<compile_context>
chip_gen: v7x
topology: tpu7x:2x2x1
jax: 0.10.0
libtpu: 0.0.40
codegen_flags: <defaults>
</compile_context>

<pallas_src>
import functools
import math

import jax
import jax.numpy as jnp
from jax.experimental import pallas as pl
from jax.experimental.pallas import tpu as pltpu


# ----------------------------------------------------------------------------
# Pallas kernels
# ----------------------------------------------------------------------------
def _conv_gemm_kernel(p_ref, w_ref, b_ref, o_ref, *, relu):
    """o = act(p @ w + b).  p:(TM,K) f32, w:(K,Cout) bf16, b:(1,Cout) f32."""
    acc = jnp.dot(p_ref[...].astype(jnp.bfloat16), w_ref[...],
                  preferred_element_type=jnp.float32)
    acc = acc + b_ref[...]
    if relu:
        acc = jnp.maximum(acc, 0.0)
    o_ref[...] = acc


def _conv_relu_pool_kernel(p_ref, w_ref, b_ref, o_ref):
    """Fused Conv2d + ReLU + MaxPool2d(2).

    p_ref: (4, Mp, K) f32 — im2col patches, one slab per 2x2 pooling tap.
    o_ref: (Mp, Cout)  = relu(max_t(p[t] @ w) + b)   (== maxpool(relu(conv)))
    """
    w = w_ref[...]
    m = None
    for t in range(4):                       # static unroll over the 4 taps
        acc = jnp.dot(p_ref[t].astype(jnp.bfloat16), w,
                      preferred_element_type=jnp.float32)
        m = acc if m is None else jnp.maximum(m, acc)
    o_ref[...] = jnp.maximum(m + b_ref[...], 0.0)


def _fcae_kernel(*refs, n_enc, n_dec):
    """All 12 FC layers of the FCAE in one kernel (weights resident in VMEM).

    Input refs layout:
      e0 (Bp, T*ic) f32, z0 (Bp, ic) f32,
      n_enc x (w bf16, b f32),
      wd1a (latent,128) bf16, wd1b (ic,128) bf16, bd1 (1,128) f32,
      (n_dec-1) x (w bf16, b f32)
    Outputs: out (Bp, T*ic) f32, latent (Bp, latent) f32.
    """
    e_ref, z0_ref = refs[0], refs[1]
    idx = 2
    enc = []
    for _ in range(n_enc):
        enc.append((refs[idx], refs[idx + 1]))
        idx += 2
    wd1a, wd1b, bd1 = refs[idx], refs[idx + 1], refs[idx + 2]
    idx += 3
    dec_rest = []
    for _ in range(n_dec - 1):
        dec_rest.append((refs[idx], refs[idx + 1]))
        idx += 2
    out_ref, latent_ref = refs[idx], refs[idx + 1]

    # ---- encoder FC stack ----
    h = e_ref[...]
    for i, (w, b) in enumerate(enc):
        h = jnp.dot(h.astype(jnp.bfloat16), w[...],
                    preferred_element_type=jnp.float32) + b[...]
        if i < n_enc - 1:
            h = jnp.maximum(h, 0.0)
    latent_ref[...] = h

    # ---- decoder FC stack;  concat([latent, z0]) @ W1 == latent@W1a + z0@W1b
    d = (jnp.dot(h.astype(jnp.bfloat16), wd1a[...],
                 preferred_element_type=jnp.float32)
         + jnp.dot(z0_ref[...].astype(jnp.bfloat16), wd1b[...],
                   preferred_element_type=jnp.float32)
         + bd1[...])
    d = jnp.maximum(d, 0.0)
    for i, (w, b) in enumerate(dec_rest):
        d = jnp.dot(d.astype(jnp.bfloat16), w[...],
                    preferred_element_type=jnp.float32) + b[...]
        if i < len(dec_rest) - 1:
            d = jnp.maximum(d, 0.0)
    out_ref[...] = d


# ----------------------------------------------------------------------------
# Pallas wrappers
# ----------------------------------------------------------------------------
def _full_spec(a):
    """BlockSpec covering the whole array as one block (grid=(1,))."""
    nd = a.ndim
    return pl.BlockSpec(a.shape, lambda i, _nd=nd: (0,) * _nd)


def _pallas_conv_gemm(patches, w2, b, relu):
    """act(patches @ w2 + b) with full-slab blocking; 2 row blocks if large."""
    M, K = patches.shape
    Cout = w2.shape[1]
    if M >= 4096 and (M // 2) % 8 == 0:      # let v7x feed both TensorCores
        tm, nblk = M // 2, 2
    else:
        tm, nblk = M, 1
    return pl.pallas_call(
        functools.partial(_conv_gemm_kernel, relu=relu),
        out_shape=jax.ShapeDtypeStruct((M, Cout), jnp.float32),
        grid=(nblk,),
        in_specs=[pl.BlockSpec((tm, K), lambda i: (i, 0)),
                  pl.BlockSpec((K, Cout), lambda i: (0, 0)),
                  pl.BlockSpec((1, Cout), lambda i: (0, 0))],
        out_specs=pl.BlockSpec((tm, Cout), lambda i: (i, 0)),
        compiler_params=pltpu.CompilerParams(dimension_semantics=("parallel",)),
    )(patches, w2, b.reshape(1, Cout))


def _im2col(x, k, stride):
    """NHWC im2col -> (N*Ho*Wo, k*k*C), column order (ky, kx, c)."""
    N, H, W, C = x.shape
    Ho = (H - k) // stride + 1
    Wo = (W - k) // stride + 1
    cols = []
    for ky in range(k):
        for kx in range(k):
            cols.append(x[:, ky: ky + stride * (Ho - 1) + 1: stride,
                            kx: kx + stride * (Wo - 1) + 1: stride, :])
    p = jnp.stack(cols, axis=3)                       # (N, Ho, Wo, k*k, C)
    return p.reshape(N * Ho * Wo, k * k * C), Ho, Wo


def conv_relu_pool(x, w, b, conv_stride, pool_stride):
    """Fused Conv2d(k, s=conv_stride, no pad) + ReLU + MaxPool2d(2, pool_stride).

    x: (N, H, W, Cin) NHWC.  w: (Cout, Cin, k, k) PyTorch Conv2d layout.
    Only the conv positions the pool actually consumes are computed.
    """
    N, H, W, C = x.shape
    Cout, Cin, k, _ = w.shape
    Ho = (H - k) // conv_stride + 1
    Wo = (W - k) // conv_stride + 1
    Hp = (Ho - 2) // pool_stride + 1
    Wp = (Wo - 2) // pool_stride + 1
    step = conv_stride * pool_stride
    taps = []
    for dy in range(2):
        for dx in range(2):
            cols = []
            for ky in range(k):
                for kx in range(k):
                    y0 = conv_stride * dy + ky
                    x0 = conv_stride * dx + kx
                    cols.append(x[:, y0: y0 + step * (Hp - 1) + 1: step,
                                    x0: x0 + step * (Wp - 1) + 1: step, :])
            taps.append(jnp.stack(cols, axis=3).reshape(N * Hp * Wp, k * k * C))
    taps = jnp.stack(taps, axis=0)                    # (4, Mp, K)
    Mp, K = taps.shape[1], taps.shape[2]
    w2 = w.transpose(2, 3, 1, 0).reshape(k * k * C, Cout).astype(jnp.bfloat16)
    out = pl.pallas_call(
        _conv_relu_pool_kernel,
        out_shape=jax.ShapeDtypeStruct((Mp, Cout), jnp.float32),
        grid=(1,),
        in_specs=[pl.BlockSpec((4, Mp, K), lambda i: (0, 0, 0)),
                  pl.BlockSpec((K, Cout), lambda i: (0, 0)),
                  pl.BlockSpec((1, Cout), lambda i: (0, 0))],
        out_specs=pl.BlockSpec((Mp, Cout), lambda i: (0, 0)),
    )(taps, w2, b.reshape(1, Cout))
    return out.reshape(N, Hp, Wp, Cout)


def conv_transpose2d(x, w, b, stride, relu):
    """PyTorch ConvTranspose2d (no padding), NHWC activations.

    x: (N, H, W, Cin).  w: (Cin, Cout, k, k) PyTorch ConvTranspose2d layout.
    """
    N, H, W, Cin = x.shape
    _, Cout, k, _ = w.shape
    Hd = (H - 1) * stride + 1
    Wd = (W - 1) * stride + 1
    # Single scatter builds the dilated + padded input (one intermediate).
    xp = jnp.zeros((N, Hd + 2 * (k - 1), Wd + 2 * (k - 1), Cin), x.dtype)
    xp = xp.at[:, k - 1: k - 1 + Hd: stride, k - 1: k - 1 + Wd: stride, :].set(x)
    # TODO(synk): per-output-phase (stride^2 sub-kernel) decomposition would
    # drop the zero-inflated K entirely; skipped — these GEMMs are tiny.
    w2 = (jnp.flip(w, axis=(2, 3)).transpose(2, 3, 0, 1)
          .reshape(k * k * Cin, Cout).astype(jnp.bfloat16))
    patches, Ho, Wo = _im2col(xp, k, 1)
    out = _pallas_conv_gemm(patches, w2, b, relu)
    return out.reshape(N, Ho, Wo, Cout)


def fcae_forward(params, z_flat, latent_dim):
    """z_flat: (B, T, ic) -> (out (B, T*ic), latent (B, latent_dim))."""
    B, T, ic = z_flat.shape
    Bp = 8                                   # min sublane tile — pad once
    e0 = jnp.pad(z_flat.reshape(B, T * ic), ((0, Bp - B), (0, 0)))
    z0 = jnp.pad(z_flat[:, 0], ((0, Bp - B), (0, 0)))

    enc, dec = params["enc_fc"], params["dec_fc"]
    ins = [e0, z0]
    for w, bb in enc:
        ins += [w.astype(jnp.bfloat16), bb.reshape(1, -1)]
    w1, b1 = dec[0]
    ins += [w1[:latent_dim].astype(jnp.bfloat16),
            w1[latent_dim:].astype(jnp.bfloat16),
            b1.reshape(1, -1)]
    for w, bb in dec[1:]:
        ins += [w.astype(jnp.bfloat16), bb.reshape(1, -1)]

    out, latent = pl.pallas_call(
        functools.partial(_fcae_kernel, n_enc=len(enc), n_dec=len(dec)),
        out_shape=(jax.ShapeDtypeStruct((Bp, T * ic), jnp.float32),
                   jax.ShapeDtypeStruct((Bp, latent_dim), jnp.float32)),
        grid=(1,),
        in_specs=[_full_spec(a) for a in ins],
        out_specs=(pl.BlockSpec((Bp, T * ic), lambda i: (0, 0)),
                   pl.BlockSpec((Bp, latent_dim), lambda i: (0, 0))),
    )(*ins)
    return out[:B], latent[:B]


# ----------------------------------------------------------------------------
# Parameter initialization (deterministic, PyTorch-like fan-in scaling)
# ----------------------------------------------------------------------------
def _init_pair(key, shape_w, fan_in, shape_b):
    k1, k2 = jax.random.split(key)
    bound = 1.0 / math.sqrt(fan_in)
    w = jax.random.uniform(k1, shape_w, jnp.float32, -bound, bound)
    b = jax.random.uniform(k2, shape_b, jnp.float32, -bound, bound)
    return w, b


def init_conv_ae_params(key, input_dim, latent_dim=32):
    """input_dim = (T, C) like the PyTorch module's (input_dim[0], input_dim[1])."""
    T, C = input_dim
    keys = iter(jax.random.split(key, 32))
    p = {}

    # encoder convs: Conv2d(C,16,3,s=2), Conv2d(16,16,3,s=2)   w:(Cout,Cin,k,k)
    p["enc_conv1_w"], p["enc_conv1_b"] = _init_pair(next(keys), (16, C, 3, 3), C * 9, (16,))
    p["enc_conv2_w"], p["enc_conv2_b"] = _init_pair(next(keys), (16, 16, 3, 3), 16 * 9, (16,))

    # FCAE: encoder_fc / decoder_fc (weights stored as (in, out))
    ic_dim = 16 * 2 * 2                 # 64
    fc_in = T * ic_dim
    enc_dims = [fc_in, 256, 256, 256, 128, 128, latent_dim]
    dec_dims = [latent_dim + ic_dim, 128, 128, 256, 256, 256, fc_in]
    p["enc_fc"] = [_init_pair(next(keys), (a, b), a, (b,))
                   for a, b in zip(enc_dims[:-1], enc_dims[1:])]
    p["dec_fc"] = [_init_pair(next(keys), (a, b), a, (b,))
                   for a, b in zip(dec_dims[:-1], dec_dims[1:])]

    # decoder conv-transposes: (16,16,3,s=2), (16,16,3,s=2), (16,C,2,s=3)
    # PyTorch ConvTranspose2d weight layout: (Cin, Cout, k, k)
    p["dec_conv1_w"], p["dec_conv1_b"] = _init_pair(next(keys), (16, 16, 3, 3), 16 * 9, (16,))
    p["dec_conv2_w"], p["dec_conv2_b"] = _init_pair(next(keys), (16, 16, 3, 3), 16 * 9, (16,))
    p["dec_conv3_w"], p["dec_conv3_b"] = _init_pair(next(keys), (16, C, 2, 2), 16 * 4, (C,))
    return p


# ----------------------------------------------------------------------------
# ConvAE forward
# ----------------------------------------------------------------------------
def conv_ae_forward(params, x, latent_dim=32):
    """x: (B, T, C, H, W) -> (out: (B, T, C, H, W), latent: (B, latent_dim))."""
    B, T, C, H, W = x.shape
    xh = x.reshape(B * T, C, H, W).transpose(0, 2, 3, 1)        # NHWC, once

    # --- encoder: two fused conv+relu+maxpool stages ---
    h = conv_relu_pool(xh, params["enc_conv1_w"], params["enc_conv1_b"],
                       conv_stride=2, pool_stride=2)            # (B*T, 7, 7, 16)
    z = conv_relu_pool(h, params["enc_conv2_w"], params["enc_conv2_b"],
                       conv_stride=2, pool_stride=1)            # (B*T, 2, 2, 16)

    # --- FCAE (single fused kernel) ---
    ic = z.shape[1] * z.shape[2] * z.shape[3]                   # 64
    z_flat = z.reshape(B, T, ic)
    fc_out, latent = fcae_forward(params, z_flat, latent_dim)
    d = fc_out.reshape(B * T, z.shape[1], z.shape[2], z.shape[3])

    # --- decoder ---
    d = conv_transpose2d(d, params["dec_conv1_w"], params["dec_conv1_b"], 2, True)
    d = conv_transpose2d(d, params["dec_conv2_w"], params["dec_conv2_b"], 2, True)
    d = conv_transpose2d(d, params["dec_conv3_w"], params["dec_conv3_b"], 3, False)

    out = d.transpose(0, 3, 1, 2).reshape(B, T, C, H, W)        # back to NCHW
    return out, latent


# ----------------------------------------------------------------------------
if __name__ == "__main__":
    # H = W = 32 is what the architecture implies: the encoder must reach a
    # 16 x 2 x 2 feature map for the FCAE (constructed with 16*2*2 = 64).
    B, T, C, H, W = 2, 4, 3, 32, 32

    key = jax.random.PRNGKey(0)
    k_param, k_data = jax.random.split(key)
    params = init_conv_ae_params(k_param, input_dim=(T, C), latent_dim=32)
    x = jax.random.normal(k_data, (B, T, C, H, W), dtype=jnp.float32)

    fwd = jax.jit(conv_ae_forward)
    out, latent = fwd(params, x)
    out = jax.block_until_ready(out)
    latent = jax.block_until_ready(latent)

    assert out.shape == (B, T, C, H, W), out.shape
    assert latent.shape == (B, 32), latent.shape
    assert jnp.all(jnp.isfinite(out)) and jnp.all(jnp.isfinite(latent))
    print("KERNEL_OK")
</pallas_src>

<mosaic_0001>
module attributes {stable_mosaic.version = 11 : i64} {
  func.func @_conv_relu_pool_kernel(%arg0: i32, %arg1: memref<4x392x27xf32, #tpu.memory_space<vmem>>, %arg2: memref<27x16xbf16, #tpu.memory_space<vmem>>, %arg3: memref<1x16xf32, #tpu.memory_space<vmem>>, %arg4: memref<392x16xf32, #tpu.memory_space<vmem>>) attributes {dimension_semantics = [#tpu.dimension_semantics<arbitrary>], iteration_bounds = array<i64: 1>, scalar_prefetch = 0 : i64, scratch_operands = 0 : i64, tpu.core_type = #tpu.core_type<tc>, window_params = [{pipeline_mode = #tpu.pipeline_mode<synchronous>, transform_indices = @transform_0, window_bounds = array<i64: 4, 392, 27>}, {pipeline_mode = #tpu.pipeline_mode<synchronous>, transform_indices = @transform_1, window_bounds = array<i64: 27, 16>}, {pipeline_mode = #tpu.pipeline_mode<synchronous>, transform_indices = @transform_2, window_bounds = array<i64: 1, 16>}, {pipeline_mode = #tpu.pipeline_mode<synchronous>, transform_indices = @transform_3, window_bounds = array<i64: 392, 16>}]} {
    %c0 = arith.constant 0 : index
    %c0_0 = arith.constant 0 : index
    %0 = vector.load %arg2[%c0, %c0_0] : memref<27x16xbf16, #tpu.memory_space<vmem>>, vector<27x16xbf16>
    %c0_1 = arith.constant 0 : index
    %c0_2 = arith.constant 0 : index
    %c0_3 = arith.constant 0 : index
    %1 = vector.load %arg1[%c0_1, %c0_2, %c0_3] : memref<4x392x27xf32, #tpu.memory_space<vmem>>, vector<1x392x27xf32>
    %2 = vector.shape_cast %1 : vector<1x392x27xf32> to vector<392x27xf32>
    %3 = arith.truncf %2 : vector<392x27xf32> to vector<392x27xbf16>
    %cst = arith.constant dense<0.000000e+00> : vector<392x16xf32>
    %4 = tpu.matmul %3, %0, %cst {dimension_numbers = #tpu.dot_dimension_numbers<[1], [0], [0], [1], [0, 0, 1, 1], [], []>} : vector<392x27xbf16>, vector<27x16xbf16>, vector<392x16xf32> -> vector<392x16xf32>
    %c1 = arith.constant 1 : index
    %c0_4 = arith.constant 0 : index
    %c0_5 = arith.constant 0 : index
    %5 = vector.load %arg1[%c1, %c0_4, %c0_5] : memref<4x392x27xf32, #tpu.memory_space<vmem>>, vector<1x392x27xf32>
    %6 = vector.shape_cast %5 : vector<1x392x27xf32> to vector<392x27xf32>
    %7 = arith.truncf %6 : vector<392x27xf32> to vector<392x27xbf16>
    %cst_6 = arith.constant dense<0.000000e+00> : vector<392x16xf32>
    %8 = tpu.matmul %7, %0, %cst_6 {dimension_numbers = #tpu.dot_dimension_numbers<[1], [0], [0], [1], [0, 0, 1, 1], [], []>} : vector<392x27xbf16>, vector<27x16xbf16>, vector<392x16xf32> -> vector<392x16xf32>
    %9 = arith.maximumf %4, %8 : vector<392x16xf32>
    %c2 = arith.constant 2 : index
    %c0_7 = arith.constant 0 : index
    %c0_8 = arith.constant 0 : index
    %10 = vector.load %arg1[%c2, %c0_7, %c0_8] : memref<4x392x27xf32, #tpu.memory_space<vmem>>, vector<1x392x27xf32>
    %11 = vector.shape_cast %10 : vector<1x392x27xf32> to vector<392x27xf32>
    %12 = arith.truncf %11 : vector<392x27xf32> to vector<392x27xbf16>
    %cst_9 = arith.constant dense<0.000000e+00> : vector<392x16xf32>
    %13 = tpu.matmul %12, %0, %cst_9 {dimension_numbers = #tpu.dot_dimension_numbers<[1], [0], [0], [1], [0, 0, 1, 1], [], []>} : vector<392x27xbf16>, vector<27x16xbf16>, vector<392x16xf32> -> vector<392x16xf32>
    %14 = arith.maximumf %9, %13 : vector<392x16xf32>
    %c3 = arith.constant 3 : index
    %c0_10 = arith.constant 0 : index
    %c0_11 = arith.constant 0 : index
    %15 = vector.load %arg1[%c3, %c0_10, %c0_11] : memref<4x392x27xf32, #tpu.memory_space<vmem>>, vector<1x392x27xf32>
    %16 = vector.shape_cast %15 : vector<1x392x27xf32> to vector<392x27xf32>
    %17 = arith.truncf %16 : vector<392x27xf32> to vector<392x27xbf16>
    %cst_12 = arith.constant dense<0.000000e+00> : vector<392x16xf32>
    %18 = tpu.matmul %17, %0, %cst_12 {dimension_numbers = #tpu.dot_dimension_numbers<[1], [0], [0], [1], [0, 0, 1, 1], [], []>} : vector<392x27xbf16>, vector<27x16xbf16>, vector<392x16xf32> -> vector<392x16xf32>
    %19 = arith.maximumf %14, %18 : vector<392x16xf32>
    %c0_13 = arith.constant 0 : index
    %c0_14 = arith.constant 0 : index
    %20 = vector.load %arg3[%c0_13, %c0_14] : memref<1x16xf32, #tpu.memory_space<vmem>>, vector<1x16xf32>
    %21 = vector.broadcast %20 : vector<1x16xf32> to vector<392x16xf32>
    %22 = arith.addf %19, %21 : vector<392x16xf32>
    %cst_15 = arith.constant 0.000000e+00 : f32
    %23 = vector.broadcast %cst_15 : f32 to vector<392x16xf32>
    %24 = arith.maximumf %22, %23 : vector<392x16xf32>
    %c0_16 = arith.constant 0 : index
    %c0_17 = arith.constant 0 : index
    %25 = vector.load %arg4[%c0_16, %c0_17] : memref<392x16xf32, #tpu.memory_space<vmem>>, vector<392x16xf32>
    tpu.vector_store %arg4[%c0_16, %c0_17], %24 {strides = array<i32>} : memref<392x16xf32, #tpu.memory_space<vmem>>, vector<392x16xf32>,
    return
  }
  func.func @transform_0(%arg0: i32) -> (i32, i32, i32) {
    %c0_i32 = arith.constant 0 : i32
    %c0_i32_0 = arith.constant 0 : i32
    %c0_i32_1 = arith.constant 0 : i32
    %c0_i32_2 = arith.constant 0 : i32
    return %c0_i32, %c0_i32_0, %c0_i32_1 : i32, i32, i32
  }
  func.func @transform_1(%arg0: i32) -> (i32, i32) {
    %c0_i32 = arith.constant 0 : i32
    %c0_i32_0 = arith.constant 0 : i32
    %c0_i32_1 = arith.constant 0 : i32
    return %c0_i32, %c0_i32_0 : i32, i32
  }
  func.func @transform_2(%arg0: i32) -> (i32, i32) {
    %c0_i32 = arith.constant 0 : i32
    %c0_i32_0 = arith.constant 0 : i32
    %c0_i32_1 = arith.constant 0 : i32
    return %c0_i32, %c0_i32_0 : i32, i32
  }
  func.func @transform_3(%arg0: i32) -> (i32, i32) {
    %c0_i32 = arith.constant 0 : i32
    %c0_i32_0 = arith.constant 0 : i32
    %c0_i32_1 = arith.constant 0 : i32
    return %c0_i32, %c0_i32_0 : i32, i32
  }
}

module attributes {stable_mosaic.version = 11 : i64} {
  func.func @_conv_relu_pool_kernel(%arg0: i32, %arg1: memref<4x32x144xf32, #tpu.memory_space<vmem>>, %arg2: memref<144x16xbf16, #tpu.memory_space<vmem>>, %arg3: memref<1x16xf32, #tpu.memory_space<vmem>>, %arg4: memref<32x16xf32, #tpu.memory_space<vmem>>) attributes {dimension_semantics = [#tpu.dimension_semantics<arbitrary>], iteration_bounds = array<i64: 1>, scalar_prefetch = 0 : i64, scratch_operands = 0 : i64, tpu.core_type = #tpu.core_type<tc>, window_params = [{pipeline_mode = #tpu.pipeline_mode<synchronous>, transform_indices = @transform_0, window_bounds = array<i64: 4, 32, 144>}, {pipeline_mode = #tpu.pipeline_mode<synchronous>, transform_indices = @transform_1, window_bounds = array<i64: 144, 16>}, {pipeline_mode = #tpu.pipeline_mode<synchronous>, transform_indices = @transform_2, window_bounds = array<i64: 1, 16>}, {pipeline_mode = #tpu.pipeline_mode<synchronous>, transform_indices = @transform_3, window_bounds = array<i64: 32, 16>}]} {
    %c0 = arith.constant 0 : index
    %c0_0 = arith.constant 0 : index
    %0 = vector.load %arg2[%c0, %c0_0] : memref<144x16xbf16, #tpu.memory_space<vmem>>, vector<144x16xbf16>
    %c0_1 = arith.constant 0 : index
    %c0_2 = arith.constant 0 : index
    %c0_3 = arith.constant 0 : index
    %1 = vector.load %arg1[%c0_1, %c0_2, %c0_3] : memref<4x32x144xf32, #tpu.memory_space<vmem>>, vector<1x32x144xf32>
    %2 = vector.shape_cast %1 : vector<1x32x144xf32> to vector<32x144xf32>
    %3 = arith.truncf %2 : vector<32x144xf32> to vector<32x144xbf16>
    %cst = arith.constant dense<0.000000e+00> : vector<32x16xf32>
    %4 = tpu.matmul %3, %0, %cst {dimension_numbers = #tpu.dot_dimension_numbers<[1], [0], [0], [1], [0, 0, 1, 1], [], []>} : vector<32x144xbf16>, vector<144x16xbf16>, vector<32x16xf32> -> vector<32x16xf32>
    %c1 = arith.constant 1 : index
    %c0_4 = arith.constant 0 : index
    %c0_5 = arith.constant 0 : index
    %5 = vector.load %arg1[%c1, %c0_4, %c0_5] : memref<4x32x144xf32, #tpu.memory_space<vmem>>, vector<1x32x144xf32>
    %6 = vector.shape_cast %5 : vector<1x32x144xf32> to vector<32x144xf32>
    %7 = arith.truncf %6 : vector<32x144xf32> to vector<32x144xbf16>
    %cst_6 = arith.constant dense<0.000000e+00> : vector<32x16xf32>
    %8 = tpu.matmul %7, %0, %cst_6 {dimension_numbers = #tpu.dot_dimension_numbers<[1], [0], [0], [1], [0, 0, 1, 1], [], []>} : vector<32x144xbf16>, vector<144x16xbf16>, vector<32x16xf32> -> vector<32x16xf32>
    %9 = arith.maximumf %4, %8 : vector<32x16xf32>
    %c2 = arith.constant 2 : index
    %c0_7 = arith.constant 0 : index
    %c0_8 = arith.constant 0 : index
    %10 = vector.load %arg1[%c2, %c0_7, %c0_8] : memref<4x32x144xf32, #tpu.memory_space<vmem>>, vector<1x32x144xf32>
    %11 = vector.shape_cast %10 : vector<1x32x144xf32> to vector<32x144xf32>
    %12 = arith.truncf %11 : vector<32x144xf32> to vector<32x144xbf16>
    %cst_9 = arith.constant dense<0.000000e+00> : vector<32x16xf32>
    %13 = tpu.matmul %12, %0, %cst_9 {dimension_numbers = #tpu.dot_dimension_numbers<[1], [0], [0], [1], [0, 0, 1, 1], [], []>} : vector<32x144xbf16>, vector<144x16xbf16>, vector<32x16xf32> -> vector<32x16xf32>
    %14 = arith.maximumf %9, %13 : vector<32x16xf32>
    %c3 = arith.constant 3 : index
    %c0_10 = arith.constant 0 : index
    %c0_11 = arith.constant 0 : index
    %15 = vector.load %arg1[%c3, %c0_10, %c0_11] : memref<4x32x144xf32, #tpu.memory_space<vmem>>, vector<1x32x144xf32>
    %16 = vector.shape_cast %15 : vector<1x32x144xf32> to vector<32x144xf32>
    %17 = arith.truncf %16 : vector<32x144xf32> to vector<32x144xbf16>
    %cst_12 = arith.constant dense<0.000000e+00> : vector<32x16xf32>
    %18 = tpu.matmul %17, %0, %cst_12 {dimension_numbers = #tpu.dot_dimension_numbers<[1], [0], [0], [1], [0, 0, 1, 1], [], []>} : vector<32x144xbf16>, vector<144x16xbf16>, vector<32x16xf32> -> vector<32x16xf32>
    %19 = arith.maximumf %14, %18 : vector<32x16xf32>
    %c0_13 = arith.constant 0 : index
    %c0_14 = arith.constant 0 : index
    %20 = vector.load %arg3[%c0_13, %c0_14] : memref<1x16xf32, #tpu.memory_space<vmem>>, vector<1x16xf32>
    %21 = vector.broadcast %20 : vector<1x16xf32> to vector<32x16xf32>
    %22 = arith.addf %19, %21 : vector<32x16xf32>
    %cst_15 = arith.constant 0.000000e+00 : f32
    %23 = vector.broadcast %cst_15 : f32 to vector<32x16xf32>
    %24 = arith.maximumf %22, %23 : vector<32x16xf32>
    %c0_16 = arith.constant 0 : index
    %c0_17 = arith.constant 0 : index
    %25 = vector.load %arg4[%c0_16, %c0_17] : memref<32x16xf32, #tpu.memory_space<vmem>>, vector<32x16xf32>
    tpu.vector_store %arg4[%c0_16, %c0_17], %24 {strides = array<i32>} : memref<32x16xf32, #tpu.memory_space<vmem>>, vector<32x16xf32>,
    return
  }
  func.func @transform_0(%arg0: i32) -> (i32, i32, i32) {
    %c0_i32 = arith.constant 0 : i32
    %c0_i32_0 = arith.constant 0 : i32
    %c0_i32_1 = arith.constant 0 : i32
    %c0_i32_2 = arith.constant 0 : i32
    return %c0_i32, %c0_i32_0, %c0_i32_1 : i32, i32, i32
  }
  func.func @transform_1(%arg0: i32) -> (i32, i32) {
    %c0_i32 = arith.constant 0 : i32
    %c0_i32_0 = arith.constant 0 : i32
    %c0_i32_1 = arith.constant 0 : i32
    return %c0_i32, %c0_i32_0 : i32, i32
  }
  func.func @transform_2(%arg0: i32) -> (i32, i32) {
    %c0_i32 = arith.constant 0 : i32
    %c0_i32_0 = arith.constant 0 : i32
    %c0_i32_1 = arith.constant 0 : i32
    return %c0_i32, %c0_i32_0 : i32, i32
  }
  func.func @transform_3(%arg0: i32) -> (i32, i32) {
    %c0_i32 = arith.constant 0 : i32
    %c0_i32_0 = arith.constant 0 : i32
    %c0_i32_1 = arith.constant 0 : i32
    return %c0_i32, %c0_i32_0 : i32, i32
  }
}

module attributes {stable_mosaic.version = 11 : i64} {
  func.func @_fcae_kernel(%arg0: i32, %arg1: memref<8x256xf32, #tpu.memory_space<vmem>>, %arg2: memref<8x64xf32, #tpu.memory_space<vmem>>, %arg3: memref<256x256xbf16, #tpu.memory_space<vmem>>, %arg4: memref<1x256xf32, #tpu.memory_space<vmem>>, %arg5: memref<256x256xbf16, #tpu.memory_space<vmem>>, %arg6: memref<1x256xf32, #tpu.memory_space<vmem>>, %arg7: memref<256x256xbf16, #tpu.memory_space<vmem>>, %arg8: memref<1x256xf32, #tpu.memory_space<vmem>>, %arg9: memref<256x128xbf16, #tpu.memory_space<vmem>>, %arg10: memref<1x128xf32, #tpu.memory_space<vmem>>, %arg11: memref<128x128xbf16, #tpu.memory_space<vmem>>, %arg12: memref<1x128xf32, #tpu.memory_space<vmem>>, %arg13: memref<128x32xbf16, #tpu.memory_space<vmem>>, %arg14: memref<1x32xf32, #tpu.memory_space<vmem>>, %arg15: memref<32x128xbf16, #tpu.memory_space<vmem>>, %arg16: memref<64x128xbf16, #tpu.memory_space<vmem>>, %arg17: memref<1x128xf32, #tpu.memory_space<vmem>>, %arg18: memref<128x128xbf16, #tpu.memory_space<vmem>>, %arg19: memref<1x128xf32, #tpu.memory_space<vmem>>, %arg20: memref<128x256xbf16, #tpu.memory_space<vmem>>, %arg21: memref<1x256xf32, #tpu.memory_space<vmem>>, %arg22: memref<256x256xbf16, #tpu.memory_space<vmem>>, %arg23: memref<1x256xf32, #tpu.memory_space<vmem>>, %arg24: memref<256x256xbf16, #tpu.memory_space<vmem>>, %arg25: memref<1x256xf32, #tpu.memory_space<vmem>>, %arg26: memref<256x256xbf16, #tpu.memory_space<vmem>>, %arg27: memref<1x256xf32, #tpu.memory_space<vmem>>, %arg28: memref<8x256xf32, #tpu.memory_space<vmem>>, %arg29: memref<8x32xf32, #tpu.memory_space<vmem>>) attributes {dimension_semantics = [#tpu.dimension_semantics<arbitrary>], iteration_bounds = array<i64: 1>, scalar_prefetch = 0 : i64, scratch_operands = 0 : i64, tpu.core_type = #tpu.core_type<tc>, window_params = [{pipeline_mode = #tpu.pipeline_mode<synchronous>, transform_indices = @transform_0, window_bounds = array<i64: 8, 256>}, {pipeline_mode = #tpu.pipeline_mode<synchronous>, transform_indices = @transform_1, window_bounds = array<i64: 8, 64>}, {pipeline_mode = #tpu.pipeline_mode<synchronous>, transform_indices = @transform_2, window_bounds = array<i64: 256, 256>}, {pipeline_mode = #tpu.pipeline_mode<synchronous>, transform_indices = @transform_3, window_bounds = array<i64: 1, 256>}, {pipeline_mode = #tpu.pipeline_mode<synchronous>, transform_indices = @transform_4, window_bounds = array<i64: 256, 256>}, {pipeline_mode = #tpu.pipeline_mode<synchronous>, transform_indices = @transform_5, window_bounds = array<i64: 1, 256>}, {pipeline_mode = #tpu.pipeline_mode<synchronous>, transform_indices = @transform_6, window_bounds = array<i64: 256, 256>}, {pipeline_mode = #tpu.pipeline_mode<synchronous>, transform_indices = @transform_7, window_bounds = array<i64: 1, 256>}, {pipeline_mode = #tpu.pipeline_mode<synchronous>, transform_indices = @transform_8, window_bounds = array<i64: 256, 128>}, {pipeline_mode = #tpu.pipeline_mode<synchronous>, transform_indices = @transform_9, window_bounds = array<i64: 1, 128>}, {pipeline_mode = #tpu.pipeline_mode<synchronous>, transform_indices = @transform_10, window_bounds = array<i64: 128, 128>}, {pipeline_mode = #tpu.pipeline_mode<synchronous>, transform_indices = @transform_11, window_bounds = array<i64: 1, 128>}, {pipeline_mode = #tpu.pipeline_mode<synchronous>, transform_indices = @transform_12, window_bounds = array<i64: 128, 32>}, {pipeline_mode = #tpu.pipeline_mode<synchronous>, transform_indices = @transform_13, window_bounds = array<i64: 1, 32>}, {pipeline_mode = #tpu.pipeline_mode<synchronous>, transform_indices = @transform_14, window_bounds = array<i64: 32, 128>}, {pipeline_mode = #tpu.pipeline_mode<synchronous>, transform_indices = @transform_15, window_bounds = array<i64: 64, 128>}, {pipeline_mode = #tpu.pipeline_mode<synchronous>, transform_indices = @transform_16, window_bounds = array<i64: 1, 128>}, {pipeline_mode = #tpu.pipeline_mode<synchronous>, transform_indices = @transform_17, window_bounds = array<i64: 128, 128>}, {pipeline_mode = #tpu.pipeline_mode<synchronous>, transform_indices = @transform_18, window_bounds = array<i64: 1, 128>}, {pipeline_mode = #tpu.pipeline_mode<synchronous>, transform_indices = @transform_19, window_bounds = array<i64: 128, 256>}, {pipeline_mode = #tpu.pipeline_mode<synchronous>, transform_indices = @transform_20, window_bounds = array<i64: 1, 256>}, {pipeline_mode = #tpu.pipeline_mode<synchronous>, transform_indices = @transform_21, window_bounds = array<i64: 256, 256>}, {pipeline_mode = #tpu.pipeline_mode<synchronous>, transform_indices = @transform_22, window_bounds = array<i64: 1, 256>}, {pipeline_mode = #tpu.pipeline_mode<synchronous>, transform_indices = @transform_23, window_bounds = array<i64: 256, 256>}, {pipeline_mode = #tpu.pipeline_mode<synchronous>, transform_indices = @transform_24, window_bounds = array<i64: 1, 256>}, {pipeline_mode = #tpu.pipeline_mode<synchronous>, transform_indices = @transform_25, window_bounds = array<i64: 256, 256>}, {pipeline_mode = #tpu.pipeline_mode<synchronous>, transform_indices = @transform_26, window_bounds = array<i64: 1, 256>}, {pipeline_mode = #tpu.pipeline_mode<synchronous>, transform_indices = @transform_27, window_bounds = array<i64: 8, 256>}, {pipeline_mode = #tpu.pipeline_mode<synchronous>, transform_indices = @transform_28, window_bounds = array<i64: 8, 32>}]} {
    %c0 = arith.constant 0 : index
    %c0_0 = arith.constant 0 : index
    %0 = vector.load %arg1[%c0, %c0_0] : memref<8x256xf32, #tpu.memory_space<vmem>>, vector<8x256xf32>
    %1 = arith.truncf %0 : vector<8x256xf32> to vector<8x256xbf16>
    %c0_1 = arith.constant 0 : index
    %c0_2 = arith.constant 0 : index
    %2 = vector.load %arg3[%c0_1, %c0_2] : memref<256x256xbf16, #tpu.memory_space<vmem>>, vector<256x256xbf16>
    %cst = arith.constant dense<0.000000e+00> : vector<8x256xf32>
    %3 = tpu.matmul %1, %2, %cst {dimension_numbers = #tpu.dot_dimension_numbers<[1], [0], [0], [1], [0, 0, 1, 1], [], []>} : vector<8x256xbf16>, vector<256x256xbf16>, vector<8x256xf32> -> vector<8x256xf32>
    %c0_3 = arith.constant 0 : index
    %c0_4 = arith.constant 0 : index
    %4 = vector.load %arg4[%c0_3, %c0_4] : memref<1x256xf32, #tpu.memory_space<vmem>>, vector<1x256xf32>
    %5 = vector.broadcast %4 : vector<1x256xf32> to vector<8x256xf32>
    %6 = arith.addf %3, %5 : vector<8x256xf32>
    %cst_5 = arith.constant 0.000000e+00 : f32
    %7 = vector.broadcast %cst_5 : f32 to vector<8x256xf32>
    %8 = arith.maximumf %6, %7 : vector<8x256xf32>
    %9 = arith.truncf %8 : vector<8x256xf32> to vector<8x256xbf16>
    %c0_6 = arith.constant 0 : index
    %c0_7 = arith.constant 0 : index
    %10 = vector.load %arg5[%c0_6, %c0_7] : memref<256x256xbf16, #tpu.memory_space<vmem>>, vector<256x256xbf16>
    %cst_8 = arith.constant dense<0.000000e+00> : vector<8x256xf32>
    %11 = tpu.matmul %9, %10, %cst_8 {dimension_numbers = #tpu.dot_dimension_numbers<[1], [0], [0], [1], [0, 0, 1, 1], [], []>} : vector<8x256xbf16>, vector<256x256xbf16>, vector<8x256xf32> -> vector<8x256xf32>
    %c0_9 = arith.constant 0 : index
    %c0_10 = arith.constant 0 : index
    %12 = vector.load %arg6[%c0_9, %c0_10] : memref<1x256xf32, #tpu.memory_space<vmem>>, vector<1x256xf32>
    %13 = vector.broadcast %12 : vector<1x256xf32> to vector<8x256xf32>
    %14 = arith.addf %11, %13 : vector<8x256xf32>
    %cst_11 = arith.constant 0.000000e+00 : f32
    %15 = vector.broadcast %cst_11 : f32 to vector<8x256xf32>
    %16 = arith.maximumf %14, %15 : vector<8x256xf32>
    %17 = arith.truncf %16 : vector<8x256xf32> to vector<8x256xbf16>
    %c0_12 = arith.constant 0 : index
    %c0_13 = arith.constant 0 : index
    %18 = vector.load %arg7[%c0_12, %c0_13] : memref<256x256xbf16, #tpu.memory_space<vmem>>, vector<256x256xbf16>
    %cst_14 = arith.constant dense<0.000000e+00> : vector<8x256xf32>
    %19 = tpu.matmul %17, %18, %cst_14 {dimension_numbers = #tpu.dot_dimension_numbers<[1], [0], [0], [1], [0, 0, 1, 1], [], []>} : vector<8x256xbf16>, vector<256x256xbf16>, vector<8x256xf32> -> vector<8x256xf32>
    %c0_15 = arith.constant 0 : index
    %c0_16 = arith.constant 0 : index
    %20 = vector.load %arg8[%c0_15, %c0_16] : memref<1x256xf32, #tpu.memory_space<vmem>>, vector<1x256xf32>
    %21 = vector.broadcast %20 : vector<1x256xf32> to vector<8x256xf32>
    %22 = arith.addf %19, %21 : vector<8x256xf32>
    %cst_17 = arith.constant 0.000000e+00 : f32
    %23 = vector.broadcast %cst_17 : f32 to vector<8x256xf32>
    %24 = arith.maximumf %22, %23 : vector<8x256xf32>
    %25 = arith.truncf %24 : vector<8x256xf32> to vector<8x256xbf16>
    %c0_18 = arith.constant 0 : index
    %c0_19 = arith.constant 0 : index
    %26 = vector.load %arg9[%c0_18, %c0_19] : memref<256x128xbf16, #tpu.memory_space<vmem>>, vector<256x128xbf16>
    %cst_20 = arith.constant dense<0.000000e+00> : vector<8x128xf32>
    %27 = tpu.matmul %25, %26, %cst_20 {dimension_numbers = #tpu.dot_dimension_numbers<[1], [0], [0], [1], [0, 0, 1, 1], [], []>} : vector<8x256xbf16>, vector<256x128xbf16>, vector<8x128xf32> -> vector<8x128xf32>
    %c0_21 = arith.constant 0 : index
    %c0_22 = arith.constant 0 : index
    %28 = vector.load %arg10[%c0_21, %c0_22] : memref<1x128xf32, #tpu.memory_space<vmem>>, vector<1x128xf32>
    %29 = vector.broadcast %28 : vector<1x128xf32> to vector<8x128xf32>
    %30 = arith.addf %27, %29 : vector<8x128xf32>
    %cst_23 = arith.constant 0.000000e+00 : f32
    %31 = vector.broadcast %cst_23 : f32 to vector<8x128xf32>
    %32 = arith.maximumf %30, %31 : vector<8x128xf32>
    %33 = arith.truncf %32 : vector<8x128xf32> to vector<8x128xbf16>
    %c0_24 = arith.constant 0 : index
    %c0_25 = arith.constant 0 : index
    %34 = vector.load %arg11[%c0_24, %c0_25] : memref<128x128xbf16, #tpu.memory_space<vmem>>, vector<128x128xbf16>
    %cst_26 = arith.constant dense<0.000000e+00> : vector<8x128xf32>
    %35 = tpu.matmul %33, %34, %cst_26 {dimension_numbers = #tpu.dot_dimension_numbers<[1], [0], [0], [1], [0, 0, 1, 1], [], []>} : vector<8x128xbf16>, vector<128x128xbf16>, vector<8x128xf32> -> vector<8x128xf32>
    %c0_27 = arith.constant 0 : index
    %c0_28 = arith.constant 0 : index
    %36 = vector.load %arg12[%c0_27, %c0_28] : memref<1x128xf32, #tpu.memory_space<vmem>>, vector<1x128xf32>
    %37 = vector.broadcast %36 : vector<1x128xf32> to vector<8x128xf32>
    %38 = arith.addf %35, %37 : vector<8x128xf32>
    %cst_29 = arith.constant 0.000000e+00 : f32
    %39 = vector.broadcast %cst_29 : f32 to vector<8x128xf32>
    %40 = arith.maximumf %38, %39 : vector<8x128xf32>
    %41 = arith.truncf %40 : vector<8x128xf32> to vector<8x128xbf16>
    %c0_30 = arith.constant 0 : index
    %c0_31 = arith.constant 0 : index
    %42 = vector.load %arg13[%c0_30, %c0_31] : memref<128x32xbf16, #tpu.memory_space<vmem>>, vector<128x32xbf16>
    %cst_32 = arith.constant dense<0.000000e+00> : vector<8x32xf32>
    %43 = tpu.matmul %41, %42, %cst_32 {dimension_numbers = #tpu.dot_dimension_numbers<[1], [0], [0], [1], [0, 0, 1, 1], [], []>} : vector<8x128xbf16>, vector<128x32xbf16>, vector<8x32xf32> -> vector<8x32xf32>
    %c0_33 = arith.constant 0 : index
    %c0_34 = arith.constant 0 : index
    %44 = vector.load %arg14[%c0_33, %c0_34] : memref<1x32xf32, #tpu.memory_space<vmem>>, vector<1x32xf32>
    %45 = vector.broadcast %44 : vector<1x32xf32> to vector<8x32xf32>
    %46 = arith.addf %43, %45 : vector<8x32xf32>
    %c0_35 = arith.constant 0 : index
    %c0_36 = arith.constant 0 : index
    %47 = vector.load %arg29[%c0_35, %c0_36] : memref<8x32xf32, #tpu.memory_space<vmem>>, vector<8x32xf32>
    tpu.vector_store %arg29[%c0_35, %c0_36], %46 {strides = array<i32>} : memref<8x32xf32, #tpu.memory_space<vmem>>, vector<8x32xf32>,
    %48 = arith.truncf %46 : vector<8x32xf32> to vector<8x32xbf16>
    %c0_37 = arith.constant 0 : index
    %c0_38 = arith.constant 0 : index
    %49 = vector.load %arg15[%c0_37, %c0_38] : memref<32x128xbf16, #tpu.memory_space<vmem>>, vector<32x128xbf16>
    %cst_39 = arith.constant dense<0.000000e+00> : vector<8x128xf32>
    %50 = tpu.matmul %48, %49, %cst_39 {dimension_numbers = #tpu.dot_dimension_numbers<[1], [0], [0], [1], [0, 0, 1, 1], [], []>} : vector<8x32xbf16>, vector<32x128xbf16>, vector<8x128xf32> -> vector<8x128xf32>
    %c0_40 = arith.constant 0 : index
    %c0_41 = arith.constant 0 : index
    %51 = vector.load %arg2[%c0_40, %c0_41] : memref<8x64xf32, #tpu.memory_space<vmem>>, vector<8x64xf32>
    %52 = arith.truncf %51 : vector<8x64xf32> to vector<8x64xbf16>
    %c0_42 = arith.constant 0 : index
    %c0_43 = arith.constant 0 : index
    %53 = vector.load %arg16[%c0_42, %c0_43] : memref<64x128xbf16, #tpu.memory_space<vmem>>, vector<64x128xbf16>
    %cst_44 = arith.constant dense<0.000000e+00> : vector<8x128xf32>
    %54 = tpu.matmul %52, %53, %cst_44 {dimension_numbers = #tpu.dot_dimension_numbers<[1], [0], [0], [1], [0, 0, 1, 1], [], []>} : vector<8x64xbf16>, vector<64x128xbf16>, vector<8x128xf32> -> vector<8x128xf32>
    %55 = arith.addf %50, %54 : vector<8x128xf32>
    %c0_45 = arith.constant 0 : index
    %c0_46 = arith.constant 0 : index
    %56 = vector.load %arg17[%c0_45, %c0_46] : memref<1x128xf32, #tpu.memory_space<vmem>>, vector<1x128xf32>
    %57 = vector.broadcast %56 : vector<1x128xf32> to vector<8x128xf32>
    %58 = arith.addf %55, %57 : vector<8x128xf32>
    %cst_47 = arith.constant 0.000000e+00 : f32
    %59 = vector.broadcast %cst_47 : f32 to vector<8x128xf32>
    %60 = arith.maximumf %58, %59 : vector<8x128xf32>
    %61 = arith.truncf %60 : vector<8x128xf32> to vector<8x128xbf16>
    %c0_48 = arith.constant 0 : index
    %c0_49 = arith.constant 0 : index
    %62 = vector.load %arg18[%c0_48, %c0_49] : memref<128x128xbf16, #tpu.memory_space<vmem>>, vector<128x128xbf16>
    %cst_50 = arith.constant dense<0.000000e+00> : vector<8x128xf32>
    %63 = tpu.matmul %61, %62, %cst_50 {dimension_numbers = #tpu.dot_dimension_numbers<[1], [0], [0], [1], [0, 0, 1, 1], [], []>} : vector<8x128xbf16>, vector<128x128xbf16>, vector<8x128xf32> -> vector<8x128xf32>
    %c0_51 = arith.constant 0 : index
    %c0_52 = arith.constant 0 : index
    %64 = vector.load %arg19[%c0_51, %c0_52] : memref<1x128xf32, #tpu.memory_space<vmem>>, vector<1x128xf32>
    %65 = vector.broadcast %64 : vector<1x128xf32> to vector<8x128xf32>
    %66 = arith.addf %63, %65 : vector<8x128xf32>
    %cst_53 = arith.constant 0.000000e+00 : f32
    %67 = vector.broadcast %cst_53 : f32 to vector<8x128xf32>
    %68 = arith.maximumf %66, %67 : vector<8x128xf32>
    %69 = arith.truncf %68 : vector<8x128xf32> to vector<8x128xbf16>
    %c0_54 = arith.constant 0 : index
    %c0_55 = arith.constant 0 : index
    %70 = vector.load %arg20[%c0_54, %c0_55] : memref<128x256xbf16, #tpu.memory_space<vmem>>, vector<128x256xbf16>
    %cst_56 = arith.constant dense<0.000000e+00> : vector<8x256xf32>
    %71 = tpu.matmul %69, %70, %cst_56 {dimension_numbers = #tpu.dot_dimension_numbers<[1], [0], [0], [1], [0, 0, 1, 1], [], []>} : vector<8x128xbf16>, vector<128x256xbf16>, vector<8x256xf32> -> vector<8x256xf32>
    %c0_57 = arith.constant 0 : index
    %c0_58 = arith.constant 0 : index
    %72 = vector.load %arg21[%c0_57, %c0_58] : memref<1x256xf32, #tpu.memory_space<vmem>>, vector<1x256xf32>
    %73 = vector.broadcast %72 : vector<1x256xf32> to vector<8x256xf32>
    %74 = arith.addf %71, %73 : vector<8x256xf32>
    %cst_59 = arith.constant 0.000000e+00 : f32
    %75 = vector.broadcast %cst_59 : f32 to vector<8x256xf32>
    %76 = arith.maximumf %74, %75 : vector<8x256xf32>
    %77 = arith.truncf %76 : vector<8x256xf32> to vector<8x256xbf16>
    %c0_60 = arith.constant 0 : index
    %c0_61 = arith.constant 0 : index
    %78 = vector.load %arg22[%c0_60, %c0_61] : memref<256x256xbf16, #tpu.memory_space<vmem>>, vector<256x256xbf16>
    %cst_62 = arith.constant dense<0.000000e+00> : vector<8x256xf32>
    %79 = tpu.matmul %77, %78, %cst_62 {dimension_numbers = #tpu.dot_dimension_numbers<[1], [0], [0], [1], [0, 0, 1, 1], [], []>} : vector<8x256xbf16>, vector<256x256xbf16>, vector<8x256xf32> -> vector<8x256xf32>
    %c0_63 = arith.constant 0 : index
    %c0_64 = arith.constant 0 : index
    %80 = vector.load %arg23[%c0_63, %c0_64] : memref<1x256xf32, #tpu.memory_space<vmem>>, vector<1x256xf32>
    %81 = vector.broadcast %80 : vector<1x256xf32> to vector<8x256xf32>
    %82 = arith.addf %79, %81 : vector<8x256xf32>
    %cst_65 = arith.constant 0.000000e+00 : f32
    %83 = vector.broadcast %cst_65 : f32 to vector<8x256xf32>
    %84 = arith.maximumf %82, %83 : vector<8x256xf32>
    %85 = arith.truncf %84 : vector<8x256xf32> to vector<8x256xbf16>
    %c0_66 = arith.constant 0 : index
    %c0_67 = arith.constant 0 : index
    %86 = vector.load %arg24[%c0_66, %c0_67] : memref<256x256xbf16, #tpu.memory_space<vmem>>, vector<256x256xbf16>
    %cst_68 = arith.constant dense<0.000000e+00> : vector<8x256xf32>
    %87 = tpu.matmul %85, %86, %cst_68 {dimension_numbers = #tpu.dot_dimension_numbers<[1], [0], [0], [1], [0, 0, 1, 1], [], []>} : vector<8x256xbf16>, vector<256x256xbf16>, vector<8x256xf32> -> vector<8x256xf32>
    %c0_69 = arith.constant 0 : index
    %c0_70 = arith.constant 0 : index
    %88 = vector.load %arg25[%c0_69, %c0_70] : memref<1x256xf32, #tpu.memory_space<vmem>>, vector<1x256xf32>
    %89 = vector.broadcast %88 : vector<1x256xf32> to vector<8x256xf32>
    %90 = arith.addf %87, %89 : vector<8x256xf32>
    %cst_71 = arith.constant 0.000000e+00 : f32
    %91 = vector.broadcast %cst_71 : f32 to vector<8x256xf32>
    %92 = arith.maximumf %90, %91 : vector<8x256xf32>
    %93 = arith.truncf %92 : vector<8x256xf32> to vector<8x256xbf16>
    %c0_72 = arith.constant 0 : index
    %c0_73 = arith.constant 0 : index
    %94 = vector.load %arg26[%c0_72, %c0_73] : memref<256x256xbf16, #tpu.memory_space<vmem>>, vector<256x256xbf16>
    %cst_74 = arith.constant dense<0.000000e+00> : vector<8x256xf32>
    %95 = tpu.matmul %93, %94, %cst_74 {dimension_numbers = #tpu.dot_dimension_numbers<[1], [0], [0], [1], [0, 0, 1, 1], [], []>} : vector<8x256xbf16>, vector<256x256xbf16>, vector<8x256xf32> -> vector<8x256xf32>
    %c0_75 = arith.constant 0 : index
    %c0_76 = arith.constant 0 : index
    %96 = vector.load %arg27[%c0_75, %c0_76] : memref<1x256xf32, #tpu.memory_space<vmem>>, vector<1x256xf32>
    %97 = vector.broadcast %96 : vector<1x256xf32> to vector<8x256xf32>
    %98 = arith.addf %95, %97 : vector<8x256xf32>
    %c0_77 = arith.constant 0 : index
    %c0_78 = arith.constant 0 : index
    %99 = vector.load %arg28[%c0_77, %c0_78] : memref<8x256xf32, #tpu.memory_space<vmem>>, vector<8x256xf32>
    tpu.vector_store %arg28[%c0_77, %c0_78], %98 {strides = array<i32>} : memref<8x256xf32, #tpu.memory_space<vmem>>, vector<8x256xf32>,
    return
  }
  func.func @transform_0(%arg0: i32) -> (i32, i32) {
    %c0_i32 = arith.constant 0 : i32
    %c0_i32_0 = arith.constant 0 : i32
    %c0_i32_1 = arith.constant 0 : i32
    return %c0_i32, %c0_i32_0 : i32, i32
  }
  func.func @transform_1(%arg0: i32) -> (i32, i32) {
    %c0_i32 = arith.constant 0 : i32
    %c0_i32_0 = arith.constant 0 : i32
    %c0_i32_1 = arith.constant 0 : i32
    return %c0_i32, %c0_i32_0 : i32, i32
  }
  func.func @transform_2(%arg0: i32) -> (i32, i32) {
    %c0_i32 = arith.constant 0 : i32
    %c0_i32_0 = arith.constant 0 : i32
    %c0_i32_1 = arith.constant 0 : i32
    return %c0_i32, %c0_i32_0 : i32, i32
  }
  func.func @transform_3(%arg0: i32) -> (i32, i32) {
    %c0_i32 = arith.constant 0 : i32
    %c0_i32_0 = arith.constant 0 : i32
    %c0_i32_1 = arith.constant 0 : i32
    return %c0_i32, %c0_i32_0 : i32, i32
  }
  func.func @transform_4(%arg0: i32) -> (i32, i32) {
    %c0_i32 = arith.constant 0 : i32
    %c0_i32_0 = arith.constant 0 : i32
    %c0_i32_1 = arith.constant 0 : i32
    return %c0_i32, %c0_i32_0 : i32, i32
  }
  func.func @transform_5(%arg0: i32) -> (i32, i32) {
    %c0_i32 = arith.constant 0 : i32
    %c0_i32_0 = arith.constant 0 : i32
    %c0_i32_1 = arith.constant 0 : i32
    return %c0_i32, %c0_i32_0 : i32, i32
  }
  func.func @transform_6(%arg0: i32) -> (i32, i32) {
    %c0_i32 = arith.constant 0 : i32
    %c0_i32_0 = arith.constant 0 : i32
    %c0_i32_1 = arith.constant 0 : i32
    return %c0_i32, %c0_i32_0 : i32, i32
  }
  func.func @transform_7(%arg0: i32) -> (i32, i32) {
    %c0_i32 = arith.constant 0 : i32
    %c0_i32_0 = arith.constant 0 : i32
    %c0_i32_1 = arith.constant 0 : i32
    return %c0_i32, %c0_i32_0 : i32, i32
  }
  func.func @transform_8(%arg0: i32) -> (i32, i32) {
    %c0_i32 = arith.constant 0 : i32
    %c0_i32_0 = arith.constant 0 : i32
    %c0_i32_1 = arith.constant 0 : i32
    return %c0_i32, %c0_i32_0 : i32, i32
  }
  func.func @transform_9(%arg0: i32) -> (i32, i32) {
    %c0_i32 = arith.constant 0 : i32
    %c0_i32_0 = arith.constant 0 : i32
    %c0_i32_1 = arith.constant 0 : i32
    return %c0_i32, %c0_i32_0 : i32, i32
  }
  func.func @transform_10(%arg0: i32) -> (i32, i32) {
    %c0_i32 = arith.constant 0 : i32
    %c0_i32_0 = arith.constant 0 : i32
    %c0_i32_1 = arith.constant 0 : i32
    return %c0_i32, %c0_i32_0 : i32, i32
  }
  func.func @transform_11(%arg0: i32) -> (i32, i32) {
    %c0_i32 = arith.constant 0 : i32
    %c0_i32_0 = arith.constant 0 : i32
    %c0_i32_1 = arith.constant 0 : i32
    return %c0_i32, %c0_i32_0 : i32, i32
  }
  func.func @transform_12(%arg0: i32) -> (i32, i32) {
    %c0_i32 = arith.constant 0 : i32
    %c0_i32_0 = arith.constant 0 : i32
    %c0_i32_1 = arith.constant 0 : i32
    return %c0_i32, %c0_i32_0 : i32, i32
  }
  func.func @transform_13(%arg0: i32) -> (i32, i32) {
    %c0_i32 = arith.constant 0 : i32
    %c0_i32_0 = arith.constant 0 : i32
    %c0_i32_1 = arith.constant 0 : i32
    return %c0_i32, %c0_i32_0 : i32, i32
  }
  func.func @transform_14(%arg0: i32) -> (i32, i32) {
    %c0_i32 = arith.constant 0 : i32
    %c0_i32_0 = arith.constant 0 : i32
    %c0_i32_1 = arith.constant 0 : i32
    return %c0_i32, %c0_i32_0 : i32, i32
  }
  func.func @transform_15(%arg0: i32) -> (i32, i32) {
    %c0_i32 = arith.constant 0 : i32
    %c0_i32_0 = arith.constant 0 : i32
    %c0_i32_1 = arith.constant 0 : i32
    return %c0_i32, %c0_i32_0 : i32, i32
  }
  func.func @transform_16(%arg0: i32) -> (i32, i32) {
    %c0_i32 = arith.constant 0 : i32
    %c0_i32_0 = arith.constant 0 : i32
    %c0_i32_1 = arith.constant 0 : i32
    return %c0_i32, %c0_i32_0 : i32, i32
  }
  func.func @transform_17(%arg0: i32) -> (i32, i32) {
    %c0_i32 = arith.constant 0 : i32
    %c0_i32_0 = arith.constant 0 : i32
    %c0_i32_1 = arith.constant 0 : i32
    return %c0_i32, %c0_i32_0 : i32, i32
  }
  func.func @transform_18(%arg0: i32) -> (i32, i32) {
    %c0_i32 = arith.constant 0 : i32
    %c0_i32_0 = arith.constant 0 : i32
    %c0_i32_1 = arith.constant 0 : i32
    return %c0_i32, %c0_i32_0 : i32, i32
  }
  func.func @transform_19(%arg0: i32) -> (i32, i32) {
    %c0_i32 = arith.constant 0 : i32
    %c0_i32_0 = arith.constant 0 : i32
    %c0_i32_1 = arith.constant 0 : i32
    return %c0_i32, %c0_i32_0 : i32, i32
  }
  func.func @transform_20(%arg0: i32) -> (i32, i32) {
    %c0_i32 = arith.constant 0 : i32
    %c0_i32_0 = arith.constant 0 : i32
    %c0_i32_1 = arith.constant 0 : i32
    return %c0_i32, %c0_i32_0 : i32, i32
  }
  func.func @transform_21(%arg0: i32) -> (i32, i32) {
    %c0_i32 = arith.constant 0 : i32
    %c0_i32_0 = arith.constant 0 : i32
    %c0_i32_1 = arith.constant 0 : i32
    return %c0_i32, %c0_i32_0 : i32, i32
  }
  func.func @transform_22(%arg0: i32) -> (i32, i32) {
    %c0_i32 = arith.constant 0 : i32
    %c0_i32_0 = arith.constant 0 : i32
    %c0_i32_1 = arith.constant 0 : i32
    return %c0_i32, %c0_i32_0 : i32, i32
  }
  func.func @transform_23(%arg0: i32) -> (i32, i32) {
    %c0_i32 = arith.constant 0 : i32
    %c0_i32_0 = arith.constant 0 : i32
    %c0_i32_1 = arith.constant 0 : i32
    return %c0_i32, %c0_i32_0 : i32, i32
  }
  func.func @transform_24(%arg0: i32) -> (i32, i32) {
    %c0_i32 = arith.constant 0 : i32
    %c0_i32_0 = arith.constant 0 : i32
    %c0_i32_1 = arith.constant 0 : i32
    return %c0_i32, %c0_i32_0 : i32, i32
  }
  func.func @transform_25(%arg0: i32) -> (i32, i32) {
    %c0_i32 = arith.constant 0 : i32
    %c0_i32_0 = arith.constant 0 : i32
    %c0_i32_1 = arith.constant 0 : i32
    return %c0_i32, %c0_i32_0 : i32, i32
  }
  func.func @transform_26(%arg0: i32) -> (i32, i32) {
    %c0_i32 = arith.constant 0 : i32
    %c0_i32_0 = arith.constant 0 : i32
    %c0_i32_1 = arith.constant 0 : i32
    return %c0_i32, %c0_i32_0 : i32, i32
  }
  func.func @transform_27(%arg0: i32) -> (i32, i32) {
    %c0_i32 = arith.constant 0 : i32
    %c0_i32_0 = arith.constant 0 : i32
    %c0_i32_1 = arith.constant 0 : i32
    return %c0_i32, %c0_i32_0 : i32, i32
  }
  func.func @transform_28(%arg0: i32) -> (i32, i32) {
    %c0_i32 = arith.constant 0 : i32
    %c0_i32_0 = arith.constant 0 : i32
    %c0_i32_1 = arith.constant 0 : i32
    return %c0_i32, %c0_i32_0 : i32, i32
  }
}

module attributes {stable_mosaic.version = 11 : i64} {
  func.func @_conv_gemm_kernel(%arg0: i32, %arg1: memref<200x144xf32, #tpu.memory_space<vmem>>, %arg2: memref<144x16xbf16, #tpu.memory_space<vmem>>, %arg3: memref<1x16xf32, #tpu.memory_space<vmem>>, %arg4: memref<200x16xf32, #tpu.memory_space<vmem>>) attributes {dimension_semantics = [#tpu.dimension_semantics<parallel>], iteration_bounds = array<i64: 1>, scalar_prefetch = 0 : i64, scratch_operands = 0 : i64, tpu.core_type = #tpu.core_type<tc>, window_params = [{transform_indices = @transform_0, window_bounds = array<i64: 200, 144>}, {pipeline_mode = #tpu.pipeline_mode<synchronous>, transform_indices = @transform_1, window_bounds = array<i64: 144, 16>}, {pipeline_mode = #tpu.pipeline_mode<synchronous>, transform_indices = @transform_2, window_bounds = array<i64: 1, 16>}, {transform_indices = @transform_3, window_bounds = array<i64: 200, 16>}]} {
    %c0 = arith.constant 0 : index
    %c0_0 = arith.constant 0 : index
    %0 = vector.load %arg1[%c0, %c0_0] : memref<200x144xf32, #tpu.memory_space<vmem>>, vector<200x144xf32>
    %1 = arith.truncf %0 : vector<200x144xf32> to vector<200x144xbf16>
    %c0_1 = arith.constant 0 : index
    %c0_2 = arith.constant 0 : index
    %2 = vector.load %arg2[%c0_1, %c0_2] : memref<144x16xbf16, #tpu.memory_space<vmem>>, vector<144x16xbf16>
    %cst = arith.constant dense<0.000000e+00> : vector<200x16xf32>
    %3 = tpu.matmul %1, %2, %cst {dimension_numbers = #tpu.dot_dimension_numbers<[1], [0], [0], [1], [0, 0, 1, 1], [], []>} : vector<200x144xbf16>, vector<144x16xbf16>, vector<200x16xf32> -> vector<200x16xf32>
    %c0_3 = arith.constant 0 : index
    %c0_4 = arith.constant 0 : index
    %4 = vector.load %arg3[%c0_3, %c0_4] : memref<1x16xf32, #tpu.memory_space<vmem>>, vector<1x16xf32>
    %5 = vector.broadcast %4 : vector<1x16xf32> to vector<200x16xf32>
    %6 = arith.addf %3, %5 : vector<200x16xf32>
    %cst_5 = arith.constant 0.000000e+00 : f32
    %7 = vector.broadcast %cst_5 : f32 to vector<200x16xf32>
    %8 = arith.maximumf %6, %7 : vector<200x16xf32>
    %c0_6 = arith.constant 0 : index
    %c0_7 = arith.constant 0 : index
    %9 = vector.load %arg4[%c0_6, %c0_7] : memref<200x16xf32, #tpu.memory_space<vmem>>, vector<200x16xf32>
    tpu.vector_store %arg4[%c0_6, %c0_7], %8 {strides = array<i32>} : memref<200x16xf32, #tpu.memory_space<vmem>>, vector<200x16xf32>,
    return
  }
  func.func @transform_0(%arg0: i32) -> (i32, i32) {
    %c0_i32 = arith.constant 0 : i32
    %c0_i32_0 = arith.constant 0 : i32
    return %arg0, %c0_i32 : i32, i32
  }
  func.func @transform_1(%arg0: i32) -> (i32, i32) {
    %c0_i32 = arith.constant 0 : i32
    %c0_i32_0 = arith.constant 0 : i32
    %c0_i32_1 = arith.constant 0 : i32
    return %c0_i32, %c0_i32_0 : i32, i32
  }
  func.func @transform_2(%arg0: i32) -> (i32, i32) {
    %c0_i32 = arith.constant 0 : i32
    %c0_i32_0 = arith.constant 0 : i32
    %c0_i32_1 = arith.constant 0 : i32
    return %c0_i32, %c0_i32_0 : i32, i32
  }
  func.func @transform_3(%arg0: i32) -> (i32, i32) {
    %c0_i32 = arith.constant 0 : i32
    %c0_i32_0 = arith.constant 0 : i32
    return %arg0, %c0_i32 : i32, i32
  }
}

module attributes {stable_mosaic.version = 11 : i64} {
  func.func @_conv_gemm_kernel(%arg0: i32, %arg1: memref<968x144xf32, #tpu.memory_space<vmem>>, %arg2: memref<144x16xbf16, #tpu.memory_space<vmem>>, %arg3: memref<1x16xf32, #tpu.memory_space<vmem>>, %arg4: memref<968x16xf32, #tpu.memory_space<vmem>>) attributes {dimension_semantics = [#tpu.dimension_semantics<parallel>], iteration_bounds = array<i64: 1>, scalar_prefetch = 0 : i64, scratch_operands = 0 : i64, tpu.core_type = #tpu.core_type<tc>, window_params = [{transform_indices = @transform_0, window_bounds = array<i64: 968, 144>}, {pipeline_mode = #tpu.pipeline_mode<synchronous>, transform_indices = @transform_1, window_bounds = array<i64: 144, 16>}, {pipeline_mode = #tpu.pipeline_mode<synchronous>, transform_indices = @transform_2, window_bounds = array<i64: 1, 16>}, {transform_indices = @transform_3, window_bounds = array<i64: 968, 16>}]} {
    %c0 = arith.constant 0 : index
    %c0_0 = arith.constant 0 : index
    %0 = vector.load %arg1[%c0, %c0_0] : memref<968x144xf32, #tpu.memory_space<vmem>>, vector<968x144xf32>
    %1 = arith.truncf %0 : vector<968x144xf32> to vector<968x144xbf16>
    %c0_1 = arith.constant 0 : index
    %c0_2 = arith.constant 0 : index
    %2 = vector.load %arg2[%c0_1, %c0_2] : memref<144x16xbf16, #tpu.memory_space<vmem>>, vector<144x16xbf16>
    %cst = arith.constant dense<0.000000e+00> : vector<968x16xf32>
    %3 = tpu.matmul %1, %2, %cst {dimension_numbers = #tpu.dot_dimension_numbers<[1], [0], [0], [1], [0, 0, 1, 1], [], []>} : vector<968x144xbf16>, vector<144x16xbf16>, vector<968x16xf32> -> vector<968x16xf32>
    %c0_3 = arith.constant 0 : index
    %c0_4 = arith.constant 0 : index
    %4 = vector.load %arg3[%c0_3, %c0_4] : memref<1x16xf32, #tpu.memory_space<vmem>>, vector<1x16xf32>
    %5 = vector.broadcast %4 : vector<1x16xf32> to vector<968x16xf32>
    %6 = arith.addf %3, %5 : vector<968x16xf32>
    %cst_5 = arith.constant 0.000000e+00 : f32
    %7 = vector.broadcast %cst_5 : f32 to vector<968x16xf32>
    %8 = arith.maximumf %6, %7 : vector<968x16xf32>
    %c0_6 = arith.constant 0 : index
    %c0_7 = arith.constant 0 : index
    %9 = vector.load %arg4[%c0_6, %c0_7] : memref<968x16xf32, #tpu.memory_space<vmem>>, vector<968x16xf32>
    tpu.vector_store %arg4[%c0_6, %c0_7], %8 {strides = array<i32>} : memref<968x16xf32, #tpu.memory_space<vmem>>, vector<968x16xf32>,
    return
  }
  func.func @transform_0(%arg0: i32) -> (i32, i32) {
    %c0_i32 = arith.constant 0 : i32
    %c0_i32_0 = arith.constant 0 : i32
    return %arg0, %c0_i32 : i32, i32
  }
  func.func @transform_1(%arg0: i32) -> (i32, i32) {
    %c0_i32 = arith.constant 0 : i32
    %c0_i32_0 = arith.constant 0 : i32
    %c0_i32_1 = arith.constant 0 : i32
    return %c0_i32, %c0_i32_0 : i32, i32
  }
  func.func @transform_2(%arg0: i32) -> (i32, i32) {
    %c0_i32 = arith.constant 0 : i32
    %c0_i32_0 = arith.constant 0 : i32
    %c0_i32_1 = arith.constant 0 : i32
    return %c0_i32, %c0_i32_0 : i32, i32
  }
  func.func @transform_3(%arg0: i32) -> (i32, i32) {
    %c0_i32 = arith.constant 0 : i32
    %c0_i32_0 = arith.constant 0 : i32
    return %arg0, %c0_i32 : i32, i32
  }
}

module attributes {stable_mosaic.version = 11 : i64} {
  func.func @_conv_gemm_kernel(%arg0: i32, %arg1: memref<4096x64xf32, #tpu.memory_space<vmem>>, %arg2: memref<64x3xbf16, #tpu.memory_space<vmem>>, %arg3: memref<1x3xf32, #tpu.memory_space<vmem>>, %arg4: memref<4096x3xf32, #tpu.memory_space<vmem>>) attributes {dimension_semantics = [#tpu.dimension_semantics<parallel>], iteration_bounds = array<i64: 2>, scalar_prefetch = 0 : i64, scratch_operands = 0 : i64, tpu.core_type = #tpu.core_type<tc>, window_params = [{transform_indices = @transform_0, window_bounds = array<i64: 4096, 64>}, {pipeline_mode = #tpu.pipeline_mode<synchronous>, transform_indices = @transform_1, window_bounds = array<i64: 64, 3>}, {pipeline_mode = #tpu.pipeline_mode<synchronous>, transform_indices = @transform_2, window_bounds = array<i64: 1, 3>}, {transform_indices = @transform_3, window_bounds = array<i64: 4096, 3>}]} {
    %c0 = arith.constant 0 : index
    %c0_0 = arith.constant 0 : index
    %0 = vector.load %arg1[%c0, %c0_0] : memref<4096x64xf32, #tpu.memory_space<vmem>>, vector<4096x64xf32>
    %1 = arith.truncf %0 : vector<4096x64xf32> to vector<4096x64xbf16>
    %c0_1 = arith.constant 0 : index
    %c0_2 = arith.constant 0 : index
    %2 = vector.load %arg2[%c0_1, %c0_2] : memref<64x3xbf16, #tpu.memory_space<vmem>>, vector<64x3xbf16>
    %cst = arith.constant dense<0.000000e+00> : vector<4096x3xf32>
    %3 = tpu.matmul %1, %2, %cst {dimension_numbers = #tpu.dot_dimension_numbers<[1], [0], [0], [1], [0, 0, 1, 1], [], []>} : vector<4096x64xbf16>, vector<64x3xbf16>, vector<4096x3xf32> -> vector<4096x3xf32>
    %c0_3 = arith.constant 0 : index
    %c0_4 = arith.constant 0 : index
    %4 = vector.load %arg3[%c0_3, %c0_4] : memref<1x3xf32, #tpu.memory_space<vmem>>, vector<1x3xf32>
    %5 = vector.broadcast %4 : vector<1x3xf32> to vector<4096x3xf32>
    %6 = arith.addf %3, %5 : vector<4096x3xf32>
    %c0_5 = arith.constant 0 : index
    %c0_6 = arith.constant 0 : index
    %7 = vector.load %arg4[%c0_5, %c0_6] : memref<4096x3xf32, #tpu.memory_space<vmem>>, vector<4096x3xf32>
    tpu.vector_store %arg4[%c0_5, %c0_6], %6 {strides = array<i32>} : memref<4096x3xf32, #tpu.memory_space<vmem>>, vector<4096x3xf32>,
    return
  }
  func.func @transform_0(%arg0: i32) -> (i32, i32) {
    %c0_i32 = arith.constant 0 : i32
    %c0_i32_0 = arith.constant 0 : i32
    return %arg0, %c0_i32 : i32, i32
  }
  func.func @transform_1(%arg0: i32) -> (i32, i32) {
    %c0_i32 = arith.constant 0 : i32
    %c0_i32_0 = arith.constant 0 : i32
    %c0_i32_1 = arith.constant 0 : i32
    return %c0_i32, %c0_i32_0 : i32, i32
  }
  func.func @transform_2(%arg0: i32) -> (i32, i32) {
    %c0_i32 = arith.constant 0 : i32
    %c0_i32_0 = arith.constant 0 : i32
    %c0_i32_1 = arith.constant 0 : i32
    return %c0_i32, %c0_i32_0 : i32, i32
  }
  func.func @transform_3(%arg0: i32) -> (i32, i32) {
    %c0_i32 = arith.constant 0 : i32
    %c0_i32_0 = arith.constant 0 : i32
    return %arg0, %c0_i32 : i32, i32
  }
}

</mosaic_0001>

<bundles_post_ra>
// kernel: conv_ae_forward.6
= control target key start
LH: loop header
LB: loop body
LE: loop exit
PB: predicated region body
PF: predicated region fallthrough
CT: control target
= control target key end

     0   :  { %vm180_vm0 = vcmask 1044480   ;;  %vm181_vm1 = vcmask 1045504   ;;  %v4270_v0 = vmov 0.0   ;;  %v2651_v2 = vmov 65535   ;;  %s4266_s1 = inlined_call_operand.vmem [shape: bf16[27,16], index: 1, kind: input, shape index: {}]   ;;  %s4267_s0 = inlined_call_operand.vmem [shape: f32[4,392,27], index: 0, kind: input, shape index: {}]   ;;  %s4268_s2 = inlined_call_operand.vmem [shape: f32[1,16], index: 2, kind: input, shape index: {}]   ;;  %s4269_s3 = inlined_call_operand.vmem [shape: f32[392,16], index: 3, kind: output, shape index: {}]  }
   0x1   :  { %2229 = vmatprep.subr.bf16.mxu0 %v4270_v0  ;;  %2333 = vmatprep.subr.bf16.mxu1 %v4270_v0  ;;  %v2648_v1 = vld [vmem:[%s4266_s1] sm:$0xff]   ;;  %v182_v3 = vsel %vm180_vm0, 4294967295, %v2651_v2  ;;  %v2649_v4 = vld [vmem:[%s4266_s1 + $0x8] sm:$0x3f]   ;;  %v1899_v10 = vld [vmem:[%s4267_s0 + $0x190] sm:$0xff]  ;;  %vm2652_vm2 = vmmov 0  }
   0x2   :  { %2230 = vmatpush3.bf16.msra.mxu0 %v2648_v1  ;;  %2334 = vmatpush3.bf16.msra.mxu1 %v2648_v1  ;;  %v183_v5 = vsel %vm181_vm1, %v182_v3, 0  ;;  %v19_v6 = vld [vmem:[%s4267_s0] sm:$0xff]  ;;  %v20_v7 = vld [vmem:[%s4267_s0 + $0x8] sm:$0xff]  ;;  %vm104_vm3 = vcmask 220160   ;;  %v21_v13 = vld [vmem:[%s4267_s0 + $0x10] sm:$0xff]  ;;  %vm1817_vm4 = vcmask 130048  }
   0x3   :  { %v1898_v8 = vld [vmem:[%s4267_s0 + $0x188] sm:$0xff]  ;;  %2231 = vmatprep.subr.bf16.mxu0 %v4270_v0  ;;  %2335 = vmatprep.subr.bf16.mxu1 %v4270_v0  ;;  %v185_v9 = vand.u32 %v2649_v4, %v183_v5  ;;  %v68_v11 = vpack.c.bf16 %v20_v7, %v19_v6  ;;  %v22_v14 = vld [vmem:[%s4267_s0 + $0x18] sm:$0xff]  ;;  %v1901_v16 = vld [vmem:[%s4267_s0 + $0x1a0] sm:$0xff] }
   0x4   :  { %2233 = vmatprep.mubr.msk.bf16.mxu0 %vm2652_vm2, %v4270_v0  ;;  %2337 = vmatprep.mubr.msk.bf16.mxu1 %vm2652_vm2, %v4270_v0  ;;  %v469_v12 = vpack.c.bf16 %v1899_v10, %v1898_v8  ;;  %v1900_v15 = vld [vmem:[%s4267_s0 + $0x198] sm:$0xff]  ;;  %v69_v17 = vpack.c.bf16 %v22_v14, %v21_v13  ;;  %v23_v19 = vld [vmem:[%s4267_s0 + $0x20] sm:$0xff]  ;;  %v24_v20 = vld [vmem:[%s4267_s0 + $0x28] sm:$0xff] }
   0x5   :  { %v470_v18 = vpack.c.bf16 %v1901_v16, %v1900_v15  ;;  %v1902_v21 = vld [vmem:[%s4267_s0 + $0x1a8] sm:$0xff]  ;;  %v1903_v22 = vld [vmem:[%s4267_s0 + $0x1b0] sm:$0xff]  ;;  %v70_v23 = vpack.c.bf16 %v24_v20, %v23_v19  ;;  %v26_v26 = vld [vmem:[%s4267_s0 + $0x38] sm:$0xff] }
   0x6   :  { %2232 = vmatpush3.bf16.msra.mxu0 %v185_v9  ;;  %2336 = vmatpush3.bf16.msra.mxu1 %v185_v9  ;;  %v471_v24 = vpack.c.bf16 %v1903_v22, %v1902_v21  ;;  %v25_v25 = vld [vmem:[%s4267_s0 + $0x30] sm:$0xff]  ;;  %v1904_v27 = vld [vmem:[%s4267_s0 + $0x1b8] sm:$0xff]  ;;  %v1905_v28 = vld [vmem:[%s4267_s0 + $0x1c0] sm:$0xff] }
   0x7   :  { %2437 = vmatprep.subr.bf16.mxu0 %v4270_v0  ;;  %2541 = vmatprep.subr.bf16.mxu1 %v4270_v0  ;;  %v71_v29 = vpack.c.bf16 %v26_v26, %v25_v25  ;;  %v472_v30 = vpack.c.bf16 %v1905_v28, %v1904_v27  ;;  %v27_v31 = vld [vmem:[%s4267_s0 + $0x40] sm:$0xff]  ;;  %v28_v32 = vld [vmem:[%s4267_s0 + $0x48] sm:$0xff]  ;;  %v1907_v34 = vld [vmem:[%s4267_s0 + $0x1d0] sm:$0xff] }
   0x8   :  { %v1906_v33 = vld [vmem:[%s4267_s0 + $0x1c8] sm:$0xff]  ;;  %v72_v35 = vpack.c.bf16 %v28_v32, %v27_v31  ;;  %v29_v37 = vld [vmem:[%s4267_s0 + $0x50] sm:$0xff]  ;;  %v30_v38 = vld [vmem:[%s4267_s0 + $0x58] sm:$0xff] }
   0x9   :  { %2234 = vmatmul.mubr.msk.bf16.vlgmr.msra.gmra.mrb[0].mxu0 %vm104_vm3, %v68_v11  ;;  %2338 = vmatmul.mubr.msk.bf16.vlgmr.msra.gmra.mrb[0].mxu1 %vm104_vm3, %v469_v12  ;;  %v473_v36 = vpack.c.bf16 %v1907_v34, %v1906_v33  ;;  %v1908_v39 = vld [vmem:[%s4267_s0 + $0x1d8] sm:$0xff]  ;;  %v1909_v40 = vld [vmem:[%s4267_s0 + $0x1e0] sm:$0xff]  ;;  %v73_v41 = vpack.c.bf16 %v30_v38, %v29_v37  ;;  %v32_v44 = vld [vmem:[%s4267_s0 + $0x68] sm:$0xff] }
   0xa   :  { %2438 = vmatpush3.bf16.msra.mxu0 %v2648_v1  ;;  %2542 = vmatpush3.bf16.msra.mxu1 %v2648_v1  ;;  %v474_v42 = vpack.c.bf16 %v1909_v40, %v1908_v39  ;;  %v31_v43 = vld [vmem:[%s4267_s0 + $0x60] sm:$0xff]  ;;  %v1910_v45 = vld [vmem:[%s4267_s0 + $0x1e8] sm:$0xff]  ;;  %v1911_v46 = vld [vmem:[%s4267_s0 + $0x1f0] sm:$0xff] }
   0xb   :  { %2237 = vmatprep.mubr.msk.bf16.mxu0 %vm2652_vm2, %v4270_v0  ;;  %2341 = vmatprep.mubr.msk.bf16.mxu1 %vm2652_vm2, %v4270_v0  ;;  %v74_v47 = vpack.c.bf16 %v32_v44, %v31_v43  ;;  %v475_v48 = vpack.c.bf16 %v1911_v46, %v1910_v45  ;;  %v33_v49 = vld [vmem:[%s4267_s0 + $0x70] sm:$0xff]  ;;  %v34_v50 = vld [vmem:[%s4267_s0 + $0x78] sm:$0xff]  ;;  %v1913_v52 = vld [vmem:[%s4267_s0 + $0x200] sm:$0xff] }
   0xc   :  { %2439 = vmatprep.subr.bf16.mxu0 %v4270_v0  ;;  %2543 = vmatprep.subr.bf16.mxu1 %v4270_v0  ;;  %v1912_v51 = vld [vmem:[%s4267_s0 + $0x1f8] sm:$0xff]  ;;  %v75_v53 = vpack.c.bf16 %v34_v50, %v33_v49  ;;  %v35_v55 = vld [vmem:[%s4267_s0 + $0x80] sm:$0xff]  ;;  %v36_v56 = vld [vmem:[%s4267_s0 + $0x88] sm:$0xff] }
   0xd   :  { %v476_v54 = vpack.c.bf16 %v1913_v52, %v1912_v51  ;;  %v1914_v57 = vld [vmem:[%s4267_s0 + $0x208] sm:$0xff]  ;;  %v1915_v58 = vld [vmem:[%s4267_s0 + $0x210] sm:$0xff]  ;;  %v76_v59 = vpack.c.bf16 %v36_v56, %v35_v55  ;;  %v38_v62 = vld [vmem:[%s4267_s0 + $0x98] sm:$0xff] }
   0xe   :  { %2440 = vmatpush3.bf16.msra.mxu0 %v185_v9  ;;  %2544 = vmatpush3.bf16.msra.mxu1 %v185_v9  ;;  %v477_v60 = vpack.c.bf16 %v1915_v58, %v1914_v57  ;;  %v37_v61 = vld [vmem:[%s4267_s0 + $0x90] sm:$0xff]  ;;  %v1916_v63 = vld [vmem:[%s4267_s0 + $0x218] sm:$0xff]  ;;  %v1917_v1 = vld [vmem:[%s4267_s0 + $0x220] sm:$0xff] }
   0xf   :  { %v77_v2 = vpack.c.bf16 %v38_v62, %v37_v61  ;;  %v478_v3 = vpack.c.bf16 %v1917_v1, %v1916_v63  ;;  %v39_v4 = vld [vmem:[%s4267_s0 + $0xa0] sm:$0xff]  ;;  %v40_v5 = vld [vmem:[%s4267_s0 + $0xa8] sm:$0xff]  ;;  %v1919_v7 = vld [vmem:[%s4267_s0 + $0x230] sm:$0xff] }
  0x10   :  { %v1918_v6 = vld [vmem:[%s4267_s0 + $0x228] sm:$0xff]  ;;  %v78_v8 = vpack.c.bf16 %v40_v5, %v39_v4  ;;  %v41_v10 = vld [vmem:[%s4267_s0 + $0xb0] sm:$0xff]  ;;  %v42_v11 = vld [vmem:[%s4267_s0 + $0xb8] sm:$0xff] }
  0x11   :  { %2238 = vmatmul.mubr.msk.bf16.gmra.mrb[4].mxu0 %vm104_vm3, %v69_v17  ;;  %2342 = vmatmul.mubr.msk.bf16.gmra.mrb[4].mxu1 %vm104_vm3, %v470_v18  ;;  %v479_v9 = vpack.c.bf16 %v1919_v7, %v1918_v6  ;;  %v1920_v12 = vld [vmem:[%s4267_s0 + $0x238] sm:$0xff]  ;;  %v1921_v13 = vld [vmem:[%s4267_s0 + $0x240] sm:$0xff]  ;;  %v79_v14 = vpack.c.bf16 %v42_v11, %v41_v10  ;;  %v44_v17 = vld [vmem:[%s4267_s0 + $0xc8] sm:$0xff] }
  0x12   :  { %2241 = vmatprep.mubr.msk.bf16.mxu0 %vm2652_vm2, %v4270_v0  ;;  %2345 = vmatprep.mubr.msk.bf16.mxu1 %vm2652_vm2, %v4270_v0  ;;  %v480_v15 = vpack.c.bf16 %v1921_v13, %v1920_v12  ;;  %v43_v16 = vld [vmem:[%s4267_s0 + $0xc0] sm:$0xff]  ;;  %v1922_v18 = vld [vmem:[%s4267_s0 + $0x248] sm:$0xff]  ;;  %v1923_v19 = vld [vmem:[%s4267_s0 + $0x250] sm:$0xff] }
  0x13   :  { %v80_v20 = vpack.c.bf16 %v44_v17, %v43_v16  ;;  %v481_v21 = vpack.c.bf16 %v1923_v19, %v1922_v18  ;;  %v45_v22 = vld [vmem:[%s4267_s0 + $0xd0] sm:$0xff]  ;;  %v1925_v25 = vld [vmem:[%s4267_s0 + $0x260] sm:$0xff] }
  0x14   :  { %v47_v28 = vld [vmem:[%s4267_s0 + $0xe0] sm:$0xff]  ;;  %v1927_v31 = vld [vmem:[%s4267_s0 + $0x270] sm:$0xff] }
  0x15   :  { %v49_v34 = vld [vmem:[%s4267_s0 + $0xf0] sm:$0xff]  ;;  %v1929_v37 = vld [vmem:[%s4267_s0 + $0x280] sm:$0xff] }
  0x16   :  { %v51_v40 = vld [vmem:[%s4267_s0 + $0x100] sm:$0xff]  ;;  %v1931_v43 = vld [vmem:[%s4267_s0 + $0x290] sm:$0xff] }
  0x17   :  { %v53_v46 = vld [vmem:[%s4267_s0 + $0x110] sm:$0xff]  ;;  %v1933_v49 = vld [vmem:[%s4267_s0 + $0x2a0] sm:$0xff] }
  0x18   :  { %v55_v52 = vld [vmem:[%s4267_s0 + $0x120] sm:$0xff]  ;;  %v1935_v55 = vld [vmem:[%s4267_s0 + $0x2b0] sm:$0xff] }
  0x19   :  { %2242 = vmatmul.mubr.msk.bf16.gmra.mrb[8].mxu0 %vm104_vm3, %v70_v23  ;;  %2346 = vmatmul.mubr.msk.bf16.gmra.mrb[8].mxu1 %vm104_vm3, %v471_v24  ;;  %v46_v23 = vld [vmem:[%s4267_s0 + $0xd8] sm:$0xff]  ;;  %v57_v58 = vld [vmem:[%s4267_s0 + $0x130] sm:$0xff]  ;;  %v1937_v61 = vld [vmem:[%s4267_s0 + $0x2c0] sm:$0xff] }
  0x1a   :  { %2245 = vmatprep.mubr.msk.bf16.mxu0 %vm2652_vm2, %v4270_v0  ;;  %2349 = vmatprep.mubr.msk.bf16.mxu1 %vm2652_vm2, %v4270_v0  ;;  %v1924_v24 = vld [vmem:[%s4267_s0 + $0x258] sm:$0xff]  ;;  %v81_v26 = vpack.c.bf16 %v46_v23, %v45_v22  ;;  %v59_v1 = vld [vmem:[%s4267_s0 + $0x140] sm:$0xff]  ;;  %v1939_v4 = vld [vmem:[%s4267_s0 + $0x2d0] sm:$0xff] }
  0x1b   :  { %v482_v27 = vpack.c.bf16 %v1925_v25, %v1924_v24  ;;  %v61_v7 = vld [vmem:[%s4267_s0 + $0x150] sm:$0xff]  ;;  %v1941_v10 = vld [vmem:[%s4267_s0 + $0x2e0] sm:$0xff] }
  0x1c   :  { %v63_v13 = vld [vmem:[%s4267_s0 + $0x160] sm:$0xff]  ;;  %v1943_v16 = vld [vmem:[%s4267_s0 + $0x2f0] sm:$0xff] }
  0x1d   :  { %v65_v19 = vld [vmem:[%s4267_s0 + $0x170] sm:$0xff]  ;;  %v1945_v22 = vld [vmem:[%s4267_s0 + $0x300] sm:$0xff] }
  0x1e   :  { %v67_v25 = vld [vmem:[%s4267_s0 + $0x180] sm:$0xff] }
  0x21   :  { %2246 = vmatmul.mubr.msk.bf16.gmra.mrb[12].mxu0 %vm104_vm3, %v71_v29  ;;  %2350 = vmatmul.mubr.msk.bf16.gmra.mrb[12].mxu1 %vm104_vm3, %v472_v30  ;;  %v48_v29 = vld [vmem:[%s4267_s0 + $0xe8] sm:$0xff] }
  0x22   :  { %2249 = vmatprep.mubr.msk.bf16.mxu0 %vm2652_vm2, %v4270_v0  ;;  %2353 = vmatprep.mubr.msk.bf16.mxu1 %vm2652_vm2, %v4270_v0  ;;  %v1926_v30 = vld [vmem:[%s4267_s0 + $0x268] sm:$0xff]  ;;  %v82_v32 = vpack.c.bf16 %v48_v29, %v47_v28  ;;  %v1972_v29 = vld [vmem:[%s4267_s0 + $0x310] sm:$0xff] }
  0x23   :  { %v483_v33 = vpack.c.bf16 %v1927_v31, %v1926_v30  ;;  %v1973_v30 = vld [vmem:[%s4267_s0 + $0x318] sm:$0xff] }
  0x24   :  { %v2046_v31 = vld [vmem:[%s4267_s0 + $0x498] sm:$0xff] }
  0x29   :  { %2250 = vmatmul.mubr.msk.bf16.gmra.mrb[16].mxu0 %vm104_vm3, %v72_v35  ;;  %2354 = vmatmul.mubr.msk.bf16.gmra.mrb[16].mxu1 %vm104_vm3, %v473_v36  ;;  %v50_v35 = vld [vmem:[%s4267_s0 + $0xf8] sm:$0xff] }
  0x2a   :  { %2253 = vmatprep.mubr.msk.bf16.mxu0 %vm2652_vm2, %v4270_v0  ;;  %2357 = vmatprep.mubr.msk.bf16.mxu1 %vm2652_vm2, %v4270_v0  ;;  %v1928_v36 = vld [vmem:[%s4267_s0 + $0x278] sm:$0xff]  ;;  %v83_v38 = vpack.c.bf16 %v50_v35, %v49_v34  ;;  %v1974_v35 = vld [vmem:[%s4267_s0 + $0x320] sm:$0xff] }
  0x2b   :  { %v484_v39 = vpack.c.bf16 %v1929_v37, %v1928_v36  ;;  %v1975_v36 = vld [vmem:[%s4267_s0 + $0x328] sm:$0xff] }
  0x2c   :  { %v2048_v37 = vld [vmem:[%s4267_s0 + $0x4a8] sm:$0xff] }
  0x31   :  { %2254 = vmatmul.mubr.msk.bf16.gmra.mrb[20].mxu0 %vm104_vm3, %v73_v41  ;;  %2358 = vmatmul.mubr.msk.bf16.gmra.mrb[20].mxu1 %vm104_vm3, %v474_v42  ;;  %v52_v41 = vld [vmem:[%s4267_s0 + $0x108] sm:$0xff] }
  0x32   :  { %2257 = vmatprep.mubr.msk.bf16.mxu0 %vm2652_vm2, %v4270_v0  ;;  %2361 = vmatprep.mubr.msk.bf16.mxu1 %vm2652_vm2, %v4270_v0  ;;  %v1930_v42 = vld [vmem:[%s4267_s0 + $0x288] sm:$0xff]  ;;  %v84_v44 = vpack.c.bf16 %v52_v41, %v51_v40  ;;  %v1976_v41 = vld [vmem:[%s4267_s0 + $0x330] sm:$0xff] }
  0x33   :  { %v485_v45 = vpack.c.bf16 %v1931_v43, %v1930_v42  ;;  %v1977_v42 = vld [vmem:[%s4267_s0 + $0x338] sm:$0xff] }
  0x34   :  { %v2050_v43 = vld [vmem:[%s4267_s0 + $0x4b8] sm:$0xff] }
  0x39   :  { %2258 = vmatmul.mubr.msk.bf16.gmra.mrb[24].mxu0 %vm104_vm3, %v74_v47  ;;  %2362 = vmatmul.mubr.msk.bf16.gmra.mrb[24].mxu1 %vm104_vm3, %v475_v48  ;;  %v54_v47 = vld [vmem:[%s4267_s0 + $0x118] sm:$0xff] }
  0x3a   :  { %2261 = vmatprep.mubr.msk.bf16.mxu0 %vm2652_vm2, %v4270_v0  ;;  %2365 = vmatprep.mubr.msk.bf16.mxu1 %vm2652_vm2, %v4270_v0  ;;  %v1932_v48 = vld [vmem:[%s4267_s0 + $0x298] sm:$0xff]  ;;  %v85_v50 = vpack.c.bf16 %v54_v47, %v53_v46 }
  0x3b   :  { %v486_v51 = vpack.c.bf16 %v1933_v49, %v1932_v48 }
  0x41   :  { %2262 = vmatmul.mubr.msk.bf16.gmra.mrb[28].mxu0 %vm104_vm3, %v75_v53  ;;  %2366 = vmatmul.mubr.msk.bf16.gmra.mrb[28].mxu1 %vm104_vm3, %v476_v54  ;;  %v56_v53 = vld [vmem:[%s4267_s0 + $0x128] sm:$0xff] }
  0x42   :  { %2265 = vmatprep.mubr.msk.bf16.mxu0 %vm2652_vm2, %v4270_v0  ;;  %2369 = vmatprep.mubr.msk.bf16.mxu1 %vm2652_vm2, %v4270_v0  ;;  %v1934_v54 = vld [vmem:[%s4267_s0 + $0x2a8] sm:$0xff]  ;;  %v86_v56 = vpack.c.bf16 %v56_v53, %v55_v52 }
  0x43   :  { %v487_v57 = vpack.c.bf16 %v1935_v55, %v1934_v54 }
  0x49   :  { %2266 = vmatmul.mubr.msk.bf16.gmra.mrb[32].mxu0 %vm104_vm3, %v76_v59  ;;  %2370 = vmatmul.mubr.msk.bf16.gmra.mrb[32].mxu1 %vm104_vm3, %v477_v60  ;;  %v58_v59 = vld [vmem:[%s4267_s0 + $0x138] sm:$0xff] }
  0x4a   :  { %2269 = vmatprep.mubr.msk.bf16.mxu0 %vm2652_vm2, %v4270_v0  ;;  %2373 = vmatprep.mubr.msk.bf16.mxu1 %vm2652_vm2, %v4270_v0  ;;  %v1936_v60 = vld [vmem:[%s4267_s0 + $0x2b8] sm:$0xff]  ;;  %v87_v62 = vpack.c.bf16 %v58_v59, %v57_v58  ;;  %v1979_v58 = vld [vmem:[%s4267_s0 + $0x348] sm:$0xff] }
  0x4b   :  { %v488_v63 = vpack.c.bf16 %v1937_v61, %v1936_v60  ;;  %v2052_v59 = vld [vmem:[%s4267_s0 + $0x4c8] sm:$0xff]  ;;  %v2053_v60 = vld [vmem:[%s4267_s0 + $0x4d0] sm:$0xff] }
  0x51   :  { %2270 = vmatmul.mubr.msk.bf16.gmra.mrb[36].mxu0 %vm104_vm3, %v77_v2  ;;  %2374 = vmatmul.mubr.msk.bf16.gmra.mrb[36].mxu1 %vm104_vm3, %v478_v3  ;;  %v60_v2 = vld [vmem:[%s4267_s0 + $0x148] sm:$0xff] }
  0x52   :  { %2273 = vmatprep.mubr.msk.bf16.mxu0 %vm2652_vm2, %v4270_v0  ;;  %2377 = vmatprep.mubr.msk.bf16.mxu1 %vm2652_vm2, %v4270_v0  ;;  %v1938_v3 = vld [vmem:[%s4267_s0 + $0x2c8] sm:$0xff]  ;;  %v88_v5 = vpack.c.bf16 %v60_v2, %v59_v1 }
  0x53   :  { %v489_v6 = vpack.c.bf16 %v1939_v4, %v1938_v3  ;;  %v1334_v4 = vpack.c.bf16 %v2053_v60, %v2052_v59 }
  0x59   :  { %2274 = vmatmul.mubr.msk.bf16.gmra.mrb[40].mxu0 %vm104_vm3, %v78_v8  ;;  %2378 = vmatmul.mubr.msk.bf16.gmra.mrb[40].mxu1 %vm104_vm3, %v479_v9  ;;  %v62_v8 = vld [vmem:[%s4267_s0 + $0x158] sm:$0xff] }
  0x5a   :  { %2277 = vmatprep.mubr.msk.bf16.mxu0 %vm2652_vm2, %v4270_v0  ;;  %2381 = vmatprep.mubr.msk.bf16.mxu1 %vm2652_vm2, %v4270_v0  ;;  %v1940_v9 = vld [vmem:[%s4267_s0 + $0x2d8] sm:$0xff]  ;;  %v89_v11 = vpack.c.bf16 %v62_v8, %v61_v7 }
  0x5b   :  { %v490_v12 = vpack.c.bf16 %v1941_v10, %v1940_v9  ;;  %v1980_v10 = vld [vmem:[%s4267_s0 + $0x350] sm:$0xff] }
  0x61   :  { %2278 = vmatmul.mubr.msk.bf16.gmra.mrb[44].mxu0 %vm104_vm3, %v79_v14  ;;  %2382 = vmatmul.mubr.msk.bf16.gmra.mrb[44].mxu1 %vm104_vm3, %v480_v15  ;;  %v64_v14 = vld [vmem:[%s4267_s0 + $0x168] sm:$0xff] }
  0x62   :  { %2281 = vmatprep.mubr.msk.bf16.mxu0 %vm2652_vm2, %v4270_v0  ;;  %2385 = vmatprep.mubr.msk.bf16.mxu1 %vm2652_vm2, %v4270_v0  ;;  %v1942_v15 = vld [vmem:[%s4267_s0 + $0x2e8] sm:$0xff]  ;;  %v90_v17 = vpack.c.bf16 %v64_v14, %v63_v13  ;;  %v2055_v13 = vld [vmem:[%s4267_s0 + $0x4e0] sm:$0xff] }
  0x63   :  { %v491_v18 = vpack.c.bf16 %v1943_v16, %v1942_v15 }
  0x69   :  { %2282 = vmatmul.mubr.msk.bf16.gmra.mrb[48].mxu0 %vm104_vm3, %v80_v20  ;;  %2386 = vmatmul.mubr.msk.bf16.gmra.mrb[48].mxu1 %vm104_vm3, %v481_v21  ;;  %v66_v20 = vld [vmem:[%s4267_s0 + $0x178] sm:$0xff] }
  0x6a   :  { %2285 = vmatprep.mubr.msk.bf16.mxu0 %vm2652_vm2, %v4270_v0  ;;  %2389 = vmatprep.mubr.msk.bf16.mxu1 %vm2652_vm2, %v4270_v0  ;;  %v1944_v21 = vld [vmem:[%s4267_s0 + $0x2f8] sm:$0xff]  ;;  %v91_v23 = vpack.c.bf16 %v66_v20, %v65_v19 }
  0x6b   :  { %v492_v24 = vpack.c.bf16 %v1945_v22, %v1944_v21 }
  0x71   :  { %2286 = vmatmul.mubr.msk.bf16.gmra.mrb[52].mxu0 %vm104_vm3, %v81_v26  ;;  %2390 = vmatmul.mubr.msk.bf16.gmra.mrb[52].mxu1 %vm104_vm3, %v482_v27  ;;  %v1946_v26 = vld [vmem:[%s4267_s0 + $0x308] sm:$0xff]  ;;  %v92_v27 = vpack.c.bf16 %v67_v25, %v67_v25 }
  0x72   :  { %2289 = vmatprep.mubr.msk.bf16.mxu0 %vm2652_vm2, %v4270_v0  ;;  %2393 = vmatprep.mubr.msk.bf16.mxu1 %vm2652_vm2, %v4270_v0  ;;  %v493_v28 = vpack.c.bf16 %v1946_v26, %v1946_v26  ;;  %v1982_v26 = vld [vmem:[%s4267_s0 + $0x360] sm:$0xff] }
  0x79   :  { %2290 = vmatmul.mubr.msk.bf16.gmra.mrb[56].mxu0 %vm104_vm3, %v82_v32  ;;  %2394 = vmatmul.mubr.msk.bf16.gmra.mrb[56].mxu1 %vm104_vm3, %v483_v33  ;;  %v2047_v32 = vld [vmem:[%s4267_s0 + $0x4a0] sm:$0xff]  ;;  %v900_v33 = vpack.c.bf16 %v1973_v30, %v1972_v29  ;;  %v2057_v29 = vld [vmem:[%s4267_s0 + $0x4f0] sm:$0xff] }
  0x7a   :  { %2293 = vmatprep.mubr.msk.bf16.mxu0 %vm2652_vm2, %v4270_v0  ;;  %2397 = vmatprep.mubr.msk.bf16.mxu1 %vm2652_vm2, %v4270_v0  ;;  %v1331_v34 = vpack.c.bf16 %v2047_v32, %v2046_v31 }
  0x81   :  { %2294 = vmatmul.mubr.msk.bf16.gmra.mrb[60].mxu0 %vm104_vm3, %v83_v38  ;;  %2398 = vmatmul.mubr.msk.bf16.gmra.mrb[60].mxu1 %vm104_vm3, %v484_v39  ;;  %v2049_v38 = vld [vmem:[%s4267_s0 + $0x4b0] sm:$0xff]  ;;  %v901_v39 = vpack.c.bf16 %v1975_v36, %v1974_v35 }
  0x82   :  { %2297 = vmatprep.mubr.msk.bf16.mxu0 %vm2652_vm2, %v4270_v0  ;;  %2401 = vmatprep.mubr.msk.bf16.mxu1 %vm2652_vm2, %v4270_v0  ;;  %v1332_v40 = vpack.c.bf16 %v2049_v38, %v2048_v37 }
  0x89   :  { %2298 = vmatmul.mubr.msk.bf16.gmra.mrb[64].mxu0 %vm104_vm3, %v84_v44  ;;  %2402 = vmatmul.mubr.msk.bf16.gmra.mrb[64].mxu1 %vm104_vm3, %v485_v45  ;;  %v2051_v44 = vld [vmem:[%s4267_s0 + $0x4c0] sm:$0xff] }
  0x8a   :  { %2301 = vmatprep.mubr.msk.bf16.mxu0 %vm2652_vm2, %v4270_v0  ;;  %2405 = vmatprep.mubr.msk.bf16.mxu1 %vm2652_vm2, %v4270_v0 }
  0x91   :  { %2302 = vmatmul.mubr.msk.bf16.gmra.mrb[68].mxu0 %vm104_vm3, %v85_v50  ;;  %2406 = vmatmul.mubr.msk.bf16.gmra.mrb[68].mxu1 %vm104_vm3, %v486_v51  ;;  %v902_v50 = vpack.c.bf16 %v1977_v42, %v1976_v41  ;;  %v1333_v51 = vpack.c.bf16 %v2051_v44, %v2050_v43  ;;  %v1984_v42 = vld [vmem:[%s4267_s0 + $0x370] sm:$0xff]  ;;  %v1985_v43 = vld [vmem:[%s4267_s0 + $0x378] sm:$0xff] }
  0x92   :  { %2305 = vmatprep.mubr.msk.bf16.mxu0 %vm2652_vm2, %v4270_v0  ;;  %2409 = vmatprep.mubr.msk.bf16.mxu1 %vm2652_vm2, %v4270_v0  ;;  %v2058_v44 = vld [vmem:[%s4267_s0 + $0x4f8] sm:$0xff] }
  0x99   :  { %2306 = vmatmul.mubr.msk.bf16.gmra.mrb[72].mxu0 %vm104_vm3, %v86_v56  ;;  %2410 = vmatmul.mubr.msk.bf16.gmra.mrb[72].mxu1 %vm104_vm3, %v487_v57  ;;  %v1978_v57 = vld [vmem:[%s4267_s0 + $0x340] sm:$0xff] }
  0x9a   :  { %2309 = vmatprep.mubr.msk.bf16.mxu0 %vm2652_vm2, %v4270_v0  ;;  %2413 = vmatprep.mubr.msk.bf16.mxu1 %vm2652_vm2, %v4270_v0  ;;  %v903_v3 = vpack.c.bf16 %v1979_v58, %v1978_v57  ;;  %v906_v57 = vpack.c.bf16 %v1985_v43, %v1984_v42 }
  0xa1   :  { %2310 = vmatmul.mubr.msk.bf16.gmra.mrb[76].mxu0 %vm104_vm3, %v87_v62  ;;  %2414 = vmatmul.mubr.msk.bf16.gmra.mrb[76].mxu1 %vm104_vm3, %v488_v63 }
  0xa2   :  { %2313 = vmatprep.mubr.msk.bf16.mxu0 %vm2652_vm2, %v4270_v0  ;;  %2417 = vmatprep.mubr.msk.bf16.mxu1 %vm2652_vm2, %v4270_v0 }
  0xa9   :  { %2314 = vmatmul.mubr.msk.bf16.gmra.mrb[80].mxu0 %vm104_vm3, %v88_v5  ;;  %2418 = vmatmul.mubr.msk.bf16.gmra.mrb[80].mxu1 %vm104_vm3, %v489_v6 }
  0xaa   :  { %2317 = vmatprep.mubr.msk.bf16.mxu0 %vm2652_vm2, %v4270_v0  ;;  %2421 = vmatprep.mubr.msk.bf16.mxu1 %vm2652_vm2, %v4270_v0 }
  0xb1   :  { %2318 = vmatmul.mubr.msk.bf16.gmra.mrb[84].mxu0 %vm104_vm3, %v89_v11  ;;  %2422 = vmatmul.mubr.msk.bf16.gmra.mrb[84].mxu1 %vm104_vm3, %v490_v12  ;;  %v1981_v11 = vld [vmem:[%s4267_s0 + $0x358] sm:$0xff] }
  0xb2   :  { %2321 = vmatprep.mubr.msk.bf16.mxu0 %vm2652_vm2, %v4270_v0  ;;  %2425 = vmatprep.mubr.msk.bf16.mxu1 %vm2652_vm2, %v4270_v0  ;;  %v2054_v12 = vld [vmem:[%s4267_s0 + $0x4d8] sm:$0xff]  ;;  %v904_v19 = vpack.c.bf16 %v1981_v11, %v1980_v10  ;;  %v2061_v10 = vld [vmem:[%s4267_s0 + $0x510] sm:$0xff] }
  0xb3   :  { %v1335_v20 = vpack.c.bf16 %v2055_v13, %v2054_v12 }
  0xb9   :  { %2322 = vmatmul.mubr.msk.bf16.gmra.mrb[88].mxu0 %vm104_vm3, %v90_v17  ;;  %2426 = vmatmul.mubr.msk.bf16.gmra.mrb[88].mxu1 %vm104_vm3, %v491_v18 }
  0xba   :  { %2325 = vmatprep.mubr.msk.bf16.mxu0 %vm2652_vm2, %v4270_v0  ;;  %2429 = vmatprep.mubr.msk.bf16.mxu1 %vm2652_vm2, %v4270_v0 }
  0xc1   :  { %2326 = vmatmul.mubr.msk.bf16.gmra.mrb[92].mxu0 %vm104_vm3, %v91_v23  ;;  %2430 = vmatmul.mubr.msk.bf16.gmra.mrb[92].mxu1 %vm104_vm3, %v492_v24 }
  0xc2   :  { %2329 = vmatprep.mubr.msk.bf16.mxu0 %vm2652_vm2, %v4270_v0  ;;  %2433 = vmatprep.mubr.msk.bf16.mxu1 %vm2652_vm2, %v4270_v0 }
  0xc9   :  { %2330 = vmatmul.mubr.msk.bf16.gmra.mrb[96].mxu0 %vm104_vm3, %v92_v27  ;;  %2434 = vmatmul.mubr.msk.bf16.gmra.mrb[96].mxu1 %vm104_vm3, %v493_v28  ;;  %v1983_v27 = vld [vmem:[%s4267_s0 + $0x368] sm:$0xff] }
  0xca   :  { %2441 = vmatprep.mubr.msk.bf16.mxu0 %vm2652_vm2, %v4270_v0  ;;  %2545 = vmatprep.mubr.msk.bf16.mxu1 %vm2652_vm2, %v4270_v0  ;;  %v2056_v28 = vld [vmem:[%s4267_s0 + $0x4e8] sm:$0xff]  ;;  %v905_v35 = vpack.c.bf16 %v1983_v27, %v1982_v26 }
  0xcb   :  { %v1336_v36 = vpack.c.bf16 %v2057_v29, %v2056_v28  ;;  %v1988_v29 = vld [vmem:[%s4267_s0 + $0x390] sm:$0xff] }
  0xd1   :  { %2442 = vmatmul.mubr.msk.bf16.vlgmr.msra.gmra.mrb[100].mxu0 %vm104_vm3, %v900_v33  ;;  %2546 = vmatmul.mubr.msk.bf16.vlgmr.msra.gmra.mrb[100].mxu1 %vm104_vm3, %v1331_v34 }
  0xd2   :  { %2445 = vmatprep.mubr.msk.bf16.mxu0 %vm2652_vm2, %v4270_v0  ;;  %2549 = vmatprep.mubr.msk.bf16.mxu1 %vm2652_vm2, %v4270_v0 }
  0xd9   :  { %2446 = vmatmul.mubr.msk.bf16.gmra.mrb[104].mxu0 %vm104_vm3, %v901_v39  ;;  %2550 = vmatmul.mubr.msk.bf16.gmra.mrb[104].mxu1 %vm104_vm3, %v1332_v40 }
  0xda   :  { %2449 = vmatprep.mubr.msk.bf16.mxu0 %vm2652_vm2, %v4270_v0  ;;  %2553 = vmatprep.mubr.msk.bf16.mxu1 %vm2652_vm2, %v4270_v0 }
  0xdc   :  { %v3183_v45 = vpop.f32.mrb[0].mxu0  ;;  %v3185_v46 = vpop.f32.mrb[0].mxu1 }
  0xdd   :  { %v2235_v48 = vpop.f32.mrb[1].mxu0  ;;  %v2339_v49 = vpop.f32.mrb[1].mxu1 }
  0xde   :  { %v3189_v52 = vpop.f32.mrb[2].mxu0  ;;  %v3191_v53 = vpop.f32.mrb[2].mxu1  ;;  %v2059_v48 = vld [vmem:[%s4267_s0 + $0x500] sm:$0xff] }
  0xdf   :  { %v2236_v55 = vpop.f32.mrb[3].mxu0  ;;  %v2340_v56 = vpop.f32.mrb[3].mxu1  ;;  %v1337_v58 = vpack.c.bf16 %v2059_v48, %v2058_v44 }
  0xe1   :  { %2450 = vmatmul.mubr.msk.bf16.gmra.mrb[108].mxu0 %vm104_vm3, %v902_v50  ;;  %2554 = vmatmul.mubr.msk.bf16.gmra.mrb[108].mxu1 %vm104_vm3, %v1333_v51 }
  0xe2   :  { %2453 = vmatprep.mubr.msk.bf16.mxu0 %vm2652_vm2, %v4270_v0  ;;  %2557 = vmatprep.mubr.msk.bf16.mxu1 %vm2652_vm2, %v4270_v0 }
  0xe4   :  { %v3213_v61 = vpop.f32.mrb[4].mxu0  ;;  %v3215_v62 = vpop.f32.mrb[4].mxu1 }
  0xe5   :  { %v2239_v1 = vpop.f32.mrb[5].mxu0  ;;  %v2343_v2 = vpop.f32.mrb[5].mxu1 }
  0xe6   :  { %v3219_v5 = vpop.f32.mrb[6].mxu0  ;;  %v3221_v6 = vpop.f32.mrb[6].mxu1 }
  0xe7   :  { %v2240_v8 = vpop.f32.mrb[7].mxu0  ;;  %v2344_v9 = vpop.f32.mrb[7].mxu1 }
  0xe8   :  { %v1987_v8 = vld [vmem:[%s4267_s0 + $0x388] sm:$0xff] }
  0xe9   :  { %2454 = vmatmul.mubr.msk.bf16.gmra.mrb[112].mxu0 %vm104_vm3, %v903_v3  ;;  %2558 = vmatmul.mubr.msk.bf16.gmra.mrb[112].mxu1 %vm104_vm3, %v1334_v4  ;;  %v1986_v4 = vld [vmem:[%s4267_s0 + $0x380] sm:$0xff]  ;;  %v2060_v9 = vld [vmem:[%s4267_s0 + $0x508] sm:$0xff] }
  0xea   :  { %2457 = vmatprep.mubr.msk.bf16.mxu0 %vm2652_vm2, %v4270_v0  ;;  %2561 = vmatprep.mubr.msk.bf16.mxu1 %vm2652_vm2, %v4270_v0 }
  0xec   :  { %v3243_v14 = vpop.f32.mrb[8].mxu0  ;;  %v3245_v15 = vpop.f32.mrb[8].mxu1 }
  0xed   :  { %v2243_v17 = vpop.f32.mrb[9].mxu0  ;;  %v2347_v18 = vpop.f32.mrb[9].mxu1 }
  0xee   :  { %v3249_v21 = vpop.f32.mrb[10].mxu0  ;;  %v3251_v22 = vpop.f32.mrb[10].mxu1 }
  0xef   :  { %v2244_v24 = vpop.f32.mrb[11].mxu0  ;;  %v2348_v25 = vpop.f32.mrb[11].mxu1 }
  0xf1   :  { %2458 = vmatmul.mubr.msk.bf16.gmra.mrb[116].mxu0 %vm104_vm3, %v904_v19  ;;  %2562 = vmatmul.mubr.msk.bf16.gmra.mrb[116].mxu1 %vm104_vm3, %v1335_v20  ;;  %v907_v19 = vpack.c.bf16 %v1987_v8, %v1986_v4  ;;  %v1338_v20 = vpack.c.bf16 %v2061_v10, %v2060_v9  ;;  %v1991_v4 = vld [vmem:[%s4267_s0 + $0x3a8] sm:$0xff]  ;;  %v2065_v9 = vld [vmem:[%s4267_s0 + $0x530] sm:$0xff] }
  0xf2   :  { %2461 = vmatprep.mubr.msk.bf16.mxu0 %vm2652_vm2, %v4270_v0  ;;  %2565 = vmatprep.mubr.msk.bf16.mxu1 %vm2652_vm2, %v4270_v0  ;;  %v2064_v8 = vld [vmem:[%s4267_s0 + $0x528] sm:$0xff] }
  0xf4   :  { %v3273_v30 = vpop.f32.mrb[12].mxu0  ;;  %v3275_v31 = vpop.f32.mrb[12].mxu1 }
  0xf5   :  { %v2247_v33 = vpop.f32.mrb[13].mxu0  ;;  %v2351_v34 = vpop.f32.mrb[13].mxu1 }
  0xf6   :  { %v3279_v37 = vpop.f32.mrb[14].mxu0  ;;  %v3281_v38 = vpop.f32.mrb[14].mxu1  ;;  %v1989_v33 = vld [vmem:[%s4267_s0 + $0x398] sm:$0xff] }
  0xf7   :  { %v2248_v40 = vpop.f32.mrb[15].mxu0  ;;  %v2352_v41 = vpop.f32.mrb[15].mxu1  ;;  %v2062_v34 = vld [vmem:[%s4267_s0 + $0x518] sm:$0xff]  ;;  %v908_v44 = vpack.c.bf16 %v1989_v33, %v1988_v29 }
  0xf9   :  { %2462 = vmatmul.mubr.msk.bf16.gmra.mrb[120].mxu0 %vm104_vm3, %v905_v35  ;;  %2566 = vmatmul.mubr.msk.bf16.gmra.mrb[120].mxu1 %vm104_vm3, %v1336_v36  ;;  %v2063_v35 = vld [vmem:[%s4267_s0 + $0x520] sm:$0xff] }
  0xfa   :  { %2465 = vmatprep.mubr.msk.bf16.mxu0 %vm2652_vm2, %v4270_v0  ;;  %2569 = vmatprep.mubr.msk.bf16.mxu1 %vm2652_vm2, %v4270_v0  ;;  %v1339_v48 = vpack.c.bf16 %v2063_v35, %v2062_v34 }
  0xfc   :  { %v3303_v49 = vpop.f32.mrb[16].mxu0  ;;  %v3305_v50 = vpop.f32.mrb[16].mxu1 }
  0xfd   :  { %v2251_v55 = vpop.f32.mrb[17].mxu0  ;;  %v2355_v56 = vpop.f32.mrb[17].mxu1 }
  0xfe   :  { %v3309_v59 = vpop.f32.mrb[18].mxu0  ;;  %v3311_v60 = vpop.f32.mrb[18].mxu1 }
  0xff   :  { %v2252_v2 = vpop.f32.mrb[19].mxu0  ;;  %v2356_v3 = vpop.f32.mrb[19].mxu1 }
 0x100   :  { %v1990_v3 = vld [vmem:[%s4267_s0 + $0x3a0] sm:$0xff] }
 0x101   :  { %2466 = vmatmul.mubr.msk.bf16.gmra.mrb[124].mxu0 %vm104_vm3, %v906_v57  ;;  %2570 = vmatmul.mubr.msk.bf16.gmra.mrb[124].mxu1 %vm104_vm3, %v1337_v58 }
 0x102   :  { %2469 = vmatprep.mubr.msk.bf16.mxu0 %vm2652_vm2, %v4270_v0  ;;  %2573 = vmatprep.mubr.msk.bf16.mxu1 %vm2652_vm2, %v4270_v0 }
 0x104   :  { %v3333_v11 = vpop.f32.mrb[20].mxu0  ;;  %v3335_v12 = vpop.f32.mrb[20].mxu1 }
 0x105   :  { %v2255_v17 = vpop.f32.mrb[21].mxu0  ;;  %v2359_v18 = vpop.f32.mrb[21].mxu1 }
 0x106   :  { %v3339_v24 = vpop.f32.mrb[22].mxu0  ;;  %v3341_v25 = vpop.f32.mrb[22].mxu1 }
 0x107   :  { %v2256_v27 = vpop.f32.mrb[23].mxu0  ;;  %v2360_v28 = vpop.f32.mrb[23].mxu1 }
 0x108   :  { %v909_v27 = vpack.c.bf16 %v1991_v4, %v1990_v3  ;;  %v1340_v28 = vpack.c.bf16 %v2065_v9, %v2064_v8 }
 0x109   :  { %2470 = vmatmul.mubr.msk.bf16.gmra.mrb[128].mxu0 %vm104_vm3, %v907_v19  ;;  %2574 = vmatmul.mubr.msk.bf16.gmra.mrb[128].mxu1 %vm104_vm3, %v1338_v20 }
 0x10a   :  { %2473 = vmatprep.mubr.msk.bf16.mxu0 %vm2652_vm2, %v4270_v0  ;;  %2577 = vmatprep.mubr.msk.bf16.mxu1 %vm2652_vm2, %v4270_v0 }
 0x10c   :  { %v3363_v36 = vpop.f32.mrb[24].mxu0  ;;  %v3365_v40 = vpop.f32.mrb[24].mxu1 }
 0x10d   :  { %v2259_v42 = vpop.f32.mrb[25].mxu0  ;;  %v2363_v43 = vpop.f32.mrb[25].mxu1 }
 0x10e   :  { %v3369_v55 = vpop.f32.mrb[26].mxu0  ;;  %v3371_v56 = vpop.f32.mrb[26].mxu1  ;;  %v1992_v43 = vld [vmem:[%s4267_s0 + $0x3b0] sm:$0xff] }
 0x10f   :  { %v2260_v58 = vpop.f32.mrb[27].mxu0  ;;  %v2364_v2 = vpop.f32.mrb[27].mxu1 }
 0x110   :  { %v2067_v58 = vld [vmem:[%s4267_s0 + $0x540] sm:$0xff] }
 0x111   :  { %2474 = vmatmul.mubr.msk.bf16.gmra.mrb[132].mxu0 %vm104_vm3, %v908_v44  ;;  %2578 = vmatmul.mubr.msk.bf16.gmra.mrb[132].mxu1 %vm104_vm3, %v1339_v48  ;;  %v1993_v44 = vld [vmem:[%s4267_s0 + $0x3b8] sm:$0xff] }
 0x112   :  { %2477 = vmatprep.mubr.msk.bf16.mxu0 %vm2652_vm2, %v4270_v0  ;;  %2581 = vmatprep.mubr.msk.bf16.mxu1 %vm2652_vm2, %v4270_v0  ;;  %v2066_v48 = vld [vmem:[%s4267_s0 + $0x538] sm:$0xff] }
 0x114   :  { %v3393_v10 = vpop.f32.mrb[28].mxu0  ;;  %v3395_v17 = vpop.f32.mrb[28].mxu1 }
 0x115   :  { %v2263_v19 = vpop.f32.mrb[29].mxu0  ;;  %v2367_v20 = vpop.f32.mrb[29].mxu1 }
 0x116   :  { %v3399_v29 = vpop.f32.mrb[30].mxu0  ;;  %v3401_v33 = vpop.f32.mrb[30].mxu1  ;;  %v910_v19 = vpack.c.bf16 %v1993_v44, %v1992_v43  ;;  %v1341_v20 = vpack.c.bf16 %v2067_v58, %v2066_v48  ;;  %v1995_v43 = vld [vmem:[%s4267_s0 + $0x3c8] sm:$0xff]  ;;  %v2069_v44 = vld [vmem:[%s4267_s0 + $0x550] sm:$0xff] }
 0x117   :  { %v2264_v35 = vpop.f32.mrb[31].mxu0  ;;  %v2368_v42 = vpop.f32.mrb[31].mxu1 }
 0x119   :  { %2478 = vmatmul.mubr.msk.bf16.gmra.mrb[136].mxu0 %vm104_vm3, %v909_v27  ;;  %2582 = vmatmul.mubr.msk.bf16.gmra.mrb[136].mxu1 %vm104_vm3, %v1340_v28 }
 0x11a   :  { %2481 = vmatprep.mubr.msk.bf16.mxu0 %vm2652_vm2, %v4270_v0  ;;  %2585 = vmatprep.mubr.msk.bf16.mxu1 %vm2652_vm2, %v4270_v0 }
 0x11c   :  { %v3423_v2 = vpop.f32.mrb[32].mxu0  ;;  %v3425_v3 = vpop.f32.mrb[32].mxu1 }
 0x11d   :  { %v2267_v8 = vpop.f32.mrb[33].mxu0  ;;  %v2371_v9 = vpop.f32.mrb[33].mxu1 }
 0x11e   :  { %v3429_v27 = vpop.f32.mrb[34].mxu0  ;;  %v3431_v28 = vpop.f32.mrb[34].mxu1  ;;  %v1994_v8 = vld [vmem:[%s4267_s0 + $0x3c0] sm:$0xff] }
 0x11f   :  { %v2268_v42 = vpop.f32.mrb[35].mxu0  ;;  %v2372_v34 = vpop.f32.mrb[35].mxu1 }
 0x120   :  { %v2068_v34 = vld [vmem:[%s4267_s0 + $0x548] sm:$0xff]  ;;  %v911_v42 = vpack.c.bf16 %v1995_v43, %v1994_v8  ;;  %v1997_v8 = vld [vmem:[%s4267_s0 + $0x3d8] sm:$0xff] }
 0x121   :  { %2482 = vmatmul.mubr.msk.bf16.gmra.mrb[140].mxu0 %vm104_vm3, %v910_v19  ;;  %2586 = vmatmul.mubr.msk.bf16.gmra.mrb[140].mxu1 %vm104_vm3, %v1341_v20  ;;  %v1342_v35 = vpack.c.bf16 %v2069_v44, %v2068_v34 }
 0x122   :  { %2485 = vmatprep.mubr.msk.bf16.mxu0 %vm2652_vm2, %v4270_v0  ;;  %2589 = vmatprep.mubr.msk.bf16.mxu1 %vm2652_vm2, %v4270_v0 }
 0x124   :  { %v3453_v48 = vpop.f32.mrb[36].mxu0  ;;  %v3455_v58 = vpop.f32.mrb[36].mxu1 }
 0x125   :  { %v2271_v19 = vpop.f32.mrb[37].mxu0  ;;  %v2375_v20 = vpop.f32.mrb[37].mxu1 }
 0x126   :  { %v3459_v4 = vpop.f32.mrb[38].mxu0  ;;  %v3461_v18 = vpop.f32.mrb[38].mxu1  ;;  %v1996_v19 = vld [vmem:[%s4267_s0 + $0x3d0] sm:$0xff] }
 0x127   :  { %v2272_v41 = vpop.f32.mrb[39].mxu0  ;;  %v2376_v26 = vpop.f32.mrb[39].mxu1 }
 0x128   :  { %v2070_v26 = vld [vmem:[%s4267_s0 + $0x558] sm:$0xff]  ;;  %v2071_v41 = vld [vmem:[%s4267_s0 + $0x560] sm:$0xff] }
 0x129   :  { %2486 = vmatmul.mubr.msk.bf16.gmra.mrb[144].mxu0 %vm104_vm3, %v911_v42  ;;  %2590 = vmatmul.mubr.msk.bf16.gmra.mrb[144].mxu1 %vm104_vm3, %v1342_v35  ;;  %v912_v42 = vpack.c.bf16 %v1997_v8, %v1996_v19  ;;  %v1343_v57 = vpack.c.bf16 %v2071_v41, %v2070_v26  ;;  %v1999_v19 = vld [vmem:[%s4267_s0 + $0x3e8] sm:$0xff] }
 0x12a   :  { %2489 = vmatprep.mubr.msk.bf16.mxu0 %vm2652_vm2, %v4270_v0  ;;  %2593 = vmatprep.mubr.msk.bf16.mxu1 %vm2652_vm2, %v4270_v0 }
 0x12c   :  { %v3483_v35 = vpop.f32.mrb[40].mxu0  ;;  %v3485_v43 = vpop.f32.mrb[40].mxu1 }
 0x12d   :  { %v2275_v44 = vpop.f32.mrb[41].mxu0  ;;  %v2379_v20 = vpop.f32.mrb[41].mxu1 }
 0x12e   :  { %v3489_v9 = vpop.f32.mrb[42].mxu0  ;;  %v3491_v13 = vpop.f32.mrb[42].mxu1  ;;  %v1998_v44 = vld [vmem:[%s4267_s0 + $0x3e0] sm:$0xff] }
 0x12f   :  { %v2276_v51 = vpop.f32.mrb[43].mxu0  ;;  %v2380_v39 = vpop.f32.mrb[43].mxu1 }
 0x130   :  { %v2072_v39 = vld [vmem:[%s4267_s0 + $0x568] sm:$0xff]  ;;  %v2073_v51 = vld [vmem:[%s4267_s0 + $0x570] sm:$0xff] }
 0x131   :  { %2490 = vmatmul.mubr.msk.bf16.gmra.mrb[148].mxu0 %vm104_vm3, %v912_v42  ;;  %2594 = vmatmul.mubr.msk.bf16.gmra.mrb[148].mxu1 %vm104_vm3, %v1343_v57  ;;  %v913_v42 = vpack.c.bf16 %v1999_v19, %v1998_v44  ;;  %v1344_v1 = vpack.c.bf16 %v2073_v51, %v2072_v39  ;;  %v2001_v44 = vld [vmem:[%s4267_s0 + $0x3f8] sm:$0xff] }
 0x132   :  { %2493 = vmatprep.mubr.msk.bf16.mxu0 %vm2652_vm2, %v4270_v0  ;;  %2597 = vmatprep.mubr.msk.bf16.mxu1 %vm2652_vm2, %v4270_v0 }
 0x134   :  { %v3513_v57 = vpop.f32.mrb[44].mxu0  ;;  %v3515_v8 = vpop.f32.mrb[44].mxu1 }
 0x135   :  { %v2279_v41 = vpop.f32.mrb[45].mxu0  ;;  %v2383_v20 = vpop.f32.mrb[45].mxu1 }
 0x136   :  { %v3519_v34 = vpop.f32.mrb[46].mxu0  ;;  %v3521_v32 = vpop.f32.mrb[46].mxu1  ;;  %v2000_v41 = vld [vmem:[%s4267_s0 + $0x3f0] sm:$0xff] }
 0x137   :  { %4321 = vst [vmem:[#allocation2_spill] sm:$0xff] %v3521_v32  ;;  %v2280_v16 = vpop.f32.mrb[47].mxu0  ;;  %v2384_v7 = vpop.f32.mrb[47].mxu1 }
 0x138   :  { %v2074_v7 = vld [vmem:[%s4267_s0 + $0x578] sm:$0xff]  ;;  %v2075_v16 = vld [vmem:[%s4267_s0 + $0x580] sm:$0xff] }
 0x139   :  { %2494 = vmatmul.mubr.msk.bf16.gmra.mrb[152].mxu0 %vm104_vm3, %v913_v42  ;;  %2598 = vmatmul.mubr.msk.bf16.gmra.mrb[152].mxu1 %vm104_vm3, %v1344_v1  ;;  %v914_v42 = vpack.c.bf16 %v2001_v44, %v2000_v41  ;;  %v1345_v23 = vpack.c.bf16 %v2075_v16, %v2074_v7  ;;  %v2003_v41 = vld [vmem:[%s4267_s0 + $0x408] sm:$0xff] }
 0x13a   :  { %2497 = vmatprep.mubr.msk.bf16.mxu0 %vm2652_vm2, %v4270_v0  ;;  %2601 = vmatprep.mubr.msk.bf16.mxu1 %vm2652_vm2, %v4270_v0 }
 0x13c   :  { %v3543_v1 = vpop.f32.mrb[48].mxu0  ;;  %v3545_v19 = vpop.f32.mrb[48].mxu1 }
 0x13d   :  { %4322 = vst [vmem:[#allocation3_spill] sm:$0xff] %v3543_v1  ;;  %4323 = vst [vmem:[#allocation4_spill] sm:$0xff] %v3545_v19  ;;  %v2283_v51 = vpop.f32.mrb[49].mxu0  ;;  %v2387_v20 = vpop.f32.mrb[49].mxu1 }
 0x13e   :  { %v3549_v26 = vpop.f32.mrb[50].mxu0  ;;  %v3551_v63 = vpop.f32.mrb[50].mxu1  ;;  %v2002_v51 = vld [vmem:[%s4267_s0 + $0x400] sm:$0xff]  ;;  %v4326_v20 = vmov 0.0  }
 0x13f   :  { %4324 = vst [vmem:[#allocation5_spill] sm:$0xff] %v3549_v26  ;;  %4325 = vst [vmem:[#allocation6_spill] sm:$0xff] %v3551_v63  ;;  %v2284_v47 = vpop.f32.mrb[51].mxu0  ;;  %v2388_v0 = vpop.f32.mrb[51].mxu1  ;;  %v915_v54 = vpack.c.bf16 %v2003_v41, %v2002_v51  ;;  %v2005_v51 = vld [vmem:[%s4267_s0 + $0x418] sm:$0xff] }
 0x140   :  { %v2076_v0 = vld [vmem:[%s4267_s0 + $0x588] sm:$0xff]  ;;  %v2077_v47 = vld [vmem:[%s4267_s0 + $0x590] sm:$0xff] }
 0x141   :  { %2498 = vmatmul.mubr.msk.bf16.gmra.mrb[156].mxu0 %vm104_vm3, %v914_v42  ;;  %2602 = vmatmul.mubr.msk.bf16.gmra.mrb[156].mxu1 %vm104_vm3, %v1345_v23  ;;  %v1346_v39 = vpack.c.bf16 %v2077_v47, %v2076_v0 }
 0x142   :  { %2501 = vmatprep.mubr.msk.bf16.mxu0 %vm2652_vm2, %v4326_v20  ;;  %2605 = vmatprep.mubr.msk.bf16.mxu1 %vm2652_vm2, %v4326_v20 }
 0x144   :  { %v3573_v23 = vpop.f32.mrb[52].mxu0  ;;  %v3575_v44 = vpop.f32.mrb[52].mxu1 }
 0x145   :  { %4327 = vst [vmem:[#allocation7_spill] sm:$0xff] %v3573_v23  ;;  %4328 = vst [vmem:[#allocation8_spill] sm:$0xff] %v3575_v44  ;;  %v2287_v16 = vpop.f32.mrb[53].mxu0  ;;  %v2391_v42 = vpop.f32.mrb[53].mxu1 }
 0x146   :  { %v3579_v63 = vpop.f32.mrb[54].mxu0  ;;  %v3581_v26 = vpop.f32.mrb[54].mxu1  ;;  %v2004_v16 = vld [vmem:[%s4267_s0 + $0x410] sm:$0xff] }
 0x147   :  { %4329 = vst [vmem:[#allocation9_spill] sm:$0xff] %v3579_v63  ;;  %4330 = vst [vmem:[#allocation10_spill] sm:$0xff] %v3581_v26  ;;  %v2288_v1 = vpop.f32.mrb[55].mxu0  ;;  %v2392_v32 = vpop.f32.mrb[55].mxu1  ;;  %v916_v42 = vpack.c.bf16 %v2005_v51, %v2004_v16  ;;  %v2007_v16 = vld [vmem:[%s4267_s0 + $0x428] sm:$0xff] }
 0x148   :  { %v2079_v32 = vld [vmem:[%s4267_s0 + $0x5a0] sm:$0xff] }
 0x149   :  { %2502 = vmatmul.mubr.msk.bf16.gmra.mrb[160].mxu0 %vm104_vm3, %v915_v54  ;;  %2606 = vmatmul.mubr.msk.bf16.gmra.mrb[160].mxu1 %vm104_vm3, %v1346_v39  ;;  %v2078_v54 = vld [vmem:[%s4267_s0 + $0x598] sm:$0xff] }
 0x14a   :  { %2505 = vmatprep.mubr.msk.bf16.mxu0 %vm2652_vm2, %v4326_v20  ;;  %2609 = vmatprep.mubr.msk.bf16.mxu1 %vm2652_vm2, %v4326_v20  ;;  %v1347_v19 = vpack.c.bf16 %v2079_v32, %v2078_v54 }
 0x14c   :  { %v3603_v1 = vpop.f32.mrb[56].mxu0  ;;  %v3605_v39 = vpop.f32.mrb[56].mxu1 }
 0x14d   :  { %4331 = vst [vmem:[#allocation11_spill] sm:$0xff] %v3603_v1  ;;  %4332 = vst [vmem:[#allocation12_spill] sm:$0xff] %v3605_v39  ;;  %v2291_v0 = vpop.f32.mrb[57].mxu0  ;;  %v2395_v47 = vpop.f32.mrb[57].mxu1 }
 0x14e   :  { %v3609_v7 = vpop.f32.mrb[58].mxu0  ;;  %v3611_v26 = vpop.f32.mrb[58].mxu1  ;;  %v2006_v0 = vld [vmem:[%s4267_s0 + $0x420] sm:$0xff] }
 0x14f   :  { %4333 = vst [vmem:[#allocation13_spill] sm:$0xff] %v3609_v7  ;;  %4334 = vst [vmem:[#allocation14_spill] sm:$0xff] %v3611_v26  ;;  %v2292_v44 = vpop.f32.mrb[59].mxu0  ;;  %v2396_v23 = vpop.f32.mrb[59].mxu1 }
 0x150   :  { %v2080_v23 = vld [vmem:[%s4267_s0 + $0x5a8] sm:$0xff] }
 0x151   :  { %2506 = vmatmul.mubr.msk.bf16.gmra.mrb[164].mxu0 %vm104_vm3, %v916_v42  ;;  %2610 = vmatmul.mubr.msk.bf16.gmra.mrb[164].mxu1 %vm104_vm3, %v1347_v19  ;;  %v2081_v19 = vld [vmem:[%s4267_s0 + $0x5b0] sm:$0xff]  ;;  %v917_v42 = vpack.c.bf16 %v2007_v16, %v2006_v0  ;;  %v2009_v0 = vld [vmem:[%s4267_s0 + $0x438] sm:$0xff] }
 0x152   :  { %2509 = vmatprep.mubr.msk.bf16.mxu0 %vm2652_vm2, %v4326_v20  ;;  %2613 = vmatprep.mubr.msk.bf16.mxu1 %vm2652_vm2, %v4326_v20  ;;  %v1348_v63 = vpack.c.bf16 %v2081_v19, %v2080_v23 }
 0x154   :  { %v3633_v44 = vpop.f32.mrb[60].mxu0  ;;  %v3635_v51 = vpop.f32.mrb[60].mxu1 }
 0x155   :  { %4335 = vst [vmem:[#allocation15_spill] sm:$0xff] %v3633_v44  ;;  %4336 = vst [vmem:[#allocation16_spill] sm:$0xff] %v3635_v51  ;;  %v2295_v32 = vpop.f32.mrb[61].mxu0  ;;  %v2399_v47 = vpop.f32.mrb[61].mxu1 }
 0x156   :  { %v3639_v41 = vpop.f32.mrb[62].mxu0  ;;  %v3641_v26 = vpop.f32.mrb[62].mxu1  ;;  %v2008_v32 = vld [vmem:[%s4267_s0 + $0x430] sm:$0xff] }
 0x157   :  { %4337 = vst [vmem:[#allocation17_spill] sm:$0xff] %v3639_v41  ;;  %4338 = vst [vmem:[#allocation18_spill] sm:$0xff] %v3641_v26  ;;  %v2296_v39 = vpop.f32.mrb[63].mxu0  ;;  %v2400_v1 = vpop.f32.mrb[63].mxu1 }
 0x158   :  { %v2082_v1 = vld [vmem:[%s4267_s0 + $0x5b8] sm:$0xff] }
 0x159   :  { %2510 = vmatmul.mubr.msk.bf16.gmra.mrb[168].mxu0 %vm104_vm3, %v917_v42  ;;  %2614 = vmatmul.mubr.msk.bf16.gmra.mrb[168].mxu1 %vm104_vm3, %v1348_v63  ;;  %v2083_v63 = vld [vmem:[%s4267_s0 + $0x5c0] sm:$0xff]  ;;  %v918_v42 = vpack.c.bf16 %v2009_v0, %v2008_v32  ;;  %v2011_v32 = vld [vmem:[%s4267_s0 + $0x448] sm:$0xff] }
 0x15a   :  { %2513 = vmatprep.mubr.msk.bf16.mxu0 %vm2652_vm2, %v4326_v20  ;;  %2617 = vmatprep.mubr.msk.bf16.mxu1 %vm2652_vm2, %v4326_v20  ;;  %v1349_v7 = vpack.c.bf16 %v2083_v63, %v2082_v1 }
 0x15c   :  { %v3663_v39 = vpop.f32.mrb[64].mxu0  ;;  %v3665_v16 = vpop.f32.mrb[64].mxu1 }
 0x15d   :  { %4339 = vst [vmem:[#allocation19_spill] sm:$0xff] %v3663_v39  ;;  %4340 = vst [vmem:[#allocation20_spill] sm:$0xff] %v3665_v16  ;;  %v2299_v19 = vpop.f32.mrb[65].mxu0  ;;  %v2403_v47 = vpop.f32.mrb[65].mxu1 }
 0x15e   :  { %v3669_v54 = vpop.f32.mrb[66].mxu0  ;;  %v3671_v26 = vpop.f32.mrb[66].mxu1  ;;  %v2010_v19 = vld [vmem:[%s4267_s0 + $0x440] sm:$0xff] }
 0x15f   :  { %4341 = vst [vmem:[#allocation21_spill] sm:$0xff] %v3669_v54  ;;  %4342 = vst [vmem:[#allocation22_spill] sm:$0xff] %v3671_v26  ;;  %v2300_v51 = vpop.f32.mrb[67].mxu0  ;;  %v2404_v44 = vpop.f32.mrb[67].mxu1 }
 0x160   :  { %v2084_v44 = vld [vmem:[%s4267_s0 + $0x5c8] sm:$0xff] }
 0x161   :  { %2514 = vmatmul.mubr.msk.bf16.gmra.mrb[172].mxu0 %vm104_vm3, %v918_v42  ;;  %2618 = vmatmul.mubr.msk.bf16.gmra.mrb[172].mxu1 %vm104_vm3, %v1349_v7  ;;  %v2085_v7 = vld [vmem:[%s4267_s0 + $0x5d0] sm:$0xff]  ;;  %v919_v42 = vpack.c.bf16 %v2011_v32, %v2010_v19  ;;  %v2013_v19 = vld [vmem:[%s4267_s0 + $0x458] sm:$0xff] }
 0x162   :  { %2517 = vmatprep.mubr.msk.bf16.mxu0 %vm2652_vm2, %v4326_v20  ;;  %2621 = vmatprep.mubr.msk.bf16.mxu1 %vm2652_vm2, %v4326_v20  ;;  %v1350_v41 = vpack.c.bf16 %v2085_v7, %v2084_v44 }
 0x164   :  { %v3693_v51 = vpop.f32.mrb[68].mxu0  ;;  %v3695_v0 = vpop.f32.mrb[68].mxu1 }
 0x165   :  { %4343 = vst [vmem:[#allocation23_spill] sm:$0xff] %v3693_v51  ;;  %4344 = vst [vmem:[#allocation24_spill] sm:$0xff] %v3695_v0  ;;  %v2303_v63 = vpop.f32.mrb[69].mxu0  ;;  %v2407_v47 = vpop.f32.mrb[69].mxu1 }
 0x166   :  { %v3699_v23 = vpop.f32.mrb[70].mxu0  ;;  %v3701_v26 = vpop.f32.mrb[70].mxu1  ;;  %v2012_v63 = vld [vmem:[%s4267_s0 + $0x450] sm:$0xff] }
 0x167   :  { %4345 = vst [vmem:[#allocation25_spill] sm:$0xff] %v3699_v23  ;;  %4346 = vst [vmem:[#allocation26_spill] sm:$0xff] %v3701_v26  ;;  %v2304_v16 = vpop.f32.mrb[71].mxu0  ;;  %v2408_v39 = vpop.f32.mrb[71].mxu1 }
 0x168   :  { %v2086_v39 = vld [vmem:[%s4267_s0 + $0x5d8] sm:$0xff] }
 0x169   :  { %2518 = vmatmul.mubr.msk.bf16.gmra.mrb[176].mxu0 %vm104_vm3, %v919_v42  ;;  %2622 = vmatmul.mubr.msk.bf16.gmra.mrb[176].mxu1 %vm104_vm3, %v1350_v41  ;;  %v2087_v41 = vld [vmem:[%s4267_s0 + $0x5e0] sm:$0xff]  ;;  %v920_v42 = vpack.c.bf16 %v2013_v19, %v2012_v63  ;;  %v2015_v63 = vld [vmem:[%s4267_s0 + $0x468] sm:$0xff] }
 0x16a   :  { %2521 = vmatprep.mubr.msk.bf16.mxu0 %vm2652_vm2, %v4326_v20  ;;  %2625 = vmatprep.mubr.msk.bf16.mxu1 %vm2652_vm2, %v4326_v20  ;;  %v1351_v54 = vpack.c.bf16 %v2087_v41, %v2086_v39 }
 0x16c   :  { %v3723_v16 = vpop.f32.mrb[72].mxu0  ;;  %v3725_v32 = vpop.f32.mrb[72].mxu1 }
 0x16d   :  { %4347 = vst [vmem:[#allocation27_spill] sm:$0xff] %v3723_v16  ;;  %4348 = vst [vmem:[#allocation28_spill] sm:$0xff] %v3725_v32  ;;  %v2307_v7 = vpop.f32.mrb[73].mxu0  ;;  %v2411_v47 = vpop.f32.mrb[73].mxu1 }
 0x16e   :  { %v3729_v1 = vpop.f32.mrb[74].mxu0  ;;  %v3731_v26 = vpop.f32.mrb[74].mxu1  ;;  %v2014_v7 = vld [vmem:[%s4267_s0 + $0x460] sm:$0xff] }
 0x16f   :  { %4349 = vst [vmem:[#allocation29_spill] sm:$0xff] %v3729_v1  ;;  %4350 = vst [vmem:[#allocation30_spill] sm:$0xff] %v3731_v26  ;;  %v2308_v0 = vpop.f32.mrb[75].mxu0  ;;  %v2412_v51 = vpop.f32.mrb[75].mxu1 }
 0x170   :  { %v2088_v51 = vld [vmem:[%s4267_s0 + $0x5e8] sm:$0xff] }
 0x171   :  { %2522 = vmatmul.mubr.msk.bf16.gmra.mrb[180].mxu0 %vm104_vm3, %v920_v42  ;;  %2626 = vmatmul.mubr.msk.bf16.gmra.mrb[180].mxu1 %vm104_vm3, %v1351_v54  ;;  %v2089_v54 = vld [vmem:[%s4267_s0 + $0x5f0] sm:$0xff]  ;;  %v921_v42 = vpack.c.bf16 %v2015_v63, %v2014_v7  ;;  %v2017_v7 = vld [vmem:[%s4267_s0 + $0x478] sm:$0xff] }
 0x172   :  { %2525 = vmatprep.mubr.msk.bf16.mxu0 %vm2652_vm2, %v4326_v20  ;;  %2629 = vmatprep.mubr.msk.bf16.mxu1 %vm2652_vm2, %v4326_v20  ;;  %v1352_v23 = vpack.c.bf16 %v2089_v54, %v2088_v51 }
 0x174   :  { %v3753_v0 = vpop.f32.mrb[76].mxu0  ;;  %v3755_v19 = vpop.f32.mrb[76].mxu1 }
 0x175   :  { %4351 = vst [vmem:[#allocation31_spill] sm:$0xff] %v3753_v0  ;;  %4352 = vst [vmem:[#allocation32_spill] sm:$0xff] %v3755_v19  ;;  %v2311_v41 = vpop.f32.mrb[77].mxu0  ;;  %v2415_v47 = vpop.f32.mrb[77].mxu1 }
 0x176   :  { %v3759_v44 = vpop.f32.mrb[78].mxu0  ;;  %v3761_v26 = vpop.f32.mrb[78].mxu1  ;;  %v2016_v41 = vld [vmem:[%s4267_s0 + $0x470] sm:$0xff] }
 0x177   :  { %4353 = vst [vmem:[#allocation33_spill] sm:$0xff] %v3759_v44  ;;  %4354 = vst [vmem:[#allocation34_spill] sm:$0xff] %v3761_v26  ;;  %v2312_v32 = vpop.f32.mrb[79].mxu0  ;;  %v2416_v16 = vpop.f32.mrb[79].mxu1 }
 0x178   :  { %v2090_v16 = vld [vmem:[%s4267_s0 + $0x5f8] sm:$0xff] }
 0x179   :  { %2526 = vmatmul.mubr.msk.bf16.gmra.mrb[184].mxu0 %vm104_vm3, %v921_v42  ;;  %2630 = vmatmul.mubr.msk.bf16.gmra.mrb[184].mxu1 %vm104_vm3, %v1352_v23  ;;  %v2091_v23 = vld [vmem:[%s4267_s0 + $0x600] sm:$0xff]  ;;  %v922_v42 = vpack.c.bf16 %v2017_v7, %v2016_v41  ;;  %v2019_v41 = vld [vmem:[%s4267_s0 + $0x488] sm:$0xff] }
 0x17a   :  { %2529 = vmatprep.mubr.msk.bf16.mxu0 %vm2652_vm2, %v4326_v20  ;;  %2633 = vmatprep.mubr.msk.bf16.mxu1 %vm2652_vm2, %v4326_v20  ;;  %v1353_v1 = vpack.c.bf16 %v2091_v23, %v2090_v16 }
 0x17c   :  { %v3783_v32 = vpop.f32.mrb[80].mxu0  ;;  %v3785_v63 = vpop.f32.mrb[80].mxu1 }
 0x17d   :  { %4355 = vst [vmem:[#allocation35_spill] sm:$0xff] %v3783_v32  ;;  %4356 = vst [vmem:[#allocation36_spill] sm:$0xff] %v3785_v63  ;;  %v2315_v54 = vpop.f32.mrb[81].mxu0  ;;  %v2419_v47 = vpop.f32.mrb[81].mxu1 }
 0x17e   :  { %v3789_v39 = vpop.f32.mrb[82].mxu0  ;;  %v3791_v26 = vpop.f32.mrb[82].mxu1  ;;  %v2018_v54 = vld [vmem:[%s4267_s0 + $0x480] sm:$0xff] }
 0x17f   :  { %4357 = vst [vmem:[#allocation37_spill] sm:$0xff] %v3789_v39  ;;  %4358 = vst [vmem:[#allocation38_spill] sm:$0xff] %v3791_v26  ;;  %v2316_v19 = vpop.f32.mrb[83].mxu0  ;;  %v2420_v0 = vpop.f32.mrb[83].mxu1 }
 0x180   :  { %v2092_v0 = vld [vmem:[%s4267_s0 + $0x608] sm:$0xff] }
 0x181   :  { %2530 = vmatmul.mubr.msk.bf16.gmra.mrb[188].mxu0 %vm104_vm3, %v922_v42  ;;  %2634 = vmatmul.mubr.msk.bf16.gmra.mrb[188].mxu1 %vm104_vm3, %v1353_v1  ;;  %v2093_v1 = vld [vmem:[%s4267_s0 + $0x610] sm:$0xff]  ;;  %v923_v42 = vpack.c.bf16 %v2019_v41, %v2018_v54  ;;  %v2094_v41 = vld [vmem:[%s4267_s0 + $0x618] sm:$0xff] }
 0x182   :  { %2533 = vmatprep.mubr.msk.bf16.mxu0 %vm2652_vm2, %v4326_v20  ;;  %2637 = vmatprep.mubr.msk.bf16.mxu1 %vm2652_vm2, %v4326_v20  ;;  %v1354_v44 = vpack.c.bf16 %v2093_v1, %v2092_v0  ;;  %v2020_v54 = vld [vmem:[%s4267_s0 + $0x490] sm:$0xff] }
 0x184   :  { %v3813_v19 = vpop.f32.mrb[84].mxu0  ;;  %v3815_v7 = vpop.f32.mrb[84].mxu1 }
 0x185   :  { %4359 = vst [vmem:[#allocation39_spill] sm:$0xff] %v3815_v7  ;;  %v2319_v23 = vpop.f32.mrb[85].mxu0  ;;  %v2423_v47 = vpop.f32.mrb[85].mxu1 }
 0x186   :  { %v3819_v51 = vpop.f32.mrb[86].mxu0  ;;  %v3821_v26 = vpop.f32.mrb[86].mxu1  ;;  %v924_v23 = vpack.c.bf16 %v2020_v54, %v2020_v54  ;;  %v1355_v47 = vpack.c.bf16 %v2094_v41, %v2094_v41 }
 0x187   :  { %4360 = vst [vmem:[#allocation40_spill] sm:$0xff] %v3819_v51  ;;  %4361 = vst [vmem:[#allocation41_spill] sm:$0xff] %v3821_v26  ;;  %v2320_v63 = vpop.f32.mrb[87].mxu0  ;;  %v2424_v32 = vpop.f32.mrb[87].mxu1 }
 0x189   :  { %2534 = vmatmul.mubr.msk.bf16.gmra.mrb[192].mxu0 %vm104_vm3, %v923_v42  ;;  %2638 = vmatmul.mubr.msk.bf16.gmra.mrb[192].mxu1 %vm104_vm3, %v1354_v44 }
 0x18a   :  { %2537 = vmatprep.mubr.msk.bf16.mxu0 %vm2652_vm2, %v4326_v20  ;;  %2641 = vmatprep.mubr.msk.bf16.mxu1 %vm2652_vm2, %v4326_v20 }
 0x18c   :  { %v3837_v63 = vpop.f32.mrb[88].mxu0  ;;  %v3839_v32 = vpop.f32.mrb[88].mxu1 }
 0x18d   :  { %4362 = vst [vmem:[#allocation42_spill] sm:$0xff] %v3837_v63  ;;  %4363 = vst [vmem:[#allocation43_spill] sm:$0xff] %v3839_v32  ;;  %v2323_v0 = vpop.f32.mrb[89].mxu0  ;;  %v2427_v1 = vpop.f32.mrb[89].mxu1 }
 0x18e   :  { %v3843_v20 = vpop.f32.mrb[90].mxu0  ;;  %v3845_v42 = vpop.f32.mrb[90].mxu1 }
 0x18f   :  { %4364 = vst [vmem:[#allocation44_spill] sm:$0xff] %v3843_v20  ;;  %4365 = vst [vmem:[#allocation45_spill] sm:$0xff] %v3845_v42  ;;  %v2324_v16 = vpop.f32.mrb[91].mxu0  ;;  %v2428_v26 = vpop.f32.mrb[91].mxu1 }
 0x190   :  { %v4371_v26 = vmax.f32 %v3183_v45, %v3185_v46 }
 0x191   :  { %2538 = vmatmul.mubr.msk.bf16.gmra.mrb[196].mxu0 %vm104_vm3, %v924_v23  ;;  %2642 = vmatmul.mubr.msk.bf16.gmra.mrb[196].mxu1 %vm104_vm3, %v1355_v47 }
 0x194   :  { %v3851_v51 = vpop.f32.mrb[92].mxu0  ;;  %v3853_v44 = vpop.f32.mrb[92].mxu1 }
 0x195   :  { %4366 = vst [vmem:[#allocation46_spill] sm:$0xff] %v3851_v51  ;;  %4367 = vst [vmem:[#allocation47_spill] sm:$0xff] %v3853_v44  ;;  %v2327_v41 = vpop.f32.mrb[93].mxu0  ;;  %v2431_v0 = vpop.f32.mrb[93].mxu1 }
 0x196   :  { %v3857_v1 = vpop.f32.mrb[94].mxu0  ;;  %v3859_v32 = vpop.f32.mrb[94].mxu1 }
 0x197   :  { %4368 = vst [vmem:[#allocation48_spill] sm:$0xff] %v3857_v1  ;;  %4369 = vst [vmem:[#allocation49_spill] sm:$0xff] %v3859_v32  ;;  %v2328_v16 = vpop.f32.mrb[95].mxu0  ;;  %v2432_v23 = vpop.f32.mrb[95].mxu1  ;;  %v3875_v1 = vld [vmem:[%s4268_s2] ss:$0 sm:$0xff] }
 0x19c   :  { %v3863_v39 = vpop.f32.mrb[96].mxu0  ;;  %v3865_v47 = vpop.f32.mrb[96].mxu1 }
 0x19d   :  { %4370 = vst [vmem:[#allocation50_spill] sm:$0xff] %v3865_v47  ;;  %v2331_v20 = vpop.f32.mrb[97].mxu0  ;;  %v2435_v54 = vpop.f32.mrb[97].mxu1 }
 0x19e   :  { %v416_v41 = vpop.f32.mrb[98].mxu0  ;;  %v798_v0 = vpop.f32.mrb[98].mxu1 }
 0x19f   :  { %v2332_v44 = vpop.f32.mrb[99].mxu0  ;;  %v2436_v51 = vpop.f32.mrb[99].mxu1 }
 0x1a0   :  { %v4372_v44 = vmax.f32 %v3189_v52, %v3191_v53  ;;  %v4373_v52 = vmax.f32 %v3213_v61, %v3215_v62 }
 0x1a4   :  { %v1034_v63 = vpop.f32.mrb[100].mxu0  ;;  %v1465_v7 = vpop.f32.mrb[100].mxu1 }
 0x1a5   :  { %v1232_v16 = vmax.f32 %v4371_v26, %v1034_v63  ;;  %v2443_v23 = vpop.f32.mrb[101].mxu0  ;;  %v2547_v32 = vpop.f32.mrb[101].mxu1 }
 0x1a6   :  { %v1037_v42 = vpop.f32.mrb[102].mxu0  ;;  %v1468_v20 = vpop.f32.mrb[102].mxu1 }
 0x1a7   :  { %v1663_v54 = vmax.f32 %v1232_v16, %v1465_v7  ;;  %v1233_v51 = vmax.f32 %v4372_v44, %v1037_v42  ;;  %v2444_v41 = vpop.f32.mrb[103].mxu0  ;;  %v2548_v0 = vpop.f32.mrb[103].mxu1 }
 0x1a9   :  { %v1719_v47 = vadd.f32 %v3875_v1, %v1663_v54  ;;  %v1664_v45 = vmax.f32 %v1233_v51, %v1468_v20  ;;  %v4374_v54 = vmax.f32 %v3219_v5, %v3221_v6  ;;  %v4375_v5 = vmax.f32 %v3243_v14, %v3245_v15 }
 0x1ab   :  { %v1768_v46 = vmax.f32 %v1719_v47, 0.0  ;;  %v1720_v63 = vadd.f32 %v3875_v1, %v1664_v45 }
 0x1ac   :  { %v1042_v32 = vpop.f32.mrb[104].mxu0  ;;  %v1473_v26 = vpop.f32.mrb[104].mxu1 }
 0x1ad   :  { %1818 = vst.msk [vmem:[%s4269_s3] sm:$0xff] %vm1817_vm4, %v1768_v46  ;;  %v1769_v7 = vmax.f32 %v1720_v63, 0.0  ;;  %v1234_v53 = vmax.f32 %v4373_v52, %v1042_v32  ;;  %v2447_v42 = vpop.f32.mrb[105].mxu0  ;;  %v2551_v16 = vpop.f32.mrb[105].mxu1 }
 0x1ae   :  { %v1045_v23 = vpop.f32.mrb[106].mxu0  ;;  %v1476_v20 = vpop.f32.mrb[106].mxu1  ;;  %v4376_v16 = vmax.f32 %v3249_v21, %v3251_v22  ;;  %v4377_v21 = vmax.f32 %v3273_v30, %v3275_v31 }
 0x1af   :  { %1819 = vst.msk [vmem:[%s4269_s3 + $0x8] sm:$0xff] %vm1817_vm4, %v1769_v7  ;;  %v1665_v47 = vmax.f32 %v1234_v53, %v1473_v26  ;;  %v1235_v44 = vmax.f32 %v4374_v54, %v1045_v23  ;;  %v2448_v51 = vpop.f32.mrb[107].mxu0  ;;  %v2552_v41 = vpop.f32.mrb[107].mxu1 }
 0x1b1   :  { %v1721_v0 = vadd.f32 %v3875_v1, %v1665_v47  ;;  %v1666_v61 = vmax.f32 %v1235_v44, %v1476_v20 }
 0x1b3   :  { %v1770_v62 = vmax.f32 %v1721_v0, 0.0  ;;  %v1722_v45 = vadd.f32 %v3875_v1, %v1666_v61 }
 0x1b4   :  { %v1050_v46 = vpop.f32.mrb[108].mxu0  ;;  %v1481_v63 = vpop.f32.mrb[108].mxu1 }
 0x1b5   :  { %1820 = vst.msk [vmem:[%s4269_s3 + $0x10] sm:$0xff] %vm1817_vm4, %v1770_v62  ;;  %v1771_v32 = vmax.f32 %v1722_v45, 0.0  ;;  %v1236_v6 = vmax.f32 %v4375_v5, %v1050_v46  ;;  %v2451_v26 = vpop.f32.mrb[109].mxu0  ;;  %v2555_v7 = vpop.f32.mrb[109].mxu1 }
 0x1b6   :  { %v1053_v52 = vpop.f32.mrb[110].mxu0  ;;  %v1484_v53 = vpop.f32.mrb[110].mxu1 }
 0x1b7   :  { %1821 = vst.msk [vmem:[%s4269_s3 + $0x18] sm:$0xff] %vm1817_vm4, %v1771_v32  ;;  %v1667_v42 = vmax.f32 %v1236_v6, %v1481_v63  ;;  %v1237_v23 = vmax.f32 %v4376_v16, %v1053_v52  ;;  %v2452_v20 = vpop.f32.mrb[111].mxu0  ;;  %v2556_v47 = vpop.f32.mrb[111].mxu1  ;;  %v4378_v32 = vmax.f32 %v3279_v37, %v3281_v38  ;;  %v4379_v37 = vmax.f32 %v3303_v49, %v3305_v50 }
 0x1b9   :  { %v1723_v54 = vadd.f32 %v3875_v1, %v1667_v42  ;;  %v1668_v14 = vmax.f32 %v1237_v23, %v1484_v53 }
 0x1bb   :  { %v1772_v15 = vmax.f32 %v1723_v54, 0.0  ;;  %v1724_v44 = vadd.f32 %v3875_v1, %v1668_v14 }
 0x1bc   :  { %v1058_v51 = vpop.f32.mrb[112].mxu0  ;;  %v1489_v41 = vpop.f32.mrb[112].mxu1 }
 0x1bd   :  { %1822 = vst.msk [vmem:[%s4269_s3 + $0x20] sm:$0xff] %vm1817_vm4, %v1772_v15  ;;  %v1773_v0 = vmax.f32 %v1724_v44, 0.0  ;;  %v1238_v22 = vmax.f32 %v4377_v21, %v1058_v51  ;;  %v2455_v61 = vpop.f32.mrb[113].mxu0  ;;  %v2559_v62 = vpop.f32.mrb[113].mxu1  ;;  %v4380_v15 = vmax.f32 %v3309_v59, %v3311_v60  ;;  %v4381_v59 = vmax.f32 %v3333_v11, %v3335_v12 }
 0x1be   :  { %v1061_v45 = vpop.f32.mrb[114].mxu0  ;;  %v1492_v46 = vpop.f32.mrb[114].mxu1 }
 0x1bf   :  { %1823 = vst.msk [vmem:[%s4269_s3 + $0x28] sm:$0xff] %vm1817_vm4, %v1773_v0  ;;  %v1669_v63 = vmax.f32 %v1238_v22, %v1489_v41  ;;  %v1239_v5 = vmax.f32 %v4378_v32, %v1061_v45  ;;  %v2456_v6 = vpop.f32.mrb[115].mxu0  ;;  %v2560_v26 = vpop.f32.mrb[115].mxu1 }
 0x1c0   :  { %v4382_v6 = vmax.f32 %v3339_v24, %v3341_v25  ;;  %v4383_v24 = vmax.f32 %v3363_v36, %v3365_v40 }
 0x1c1   :  { %v1725_v7 = vadd.f32 %v3875_v1, %v1669_v63  ;;  %v1670_v30 = vmax.f32 %v1239_v5, %v1492_v46 }
 0x1c3   :  { %v1774_v31 = vmax.f32 %v1725_v7, 0.0  ;;  %v1726_v52 = vadd.f32 %v3875_v1, %v1670_v30 }
 0x1c4   :  { %v1066_v53 = vpop.f32.mrb[116].mxu0  ;;  %v1497_v42 = vpop.f32.mrb[116].mxu1 }
 0x1c5   :  { %1824 = vst.msk [vmem:[%s4269_s3 + $0x30] sm:$0xff] %vm1817_vm4, %v1774_v31  ;;  %v1775_v16 = vmax.f32 %v1726_v52, 0.0  ;;  %v1240_v38 = vmax.f32 %v4379_v37, %v1066_v53  ;;  %v2459_v23 = vpop.f32.mrb[117].mxu0  ;;  %v2563_v20 = vpop.f32.mrb[117].mxu1 }
 0x1c6   :  { %v1069_v47 = vpop.f32.mrb[118].mxu0  ;;  %v1500_v54 = vpop.f32.mrb[118].mxu1 }
 0x1c7   :  { %1825 = vst.msk [vmem:[%s4269_s3 + $0x38] sm:$0xff] %vm1817_vm4, %v1775_v16  ;;  %v1671_v14 = vmax.f32 %v1240_v38, %v1497_v42  ;;  %v1241_v44 = vmax.f32 %v4380_v15, %v1069_v47  ;;  %v2460_v51 = vpop.f32.mrb[119].mxu0  ;;  %v2564_v41 = vpop.f32.mrb[119].mxu1 }
 0x1c9   :  { %v1727_v0 = vadd.f32 %v3875_v1, %v1671_v14  ;;  %v1672_v49 = vmax.f32 %v1241_v44, %v1500_v54  ;;  %v4384_v54 = vmax.f32 %v3369_v55, %v3371_v56  ;;  %v4385_v55 = vmax.f32 %v3393_v10, %v3395_v17 }
 0x1cb   :  { %v1776_v50 = vmax.f32 %v1727_v0, 0.0  ;;  %v1728_v21 = vadd.f32 %v3875_v1, %v1672_v49 }
 0x1cc   :  { %v1074_v22 = vpop.f32.mrb[120].mxu0  ;;  %v1505_v61 = vpop.f32.mrb[120].mxu1 }
 0x1cd   :  { %1826 = vst.msk [vmem:[%s4269_s3 + $0x40] sm:$0xff] %vm1817_vm4, %v1776_v50  ;;  %v1777_v62 = vmax.f32 %v1728_v21, 0.0  ;;  %v1242_v60 = vmax.f32 %v4381_v59, %v1074_v22  ;;  %v2463_v45 = vpop.f32.mrb[121].mxu0  ;;  %v2567_v46 = vpop.f32.mrb[121].mxu1 }
 0x1ce   :  { %v1077_v63 = vpop.f32.mrb[122].mxu0  ;;  %v1508_v32 = vpop.f32.mrb[122].mxu1 }
 0x1cf   :  { %1827 = vst.msk [vmem:[%s4269_s3 + $0x48] sm:$0xff] %vm1817_vm4, %v1777_v62  ;;  %v1673_v5 = vmax.f32 %v1242_v60, %v1505_v61  ;;  %v1243_v26 = vmax.f32 %v4382_v6, %v1077_v63  ;;  %v2464_v7 = vpop.f32.mrb[123].mxu0  ;;  %v2568_v30 = vpop.f32.mrb[123].mxu1  ;;  %v4386_v60 = vmax.f32 %v3399_v29, %v3401_v33  ;;  %v4387_v29 = vmax.f32 %v3423_v2, %v3425_v3 }
 0x1d1   :  { %v1729_v31 = vadd.f32 %v3875_v1, %v1673_v5  ;;  %v1674_v11 = vmax.f32 %v1243_v26, %v1508_v32 }
 0x1d3   :  { %v1778_v12 = vmax.f32 %v1729_v31, 0.0  ;;  %v1730_v52 = vadd.f32 %v3875_v1, %v1674_v11 }
 0x1d4   :  { %v1082_v53 = vpop.f32.mrb[124].mxu0  ;;  %v1513_v42 = vpop.f32.mrb[124].mxu1 }
 0x1d5   :  { %1828 = vst.msk [vmem:[%s4269_s3 + $0x50] sm:$0xff] %vm1817_vm4, %v1778_v12  ;;  %v1779_v16 = vmax.f32 %v1730_v52, 0.0  ;;  %v1244_v25 = vmax.f32 %v4383_v24, %v1082_v53  ;;  %v2467_v37 = vpop.f32.mrb[125].mxu0  ;;  %v2571_v38 = vpop.f32.mrb[125].mxu1  ;;  %v4388_v53 = vmax.f32 %v3429_v27, %v3431_v28  ;;  %v4389_v27 = vmax.f32 %v3453_v48, %v3455_v58 }
 0x1d6   :  { %v1085_v23 = vpop.f32.mrb[126].mxu0  ;;  %v1516_v20 = vpop.f32.mrb[126].mxu1 }
 0x1d7   :  { %1829 = vst.msk [vmem:[%s4269_s3 + $0x58] sm:$0xff] %vm1817_vm4, %v1779_v16  ;;  %v1675_v47 = vmax.f32 %v1244_v25, %v1513_v42  ;;  %v1245_v14 = vmax.f32 %v4384_v54, %v1085_v23  ;;  %v2468_v15 = vpop.f32.mrb[127].mxu0  ;;  %v2572_v44 = vpop.f32.mrb[127].mxu1 }
 0x1d9   :  { %v1731_v51 = vadd.f32 %v3875_v1, %v1675_v47  ;;  %v1676_v36 = vmax.f32 %v1245_v14, %v1516_v20 }
 0x1db   :  { %v1780_v40 = vmax.f32 %v1731_v51, 0.0  ;;  %v1732_v41 = vadd.f32 %v3875_v1, %v1676_v36  ;;  %v4390_v51 = vmax.f32 %v3459_v4, %v3461_v18  ;;  %v4391_v18 = vmax.f32 %v3483_v35, %v3485_v43 }
 0x1dc   :  { %v1090_v0 = vpop.f32.mrb[128].mxu0  ;;  %v1521_v49 = vpop.f32.mrb[128].mxu1 }
 0x1dd   :  { %1830 = vst.msk [vmem:[%s4269_s3 + $0x60] sm:$0xff] %vm1817_vm4, %v1780_v40  ;;  %v1781_v50 = vmax.f32 %v1732_v41, 0.0  ;;  %v1246_v56 = vmax.f32 %v4385_v55, %v1090_v0  ;;  %v2471_v21 = vpop.f32.mrb[129].mxu0  ;;  %v2575_v22 = vpop.f32.mrb[129].mxu1 }
 0x1de   :  { %v1093_v61 = vpop.f32.mrb[130].mxu0  ;;  %v1524_v62 = vpop.f32.mrb[130].mxu1 }
 0x1df   :  { %1831 = vst.msk [vmem:[%s4269_s3 + $0x68] sm:$0xff] %vm1817_vm4, %v1781_v50  ;;  %v1677_v59 = vmax.f32 %v1246_v56, %v1521_v49  ;;  %v1247_v45 = vmax.f32 %v4386_v60, %v1093_v61  ;;  %v2472_v46 = vpop.f32.mrb[131].mxu0  ;;  %v2576_v63 = vpop.f32.mrb[131].mxu1  ;;  %v4392_v60 = vmax.f32 %v3489_v9, %v3491_v13  ;;  %v4393_v13 = vmax.f32 %v3513_v57, %v3515_v8 }
 0x1e1   :  { %v1733_v32 = vadd.f32 %v3875_v1, %v1677_v59  ;;  %v1678_v10 = vmax.f32 %v1247_v45, %v1524_v62 }
 0x1e3   :  { %v1782_v17 = vmax.f32 %v1733_v32, 0.0  ;;  %v1734_v5 = vadd.f32 %v3875_v1, %v1678_v10 }
 0x1e4   :  { %v1098_v6 = vpop.f32.mrb[132].mxu0  ;;  %v1529_v26 = vpop.f32.mrb[132].mxu1 }
 0x1e5   :  { %1832 = vst.msk [vmem:[%s4269_s3 + $0x70] sm:$0xff] %vm1817_vm4, %v1782_v17  ;;  %v1783_v7 = vmax.f32 %v1734_v5, 0.0  ;;  %v1248_v33 = vmax.f32 %v4387_v29, %v1098_v6  ;;  %v2475_v30 = vpop.f32.mrb[133].mxu0  ;;  %v2579_v31 = vpop.f32.mrb[133].mxu1 }
 0x1e6   :  { %v1101_v11 = vpop.f32.mrb[134].mxu0  ;;  %v1532_v12 = vpop.f32.mrb[134].mxu1  ;;  %v4394_v31 = vld [vmem:[#allocation2_spill] sm:$0xff] }
 0x1e7   :  { %1833 = vst.msk [vmem:[%s4269_s3 + $0x78] sm:$0xff] %vm1817_vm4, %v1783_v7  ;;  %v1679_v52 = vmax.f32 %v1248_v33, %v1529_v26  ;;  %v1249_v42 = vmax.f32 %v4388_v53, %v1101_v11  ;;  %v2476_v16 = vpop.f32.mrb[135].mxu0  ;;  %v2580_v24 = vpop.f32.mrb[135].mxu1  ;;  %v4395_v11 = vmax.f32 %v3519_v34, %v4394_v31 }
 0x1e9   :  { %v1735_v25 = vadd.f32 %v3875_v1, %v1679_v52  ;;  %v1680_v2 = vmax.f32 %v1249_v42, %v1532_v12 }
 0x1eb   :  { %v1784_v3 = vmax.f32 %v1735_v25, 0.0  ;;  %v1736_v37 = vadd.f32 %v3875_v1, %v1680_v2 }
 0x1ec   :  { %v1106_v38 = vpop.f32.mrb[136].mxu0  ;;  %v1537_v23 = vpop.f32.mrb[136].mxu1 }
 0x1ed   :  { %1834 = vst.msk [vmem:[%s4269_s3 + $0x80] sm:$0xff] %vm1817_vm4, %v1784_v3  ;;  %v1785_v20 = vmax.f32 %v1736_v37, 0.0  ;;  %v1250_v28 = vmax.f32 %v4389_v27, %v1106_v38  ;;  %v2479_v47 = vpop.f32.mrb[137].mxu0  ;;  %v2583_v54 = vpop.f32.mrb[137].mxu1  ;;  %v4396_v3 = vld [vmem:[#allocation3_spill] sm:$0xff]  ;;  %v4397_v37 = vld [vmem:[#allocation4_spill] sm:$0xff] }
 0x1ee   :  { %v1109_v14 = vpop.f32.mrb[138].mxu0  ;;  %v1540_v15 = vpop.f32.mrb[138].mxu1  ;;  %v4398_v34 = vmax.f32 %v4396_v3, %v4397_v37  ;;  %v4399_v54 = vld [vmem:[#allocation5_spill] sm:$0xff] }
 0x1ef   :  { %1835 = vst.msk [vmem:[%s4269_s3 + $0x88] sm:$0xff] %vm1817_vm4, %v1785_v20  ;;  %v1681_v44 = vmax.f32 %v1250_v28, %v1537_v23  ;;  %v1251_v36 = vmax.f32 %v4390_v51, %v1109_v14  ;;  %v2480_v40 = vpop.f32.mrb[139].mxu0  ;;  %v2584_v41 = vpop.f32.mrb[139].mxu1  ;;  %v4400_v14 = vld [vmem:[#allocation6_spill] sm:$0xff] }
 0x1f1   :  { %v1737_v0 = vadd.f32 %v3875_v1, %v1681_v44  ;;  %v1682_v48 = vmax.f32 %v1251_v36, %v1540_v15  ;;  %v4401_v15 = vmax.f32 %v4399_v54, %v4400_v14 }
 0x1f3   :  { %v1786_v58 = vmax.f32 %v1737_v0, 0.0  ;;  %v1738_v49 = vadd.f32 %v3875_v1, %v1682_v48 }
 0x1f4   :  { %v1114_v50 = vpop.f32.mrb[140].mxu0  ;;  %v1545_v55 = vpop.f32.mrb[140].mxu1 }
 0x1f5   :  { %1836 = vst.msk [vmem:[%s4269_s3 + $0x90] sm:$0xff] %vm1817_vm4, %v1786_v58  ;;  %v1787_v56 = vmax.f32 %v1738_v49, 0.0  ;;  %v1252_v4 = vmax.f32 %v4391_v18, %v1114_v50  ;;  %v2483_v21 = vpop.f32.mrb[141].mxu0  ;;  %v2587_v22 = vpop.f32.mrb[141].mxu1 }
 0x1f6   :  { %v1117_v61 = vpop.f32.mrb[142].mxu0  ;;  %v1548_v62 = vpop.f32.mrb[142].mxu1 }
 0x1f7   :  { %1837 = vst.msk [vmem:[%s4269_s3 + $0x98] sm:$0xff] %vm1817_vm4, %v1787_v56  ;;  %v1683_v59 = vmax.f32 %v1252_v4, %v1545_v55  ;;  %v1253_v45 = vmax.f32 %v4392_v60, %v1117_v61  ;;  %v2484_v46 = vpop.f32.mrb[143].mxu0  ;;  %v2588_v63 = vpop.f32.mrb[143].mxu1  ;;  %v4402_v55 = vld [vmem:[#allocation7_spill] sm:$0xff]  ;;  %v4403_v56 = vld [vmem:[#allocation8_spill] sm:$0xff]  ;;  %v4405_v60 = vld [vmem:[#allocation9_spill] sm:$0xff] }
 0x1f8   :  { %v4404_v18 = vmax.f32 %v4402_v55, %v4403_v56 }
 0x1f9   :  { %v1739_v32 = vadd.f32 %v3875_v1, %v1683_v59  ;;  %v1684_v35 = vmax.f32 %v1253_v45, %v1548_v62  ;;  %v4406_v45 = vld [vmem:[#allocation10_spill] sm:$0xff] }
 0x1fa   :  { %v4407_v46 = vmax.f32 %v4405_v60, %v4406_v45 }
 0x1fb   :  { %v1788_v43 = vmax.f32 %v1739_v32, 0.0  ;;  %v1740_v10 = vadd.f32 %v3875_v1, %v1684_v35 }
 0x1fc   :  { %v1122_v17 = vpop.f32.mrb[144].mxu0  ;;  %v1553_v5 = vpop.f32.mrb[144].mxu1 }
 0x1fd   :  { %1838 = vst.msk [vmem:[%s4269_s3 + $0xa0] sm:$0xff] %vm1817_vm4, %v1788_v43  ;;  %v1789_v6 = vmax.f32 %v1740_v10, 0.0  ;;  %v1254_v9 = vmax.f32 %v4393_v13, %v1122_v17  ;;  %v2487_v26 = vpop.f32.mrb[145].mxu0  ;;  %v2591_v7 = vpop.f32.mrb[145].mxu1 }
 0x1fe   :  { %v1125_v29 = vpop.f32.mrb[146].mxu0  ;;  %v1556_v33 = vpop.f32.mrb[146].mxu1  ;;  %v4408_v26 = vld [vmem:[#allocation11_spill] sm:$0xff]  ;;  %v4409_v7 = vld [vmem:[#allocation12_spill] sm:$0xff] }
 0x1ff   :  { %1839 = vst.msk [vmem:[%s4269_s3 + $0xa8] sm:$0xff] %vm1817_vm4, %v1789_v6  ;;  %v1685_v30 = vmax.f32 %v1254_v9, %v1553_v5  ;;  %v1255_v12 = vmax.f32 %v4395_v11, %v1125_v29  ;;  %v2488_v52 = vpop.f32.mrb[147].mxu0  ;;  %v2592_v53 = vpop.f32.mrb[147].mxu1  ;;  %v4410_v29 = vmax.f32 %v4408_v26, %v4409_v7 }
 0x200   :  { %v4411_v53 = vld [vmem:[#allocation13_spill] sm:$0xff] }
 0x201   :  { %v1741_v42 = vadd.f32 %v3875_v1, %v1685_v30  ;;  %v1686_v57 = vmax.f32 %v1255_v12, %v1556_v33 }
 0x203   :  { %v1790_v8 = vmax.f32 %v1741_v42, 0.0  ;;  %v1742_v16 = vadd.f32 %v3875_v1, %v1686_v57  ;;  %v4412_v42 = vld [vmem:[#allocation14_spill] sm:$0xff] }
 0x204   :  { %v1130_v24 = vpop.f32.mrb[148].mxu0  ;;  %v1561_v25 = vpop.f32.mrb[148].mxu1  ;;  %v4413_v57 = vmax.f32 %v4411_v53, %v4412_v42 }
 0x205   :  { %1840 = vst.msk [vmem:[%s4269_s3 + $0xb0] sm:$0xff] %vm1817_vm4, %v1790_v8  ;;  %v1791_v2 = vmax.f32 %v1742_v16, 0.0  ;;  %v1256_v38 = vmax.f32 %v4398_v34, %v1130_v24  ;;  %v2491_v23 = vpop.f32.mrb[149].mxu0  ;;  %v2595_v20 = vpop.f32.mrb[149].mxu1 }
 0x206   :  { %v1133_v27 = vpop.f32.mrb[150].mxu0  ;;  %v1564_v28 = vpop.f32.mrb[150].mxu1  ;;  %v4414_v20 = vld [vmem:[#allocation15_spill] sm:$0xff] }
 0x207   :  { %1841 = vst.msk [vmem:[%s4269_s3 + $0xb8] sm:$0xff] %vm1817_vm4, %v1791_v2  ;;  %v1687_v47 = vmax.f32 %v1256_v38, %v1561_v25  ;;  %v1257_v44 = vmax.f32 %v4401_v15, %v1133_v27  ;;  %v2492_v51 = vpop.f32.mrb[151].mxu0  ;;  %v2596_v36 = vpop.f32.mrb[151].mxu1  ;;  %v4415_v27 = vld [vmem:[#allocation16_spill] sm:$0xff] }
 0x208   :  { %v4417_v36 = vld [vmem:[#allocation17_spill] sm:$0xff] }
 0x209   :  { %v1743_v40 = vadd.f32 %v3875_v1, %v1687_v47  ;;  %v1688_v41 = vmax.f32 %v1257_v44, %v1564_v28  ;;  %v4416_v28 = vmax.f32 %v4414_v20, %v4415_v27 }
 0x20b   :  { %v1792_v0 = vmax.f32 %v1743_v40, 0.0  ;;  %v1744_v48 = vadd.f32 %v3875_v1, %v1688_v41  ;;  %v4418_v40 = vld [vmem:[#allocation18_spill] sm:$0xff] }
 0x20c   :  { %v1138_v58 = vpop.f32.mrb[152].mxu0  ;;  %v1569_v49 = vpop.f32.mrb[152].mxu1  ;;  %v4419_v41 = vmax.f32 %v4417_v36, %v4418_v40 }
 0x20d   :  { %1842 = vst.msk [vmem:[%s4269_s3 + $0xc0] sm:$0xff] %vm1817_vm4, %v1792_v0  ;;  %v1793_v50 = vmax.f32 %v1744_v48, 0.0  ;;  %v1258_v4 = vmax.f32 %v4404_v18, %v1138_v58  ;;  %v2495_v21 = vpop.f32.mrb[153].mxu0  ;;  %v2599_v22 = vpop.f32.mrb[153].mxu1 }
 0x20e   :  { %v1141_v61 = vpop.f32.mrb[154].mxu0  ;;  %v1572_v62 = vpop.f32.mrb[154].mxu1  ;;  %v4420_v22 = vld [vmem:[#allocation19_spill] sm:$0xff] }
 0x20f   :  { %1843 = vst.msk [vmem:[%s4269_s3 + $0xc8] sm:$0xff] %vm1817_vm4, %v1793_v50  ;;  %v1689_v59 = vmax.f32 %v1258_v4, %v1569_v49  ;;  %v1259_v63 = vmax.f32 %v4407_v46, %v1141_v61  ;;  %v2496_v32 = vpop.f32.mrb[155].mxu0  ;;  %v2600_v35 = vpop.f32.mrb[155].mxu1  ;;  %v4421_v61 = vld [vmem:[#allocation20_spill] sm:$0xff] }
 0x210   :  { %v4423_v35 = vld [vmem:[#allocation21_spill] sm:$0xff] }
 0x211   :  { %v1745_v43 = vadd.f32 %v3875_v1, %v1689_v59  ;;  %v1690_v10 = vmax.f32 %v1259_v63, %v1572_v62  ;;  %v4422_v62 = vmax.f32 %v4420_v22, %v4421_v61 }
 0x213   :  { %v1794_v17 = vmax.f32 %v1745_v43, 0.0  ;;  %v1746_v5 = vadd.f32 %v3875_v1, %v1690_v10  ;;  %v4424_v43 = vld [vmem:[#allocation22_spill] sm:$0xff] }
 0x214   :  { %v1146_v6 = vpop.f32.mrb[156].mxu0  ;;  %v1577_v13 = vpop.f32.mrb[156].mxu1  ;;  %v4425_v10 = vmax.f32 %v4423_v35, %v4424_v43 }
 0x215   :  { %1844 = vst.msk [vmem:[%s4269_s3 + $0xd0] sm:$0xff] %vm1817_vm4, %v1794_v17  ;;  %v1795_v9 = vmax.f32 %v1746_v5, 0.0  ;;  %v1260_v33 = vmax.f32 %v4410_v29, %v1146_v6  ;;  %v2499_v30 = vpop.f32.mrb[157].mxu0  ;;  %v2603_v31 = vpop.f32.mrb[157].mxu1 }
 0x216   :  { %v1149_v11 = vpop.f32.mrb[158].mxu0  ;;  %v1580_v12 = vpop.f32.mrb[158].mxu1  ;;  %v4426_v31 = vld [vmem:[#allocation23_spill] sm:$0xff] }
 0x217   :  { %1845 = vst.msk [vmem:[%s4269_s3 + $0xd8] sm:$0xff] %vm1817_vm4, %v1795_v9  ;;  %v1691_v52 = vmax.f32 %v1260_v33, %v1577_v13  ;;  %v1261_v8 = vmax.f32 %v4413_v57, %v1149_v11  ;;  %v2500_v16 = vpop.f32.mrb[159].mxu0  ;;  %v2604_v24 = vpop.f32.mrb[159].mxu1  ;;  %v4427_v11 = vld [vmem:[#allocation24_spill] sm:$0xff] }
 0x218   :  { %v4429_v24 = vld [vmem:[#allocation25_spill] sm:$0xff] }
 0x219   :  { %v1747_v25 = vadd.f32 %v3875_v1, %v1691_v52  ;;  %v1692_v2 = vmax.f32 %v1261_v8, %v1580_v12  ;;  %v4428_v12 = vmax.f32 %v4426_v31, %v4427_v11 }
 0x21b   :  { %v1796_v3 = vmax.f32 %v1747_v25, 0.0  ;;  %v1748_v37 = vadd.f32 %v3875_v1, %v1692_v2  ;;  %v4430_v25 = vld [vmem:[#allocation26_spill] sm:$0xff] }
 0x21c   :  { %v1154_v34 = vpop.f32.mrb[160].mxu0  ;;  %v1585_v38 = vpop.f32.mrb[160].mxu1  ;;  %v4431_v2 = vmax.f32 %v4429_v24, %v4430_v25 }
 0x21d   :  { %1846 = vst.msk [vmem:[%s4269_s3 + $0xe0] sm:$0xff] %vm1817_vm4, %v1796_v3  ;;  %v1797_v23 = vmax.f32 %v1748_v37, 0.0  ;;  %v1262_v47 = vmax.f32 %v4416_v28, %v1154_v34  ;;  %v2503_v54 = vpop.f32.mrb[161].mxu0  ;;  %v2607_v14 = vpop.f32.mrb[161].mxu1 }
 0x21e   :  { %v1157_v15 = vpop.f32.mrb[162].mxu0  ;;  %v1588_v44 = vpop.f32.mrb[162].mxu1  ;;  %v4432_v14 = vld [vmem:[#allocation27_spill] sm:$0xff] }
 0x21f   :  { %1847 = vst.msk [vmem:[%s4269_s3 + $0xe8] sm:$0xff] %vm1817_vm4, %v1797_v23  ;;  %v1693_v51 = vmax.f32 %v1262_v47, %v1585_v38  ;;  %v1263_v0 = vmax.f32 %v4419_v41, %v1157_v15  ;;  %v2504_v48 = vpop.f32.mrb[163].mxu0  ;;  %v2608_v58 = vpop.f32.mrb[163].mxu1  ;;  %v4433_v15 = vld [vmem:[#allocation28_spill] sm:$0xff] }
 0x220   :  { %v4435_v58 = vld [vmem:[#allocation29_spill] sm:$0xff] }
 0x221   :  { %v1749_v49 = vadd.f32 %v3875_v1, %v1693_v51  ;;  %v1694_v50 = vmax.f32 %v1263_v0, %v1588_v44  ;;  %v4434_v44 = vmax.f32 %v4432_v14, %v4433_v15 }
 0x223   :  { %v1798_v55 = vmax.f32 %v1749_v49, 0.0  ;;  %v1750_v56 = vadd.f32 %v3875_v1, %v1694_v50  ;;  %v4436_v49 = vld [vmem:[#allocation30_spill] sm:$0xff] }
 0x224   :  { %v1162_v18 = vpop.f32.mrb[164].mxu0  ;;  %v1593_v4 = vpop.f32.mrb[164].mxu1  ;;  %v4437_v50 = vmax.f32 %v4435_v58, %v4436_v49 }
 0x225   :  { %1848 = vst.msk [vmem:[%s4269_s3 + $0xf0] sm:$0xff] %vm1817_vm4, %v1798_v55  ;;  %v1799_v21 = vmax.f32 %v1750_v56, 0.0  ;;  %v1264_v59 = vmax.f32 %v4422_v62, %v1162_v18  ;;  %v2507_v60 = vpop.f32.mrb[165].mxu0  ;;  %v2611_v45 = vpop.f32.mrb[165].mxu1 }
 0x226   :  { %v1165_v46 = vpop.f32.mrb[166].mxu0  ;;  %v1596_v63 = vpop.f32.mrb[166].mxu1  ;;  %v4438_v45 = vld [vmem:[#allocation31_spill] sm:$0xff] }
 0x227   :  { %1849 = vst.msk [vmem:[%s4269_s3 + $0xf8] sm:$0xff] %vm1817_vm4, %v1799_v21  ;;  %v1695_v32 = vmax.f32 %v1264_v59, %v1593_v4  ;;  %v1265_v17 = vmax.f32 %v4425_v10, %v1165_v46  ;;  %v2508_v5 = vpop.f32.mrb[167].mxu0  ;;  %v2612_v6 = vpop.f32.mrb[167].mxu1  ;;  %v4439_v46 = vld [vmem:[#allocation32_spill] sm:$0xff] }
 0x228   :  { %v4441_v6 = vld [vmem:[#allocation33_spill] sm:$0xff] }
 0x229   :  { %v1751_v13 = vadd.f32 %v3875_v1, %v1695_v32  ;;  %v1696_v9 = vmax.f32 %v1265_v17, %v1596_v63  ;;  %v4440_v63 = vmax.f32 %v4438_v45, %v4439_v46 }
 0x22b   :  { %v1800_v26 = vmax.f32 %v1751_v13, 0.0  ;;  %v1752_v7 = vadd.f32 %v3875_v1, %v1696_v9  ;;  %v4442_v13 = vld [vmem:[#allocation34_spill] sm:$0xff] }
 0x22c   :  { %v1170_v29 = vpop.f32.mrb[168].mxu0  ;;  %v1601_v33 = vpop.f32.mrb[168].mxu1  ;;  %v4443_v9 = vmax.f32 %v4441_v6, %v4442_v13 }
 0x22d   :  { %1850 = vst.msk [vmem:[%s4269_s3 + $0x100] sm:$0xff] %vm1817_vm4, %v1800_v26  ;;  %v1801_v30 = vmax.f32 %v1752_v7, 0.0  ;;  %v1266_v52 = vmax.f32 %v4428_v12, %v1170_v29  ;;  %v2511_v53 = vpop.f32.mrb[169].mxu0  ;;  %v2615_v42 = vpop.f32.mrb[169].mxu1 }
 0x22e   :  { %v1173_v57 = vpop.f32.mrb[170].mxu0  ;;  %v1604_v8 = vpop.f32.mrb[170].mxu1  ;;  %v4444_v42 = vld [vmem:[#allocation35_spill] sm:$0xff] }
 0x22f   :  { %1851 = vst.msk [vmem:[%s4269_s3 + $0x108] sm:$0xff] %vm1817_vm4, %v1801_v30  ;;  %v1697_v16 = vmax.f32 %v1266_v52, %v1601_v33  ;;  %v1267_v3 = vmax.f32 %v4431_v2, %v1173_v57  ;;  %v2512_v37 = vpop.f32.mrb[171].mxu0  ;;  %v2616_v34 = vpop.f32.mrb[171].mxu1  ;;  %v4445_v57 = vld [vmem:[#allocation36_spill] sm:$0xff] }
 0x230   :  { %v4447_v34 = vld [vmem:[#allocation37_spill] sm:$0xff] }
 0x231   :  { %v1753_v38 = vadd.f32 %v3875_v1, %v1697_v16  ;;  %v1698_v23 = vmax.f32 %v1267_v3, %v1604_v8  ;;  %v4446_v8 = vmax.f32 %v4444_v42, %v4445_v57 }
 0x233   :  { %v1802_v20 = vmax.f32 %v1753_v38, 0.0  ;;  %v1754_v27 = vadd.f32 %v3875_v1, %v1698_v23  ;;  %v4448_v38 = vld [vmem:[#allocation38_spill] sm:$0xff] }
 0x234   :  { %v1178_v28 = vpop.f32.mrb[172].mxu0  ;;  %v1609_v47 = vpop.f32.mrb[172].mxu1  ;;  %v4449_v23 = vmax.f32 %v4447_v34, %v4448_v38 }
 0x235   :  { %1852 = vst.msk [vmem:[%s4269_s3 + $0x110] sm:$0xff] %vm1817_vm4, %v1802_v20  ;;  %v1803_v54 = vmax.f32 %v1754_v27, 0.0  ;;  %v1268_v51 = vmax.f32 %v4434_v44, %v1178_v28  ;;  %v2515_v36 = vpop.f32.mrb[173].mxu0  ;;  %v2619_v40 = vpop.f32.mrb[173].mxu1 }
 0x236   :  { %v1181_v41 = vpop.f32.mrb[174].mxu0  ;;  %v1612_v0 = vpop.f32.mrb[174].mxu1  ;;  %v4450_v40 = vld [vmem:[#allocation39_spill] sm:$0xff] }
 0x237   :  { %1853 = vst.msk [vmem:[%s4269_s3 + $0x118] sm:$0xff] %vm1817_vm4, %v1803_v54  ;;  %v1699_v48 = vmax.f32 %v1268_v51, %v1609_v47  ;;  %v1269_v55 = vmax.f32 %v4437_v50, %v1181_v41  ;;  %v2516_v56 = vpop.f32.mrb[175].mxu0  ;;  %v2620_v18 = vpop.f32.mrb[175].mxu1  ;;  %v4451_v41 = vmax.f32 %v3813_v19, %v4450_v40 }
 0x238   :  { %v4452_v56 = vld [vmem:[#allocation40_spill] sm:$0xff]  ;;  %v4453_v18 = vld [vmem:[#allocation41_spill] sm:$0xff] }
 0x239   :  { %v1755_v4 = vadd.f32 %v3875_v1, %v1699_v48  ;;  %v1700_v21 = vmax.f32 %v1269_v55, %v1612_v0 }
 0x23b   :  { %v1804_v22 = vmax.f32 %v1755_v4, 0.0  ;;  %v1756_v61 = vadd.f32 %v3875_v1, %v1700_v21  ;;  %v4454_v4 = vmax.f32 %v4452_v56, %v4453_v18 }
 0x23c   :  { %v1186_v62 = vpop.f32.mrb[176].mxu0  ;;  %v1617_v59 = vpop.f32.mrb[176].mxu1 }
 0x23d   :  { %1854 = vst.msk [vmem:[%s4269_s3 + $0x120] sm:$0xff] %vm1817_vm4, %v1804_v22  ;;  %v1805_v60 = vmax.f32 %v1756_v61, 0.0  ;;  %v1270_v32 = vmax.f32 %v4440_v63, %v1186_v62  ;;  %v2519_v35 = vpop.f32.mrb[177].mxu0  ;;  %v2623_v43 = vpop.f32.mrb[177].mxu1 }
 0x23e   :  { %v1189_v10 = vpop.f32.mrb[178].mxu0  ;;  %v1620_v17 = vpop.f32.mrb[178].mxu1  ;;  %v4456_v35 = vld [vmem:[#allocation43_spill] sm:$0xff] }
 0x23f   :  { %1855 = vst.msk [vmem:[%s4269_s3 + $0x128] sm:$0xff] %vm1817_vm4, %v1805_v60  ;;  %v1701_v5 = vmax.f32 %v1270_v32, %v1617_v59  ;;  %v1271_v26 = vmax.f32 %v4443_v9, %v1189_v10  ;;  %v2520_v7 = vpop.f32.mrb[179].mxu0  ;;  %v2624_v29 = vpop.f32.mrb[179].mxu1  ;;  %v4455_v32 = vld [vmem:[#allocation42_spill] sm:$0xff] }
 0x240   :  { %v4457_v43 = vmax.f32 %v4455_v32, %v4456_v35  ;;  %v4459_v7 = vld [vmem:[#allocation45_spill] sm:$0xff] }
 0x241   :  { %v1757_v33 = vadd.f32 %v3875_v1, %v1701_v5  ;;  %v1702_v30 = vmax.f32 %v1271_v26, %v1620_v17  ;;  %v4458_v26 = vld [vmem:[#allocation44_spill] sm:$0xff] }
 0x242   :  { %v4460_v29 = vmax.f32 %v4458_v26, %v4459_v7 }
 0x243   :  { %v1806_v31 = vmax.f32 %v1757_v33, 0.0  ;;  %v1758_v11 = vadd.f32 %v3875_v1, %v1702_v30 }
 0x244   :  { %v1194_v12 = vpop.f32.mrb[180].mxu0  ;;  %v1625_v52 = vpop.f32.mrb[180].mxu1 }
 0x245   :  { %1856 = vst.msk [vmem:[%s4269_s3 + $0x130] sm:$0xff] %vm1817_vm4, %v1806_v31  ;;  %v1807_v53 = vmax.f32 %v1758_v11, 0.0  ;;  %v1272_v16 = vmax.f32 %v4446_v8, %v1194_v12  ;;  %v2523_v24 = vpop.f32.mrb[181].mxu0  ;;  %v2627_v25 = vpop.f32.mrb[181].mxu1 }
 0x246   :  { %v1197_v2 = vpop.f32.mrb[182].mxu0  ;;  %v1628_v3 = vpop.f32.mrb[182].mxu1  ;;  %v4462_v24 = vld [vmem:[#allocation47_spill] sm:$0xff] }
 0x247   :  { %1857 = vst.msk [vmem:[%s4269_s3 + $0x138] sm:$0xff] %vm1817_vm4, %v1807_v53  ;;  %v1703_v37 = vmax.f32 %v1272_v16, %v1625_v52  ;;  %v1273_v20 = vmax.f32 %v4449_v23, %v1197_v2  ;;  %v2524_v27 = vpop.f32.mrb[183].mxu0  ;;  %v2628_v28 = vpop.f32.mrb[183].mxu1  ;;  %v4461_v16 = vld [vmem:[#allocation46_spill] sm:$0xff] }
 0x248   :  { %v4463_v25 = vmax.f32 %v4461_v16, %v4462_v24  ;;  %v4465_v27 = vld [vmem:[#allocation49_spill] sm:$0xff] }
 0x249   :  { %v1759_v47 = vadd.f32 %v3875_v1, %v1703_v37  ;;  %v1704_v54 = vmax.f32 %v1273_v20, %v1628_v3  ;;  %v4464_v20 = vld [vmem:[#allocation48_spill] sm:$0xff] }
 0x24a   :  { %v4466_v28 = vmax.f32 %v4464_v20, %v4465_v27 }
 0x24b   :  { %v1808_v14 = vmax.f32 %v1759_v47, 0.0  ;;  %v1760_v15 = vadd.f32 %v3875_v1, %v1704_v54 }
 0x24c   :  { %v1202_v44 = vpop.f32.mrb[184].mxu0  ;;  %v1633_v51 = vpop.f32.mrb[184].mxu1 }
 0x24d   :  { %1858 = vst.msk [vmem:[%s4269_s3 + $0x140] sm:$0xff] %vm1817_vm4, %v1808_v14  ;;  %v1809_v36 = vmax.f32 %v1760_v15, 0.0  ;;  %v1274_v0 = vmax.f32 %v4451_v41, %v1202_v44  ;;  %v2527_v48 = vpop.f32.mrb[185].mxu0  ;;  %v2631_v58 = vpop.f32.mrb[185].mxu1 }
 0x24e   :  { %v1205_v49 = vpop.f32.mrb[186].mxu0  ;;  %v1636_v50 = vpop.f32.mrb[186].mxu1  ;;  %v4467_v48 = vld [vmem:[#allocation50_spill] sm:$0xff] }
 0x24f   :  { %1859 = vst.msk [vmem:[%s4269_s3 + $0x148] sm:$0xff] %vm1817_vm4, %v1809_v36  ;;  %v1705_v55 = vmax.f32 %v1274_v0, %v1633_v51  ;;  %v1275_v21 = vmax.f32 %v4454_v4, %v1205_v49  ;;  %v2528_v22 = vpop.f32.mrb[187].mxu0  ;;  %v2632_v61 = vpop.f32.mrb[187].mxu1  ;;  %v4468_v58 = vmax.f32 %v3863_v39, %v4467_v48 }
 0x251   :  { %v1761_v62 = vadd.f32 %v3875_v1, %v1705_v55  ;;  %v1706_v19 = vmax.f32 %v1275_v21, %v1636_v50 }
 0x253   :  { %v1810_v59 = vmax.f32 %v1761_v62, 0.0  ;;  %v1762_v60 = vadd.f32 %v3875_v1, %v1706_v19 }
 0x254   :  { %v1210_v45 = vpop.f32.mrb[188].mxu0  ;;  %v1641_v46 = vpop.f32.mrb[188].mxu1 }
 0x255   :  { %1860 = vst.msk [vmem:[%s4269_s3 + $0x150] sm:$0xff] %vm1817_vm4, %v1810_v59  ;;  %v1811_v63 = vmax.f32 %v1762_v60, 0.0  ;;  %v1276_v10 = vmax.f32 %v4457_v43, %v1210_v45  ;;  %v2531_v17 = vpop.f32.mrb[189].mxu0  ;;  %v2635_v5 = vpop.f32.mrb[189].mxu1 }
 0x256   :  { %v1213_v6 = vpop.f32.mrb[190].mxu0  ;;  %v1644_v13 = vpop.f32.mrb[190].mxu1 }
 0x257   :  { %1861 = vst.msk [vmem:[%s4269_s3 + $0x158] sm:$0xff] %vm1817_vm4, %v1811_v63  ;;  %v1707_v9 = vmax.f32 %v1276_v10, %v1641_v46  ;;  %v1277_v33 = vmax.f32 %v4460_v29, %v1213_v6  ;;  %v2532_v30 = vpop.f32.mrb[191].mxu0  ;;  %v2636_v31 = vpop.f32.mrb[191].mxu1 }
 0x259   :  { %v1763_v11 = vadd.f32 %v3875_v1, %v1707_v9  ;;  %v1708_v12 = vmax.f32 %v1277_v33, %v1644_v13 }
 0x25b   :  { %v1812_v52 = vmax.f32 %v1763_v11, 0.0  ;;  %v1764_v53 = vadd.f32 %v3875_v1, %v1708_v12 }
 0x25c   :  { %v1218_v42 = vpop.f32.mrb[192].mxu0  ;;  %v1649_v57 = vpop.f32.mrb[192].mxu1 }
 0x25d   :  { %1862 = vst.msk [vmem:[%s4269_s3 + $0x160] sm:$0xff] %vm1817_vm4, %v1812_v52  ;;  %v1813_v8 = vmax.f32 %v1764_v53, 0.0  ;;  %v1278_v2 = vmax.f32 %v4463_v25, %v1218_v42  ;;  %v2535_v3 = vpop.f32.mrb[193].mxu0  ;;  %v2639_v37 = vpop.f32.mrb[193].mxu1 }
 0x25e   :  { %v1221_v34 = vpop.f32.mrb[194].mxu0  ;;  %v1652_v38 = vpop.f32.mrb[194].mxu1 }
 0x25f   :  { %1863 = vst.msk [vmem:[%s4269_s3 + $0x168] sm:$0xff] %vm1817_vm4, %v1813_v8  ;;  %v1709_v23 = vmax.f32 %v1278_v2, %v1649_v57  ;;  %v1279_v47 = vmax.f32 %v4466_v28, %v1221_v34  ;;  %v2536_v54 = vpop.f32.mrb[195].mxu0  ;;  %v2640_v14 = vpop.f32.mrb[195].mxu1 }
 0x261   :  { %v1765_v15 = vadd.f32 %v3875_v1, %v1709_v23  ;;  %v1710_v44 = vmax.f32 %v1279_v47, %v1652_v38 }
 0x263   :  { %v1814_v51 = vmax.f32 %v1765_v15, 0.0  ;;  %v1766_v36 = vadd.f32 %v3875_v1, %v1710_v44 }
 0x264   :  { %v1226_v40 = vpop.f32.mrb[196].mxu0  ;;  %v1657_v41 = vpop.f32.mrb[196].mxu1 }
 0x265   :  { %1864 = vst.msk [vmem:[%s4269_s3 + $0x170] sm:$0xff] %vm1817_vm4, %v1814_v51  ;;  %v1815_v0 = vmax.f32 %v1766_v36, 0.0  ;;  %v1280_v49 = vmax.f32 %v4468_v58, %v1226_v40  ;;  %v2539_v50 = vpop.f32.mrb[197].mxu0  ;;  %v2643_v55 = vpop.f32.mrb[197].mxu1 }
 0x266   :  { %v1229_v56 = vpop.f32.mrb[198].mxu0  ;;  %v1660_v18 = vpop.f32.mrb[198].mxu1 }
 0x267   :  { %1865 = vst.msk [vmem:[%s4269_s3 + $0x178] sm:$0xff] %vm1817_vm4, %v1815_v0  ;;  %v1711_v4 = vmax.f32 %v1280_v49, %v1657_v41  ;;  %v2540_v21 = vpop.f32.mrb[199].mxu0  ;;  %v2644_v22 = vpop.f32.mrb[199].mxu1 }
 0x269   :  { %v1767_v61 = vadd.f32 %v3875_v1, %v1711_v4 }
 0x26b   :  { %v1816_v62 = vmax.f32 %v1767_v61, 0.0 }
 0x26d   :  { %1866 = vst.msk [vmem:[%s4269_s3 + $0x180] sm:$0xff] %vm1817_vm4, %v1816_v62 }

// kernel: conv_ae_forward.7
= control target key start
LH: loop header
LB: loop body
LE: loop exit
PB: predicated region body
PF: predicated region fallthrough
CT: control target
= control target key end

     0   :  { %v446_v0 = vmov 0   ;;  %vm99_vm0 = vcmask 130048   ;;  %s707_s1 = inlined_call_operand.vmem [shape: bf16[144,16], index: 1, kind: input, shape index: {}]   ;;  %s708_s0 = inlined_call_operand.vmem [shape: f32[4,32,144], index: 0, kind: input, shape index: {}]   ;;  %s709_s2 = inlined_call_operand.vmem [shape: f32[1,16], index: 2, kind: input, shape index: {}]   ;;  %s710_s3 = inlined_call_operand.vmem [shape: f32[32,16], index: 3, kind: output, shape index: {}]  }
   0x1   :  { %106 = vmatprep.subr.bf16.mxu0 %v446_v0  ;;  %174 = vmatprep.subr.bf16.mxu1 %v446_v0  ;;  %v472_v1 = vld [vmem:[%s707_s1] sm:$0xff]   ;;  %v479_v2 = vld [vmem:[%s707_s1 + $0x8] sm:$0xff]   ;;  %v488_v3 = vld [vmem:[%s707_s1 + $0x10] sm:$0xff]  }
   0x2   :  { %107 = vmatpush1.bf16.msra.mxu0 %v472_v1  ;;  %175 = vmatpush1.bf16.msra.mxu1 %v472_v1  ;;  %v34_v4 = vld [vmem:[%s708_s0 + $0x8] sm:$0xff]  ;;  %v36_v5 = vld [vmem:[%s708_s0 + $0x18] sm:$0xff]  ;;  %v520_v11 = vld [vmem:[%s707_s1 + $0x20] sm:$0xff]  }
   0x3   :  { %108 = vmatprep.subr.bf16.mxu0 %v446_v0  ;;  %176 = vmatprep.subr.bf16.mxu1 %v446_v0  ;;  %v406_v6 = vld [vmem:[%s708_s0 + $0x48] sm:$0xff]  ;;  %v506_v7 = vld [vmem:[%s707_s1 + $0x18] sm:$0xff]   ;;  %v42_v8 = vpack.c.bf16 %v36_v5, %v34_v4  ;;  %v538_v13 = vld [vmem:[%s707_s1 + $0x30] sm:$0xff]  }
   0x4   :  { %v408_v9 = vld [vmem:[%s708_s0 + $0x58] sm:$0xff]  ;;  %v529_v12 = vld [vmem:[%s707_s1 + $0x28] sm:$0xff]   ;;  %v554_v15 = vld [vmem:[%s707_s1 + $0x40] sm:$0xff]  }
   0x5   :  { %v165_v10 = vpack.c.bf16 %v408_v9, %v406_v6  ;;  %403 = vmatprep.mubr.msk.bf16.mxu0 %vm99_vm0, %v42_v8  ;;  %v547_v14 = vld [vmem:[%s707_s1 + $0x38] sm:$0xff]   ;;  %v33_v16 = vld [vmem:[%s708_s0] sm:$0xff]  ;;  %v35_v17 = vld [vmem:[%s708_s0 + $0x10] sm:$0xff] }
   0x6   :  { %109 = vmatpush1.bf16.msra.mxu0 %v479_v2  ;;  %177 = vmatpush1.bf16.msra.mxu1 %v479_v2  ;;  %v405_v18 = vld [vmem:[%s708_s0 + $0x40] sm:$0xff]  ;;  %v407_v19 = vld [vmem:[%s708_s0 + $0x50] sm:$0xff]  ;;  %v38_v20 = vld [vmem:[%s708_s0 + $0x28] sm:$0xff]  ;;  %v41_v21 = vpack.c.bf16 %v35_v17, %v33_v16 }
   0x7   :  { %110 = vmatprep.subr.bf16.mxu0 %v446_v0  ;;  %178 = vmatprep.subr.bf16.mxu1 %v446_v0  ;;  %v164_v22 = vpack.c.bf16 %v407_v19, %v405_v18  ;;  %v40_v23 = vld [vmem:[%s708_s0 + $0x38] sm:$0xff]  ;;  %v410_v24 = vld [vmem:[%s708_s0 + $0x68] sm:$0xff]  ;;  %v37_v28 = vld [vmem:[%s708_s0 + $0x20] sm:$0xff] }
   0x8   :  { %413 = vmatprep.mubr.msk.bf16.mxu1 %vm99_vm0, %v165_v10  ;;  %v412_v25 = vld [vmem:[%s708_s0 + $0x78] sm:$0xff]  ;;  %v44_v26 = vpack.c.bf16 %v40_v23, %v38_v20  ;;  %v39_v29 = vld [vmem:[%s708_s0 + $0x30] sm:$0xff]  ;;  %v409_v30 = vld [vmem:[%s708_s0 + $0x60] sm:$0xff] }
   0x9   :  { %v167_v27 = vpack.c.bf16 %v412_v25, %v410_v24  ;;  %v411_v31 = vld [vmem:[%s708_s0 + $0x70] sm:$0xff]  ;;  %v416_v32 = vld [vmem:[%s708_s0 + $0x88] sm:$0xff]  ;;  %v43_v33 = vpack.c.bf16 %v39_v29, %v37_v28  ;;  %v418_v35 = vld [vmem:[%s708_s0 + $0x98] sm:$0xff] }
   0xa   :  { %111 = vmatpush1.bf16.msra.mxu0 %v488_v3  ;;  %179 = vmatpush1.bf16.msra.mxu1 %v488_v3  ;;  %v166_v34 = vpack.c.bf16 %v411_v31, %v409_v30  ;;  %v426_v36 = vld [vmem:[%s708_s0 + $0xc8] sm:$0xff]  ;;  %v428_v37 = vld [vmem:[%s708_s0 + $0xd8] sm:$0xff]  ;;  %v237_v38 = vpack.c.bf16 %v418_v35, %v416_v32  ;;  %v415_v40 = vld [vmem:[%s708_s0 + $0x80] sm:$0xff] }
   0xb   :  { %112 = vmatprep.subr.bf16.mxu0 %v446_v0  ;;  %180 = vmatprep.subr.bf16.mxu1 %v446_v0  ;;  %v309_v39 = vpack.c.bf16 %v428_v37, %v426_v36  ;;  %v417_v41 = vld [vmem:[%s708_s0 + $0x90] sm:$0xff]  ;;  %v425_v42 = vld [vmem:[%s708_s0 + $0xc0] sm:$0xff]  ;;  %v420_v44 = vld [vmem:[%s708_s0 + $0xa8] sm:$0xff] }
   0xc   :  { %v427_v43 = vld [vmem:[%s708_s0 + $0xd0] sm:$0xff]  ;;  %v422_v45 = vld [vmem:[%s708_s0 + $0xb8] sm:$0xff]  ;;  %v430_v46 = vld [vmem:[%s708_s0 + $0xe8] sm:$0xff]  ;;  %v236_v48 = vpack.c.bf16 %v417_v41, %v415_v40 }
   0xd   :  { %v432_v47 = vld [vmem:[%s708_s0 + $0xf8] sm:$0xff]  ;;  %v308_v49 = vpack.c.bf16 %v427_v43, %v425_v42  ;;  %v239_v50 = vpack.c.bf16 %v422_v45, %v420_v44  ;;  %v419_v52 = vld [vmem:[%s708_s0 + $0xa0] sm:$0xff]  ;;  %v421_v53 = vld [vmem:[%s708_s0 + $0xb0] sm:$0xff] }
   0xe   :  { %113 = vmatpush1.bf16.msra.mxu0 %v506_v7  ;;  %181 = vmatpush1.bf16.msra.mxu1 %v506_v7  ;;  %v311_v51 = vpack.c.bf16 %v432_v47, %v430_v46  ;;  %v429_v54 = vld [vmem:[%s708_s0 + $0xe0] sm:$0xff]  ;;  %v431_v55 = vld [vmem:[%s708_s0 + $0xf0] sm:$0xff]  ;;  %v238_v56 = vpack.c.bf16 %v421_v53, %v419_v52 }
   0xf   :  { %114 = vmatprep.subr.bf16.mxu0 %v446_v0  ;;  %182 = vmatprep.subr.bf16.mxu1 %v446_v0  ;;  %v310_v57 = vpack.c.bf16 %v431_v55, %v429_v54  ;;  %v435_v19 = vld [vmem:[%s709_s2] ss:$0 sm:$0xff] }
  0x12   :  { %115 = vmatpush1.bf16.msra.mxu0 %v520_v11  ;;  %183 = vmatpush1.bf16.msra.mxu1 %v520_v11 }
  0x13   :  { %116 = vmatprep.subr.bf16.mxu0 %v446_v0  ;;  %184 = vmatprep.subr.bf16.mxu1 %v446_v0 }
  0x16   :  { %117 = vmatpush1.bf16.msra.mxu0 %v529_v12  ;;  %185 = vmatpush1.bf16.msra.mxu1 %v529_v12 }
  0x17   :  { %118 = vmatprep.subr.bf16.mxu0 %v446_v0  ;;  %186 = vmatprep.subr.bf16.mxu1 %v446_v0 }
  0x1a   :  { %119 = vmatpush1.bf16.msra.mxu0 %v538_v13  ;;  %187 = vmatpush1.bf16.msra.mxu1 %v538_v13 }
  0x1b   :  { %120 = vmatprep.subr.bf16.mxu0 %v446_v0  ;;  %188 = vmatprep.subr.bf16.mxu1 %v446_v0 }
  0x1e   :  { %121 = vmatpush1.bf16.msra.mxu0 %v547_v14  ;;  %189 = vmatpush1.bf16.msra.mxu1 %v547_v14 }
  0x1f   :  { %122 = vmatprep.subr.bf16.mxu0 %v446_v0  ;;  %190 = vmatprep.subr.bf16.mxu1 %v446_v0 }
  0x22   :  { %123 = vmatpush1.bf16.msra.mxu0 %v554_v15  ;;  %191 = vmatpush1.bf16.msra.mxu1 %v554_v15 }
  0x23   :  { %246 = vmatprep.subr.bf16.mxu0 %v446_v0  ;;  %318 = vmatprep.subr.bf16.mxu1 %v446_v0 }
  0x25   :  { %139 = vmatmul.mubr.bf16.vlgmr.msra.gmra.mrb[0].mxu0 %v41_v21  ;;  %207 = vmatmul.mubr.bf16.vlgmr.msra.gmra.mrb[0].mxu1 %v164_v22 }
  0x26   :  { %247 = vmatpush1.bf16.msra.mxu0 %v472_v1  ;;  %319 = vmatpush1.bf16.msra.mxu1 %v472_v1 }
  0x27   :  { %248 = vmatprep.subr.bf16.mxu0 %v446_v0  ;;  %320 = vmatprep.subr.bf16.mxu1 %v446_v0 }
  0x28   :  { %404 = vmatprep.mubr.msk.bf16.mxu0 %vm99_vm0, %v44_v26  ;;  %414 = vmatprep.mubr.msk.bf16.mxu1 %vm99_vm0, %v167_v27 }
  0x2a   :  { %249 = vmatpush1.bf16.msra.mxu0 %v479_v2  ;;  %321 = vmatpush1.bf16.msra.mxu1 %v479_v2 }
  0x2b   :  { %250 = vmatprep.subr.bf16.mxu0 %v446_v0  ;;  %322 = vmatprep.subr.bf16.mxu1 %v446_v0 }
  0x2d   :  { %147 = vmatmul.mubr.bf16.gmra.mrb[4].mxu0 %v43_v33  ;;  %215 = vmatmul.mubr.bf16.gmra.mrb[4].mxu1 %v166_v34 }
  0x2e   :  { %251 = vmatpush1.bf16.msra.mxu0 %v488_v3  ;;  %323 = vmatpush1.bf16.msra.mxu1 %v488_v3 }
  0x2f   :  { %252 = vmatprep.subr.bf16.mxu0 %v446_v0  ;;  %324 = vmatprep.subr.bf16.mxu1 %v446_v0 }
  0x30   :  { %423 = vmatprep.mubr.msk.bf16.mxu0 %vm99_vm0, %v237_v38  ;;  %433 = vmatprep.mubr.msk.bf16.mxu1 %vm99_vm0, %v309_v39 }
  0x32   :  { %253 = vmatpush1.bf16.msra.mxu0 %v506_v7  ;;  %325 = vmatpush1.bf16.msra.mxu1 %v506_v7 }
  0x33   :  { %254 = vmatprep.subr.bf16.mxu0 %v446_v0  ;;  %326 = vmatprep.subr.bf16.mxu1 %v446_v0 }
  0x36   :  { %255 = vmatpush1.bf16.msra.mxu0 %v520_v11  ;;  %327 = vmatpush1.bf16.msra.mxu1 %v520_v11 }
  0x37   :  { %256 = vmatprep.subr.bf16.mxu0 %v446_v0  ;;  %328 = vmatprep.subr.bf16.mxu1 %v446_v0 }
  0x3a   :  { %257 = vmatpush1.bf16.msra.mxu0 %v529_v12  ;;  %329 = vmatpush1.bf16.msra.mxu1 %v529_v12 }
  0x3b   :  { %258 = vmatprep.subr.bf16.mxu0 %v446_v0  ;;  %330 = vmatprep.subr.bf16.mxu1 %v446_v0 }
  0x3e   :  { %259 = vmatpush1.bf16.msra.mxu0 %v538_v13  ;;  %331 = vmatpush1.bf16.msra.mxu1 %v538_v13 }
  0x3f   :  { %260 = vmatprep.subr.bf16.mxu0 %v446_v0  ;;  %332 = vmatprep.subr.bf16.mxu1 %v446_v0 }
  0x42   :  { %261 = vmatpush1.bf16.msra.mxu0 %v547_v14  ;;  %333 = vmatpush1.bf16.msra.mxu1 %v547_v14 }
  0x43   :  { %262 = vmatprep.subr.bf16.mxu0 %v446_v0  ;;  %334 = vmatprep.subr.bf16.mxu1 %v446_v0 }
  0x46   :  { %263 = vmatpush1.bf16.msra.mxu0 %v554_v15  ;;  %335 = vmatpush1.bf16.msra.mxu1 %v554_v15 }
  0x49   :  { %279 = vmatmul.mubr.bf16.vlgmr.msra.gmra.mrb[8].mxu0 %v236_v48  ;;  %351 = vmatmul.mubr.bf16.vlgmr.msra.gmra.mrb[8].mxu1 %v308_v49 }
  0x4a   :  { %424 = vmatprep.mubr.msk.bf16.mxu0 %vm99_vm0, %v239_v50  ;;  %434 = vmatprep.mubr.msk.bf16.mxu1 %vm99_vm0, %v311_v51 }
  0x51   :  { %287 = vmatmul.mubr.bf16.gmra.mrb[12].mxu0 %v238_v56  ;;  %359 = vmatmul.mubr.bf16.gmra.mrb[12].mxu1 %v310_v57 }
  0xf8   :  { %v140_v58 = vpop.f32.mrb[0].mxu0  ;;  %v208_v59 = vpop.f32.mrb[0].mxu1 }
  0xf9   :  { %v223_v60 = vmax.f32 %v140_v58, %v208_v59  ;;  %v142_v61 = vpop.f32.mrb[1].mxu0  ;;  %v210_v62 = vpop.f32.mrb[1].mxu1 }
  0xfa   :  { %v143_v63 = vpop.f32.mrb[2].mxu0  ;;  %v211_v0 = vpop.f32.mrb[2].mxu1 }
  0xfb   :  { %v224_v1 = vmax.f32 %v143_v63, %v211_v0  ;;  %v145_v2 = vpop.f32.mrb[3].mxu0  ;;  %v213_v3 = vpop.f32.mrb[3].mxu1 }
 0x100   :  { %v148_v4 = vpop.f32.mrb[4].mxu0  ;;  %v216_v5 = vpop.f32.mrb[4].mxu1 }
 0x101   :  { %v150_v6 = vpop.f32.mrb[5].mxu0  ;;  %v225_v7 = vmax.f32 %v148_v4, %v216_v5  ;;  %v218_v8 = vpop.f32.mrb[5].mxu1 }
 0x102   :  { %v151_v9 = vpop.f32.mrb[6].mxu0  ;;  %v219_v10 = vpop.f32.mrb[6].mxu1 }
 0x103   :  { %v153_v11 = vpop.f32.mrb[7].mxu0  ;;  %v226_v12 = vmax.f32 %v151_v9, %v219_v10  ;;  %v221_v13 = vpop.f32.mrb[7].mxu1 }
 0x11c   :  { %v280_v14 = vpop.f32.mrb[8].mxu0  ;;  %v352_v15 = vpop.f32.mrb[8].mxu1 }
 0x11d   :  { %v295_v16 = vmax.f32 %v223_v60, %v280_v14  ;;  %v282_v17 = vpop.f32.mrb[9].mxu0  ;;  %v354_v18 = vpop.f32.mrb[9].mxu1 }
 0x11e   :  { %v283_v20 = vpop.f32.mrb[10].mxu0  ;;  %v355_v21 = vpop.f32.mrb[10].mxu1 }
 0x11f   :  { %v367_v22 = vmax.f32 %v295_v16, %v352_v15  ;;  %v296_v23 = vmax.f32 %v224_v1, %v283_v20  ;;  %v285_v24 = vpop.f32.mrb[11].mxu0  ;;  %v357_v25 = vpop.f32.mrb[11].mxu1 }
 0x121   :  { %v378_v26 = vadd.f32 %v435_v19, %v367_v22  ;;  %v368_v27 = vmax.f32 %v296_v23, %v355_v21 }
 0x123   :  { %v382_v28 = vmax.f32 %v378_v26, 0.0  ;;  %v379_v29 = vadd.f32 %v435_v19, %v368_v27 }
 0x124   :  { %v288_v30 = vpop.f32.mrb[12].mxu0  ;;  %v360_v31 = vpop.f32.mrb[12].mxu1 }
 0x125   :  { %386 = vst.msk [vmem:[%s710_s3] sm:$0xff] %vm99_vm0, %v382_v28  ;;  %v383_v32 = vmax.f32 %v379_v29, 0.0  ;;  %v297_v33 = vmax.f32 %v225_v7, %v288_v30  ;;  %v290_v34 = vpop.f32.mrb[13].mxu0  ;;  %v362_v35 = vpop.f32.mrb[13].mxu1 }
 0x126   :  { %v291_v36 = vpop.f32.mrb[14].mxu0  ;;  %v363_v37 = vpop.f32.mrb[14].mxu1 }
 0x127   :  { %387 = vst.msk [vmem:[%s710_s3 + $0x8] sm:$0xff] %vm99_vm0, %v383_v32  ;;  %v369_v38 = vmax.f32 %v297_v33, %v360_v31  ;;  %v298_v39 = vmax.f32 %v226_v12, %v291_v36  ;;  %v293_v40 = vpop.f32.mrb[15].mxu0  ;;  %v365_v41 = vpop.f32.mrb[15].mxu1 }
 0x129   :  { %v380_v42 = vadd.f32 %v435_v19, %v369_v38  ;;  %v370_v43 = vmax.f32 %v298_v39, %v363_v37 }
 0x12b   :  { %v384_v44 = vmax.f32 %v380_v42, 0.0  ;;  %v381_v45 = vadd.f32 %v435_v19, %v370_v43 }
 0x12d   :  { %388 = vst.msk [vmem:[%s710_s3 + $0x10] sm:$0xff] %vm99_vm0, %v384_v44  ;;  %v385_v46 = vmax.f32 %v381_v45, 0.0 }
 0x12f   :  { %389 = vst.msk [vmem:[%s710_s3 + $0x18] sm:$0xff] %vm99_vm0, %v385_v46 }

// kernel: conv_ae_forward.9
= control target key start
LH: loop header
LB: loop body
LE: loop exit
PB: predicated region body
PF: predicated region fallthrough
CT: control target
= control target key end

     0   :  { %v451_v0 = vmov 0   ;;  %vm170_vm0 = vcmask 130048   ;;  %s792_s1 = inlined_call_operand.vmem [shape: bf16[144,16], index: 1, kind: input, shape index: {}]   ;;  %s793_s0 = inlined_call_operand.vmem [shape: f32[200,144], index: 0, kind: input, shape index: {}]   ;;  %s794_s2 = inlined_call_operand.vmem [shape: f32[1,16], index: 2, kind: input, shape index: {}]   ;;  %s795_s3 = inlined_call_operand.vmem [shape: f32[200,16], index: 3, kind: output, shape index: {}]  }
   0x1   :  { %210 = vmatprep.subr.bf16.mxu0 %v451_v0  ;;  %v442_v1 = vld [vmem:[%s792_s1] sm:$0xff]   ;;  %423 = vmatprep.subr.bf16.mxu1 %v451_v0  ;;  %v443_v2 = vld [vmem:[%s792_s1 + $0x8] sm:$0xff]   ;;  %v444_v3 = vld [vmem:[%s792_s1 + $0x10] sm:$0xff]  }
   0x2   :  { %211 = vmatpush1.bf16.msra.mxu0 %v442_v1  ;;  %432 = vmatpush1.bf16.msra.mxu1 %v442_v1  ;;  %v16_v4 = vld [vmem:[%s793_s0 + $0x8] sm:$0xff]  ;;  %v18_v5 = vld [vmem:[%s793_s0 + $0x18] sm:$0xff]  ;;  %v446_v11 = vld [vmem:[%s792_s1 + $0x20] sm:$0xff]  }
   0x3   :  { %212 = vmatprep.subr.bf16.mxu0 %v451_v0  ;;  %424 = vmatprep.subr.bf16.mxu1 %v451_v0  ;;  %v445_v6 = vld [vmem:[%s792_s1 + $0x18] sm:$0xff]   ;;  %v66_v7 = vpack.c.bf16 %v18_v5, %v16_v4  ;;  %v44_v8 = vld [vmem:[%s793_s0 + $0xe8] sm:$0xff]  ;;  %v448_v13 = vld [vmem:[%s792_s1 + $0x30] sm:$0xff]  }
   0x4   :  { %v46_v9 = vld [vmem:[%s793_s0 + $0xf8] sm:$0xff]  ;;  %v447_v12 = vld [vmem:[%s792_s1 + $0x28] sm:$0xff]   ;;  %v450_v15 = vld [vmem:[%s792_s1 + $0x40] sm:$0xff]  }
   0x5   :  { %v80_v10 = vpack.c.bf16 %v46_v9, %v44_v8  ;;  %410 = vmatprep.mubr.msk.bf16.mxu0 %vm170_vm0, %v66_v7  ;;  %v449_v14 = vld [vmem:[%s792_s1 + $0x38] sm:$0xff]   ;;  %v15_v16 = vld [vmem:[%s793_s0] sm:$0xff]  ;;  %v17_v17 = vld [vmem:[%s793_s0 + $0x10] sm:$0xff] }
   0x6   :  { %213 = vmatpush1.bf16.msra.mxu0 %v443_v2  ;;  %433 = vmatpush1.bf16.msra.mxu1 %v443_v2  ;;  %v20_v18 = vld [vmem:[%s793_s0 + $0x28] sm:$0xff]  ;;  %v43_v19 = vld [vmem:[%s793_s0 + $0xe0] sm:$0xff]  ;;  %v45_v20 = vld [vmem:[%s793_s0 + $0xf0] sm:$0xff]  ;;  %v65_v24 = vpack.c.bf16 %v17_v17, %v15_v16 }
   0x7   :  { %214 = vmatprep.subr.bf16.mxu0 %v451_v0  ;;  %425 = vmatprep.subr.bf16.mxu1 %v451_v0  ;;  %v22_v21 = vld [vmem:[%s793_s0 + $0x38] sm:$0xff]  ;;  %v48_v22 = vld [vmem:[%s793_s0 + $0x108] sm:$0xff]  ;;  %v79_v25 = vpack.c.bf16 %v45_v20, %v43_v19  ;;  %v19_v28 = vld [vmem:[%s793_s0 + $0x20] sm:$0xff] }
   0x8   :  { %417 = vmatprep.mubr.msk.bf16.mxu1 %vm170_vm0, %v80_v10  ;;  %v50_v23 = vld [vmem:[%s793_s0 + $0x118] sm:$0xff]  ;;  %v68_v26 = vpack.c.bf16 %v22_v21, %v20_v18  ;;  %v21_v29 = vld [vmem:[%s793_s0 + $0x30] sm:$0xff]  ;;  %v24_v30 = vld [vmem:[%s793_s0 + $0x48] sm:$0xff] }
   0x9   :  { %v82_v27 = vpack.c.bf16 %v50_v23, %v48_v22  ;;  %v47_v31 = vld [vmem:[%s793_s0 + $0x100] sm:$0xff]  ;;  %v49_v32 = vld [vmem:[%s793_s0 + $0x110] sm:$0xff]  ;;  %v26_v33 = vld [vmem:[%s793_s0 + $0x58] sm:$0xff]  ;;  %v67_v36 = vpack.c.bf16 %v21_v29, %v19_v28 }
   0xa   :  { %215 = vmatpush1.bf16.msra.mxu0 %v444_v3  ;;  %434 = vmatpush1.bf16.msra.mxu1 %v444_v3  ;;  %v52_v34 = vld [vmem:[%s793_s0 + $0x128] sm:$0xff]  ;;  %v54_v35 = vld [vmem:[%s793_s0 + $0x138] sm:$0xff]  ;;  %v81_v37 = vpack.c.bf16 %v49_v32, %v47_v31  ;;  %v70_v38 = vpack.c.bf16 %v26_v33, %v24_v30  ;;  %v23_v40 = vld [vmem:[%s793_s0 + $0x40] sm:$0xff] }
   0xb   :  { %216 = vmatprep.subr.bf16.mxu0 %v451_v0  ;;  %426 = vmatprep.subr.bf16.mxu1 %v451_v0  ;;  %v84_v39 = vpack.c.bf16 %v54_v35, %v52_v34  ;;  %v25_v41 = vld [vmem:[%s793_s0 + $0x50] sm:$0xff]  ;;  %v28_v42 = vld [vmem:[%s793_s0 + $0x68] sm:$0xff]  ;;  %v51_v43 = vld [vmem:[%s793_s0 + $0x120] sm:$0xff] }
   0xc   :  { %v53_v44 = vld [vmem:[%s793_s0 + $0x130] sm:$0xff]  ;;  %v30_v45 = vld [vmem:[%s793_s0 + $0x78] sm:$0xff]  ;;  %v56_v46 = vld [vmem:[%s793_s0 + $0x148] sm:$0xff]  ;;  %v69_v48 = vpack.c.bf16 %v25_v41, %v23_v40 }
   0xd   :  { %v58_v47 = vld [vmem:[%s793_s0 + $0x158] sm:$0xff]  ;;  %v83_v49 = vpack.c.bf16 %v53_v44, %v51_v43  ;;  %v72_v50 = vpack.c.bf16 %v30_v45, %v28_v42  ;;  %v27_v52 = vld [vmem:[%s793_s0 + $0x60] sm:$0xff]  ;;  %v29_v53 = vld [vmem:[%s793_s0 + $0x70] sm:$0xff] }
   0xe   :  { %217 = vmatpush1.bf16.msra.mxu0 %v445_v6  ;;  %435 = vmatpush1.bf16.msra.mxu1 %v445_v6  ;;  %v86_v51 = vpack.c.bf16 %v58_v47, %v56_v46  ;;  %v32_v54 = vld [vmem:[%s793_s0 + $0x88] sm:$0xff]  ;;  %v55_v55 = vld [vmem:[%s793_s0 + $0x140] sm:$0xff]  ;;  %v57_v56 = vld [vmem:[%s793_s0 + $0x150] sm:$0xff]  ;;  %v71_v60 = vpack.c.bf16 %v29_v53, %v27_v52 }
   0xf   :  { %218 = vmatprep.subr.bf16.mxu0 %v451_v0  ;;  %427 = vmatprep.subr.bf16.mxu1 %v451_v0  ;;  %v34_v57 = vld [vmem:[%s793_s0 + $0x98] sm:$0xff]  ;;  %v60_v58 = vld [vmem:[%s793_s0 + $0x168] sm:$0xff]  ;;  %v85_v61 = vpack.c.bf16 %v57_v56, %v55_v55  ;;  %v33_v1 = vld [vmem:[%s793_s0 + $0x90] sm:$0xff] }
  0x10   :  { %v62_v59 = vld [vmem:[%s793_s0 + $0x178] sm:$0xff]  ;;  %v74_v62 = vpack.c.bf16 %v34_v57, %v32_v54  ;;  %v59_v2 = vld [vmem:[%s793_s0 + $0x160] sm:$0xff]  ;;  %v61_v3 = vld [vmem:[%s793_s0 + $0x170] sm:$0xff] }
  0x11   :  { %v88_v63 = vpack.c.bf16 %v62_v59, %v60_v58  ;;  %v36_v4 = vld [vmem:[%s793_s0 + $0xa8] sm:$0xff]  ;;  %v38_v5 = vld [vmem:[%s793_s0 + $0xb8] sm:$0xff]  ;;  %v87_v8 = vpack.c.bf16 %v61_v3, %v59_v2  ;;  %v39_v19 = vld [vmem:[%s793_s0 + $0xc0] sm:$0xff] }
  0x12   :  { %219 = vmatpush1.bf16.msra.mxu0 %v446_v11  ;;  %436 = vmatpush1.bf16.msra.mxu1 %v446_v11  ;;  %v64_v6 = vld [vmem:[%s793_s0 + $0x188] sm:$0xff]  ;;  %v76_v9 = vpack.c.bf16 %v38_v5, %v36_v4  ;;  %v35_v11 = vld [vmem:[%s793_s0 + $0xa0] sm:$0xff]  ;;  %v41_v20 = vld [vmem:[%s793_s0 + $0xd0] sm:$0xff] }
  0x13   :  { %220 = vmatprep.subr.bf16.mxu0 %v451_v0  ;;  %428 = vmatprep.subr.bf16.mxu1 %v451_v0  ;;  %v90_v10 = vpack.c.bf16 %v64_v6, %v64_v6  ;;  %v77_v21 = vpack.c.bf16 %v41_v20, %v39_v19  ;;  %v665_v22 = vld [vmem:[%s794_s2] ss:$0 sm:$0xff] }
  0x16   :  { %221 = vmatpush1.bf16.msra.mxu0 %v447_v12  ;;  %437 = vmatpush1.bf16.msra.mxu1 %v447_v12  ;;  %v37_v12 = vld [vmem:[%s793_s0 + $0xb0] sm:$0xff] }
  0x17   :  { %222 = vmatprep.subr.bf16.mxu0 %v451_v0  ;;  %429 = vmatprep.subr.bf16.mxu1 %v451_v0  ;;  %v75_v16 = vpack.c.bf16 %v37_v12, %v35_v11 }
  0x1a   :  { %223 = vmatpush1.bf16.msra.mxu0 %v448_v13  ;;  %438 = vmatpush1.bf16.msra.mxu1 %v448_v13  ;;  %v63_v13 = vld [vmem:[%s793_s0 + $0x180] sm:$0xff] }
  0x1b   :  { %224 = vmatprep.subr.bf16.mxu0 %v451_v0  ;;  %430 = vmatprep.subr.bf16.mxu1 %v451_v0  ;;  %v89_v17 = vpack.c.bf16 %v63_v13, %v63_v13 }
  0x1e   :  { %225 = vmatpush1.bf16.msra.mxu0 %v449_v14  ;;  %439 = vmatpush1.bf16.msra.mxu1 %v449_v14  ;;  %v40_v14 = vld [vmem:[%s793_s0 + $0xc8] sm:$0xff] }
  0x1f   :  { %226 = vmatprep.subr.bf16.mxu0 %v451_v0  ;;  %431 = vmatprep.subr.bf16.mxu1 %v451_v0  ;;  %v31_v0 = vld [vmem:[%s793_s0 + $0x80] sm:$0xff] }
  0x20   :  { %v73_v7 = vpack.c.bf16 %v33_v1, %v31_v0 }
  0x22   :  { %227 = vmatpush1.bf16.msra.mxu0 %v450_v15  ;;  %440 = vmatpush1.bf16.msra.mxu1 %v450_v15  ;;  %v42_v15 = vld [vmem:[%s793_s0 + $0xd8] sm:$0xff] }
  0x23   :  { %v78_v18 = vpack.c.bf16 %v42_v15, %v40_v14 }
  0x25   :  { %243 = vmatmul.mubr.bf16.vlgmr.msra.gmra.mrb[0].mxu0 %v65_v24  ;;  %299 = vmatmul.mubr.bf16.vlgmr.msra.gmra.mrb[0].mxu1 %v79_v25 }
  0x26   :  { %411 = vmatprep.mubr.msk.bf16.mxu0 %vm170_vm0, %v68_v26  ;;  %418 = vmatprep.mubr.msk.bf16.mxu1 %vm170_vm0, %v82_v27 }
  0x2d   :  { %251 = vmatmul.mubr.bf16.gmra.mrb[4].mxu0 %v67_v36  ;;  %307 = vmatmul.mubr.bf16.gmra.mrb[4].mxu1 %v81_v37 }
  0x2e   :  { %412 = vmatprep.mubr.msk.bf16.mxu0 %vm170_vm0, %v70_v38  ;;  %419 = vmatprep.mubr.msk.bf16.mxu1 %vm170_vm0, %v84_v39 }
  0x35   :  { %259 = vmatmul.mubr.bf16.gmra.mrb[8].mxu0 %v69_v48  ;;  %315 = vmatmul.mubr.bf16.gmra.mrb[8].mxu1 %v83_v49 }
  0x36   :  { %413 = vmatprep.mubr.msk.bf16.mxu0 %vm170_vm0, %v72_v50  ;;  %420 = vmatprep.mubr.msk.bf16.mxu1 %vm170_vm0, %v86_v51 }
  0x3d   :  { %267 = vmatmul.mubr.bf16.gmra.mrb[12].mxu0 %v71_v60  ;;  %323 = vmatmul.mubr.bf16.gmra.mrb[12].mxu1 %v85_v61 }
  0x3e   :  { %414 = vmatprep.mubr.msk.bf16.mxu0 %vm170_vm0, %v74_v62  ;;  %421 = vmatprep.mubr.msk.bf16.mxu1 %vm170_vm0, %v88_v63 }
  0x45   :  { %275 = vmatmul.mubr.bf16.gmra.mrb[16].mxu0 %v73_v7  ;;  %331 = vmatmul.mubr.bf16.gmra.mrb[16].mxu1 %v87_v8 }
  0x46   :  { %415 = vmatprep.mubr.msk.bf16.mxu0 %vm170_vm0, %v76_v9  ;;  %422 = vmatprep.mubr.msk.bf16.mxu1 %vm170_vm0, %v90_v10 }
  0x4d   :  { %283 = vmatmul.mubr.bf16.gmra.mrb[20].mxu0 %v75_v16  ;;  %339 = vmatmul.mubr.bf16.gmra.mrb[20].mxu1 %v89_v17 }
  0x4e   :  { %416 = vmatprep.mubr.msk.bf16.mxu0 %vm170_vm0, %v78_v18 }
  0x55   :  { %291 = vmatmul.mubr.bf16.gmra.mrb[24].mxu0 %v77_v21 }
  0xf8   :  { %v244_v23 = vpop.f32.mrb[0].mxu0  ;;  %v300_v24 = vpop.f32.mrb[0].mxu1 }
  0xf9   :  { %v245_v25 = vadd.f32 %v665_v22, %v244_v23  ;;  %v246_v26 = vpop.f32.mrb[1].mxu0  ;;  %v301_v27 = vadd.f32 %v665_v22, %v300_v24  ;;  %v302_v28 = vpop.f32.mrb[1].mxu1 }
  0xfa   :  { %v247_v29 = vpop.f32.mrb[2].mxu0  ;;  %v303_v30 = vpop.f32.mrb[2].mxu1 }
  0xfb   :  { %v346_v31 = vmax.f32 %v245_v25, 0.0  ;;  %v248_v32 = vadd.f32 %v665_v22, %v247_v29  ;;  %v249_v33 = vpop.f32.mrb[3].mxu0  ;;  %v360_v34 = vmax.f32 %v301_v27, 0.0  ;;  %v304_v35 = vadd.f32 %v665_v22, %v303_v30  ;;  %v305_v36 = vpop.f32.mrb[3].mxu1 }
  0xfd   :  { %371 = vst.msk [vmem:[%s795_s3] sm:$0xff] %vm170_vm0, %v346_v31  ;;  %v347_v37 = vmax.f32 %v248_v32, 0.0  ;;  %385 = vst.msk [vmem:[%s795_s3 + $0x70] sm:$0xff] %vm170_vm0, %v360_v34  ;;  %v361_v38 = vmax.f32 %v304_v35, 0.0 }
  0xff   :  { %372 = vst.msk [vmem:[%s795_s3 + $0x8] sm:$0xff] %vm170_vm0, %v347_v37  ;;  %386 = vst.msk [vmem:[%s795_s3 + $0x78] sm:$0xff] %vm170_vm0, %v361_v38 }
 0x100   :  { %v252_v39 = vpop.f32.mrb[4].mxu0  ;;  %v308_v40 = vpop.f32.mrb[4].mxu1 }
 0x101   :  { %v253_v41 = vadd.f32 %v665_v22, %v252_v39  ;;  %v254_v42 = vpop.f32.mrb[5].mxu0  ;;  %v309_v43 = vadd.f32 %v665_v22, %v308_v40  ;;  %v310_v44 = vpop.f32.mrb[5].mxu1 }
 0x102   :  { %v255_v45 = vpop.f32.mrb[6].mxu0  ;;  %v311_v46 = vpop.f32.mrb[6].mxu1 }
 0x103   :  { %v348_v47 = vmax.f32 %v253_v41, 0.0  ;;  %v256_v48 = vadd.f32 %v665_v22, %v255_v45  ;;  %v257_v49 = vpop.f32.mrb[7].mxu0  ;;  %v362_v50 = vmax.f32 %v309_v43, 0.0  ;;  %v312_v51 = vadd.f32 %v665_v22, %v311_v46  ;;  %v313_v52 = vpop.f32.mrb[7].mxu1 }
 0x105   :  { %373 = vst.msk [vmem:[%s795_s3 + $0x10] sm:$0xff] %vm170_vm0, %v348_v47  ;;  %v349_v53 = vmax.f32 %v256_v48, 0.0  ;;  %387 = vst.msk [vmem:[%s795_s3 + $0x80] sm:$0xff] %vm170_vm0, %v362_v50  ;;  %v363_v54 = vmax.f32 %v312_v51, 0.0 }
 0x107   :  { %374 = vst.msk [vmem:[%s795_s3 + $0x18] sm:$0xff] %vm170_vm0, %v349_v53  ;;  %388 = vst.msk [vmem:[%s795_s3 + $0x88] sm:$0xff] %vm170_vm0, %v363_v54 }
 0x108   :  { %v260_v55 = vpop.f32.mrb[8].mxu0  ;;  %v316_v56 = vpop.f32.mrb[8].mxu1 }
 0x109   :  { %v261_v57 = vadd.f32 %v665_v22, %v260_v55  ;;  %v262_v58 = vpop.f32.mrb[9].mxu0  ;;  %v317_v59 = vadd.f32 %v665_v22, %v316_v56  ;;  %v318_v60 = vpop.f32.mrb[9].mxu1 }
 0x10a   :  { %v263_v61 = vpop.f32.mrb[10].mxu0  ;;  %v319_v62 = vpop.f32.mrb[10].mxu1 }
 0x10b   :  { %v350_v63 = vmax.f32 %v261_v57, 0.0  ;;  %v264_v0 = vadd.f32 %v665_v22, %v263_v61  ;;  %v265_v1 = vpop.f32.mrb[11].mxu0  ;;  %v364_v2 = vmax.f32 %v317_v59, 0.0  ;;  %v320_v3 = vadd.f32 %v665_v22, %v319_v62  ;;  %v321_v4 = vpop.f32.mrb[11].mxu1 }
 0x10d   :  { %375 = vst.msk [vmem:[%s795_s3 + $0x20] sm:$0xff] %vm170_vm0, %v350_v63  ;;  %v351_v5 = vmax.f32 %v264_v0, 0.0  ;;  %389 = vst.msk [vmem:[%s795_s3 + $0x90] sm:$0xff] %vm170_vm0, %v364_v2  ;;  %v365_v6 = vmax.f32 %v320_v3, 0.0 }
 0x10f   :  { %376 = vst.msk [vmem:[%s795_s3 + $0x28] sm:$0xff] %vm170_vm0, %v351_v5  ;;  %390 = vst.msk [vmem:[%s795_s3 + $0x98] sm:$0xff] %vm170_vm0, %v365_v6 }
 0x110   :  { %v268_v7 = vpop.f32.mrb[12].mxu0  ;;  %v324_v8 = vpop.f32.mrb[12].mxu1 }
 0x111   :  { %v269_v9 = vadd.f32 %v665_v22, %v268_v7  ;;  %v270_v10 = vpop.f32.mrb[13].mxu0  ;;  %v325_v11 = vadd.f32 %v665_v22, %v324_v8  ;;  %v326_v12 = vpop.f32.mrb[13].mxu1 }
 0x112   :  { %v271_v13 = vpop.f32.mrb[14].mxu0  ;;  %v327_v14 = vpop.f32.mrb[14].mxu1 }
 0x113   :  { %v352_v15 = vmax.f32 %v269_v9, 0.0  ;;  %v272_v16 = vadd.f32 %v665_v22, %v271_v13  ;;  %v273_v17 = vpop.f32.mrb[15].mxu0  ;;  %v366_v18 = vmax.f32 %v325_v11, 0.0  ;;  %v328_v19 = vadd.f32 %v665_v22, %v327_v14  ;;  %v329_v20 = vpop.f32.mrb[15].mxu1 }
 0x115   :  { %377 = vst.msk [vmem:[%s795_s3 + $0x30] sm:$0xff] %vm170_vm0, %v352_v15  ;;  %v353_v21 = vmax.f32 %v272_v16, 0.0  ;;  %391 = vst.msk [vmem:[%s795_s3 + $0xa0] sm:$0xff] %vm170_vm0, %v366_v18  ;;  %v367_v23 = vmax.f32 %v328_v19, 0.0 }
 0x117   :  { %378 = vst.msk [vmem:[%s795_s3 + $0x38] sm:$0xff] %vm170_vm0, %v353_v21  ;;  %392 = vst.msk [vmem:[%s795_s3 + $0xa8] sm:$0xff] %vm170_vm0, %v367_v23 }
 0x118   :  { %v276_v24 = vpop.f32.mrb[16].mxu0  ;;  %v332_v25 = vpop.f32.mrb[16].mxu1 }
 0x119   :  { %v277_v26 = vadd.f32 %v665_v22, %v276_v24  ;;  %v278_v27 = vpop.f32.mrb[17].mxu0  ;;  %v333_v28 = vadd.f32 %v665_v22, %v332_v25  ;;  %v334_v29 = vpop.f32.mrb[17].mxu1 }
 0x11a   :  { %v279_v30 = vpop.f32.mrb[18].mxu0  ;;  %v335_v31 = vpop.f32.mrb[18].mxu1 }
 0x11b   :  { %v354_v32 = vmax.f32 %v277_v26, 0.0  ;;  %v280_v33 = vadd.f32 %v665_v22, %v279_v30  ;;  %v281_v34 = vpop.f32.mrb[19].mxu0  ;;  %v368_v35 = vmax.f32 %v333_v28, 0.0  ;;  %v336_v36 = vadd.f32 %v665_v22, %v335_v31  ;;  %v337_v37 = vpop.f32.mrb[19].mxu1 }
 0x11d   :  { %379 = vst.msk [vmem:[%s795_s3 + $0x40] sm:$0xff] %vm170_vm0, %v354_v32  ;;  %v355_v38 = vmax.f32 %v280_v33, 0.0  ;;  %393 = vst.msk [vmem:[%s795_s3 + $0xb0] sm:$0xff] %vm170_vm0, %v368_v35  ;;  %v369_v39 = vmax.f32 %v336_v36, 0.0 }
 0x11f   :  { %380 = vst.msk [vmem:[%s795_s3 + $0x48] sm:$0xff] %vm170_vm0, %v355_v38  ;;  %394 = vst.msk [vmem:[%s795_s3 + $0xb8] sm:$0xff] %vm170_vm0, %v369_v39 }
 0x120   :  { %v284_v40 = vpop.f32.mrb[20].mxu0  ;;  %v340_v41 = vpop.f32.mrb[20].mxu1 }
 0x121   :  { %v285_v42 = vadd.f32 %v665_v22, %v284_v40  ;;  %v286_v43 = vpop.f32.mrb[21].mxu0  ;;  %v341_v44 = vadd.f32 %v665_v22, %v340_v41  ;;  %v342_v45 = vpop.f32.mrb[21].mxu1 }
 0x122   :  { %v287_v46 = vpop.f32.mrb[22].mxu0  ;;  %v343_v47 = vpop.f32.mrb[22].mxu1 }
 0x123   :  { %v356_v48 = vmax.f32 %v285_v42, 0.0  ;;  %v288_v49 = vadd.f32 %v665_v22, %v287_v46  ;;  %v289_v50 = vpop.f32.mrb[23].mxu0  ;;  %v370_v51 = vmax.f32 %v341_v44, 0.0  ;;  %v344_v52 = vpop.f32.mrb[23].mxu1 }
 0x125   :  { %381 = vst.msk [vmem:[%s795_s3 + $0x50] sm:$0xff] %vm170_vm0, %v356_v48  ;;  %v357_v53 = vmax.f32 %v288_v49, 0.0  ;;  %395 = vst.msk [vmem:[%s795_s3 + $0xc0] sm:$0xff] %vm170_vm0, %v370_v51 }
 0x127   :  { %382 = vst.msk [vmem:[%s795_s3 + $0x58] sm:$0xff] %vm170_vm0, %v357_v53 }
 0x128   :  { %v292_v54 = vpop.f32.mrb[24].mxu0 }
 0x129   :  { %v293_v55 = vadd.f32 %v665_v22, %v292_v54  ;;  %v294_v56 = vpop.f32.mrb[25].mxu0 }
 0x12a   :  { %v295_v57 = vpop.f32.mrb[26].mxu0 }
 0x12b   :  { %v358_v58 = vmax.f32 %v293_v55, 0.0  ;;  %v296_v59 = vadd.f32 %v665_v22, %v295_v57  ;;  %v297_v60 = vpop.f32.mrb[27].mxu0 }
 0x12d   :  { %383 = vst.msk [vmem:[%s795_s3 + $0x60] sm:$0xff] %vm170_vm0, %v358_v58  ;;  %v359_v61 = vmax.f32 %v296_v59, 0.0 }
 0x12f   :  { %384 = vst.msk [vmem:[%s795_s3 + $0x68] sm:$0xff] %vm170_vm0, %v359_v61 }

// kernel: conv_ae_forward.8
= control target key start
LH: loop header
LB: loop body
LE: loop exit
PB: predicated region body
PF: predicated region fallthrough
CT: control target
= control target key end

     0   :  { %vm3170_vm0 = vmmov 0   ;;  %vm1282_vm1 = vcmask 523264   ;;  %vm1241_vm2 = vcmask 261120   ;;  %s4194_s2 = inlined_call_operand.vmem [shape: bf16[256,256], index: 2, kind: input, shape index: {}]   ;;  %s4195_s0 = inlined_call_operand.vmem [shape: f32[8,256], index: 0, kind: input, shape index: {}]   ;;  %s4196_s4 = inlined_call_operand.vmem [shape: bf16[256,256], index: 4, kind: input, shape index: {}]   ;;  %s4197_s6 = inlined_call_operand.vmem [shape: bf16[256,256], index: 6, kind: input, shape index: {}]   ;;  %s4198_s3 = inlined_call_operand.vmem [shape: f32[1,256], index: 3, kind: input, shape index: {}]   ;;  %s4199_s8 = inlined_call_operand.vmem [shape: bf16[256,128], index: 8, kind: input, shape index: {}]   ;;  %s4200_s5 = inlined_call_operand.vmem [shape: f32[1,256], index: 5, kind: input, shape index: {}]   ;;  %s4201_s10 = inlined_call_operand.vmem [shape: bf16[128,128], index: 10, kind: input, shape index: {}]   ;;  %s4202_s7 = inlined_call_operand.vmem [shape: f32[1,256], index: 7, kind: input, shape index: {}]   ;;  %s4203_s12 = inlined_call_operand.vmem [shape: bf16[128,32], index: 12, kind: input, shape index: {}]   ;;  %s4204_s9 = inlined_call_operand.vmem [shape: f32[1,128], index: 9, kind: input, shape index: {}]   ;;  %s4205_s15 = inlined_call_operand.vmem [shape: bf16[64,128], index: 15, kind: input, shape index: {}]   ;;  %s4206_s14 = inlined_call_operand.vmem [shape: bf16[32,128], index: 14, kind: input, shape index: {}]   ;;  %s4207_s1 = inlined_call_operand.vmem [shape: f32[8,64], index: 1, kind: input, shape index: {}]   ;;  %s4208_s11 = inlined_call_operand.vmem [shape: f32[1,128], index: 11, kind: input, shape index: {}]   ;;  %s4209_s17 = inlined_call_operand.vmem [shape: bf16[128,128], index: 17, kind: input, shape index: {}]   ;;  %s4210_s13 = inlined_call_operand.vmem [shape: f32[1,32], index: 13, kind: input, shape index: {}]   ;;  %s4211_s28 = inlined_call_operand.vmem [shape: f32[8,32], index: 28, kind: output, shape index: {1}]   ;;  %s4212_s19 = inlined_call_operand.vmem [shape: bf16[128,256], index: 19, kind: input, shape index: {}]   ;;  %s4213_s16 = inlined_call_operand.vmem [shape: f32[1,128], index: 16, kind: input, shape index: {}]   ;;  %s4214_s21 = inlined_call_operand.vmem [shape: bf16[256,256], index: 21, kind: input, shape index: {}]   ;;  %s4215_s18 = inlined_call_operand.vmem [shape: f32[1,128], index: 18, kind: input, shape index: {}]   ;;  %s4216_s23 = inlined_call_operand.vmem [shape: bf16[256,256], index: 23, kind: input, shape index: {}]   ;;  %s4217_s20 = inlined_call_operand.vmem [shape: f32[1,256], index: 20, kind: input, shape index: {}]   ;;  %s4218_s25 = inlined_call_operand.vmem [shape: bf16[256,256], index: 25, kind: input, shape index: {}]   ;;  %s4219_s22 = inlined_call_operand.vmem [shape: f32[1,256], index: 22, kind: input, shape index: {}]   ;;  %s4220_s24 = inlined_call_operand.vmem [shape: f32[1,256], index: 24, kind: input, shape index: {}]   ;;  %s4221_s26 = inlined_call_operand.vmem [shape: f32[1,256], index: 26, kind: input, shape index: {}]   ;;  %s4222_s27 = inlined_call_operand.vmem [shape: f32[8,256], index: 27, kind: output, shape index: {0}]  }
   0x1   :  { %4232 = sst [smem:[#allocation2_spill]] %s4194_s2 }
   0x2   :  { %4233 = sst [smem:[#allocation3_spill]] %s4195_s0 }
   0x3   :  { %4234 = sst [smem:[#allocation4_spill]] %s4196_s4  ;;  %s4246_s30 = sld [smem:[#allocation3_spill]] }
   0x4   :  { %4235 = sst [smem:[#allocation5_spill]] %s4197_s6 }
   0x5   :  { %4236 = sst [smem:[#allocation6_spill]] %s4198_s3  ;;  %s4248_s29 = sld [smem:[#allocation5_spill]] }
   0x6   :  { %4237 = sst [smem:[#allocation7_spill]] %s4199_s8  ;;  %s4249_s3 = sld [smem:[#allocation6_spill]] }
   0x7   :  { %4238 = sst [smem:[#allocation8_spill]] %s4200_s5  ;;  %s4250_s6 = sld [smem:[#allocation7_spill]] }
   0x8   :  { %4239 = sst [smem:[#allocation9_spill]] %s4201_s10 }
   0x9   :  { %4240 = sst [smem:[#allocation10_spill]] %s4202_s7  ;;  %v90_v14 = vld [vmem:[%s4246_s30 + $0x8] sm:$0xff]  ;;  %v89_v54 = vld [vmem:[%s4246_s30] sm:$0xff]  ;;  %s4252_s4 = sld [smem:[#allocation9_spill]] }
   0xa   :  { %4241 = sst [smem:[#allocation11_spill]] %s4203_s12  ;;  %s4245_s12 = sld [smem:[#allocation2_spill]]  ;;  %v92_v15 = vpack.c.bf16 %v90_v14, %v90_v14  ;;  %v91_v56 = vpack.c.bf16 %v89_v54, %v89_v54 }
   0xb   :  { %4242 = sst [smem:[#allocation12_spill]] %s4204_s9  ;;  %v2924_v14 = vld [vmem:[%s4248_s29 + $0x54] ss:$8 sps:$4 sm:$0xff]   ;;  %s4254_s8 = sld [smem:[#allocation11_spill]] }
   0xc   :  { %4243 = sst [smem:[#allocation13_spill]] %s4205_s15  ;;  %s4247_s9 = sld [smem:[#allocation4_spill]]  ;;  %329 = vmatprep.mubr.bf16.mxu0 %v92_v15  ;;  %v2922_v15 = vld [vmem:[%s4248_s29 + $0x50] ss:$8 sps:$4 sm:$0xff]  }
   0xd   :  { %4244 = sst [smem:[#allocation14_spill]] %s4206_s14  ;;  %s4253_s14 = sld [smem:[#allocation10_spill]] }
   0xe   :  { %s4257_s0 = sld [smem:[#allocation14_spill]] }
  0x10   :  { %v2811_v0 = vld [vmem:[%s4245_s12 + $0x4] ss:$8 sps:$4 sm:$0xff]   ;;  %v2813_v1 = vld [vmem:[%s4245_s12] ss:$8 sps:$4 sm:$0xff]   ;;  %v2814_v2 = vld [vmem:[%s4245_s12 + $0x14] ss:$8 sps:$4 sm:$0xff]  }
  0x11   :  { %297 = vmatprep.subr.bf16.mxu0 %v2811_v0  ;;  %v2816_v3 = vld [vmem:[%s4245_s12 + $0x10] ss:$8 sps:$4 sm:$0xff]   ;;  %v2817_v4 = vld [vmem:[%s4245_s12 + $0x24] ss:$8 sps:$4 sm:$0xff]   ;;  %v2819_v5 = vld [vmem:[%s4245_s12 + $0x20] ss:$8 sps:$4 sm:$0xff]  }
  0x12   :  { %298 = vmatpush1.bf16.msra.mxu0 %v2813_v1  ;;  %v2820_v6 = vld [vmem:[%s4245_s12 + $0x34] ss:$8 sps:$4 sm:$0xff]   ;;  %v2822_v7 = vld [vmem:[%s4245_s12 + $0x30] ss:$8 sps:$4 sm:$0xff]   ;;  %v2823_v8 = vld [vmem:[%s4245_s12 + $0x44] ss:$8 sps:$4 sm:$0xff]  }
  0x13   :  { %299 = vmatprep.subr.bf16.mxu0 %v2814_v2  ;;  %v2825_v9 = vld [vmem:[%s4245_s12 + $0x40] ss:$8 sps:$4 sm:$0xff]   ;;  %v2826_v10 = vld [vmem:[%s4245_s12 + $0x54] ss:$8 sps:$4 sm:$0xff]   ;;  %v2828_v11 = vld [vmem:[%s4245_s12 + $0x50] ss:$8 sps:$4 sm:$0xff]  }
  0x14   :  { %v2829_v12 = vld [vmem:[%s4245_s12 + $0x64] ss:$8 sps:$4 sm:$0xff]   ;;  %v2831_v13 = vld [vmem:[%s4245_s12 + $0x60] ss:$8 sps:$4 sm:$0xff]   ;;  %v2832_v18 = vld [vmem:[%s4245_s12 + $0x74] ss:$8 sps:$4 sm:$0xff]  }
  0x15   :  { %v2859_v16 = vld [vmem:[%s4247_s9 + $0x4] ss:$8 sps:$4 sm:$0xff]   ;;  %v2861_v17 = vld [vmem:[%s4247_s9] ss:$8 sps:$4 sm:$0xff]   ;;  %v2862_v19 = vld [vmem:[%s4247_s9 + $0x14] ss:$8 sps:$4 sm:$0xff]  }
  0x16   :  { %300 = vmatpush1.bf16.msra.mxu0 %v2816_v3  ;;  %v2834_v20 = vld [vmem:[%s4245_s12 + $0x70] ss:$8 sps:$4 sm:$0xff]   ;;  %546 = vmatprep.subr.bf16.mxu1 %v2859_v16  ;;  %v2865_v22 = vld [vmem:[%s4247_s9 + $0x24] ss:$8 sps:$4 sm:$0xff]   ;;  %v2837_v24 = vld [vmem:[%s4245_s12 + $0x80] ss:$8 sps:$4 sm:$0xff]  }
  0x17   :  { %301 = vmatprep.subr.bf16.mxu0 %v2817_v4  ;;  %547 = vmatpush1.bf16.msra.mxu1 %v2861_v17  ;;  %v2864_v21 = vld [vmem:[%s4247_s9 + $0x10] ss:$8 sps:$4 sm:$0xff]   ;;  %v2835_v23 = vld [vmem:[%s4245_s12 + $0x84] ss:$8 sps:$4 sm:$0xff]   ;;  %v2867_v25 = vld [vmem:[%s4247_s9 + $0x20] ss:$8 sps:$4 sm:$0xff]  }
  0x18   :  { %548 = vmatprep.subr.bf16.mxu1 %v2862_v19  ;;  %v2868_v26 = vld [vmem:[%s4247_s9 + $0x34] ss:$8 sps:$4 sm:$0xff]   ;;  %v2840_v28 = vld [vmem:[%s4245_s12 + $0x90] ss:$8 sps:$4 sm:$0xff]   ;;  %v2871_v30 = vld [vmem:[%s4247_s9 + $0x44] ss:$8 sps:$4 sm:$0xff]  }
  0x19   :  { %v2838_v27 = vld [vmem:[%s4245_s12 + $0x94] ss:$8 sps:$4 sm:$0xff]   ;;  %v2870_v29 = vld [vmem:[%s4247_s9 + $0x30] ss:$8 sps:$4 sm:$0xff]   ;;  %v2841_v31 = vld [vmem:[%s4245_s12 + $0xa4] ss:$8 sps:$4 sm:$0xff]  }
  0x1a   :  { %302 = vmatpush1.bf16.msra.mxu0 %v2819_v5  ;;  %v2843_v32 = vld [vmem:[%s4245_s12 + $0xa0] ss:$8 sps:$4 sm:$0xff]   ;;  %v2874_v34 = vld [vmem:[%s4247_s9 + $0x54] ss:$8 sps:$4 sm:$0xff]   ;;  %v2876_v36 = vld [vmem:[%s4247_s9 + $0x50] ss:$8 sps:$4 sm:$0xff]  }
  0x1b   :  { %303 = vmatprep.subr.bf16.mxu0 %v2820_v6  ;;  %549 = vmatpush1.bf16.msra.mxu1 %v2864_v21  ;;  %v2873_v33 = vld [vmem:[%s4247_s9 + $0x40] ss:$8 sps:$4 sm:$0xff]   ;;  %v2844_v35 = vld [vmem:[%s4245_s12 + $0xb4] ss:$8 sps:$4 sm:$0xff]   ;;  %v2846_v37 = vld [vmem:[%s4245_s12 + $0xb0] ss:$8 sps:$4 sm:$0xff]  }
  0x1c   :  { %550 = vmatprep.subr.bf16.mxu1 %v2865_v22  ;;  %v2877_v38 = vld [vmem:[%s4247_s9 + $0x64] ss:$8 sps:$4 sm:$0xff]   ;;  %v2879_v40 = vld [vmem:[%s4247_s9 + $0x60] ss:$8 sps:$4 sm:$0xff]   ;;  %v2880_v42 = vld [vmem:[%s4247_s9 + $0x74] ss:$8 sps:$4 sm:$0xff]  }
  0x1d   :  { %v2847_v39 = vld [vmem:[%s4245_s12 + $0xc4] ss:$8 sps:$4 sm:$0xff]   ;;  %v2849_v41 = vld [vmem:[%s4245_s12 + $0xc0] ss:$8 sps:$4 sm:$0xff]   ;;  %v2850_v43 = vld [vmem:[%s4245_s12 + $0xd4] ss:$8 sps:$4 sm:$0xff]  }
  0x1e   :  { %304 = vmatpush1.bf16.msra.mxu0 %v2822_v7  ;;  %v2882_v44 = vld [vmem:[%s4247_s9 + $0x70] ss:$8 sps:$4 sm:$0xff]   ;;  %v2883_v46 = vld [vmem:[%s4247_s9 + $0x84] ss:$8 sps:$4 sm:$0xff]   ;;  %v2885_v48 = vld [vmem:[%s4247_s9 + $0x80] ss:$8 sps:$4 sm:$0xff]  }
  0x1f   :  { %305 = vmatprep.subr.bf16.mxu0 %v2823_v8  ;;  %551 = vmatpush1.bf16.msra.mxu1 %v2867_v25  ;;  %v2852_v45 = vld [vmem:[%s4245_s12 + $0xd0] ss:$8 sps:$4 sm:$0xff]   ;;  %v2853_v47 = vld [vmem:[%s4245_s12 + $0xe4] ss:$8 sps:$4 sm:$0xff]   ;;  %v2855_v49 = vld [vmem:[%s4245_s12 + $0xe0] ss:$8 sps:$4 sm:$0xff]  }
  0x20   :  { %552 = vmatprep.subr.bf16.mxu1 %v2868_v26  ;;  %v2886_v50 = vld [vmem:[%s4247_s9 + $0x94] ss:$8 sps:$4 sm:$0xff]   ;;  %v2888_v52 = vld [vmem:[%s4247_s9 + $0x90] ss:$8 sps:$4 sm:$0xff]   ;;  %v2889_v55 = vld [vmem:[%s4247_s9 + $0xa4] ss:$8 sps:$4 sm:$0xff]  }
  0x21   :  { %v2856_v51 = vld [vmem:[%s4245_s12 + $0xf4] ss:$8 sps:$4 sm:$0xff]   ;;  %v2858_v53 = vld [vmem:[%s4245_s12 + $0xf0] ss:$8 sps:$4 sm:$0xff]   ;;  %v2891_v57 = vld [vmem:[%s4247_s9 + $0xa0] ss:$8 sps:$4 sm:$0xff]  }
  0x22   :  { %306 = vmatpush1.bf16.msra.mxu0 %v2825_v9  ;;  %v2892_v58 = vld [vmem:[%s4247_s9 + $0xb4] ss:$8 sps:$4 sm:$0xff]   ;;  %v2894_v59 = vld [vmem:[%s4247_s9 + $0xb0] ss:$8 sps:$4 sm:$0xff]   ;;  %v2895_v60 = vld [vmem:[%s4247_s9 + $0xc4] ss:$8 sps:$4 sm:$0xff]  }
  0x23   :  { %307 = vmatprep.subr.bf16.mxu0 %v2826_v10  ;;  %553 = vmatpush1.bf16.msra.mxu1 %v2870_v29  ;;  %v2897_v61 = vld [vmem:[%s4247_s9 + $0xc0] ss:$8 sps:$4 sm:$0xff]   ;;  %v2898_v62 = vld [vmem:[%s4247_s9 + $0xd4] ss:$8 sps:$4 sm:$0xff]   ;;  %v2900_v63 = vld [vmem:[%s4247_s9 + $0xd0] ss:$8 sps:$4 sm:$0xff]  }
  0x24   :  { %554 = vmatprep.subr.bf16.mxu1 %v2871_v30  ;;  %v2901_v0 = vld [vmem:[%s4247_s9 + $0xe4] ss:$8 sps:$4 sm:$0xff]   ;;  %v2903_v1 = vld [vmem:[%s4247_s9 + $0xe0] ss:$8 sps:$4 sm:$0xff]   ;;  %v2904_v2 = vld [vmem:[%s4247_s9 + $0xf4] ss:$8 sps:$4 sm:$0xff]  }
  0x25   :  { %v2906_v3 = vld [vmem:[%s4247_s9 + $0xf0] ss:$8 sps:$4 sm:$0xff]   ;;  %v2907_v4 = vld [vmem:[%s4248_s29] ss:$8 sps:$4 sm:$0xff]   ;;  %v2909_v5 = vld [vmem:[%s4248_s29 + $0x4] ss:$8 sps:$4 sm:$0xff]  }
  0x26   :  { %308 = vmatpush1.bf16.msra.mxu0 %v2828_v11  ;;  %v2912_v6 = vld [vmem:[%s4248_s29 + $0x14] ss:$8 sps:$4 sm:$0xff]   ;;  %v2910_v7 = vld [vmem:[%s4248_s29 + $0x10] ss:$8 sps:$4 sm:$0xff]   ;;  %v2915_v8 = vld [vmem:[%s4248_s29 + $0x24] ss:$8 sps:$4 sm:$0xff]  }
  0x27   :  { %309 = vmatprep.subr.bf16.mxu0 %v2829_v12  ;;  %555 = vmatpush1.bf16.msra.mxu1 %v2873_v33  ;;  %v2913_v9 = vld [vmem:[%s4248_s29 + $0x20] ss:$8 sps:$4 sm:$0xff]   ;;  %v2918_v10 = vld [vmem:[%s4248_s29 + $0x34] ss:$8 sps:$4 sm:$0xff]   ;;  %v2916_v11 = vld [vmem:[%s4248_s29 + $0x30] ss:$8 sps:$4 sm:$0xff]  }
  0x28   :  { %556 = vmatprep.subr.bf16.mxu1 %v2874_v34  ;;  %v2921_v12 = vld [vmem:[%s4248_s29 + $0x44] ss:$8 sps:$4 sm:$0xff]   ;;  %v2925_v17 = vld [vmem:[%s4248_s29 + $0x60] ss:$8 sps:$4 sm:$0xff]   ;;  %v2928_v19 = vld [vmem:[%s4248_s29 + $0x70] ss:$8 sps:$4 sm:$0xff]  }
  0x29   :  { %v2927_v16 = vld [vmem:[%s4248_s29 + $0x64] ss:$8 sps:$4 sm:$0xff]   ;;  %v2931_v21 = vld [vmem:[%s4248_s29 + $0x80] ss:$8 sps:$4 sm:$0xff]   ;;  %v2936_v22 = vld [vmem:[%s4248_s29 + $0x94] ss:$8 sps:$4 sm:$0xff]  }
  0x2a   :  { %310 = vmatpush1.bf16.msra.mxu0 %v2831_v13  ;;  %v2919_v13 = vld [vmem:[%s4248_s29 + $0x40] ss:$8 sps:$4 sm:$0xff]   ;;  %v2942_v26 = vld [vmem:[%s4248_s29 + $0xb4] ss:$8 sps:$4 sm:$0xff]  }
  0x2b   :  { %311 = vmatprep.subr.bf16.mxu0 %v2832_v18  ;;  %557 = vmatpush1.bf16.msra.mxu1 %v2876_v36  ;;  %v2930_v18 = vld [vmem:[%s4248_s29 + $0x74] ss:$8 sps:$4 sm:$0xff]   ;;  %v2937_v25 = vld [vmem:[%s4248_s29 + $0xa0] ss:$8 sps:$4 sm:$0xff]  }
  0x2c   :  { %558 = vmatprep.subr.bf16.mxu1 %v2877_v38  ;;  %v2943_v29 = vld [vmem:[%s4248_s29 + $0xc0] ss:$8 sps:$4 sm:$0xff]   ;;  %v2948_v30 = vld [vmem:[%s4248_s29 + $0xd4] ss:$8 sps:$4 sm:$0xff]  }
  0x2e   :  { %312 = vmatpush1.bf16.msra.mxu0 %v2834_v20  ;;  %v2933_v20 = vld [vmem:[%s4248_s29 + $0x84] ss:$8 sps:$4 sm:$0xff]  }
  0x2f   :  { %313 = vmatprep.subr.bf16.mxu0 %v2835_v23  ;;  %559 = vmatpush1.bf16.msra.mxu1 %v2879_v40  ;;  %v2934_v23 = vld [vmem:[%s4248_s29 + $0x90] ss:$8 sps:$4 sm:$0xff]  }
  0x30   :  { %560 = vmatprep.subr.bf16.mxu1 %v2880_v42 }
  0x32   :  { %314 = vmatpush1.bf16.msra.mxu0 %v2837_v24  ;;  %v2939_v24 = vld [vmem:[%s4248_s29 + $0xa4] ss:$8 sps:$4 sm:$0xff]  }
  0x33   :  { %315 = vmatprep.subr.bf16.mxu0 %v2838_v27  ;;  %561 = vmatpush1.bf16.msra.mxu1 %v2882_v44  ;;  %v2940_v27 = vld [vmem:[%s4248_s29 + $0xb0] ss:$8 sps:$4 sm:$0xff]  }
  0x34   :  { %562 = vmatprep.subr.bf16.mxu1 %v2883_v46 }
  0x36   :  { %316 = vmatpush1.bf16.msra.mxu0 %v2840_v28  ;;  %v2945_v28 = vld [vmem:[%s4248_s29 + $0xc4] ss:$8 sps:$4 sm:$0xff]  }
  0x37   :  { %317 = vmatprep.subr.bf16.mxu0 %v2841_v31  ;;  %563 = vmatpush1.bf16.msra.mxu1 %v2885_v48  ;;  %v2946_v31 = vld [vmem:[%s4248_s29 + $0xd0] ss:$8 sps:$4 sm:$0xff]  }
  0x38   :  { %564 = vmatprep.subr.bf16.mxu1 %v2886_v50  ;;  %v2949_v50 = vld [vmem:[%s4248_s29 + $0xe0] ss:$8 sps:$4 sm:$0xff]  }
  0x3a   :  { %318 = vmatpush1.bf16.msra.mxu0 %v2843_v32  ;;  %v127_v32 = vlaneseq }
  0x3b   :  { %319 = vmatprep.subr.bf16.mxu0 %v2844_v35  ;;  %565 = vmatpush1.bf16.msra.mxu1 %v2888_v52  ;;  %v125_v35 = vld [vmem:[%s4249_s3] sm:$0x3]  ;;  %v2952_v52 = vld [vmem:[%s4248_s29 + $0xf0] ss:$8 sps:$4 sm:$0xff]   ;;  %s4251_s3 = sld [smem:[#allocation8_spill]] }
  0x3c   :  { %566 = vmatprep.subr.bf16.mxu1 %v2889_v55  ;;  %v128_v33 = vshrl.u32 %v127_v32, 7 }
  0x3e   :  { %320 = vmatpush1.bf16.msra.mxu0 %v2846_v37  ;;  %v3599_v34 = vsub.s32 0, %v128_v33  ;;  %v3604_v36 = vsub.s32 1, %v128_v33 }
  0x3f   :  { %321 = vmatprep.subr.bf16.mxu0 %v2847_v39  ;;  %567 = vmatpush1.bf16.msra.mxu1 %v2891_v57 }
  0x40   :  { %568 = vmatprep.subr.bf16.mxu1 %v2892_v58  ;;  %v130_v37 = vrot.slane %v125_v35, %v3599_v34  ;;  %v134_v38 = vrot.slane %v125_v35, %v3604_v36 }
  0x41   :  { %v374_v54 = vld [vmem:[%s4251_s3] sm:$0x3] }
  0x42   :  { %322 = vmatpush1.bf16.msra.mxu0 %v2849_v41  ;;  %v379_v55 = vrot.slane %v374_v54, %v3599_v34 }
  0x43   :  { %323 = vmatprep.subr.bf16.mxu0 %v2850_v43  ;;  %569 = vmatpush1.bf16.msra.mxu1 %v2894_v59 }
  0x44   :  { %570 = vmatprep.subr.bf16.mxu1 %v2895_v60 }
  0x46   :  { %324 = vmatpush1.bf16.msra.mxu0 %v2852_v45 }
  0x47   :  { %325 = vmatprep.subr.bf16.mxu0 %v2853_v47  ;;  %571 = vmatpush1.bf16.msra.mxu1 %v2897_v61 }
  0x48   :  { %572 = vmatprep.subr.bf16.mxu1 %v2898_v62 }
  0x4a   :  { %326 = vmatpush1.bf16.msra.mxu0 %v2855_v49  ;;  %v2951_v49 = vld [vmem:[%s4248_s29 + $0xe4] ss:$8 sps:$4 sm:$0xff]  }
  0x4b   :  { %327 = vmatprep.subr.bf16.mxu0 %v2856_v51  ;;  %573 = vmatpush1.bf16.msra.mxu1 %v2900_v63  ;;  %v2954_v51 = vld [vmem:[%s4248_s29 + $0xf4] ss:$8 sps:$4 sm:$0xff]   ;;  %s4256_s29 = sld [smem:[#allocation13_spill]] }
  0x4c   :  { %574 = vmatprep.subr.bf16.mxu1 %v2901_v0 }
  0x4e   :  { %328 = vmatpush1.bf16.msra.mxu0 %v2858_v53  ;;  %v2955_v53 = vld [vmem:[%s4250_s6 + $0x40] sm:$0xff]  }
  0x4f   :  { %575 = vmatpush1.bf16.msra.mxu1 %v2903_v1  ;;  %795 = vmatprep.subr.bf16.mxu0 %v2909_v5  ;;  %v2958_v5 = vld [vmem:[%s4250_s6 + $0x8] sm:$0xff]  }
  0x50   :  { %576 = vmatprep.subr.bf16.mxu1 %v2904_v2  ;;  %v2956_v2 = vld [vmem:[%s4250_s6] sm:$0xff]  }
  0x51   :  { %330 = vmatmul.mubr.bf16.vlgmr.msra.gmra.mrb[0].mxu0 %v91_v56  ;;  %v383_v56 = vrot.slane %v374_v54, %v3604_v36 }
  0x52   :  { %796 = vmatpush1.bf16.msra.mxu0 %v2907_v4  ;;  %v2957_v4 = vld [vmem:[%s4250_s6 + $0x48] sm:$0xff]  }
  0x53   :  { %577 = vmatpush1.bf16.msra.mxu1 %v2906_v3  ;;  %797 = vmatprep.subr.bf16.mxu0 %v2912_v6  ;;  %v2959_v6 = vld [vmem:[%s4250_s6 + $0x50] sm:$0xff]  }
  0x56   :  { %798 = vmatpush1.bf16.msra.mxu0 %v2910_v7  ;;  %v2960_v7 = vld [vmem:[%s4250_s6 + $0x10] sm:$0xff]  }
  0x57   :  { %799 = vmatprep.subr.bf16.mxu0 %v2915_v8  ;;  %v2961_v8 = vld [vmem:[%s4250_s6 + $0x58] sm:$0xff]  }
  0x5a   :  { %800 = vmatpush1.bf16.msra.mxu0 %v2913_v9  ;;  %v2962_v9 = vld [vmem:[%s4250_s6 + $0x18] sm:$0xff]  }
  0x5b   :  { %801 = vmatprep.subr.bf16.mxu0 %v2918_v10  ;;  %v2963_v10 = vld [vmem:[%s4250_s6 + $0x60] sm:$0xff]  }
  0x5e   :  { %802 = vmatpush1.bf16.msra.mxu0 %v2916_v11  ;;  %v2964_v11 = vld [vmem:[%s4250_s6 + $0x20] sm:$0xff]  }
  0x5f   :  { %803 = vmatprep.subr.bf16.mxu0 %v2921_v12  ;;  %v2965_v12 = vld [vmem:[%s4250_s6 + $0x68] sm:$0xff]  }
  0x62   :  { %804 = vmatpush1.bf16.msra.mxu0 %v2919_v13  ;;  %v2966_v13 = vld [vmem:[%s4250_s6 + $0x28] sm:$0xff]  }
  0x63   :  { %805 = vmatprep.subr.bf16.mxu0 %v2924_v14  ;;  %v2967_v14 = vld [vmem:[%s4250_s6 + $0x70] sm:$0xff]  }
  0x66   :  { %806 = vmatpush1.bf16.msra.mxu0 %v2922_v15  ;;  %v2968_v15 = vld [vmem:[%s4250_s6 + $0x30] sm:$0xff]  }
  0x67   :  { %807 = vmatprep.subr.bf16.mxu0 %v2927_v16  ;;  %v2969_v16 = vld [vmem:[%s4250_s6 + $0x78] sm:$0xff]  }
  0x6a   :  { %808 = vmatpush1.bf16.msra.mxu0 %v2925_v17  ;;  %v2970_v17 = vld [vmem:[%s4250_s6 + $0x38] sm:$0xff]   ;;  %s4255_s6 = sld [smem:[#allocation12_spill]] }
  0x6b   :  { %809 = vmatprep.subr.bf16.mxu0 %v2930_v18  ;;  %v3169_v18 = vmov 0.0  }
  0x6c   :  { %2728 = vmatprep.subr.bf16.mxu1 %v3169_v18 }
  0x6e   :  { %810 = vmatpush1.bf16.msra.mxu0 %v2928_v19  ;;  %v2971_v19 = vld [vmem:[%s4252_s4] sm:$0xff]  }
  0x6f   :  { %811 = vmatprep.subr.bf16.mxu0 %v2933_v20  ;;  %v2972_v20 = vld [vmem:[%s4252_s4 + $0x8] sm:$0xff]  }
  0x72   :  { %812 = vmatpush1.bf16.msra.mxu0 %v2931_v21  ;;  %v2973_v21 = vld [vmem:[%s4252_s4 + $0x10] sm:$0xff]  }
  0x73   :  { %813 = vmatprep.subr.bf16.mxu0 %v2936_v22  ;;  %v2974_v22 = vld [vmem:[%s4252_s4 + $0x18] sm:$0xff]  }
  0x76   :  { %814 = vmatpush1.bf16.msra.mxu0 %v2934_v23  ;;  %v2975_v23 = vld [vmem:[%s4252_s4 + $0x20] sm:$0xff]  }
  0x77   :  { %815 = vmatprep.subr.bf16.mxu0 %v2939_v24  ;;  %v2976_v24 = vld [vmem:[%s4252_s4 + $0x28] sm:$0xff]  }
  0x7a   :  { %816 = vmatpush1.bf16.msra.mxu0 %v2937_v25  ;;  %v623_v25 = vld [vmem:[%s4253_s14] sm:$0x3] }
  0x7b   :  { %817 = vmatprep.subr.bf16.mxu0 %v2942_v26  ;;  %v628_v26 = vrot.slane %v623_v25, %v3599_v34 }
  0x7e   :  { %818 = vmatpush1.bf16.msra.mxu0 %v2940_v27  ;;  %v632_v27 = vrot.slane %v623_v25, %v3604_v36  ;;  %v2995_v25 = vld [vmem:[%s4209_s17 + $0x10] sm:$0xff]  }
  0x7f   :  { %819 = vmatprep.subr.bf16.mxu0 %v2945_v28 }
  0x82   :  { %820 = vmatpush1.bf16.msra.mxu0 %v2943_v29 }
  0x83   :  { %821 = vmatprep.subr.bf16.mxu0 %v2948_v30 }
  0x86   :  { %822 = vmatpush1.bf16.msra.mxu0 %v2946_v31 }
  0x87   :  { %823 = vmatprep.subr.bf16.mxu0 %v2951_v49  ;;  %v2506_v49 = vld [vmem:[%s4255_s6] ss:$0 sm:$0xff] }
  0x8a   :  { %824 = vmatpush1.bf16.msra.mxu0 %v2949_v50 }
  0x8b   :  { %825 = vmatprep.subr.bf16.mxu0 %v2954_v51 }
  0x8e   :  { %826 = vmatpush1.bf16.msra.mxu0 %v2952_v52 }
  0x8f   :  { %2671 = vmatprep.subr.bf16.mxu0 %v2955_v53 }
 0x124   :  { %v331_v39 = vpop.f32.mrb[0].mxu0 }
 0x125   :  { %v332_v40 = vadd.f32 %v331_v39, %v130_v37  ;;  %v333_v41 = vpop.f32.mrb[1].mxu0 }
 0x126   :  { %v334_v42 = vadd.f32 %v333_v41, %v134_v38  ;;  %v335_v43 = vpop.f32.mrb[2].mxu0  ;;  %v2978_v41 = vld [vmem:[%s4252_s4 + $0x38] sm:$0xff]  }
 0x127   :  { %v338_v44 = vmax.f32 %v332_v40, 0.0  ;;  %v336_v45 = vpop.f32.mrb[3].mxu0  ;;  %v2977_v40 = vld [vmem:[%s4252_s4 + $0x30] sm:$0xff]   ;;  %v2980_v43 = vld [vmem:[%s4254_s8 + $0x8] sm:$0xff]  }
 0x128   :  { %v339_v46 = vmax.f32 %v334_v42, 0.0  ;;  %v2979_v42 = vld [vmem:[%s4254_s8] sm:$0xff]   ;;  %v2982_v45 = vld [vmem:[%s4254_s8 + $0x18] sm:$0xff]  }
 0x129   :  { %v340_v48 = vpack.c.bf16 %v338_v44, %v338_v44  ;;  %v2981_v44 = vld [vmem:[%s4254_s8 + $0x10] sm:$0xff]  }
 0x12a   :  { %v341_v47 = vpack.c.bf16 %v339_v46, %v339_v46  ;;  %v2983_v46 = vld [vmem:[%s4254_s8 + $0x20] sm:$0xff]  }
 0x12c   :  { %578 = vmatprep.mubr.bf16.mxu1 %v341_v47  ;;  %v2984_v47 = vld [vmem:[%s4254_s8 + $0x28] sm:$0xff]  }
 0x12d   :  { %579 = vmatmul.mubr.bf16.vlgmr.msra.gmra.mrb[0].mxu1 %v340_v48 }
 0x12e   :  { %2729 = vmatpush3.bf16.msra.mxu1 %v2971_v19  ;;  %2744 = vmatprep.mubr.msk.bf16.mxu1 %vm3170_vm0, %v3169_v18 }
 0x12f   :  { %2730 = vmatprep.subr.bf16.mxu1 %v3169_v18 }
 0x132   :  { %2731 = vmatpush3.bf16.msra.mxu1 %v2972_v20 }
 0x133   :  { %2732 = vmatprep.subr.bf16.mxu1 %v3169_v18 }
 0x136   :  { %2733 = vmatpush3.bf16.msra.mxu1 %v2973_v21  ;;  %v2993_v21 = vld [vmem:[%s4209_s17] sm:$0xff]  }
 0x137   :  { %2734 = vmatprep.subr.bf16.mxu1 %v3169_v18 }
 0x13a   :  { %2735 = vmatpush3.bf16.msra.mxu1 %v2974_v22 }
 0x13b   :  { %2736 = vmatprep.subr.bf16.mxu1 %v3169_v18 }
 0x13e   :  { %2737 = vmatpush3.bf16.msra.mxu1 %v2975_v23 }
 0x13f   :  { %2738 = vmatprep.subr.bf16.mxu1 %v3169_v18 }
 0x142   :  { %2739 = vmatpush3.bf16.msra.mxu1 %v2976_v24  ;;  %v2994_v24 = vld [vmem:[%s4209_s17 + $0x8] sm:$0xff]  }
 0x143   :  { %2740 = vmatprep.subr.bf16.mxu1 %v3169_v18 }
 0x146   :  { %2741 = vmatpush3.bf16.msra.mxu1 %v2977_v40  ;;  %v3015_v40 = vld [vmem:[%s4212_s19 + $0x44] ss:$8 sps:$4 sm:$0xff]  }
 0x147   :  { %2742 = vmatprep.subr.bf16.mxu1 %v3169_v18 }
 0x14a   :  { %2743 = vmatpush3.bf16.msra.mxu1 %v2978_v41  ;;  %v3013_v41 = vld [vmem:[%s4212_s19 + $0x40] ss:$8 sps:$4 sm:$0xff]  }
 0x14b   :  { %2768 = vmatprep.subr.bf16.mxu1 %v3169_v18 }
 0x200   :  { %v580_v57 = vpop.f32.mrb[0].mxu1 }
 0x201   :  { %v581_v58 = vadd.f32 %v580_v57, %v379_v55  ;;  %v582_v59 = vpop.f32.mrb[1].mxu1  ;;  %v2985_v57 = vld [vmem:[%s4254_s8 + $0x30] sm:$0xff]  }
 0x202   :  { %v583_v60 = vadd.f32 %v582_v59, %v383_v56  ;;  %v584_v61 = vpop.f32.mrb[2].mxu1  ;;  %v2987_v59 = vld [vmem:[%s4256_s29] sm:$0xff]  }
 0x203   :  { %v587_v62 = vmax.f32 %v581_v58, 0.0  ;;  %v585_v63 = vpop.f32.mrb[3].mxu1  ;;  %v2986_v58 = vld [vmem:[%s4254_s8 + $0x38] sm:$0xff]   ;;  %v2989_v61 = vld [vmem:[%s4256_s29 + $0x10] sm:$0xff]  }
 0x204   :  { %v588_v0 = vmax.f32 %v583_v60, 0.0  ;;  %v2988_v60 = vld [vmem:[%s4256_s29 + $0x8] sm:$0xff]   ;;  %v1248_v63 = vld [vmem:[%s4207_s1] sm:$0xff] }
 0x205   :  { %v589_v3 = vpack.c.bf16 %v587_v62, %v587_v62  ;;  %v2990_v62 = vld [vmem:[%s4256_s29 + $0x18] sm:$0xff]  }
 0x206   :  { %v590_v1 = vpack.c.bf16 %v588_v0, %v588_v0  ;;  %v1249_v0 = vpack.c.bf16 %v1248_v63, %v1248_v63  ;;  %v3031_v63 = vld [vmem:[%s4214_s21 + $0x20] ss:$8 sps:$4 sm:$0xff]  }
 0x208   :  { %827 = vmatprep.mubr.bf16.mxu0 %v590_v1  ;;  %v2991_v1 = vld [vmem:[%s4257_s0] sm:$0xff]  }
 0x209   :  { %828 = vmatmul.mubr.bf16.vlgmr.msra.gmra.mrb[4].mxu0 %v589_v3 }
 0x20a   :  { %2672 = vmatpush3.bf16.msra.mxu0 %v2956_v2  ;;  %v2523_v2 = vld [vmem:[%s4208_s11] ss:$0 sm:$0xff] }
 0x20b   :  { %2673 = vmatprep.subr.bf16.mxu0 %v2957_v4 }
 0x20e   :  { %2674 = vmatpush3.bf16.msra.mxu0 %v2958_v5 }
 0x20f   :  { %2675 = vmatprep.subr.bf16.mxu0 %v2959_v6 }
 0x212   :  { %2676 = vmatpush3.bf16.msra.mxu0 %v2960_v7 }
 0x213   :  { %2677 = vmatprep.subr.bf16.mxu0 %v2961_v8 }
 0x216   :  { %2678 = vmatpush3.bf16.msra.mxu0 %v2962_v9 }
 0x217   :  { %2679 = vmatprep.subr.bf16.mxu0 %v2963_v10  ;;  %v2992_v10 = vld [vmem:[%s4257_s0 + $0x8] sm:$0xff]  }
 0x21a   :  { %2680 = vmatpush3.bf16.msra.mxu0 %v2964_v11 }
 0x21b   :  { %2681 = vmatprep.subr.bf16.mxu0 %v2965_v12 }
 0x21e   :  { %2682 = vmatpush3.bf16.msra.mxu0 %v2966_v13 }
 0x21f   :  { %2683 = vmatprep.subr.bf16.mxu0 %v2967_v14 }
 0x222   :  { %2684 = vmatpush3.bf16.msra.mxu0 %v2968_v15  ;;  %v2532_v15 = vld [vmem:[%s4210_s13] ss:$0 sm:$0xff] }
 0x223   :  { %2685 = vmatprep.subr.bf16.mxu0 %v2969_v16 }
 0x226   :  { %2686 = vmatpush3.bf16.msra.mxu0 %v2970_v17 }
 0x227   :  { %2748 = vmatprep.subr.bf16.mxu0 %v3169_v18 }
 0x2dc   :  { %v829_v28 = vpop.f32.mrb[4].mxu0 }
 0x2dd   :  { %v830_v29 = vadd.f32 %v829_v28, %v628_v26  ;;  %v831_v30 = vpop.f32.mrb[5].mxu0  ;;  %v2996_v26 = vld [vmem:[%s4209_s17 + $0x18] sm:$0xff]   ;;  %v2998_v28 = vld [vmem:[%s4209_s17 + $0x28] sm:$0xff]  }
 0x2de   :  { %v832_v31 = vadd.f32 %v831_v30, %v632_v27  ;;  %v833_v32 = vpop.f32.mrb[6].mxu0  ;;  %v2997_v27 = vld [vmem:[%s4209_s17 + $0x20] sm:$0xff]   ;;  %v3000_v30 = vld [vmem:[%s4209_s17 + $0x38] sm:$0xff]  }
 0x2df   :  { %v836_v33 = vmax.f32 %v830_v29, 0.0  ;;  %v834_v35 = vpop.f32.mrb[7].mxu0  ;;  %v2999_v29 = vld [vmem:[%s4209_s17 + $0x30] sm:$0xff]   ;;  %v3003_v32 = vld [vmem:[%s4212_s19 + $0x4] ss:$8 sps:$4 sm:$0xff]  }
 0x2e0   :  { %v837_v37 = vmax.f32 %v832_v31, 0.0  ;;  %v3001_v31 = vld [vmem:[%s4212_s19] ss:$8 sps:$4 sm:$0xff]   ;;  %v3009_v35 = vld [vmem:[%s4212_s19 + $0x24] ss:$8 sps:$4 sm:$0xff]  }
 0x2e1   :  { %v838_v39 = vpack.c.bf16 %v836_v33, %v836_v33  ;;  %v3006_v33 = vld [vmem:[%s4212_s19 + $0x14] ss:$8 sps:$4 sm:$0xff]  }
 0x2e2   :  { %v839_v38 = vpack.c.bf16 %v837_v37, %v837_v37  ;;  %v3007_v37 = vld [vmem:[%s4212_s19 + $0x20] ss:$8 sps:$4 sm:$0xff]  }
 0x2e4   :  { %1007 = vmatprep.mubr.bf16.mxu0 %v839_v38  ;;  %v3012_v38 = vld [vmem:[%s4212_s19 + $0x34] ss:$8 sps:$4 sm:$0xff]  }
 0x2e5   :  { %1008 = vmatmul.mubr.bf16.vlgmr.msra.gmra.mrb[8].mxu0 %v838_v39  ;;  %v3010_v39 = vld [vmem:[%s4212_s19 + $0x30] ss:$8 sps:$4 sm:$0xff]  }
 0x2e6   :  { %2764 = vmatprep.mubr.msk.bf16.mxu0 %vm3170_vm0, %v3169_v18  ;;  %2749 = vmatpush3.bf16.msra.mxu0 %v2979_v42  ;;  %v3018_v42 = vld [vmem:[%s4212_s19 + $0x54] ss:$8 sps:$4 sm:$0xff]  }
 0x2e7   :  { %2750 = vmatprep.subr.bf16.mxu0 %v3169_v18 }
 0x2ea   :  { %2751 = vmatpush3.bf16.msra.mxu0 %v2980_v43  ;;  %v3016_v43 = vld [vmem:[%s4212_s19 + $0x50] ss:$8 sps:$4 sm:$0xff]  }
 0x2eb   :  { %2752 = vmatprep.subr.bf16.mxu0 %v3169_v18 }
 0x2ee   :  { %2753 = vmatpush3.bf16.msra.mxu0 %v2981_v44  ;;  %v3021_v44 = vld [vmem:[%s4212_s19 + $0x64] ss:$8 sps:$4 sm:$0xff]  }
 0x2ef   :  { %2754 = vmatprep.subr.bf16.mxu0 %v3169_v18 }
 0x2f2   :  { %2755 = vmatpush3.bf16.msra.mxu0 %v2982_v45  ;;  %v3019_v45 = vld [vmem:[%s4212_s19 + $0x60] ss:$8 sps:$4 sm:$0xff]  }
 0x2f3   :  { %2756 = vmatprep.subr.bf16.mxu0 %v3169_v18 }
 0x2f6   :  { %2757 = vmatpush3.bf16.msra.mxu0 %v2983_v46 }
 0x2f7   :  { %2758 = vmatprep.subr.bf16.mxu0 %v3169_v18 }
 0x2fa   :  { %2759 = vmatpush3.bf16.msra.mxu0 %v2984_v47  ;;  %v2549_v47 = vld [vmem:[%s4213_s16] ss:$0 sm:$0xff] }
 0x2fb   :  { %2760 = vmatprep.subr.bf16.mxu0 %v3169_v18 }
 0x2fe   :  { %2761 = vmatpush3.bf16.msra.mxu0 %v2985_v57  ;;  %v3171_v57 = vmov 0  }
 0x2ff   :  { %2762 = vmatprep.subr.bf16.mxu0 %v3169_v18 }
 0x302   :  { %2763 = vmatpush3.bf16.msra.mxu0 %v2986_v58  ;;  %v3025_v58 = vld [vmem:[%s4214_s21] ss:$8 sps:$4 sm:$0xff]  }
 0x303   :  { %1612 = vmatprep.subr.bf16.mxu0 %v3003_v32  ;;  %v3067_v32 = vld [vmem:[%s4214_s21 + $0xe0] ss:$8 sps:$4 sm:$0xff]  }
 0x3b8   :  { %v2687_v48 = vpop.f32.mrb[8].mxu0 }
 0x3b9   :  { %v2688_v50 = vpop.f32.mrb[9].mxu0 }
 0x3ba   :  { %v2689_v51 = vadd.f32 %v2688_v50, %v2687_v48  ;;  %v2690_v52 = vpop.f32.mrb[10].mxu0 }
 0x3bb   :  { %v2691_v53 = vpop.f32.mrb[11].mxu0 }
 0x3bc   :  { %v1010_v54 = vadd.f32 %v2689_v51, %v2506_v49 }
 0x3be   :  { %v1015_v55 = vmax.f32 %v1010_v54, 0.0 }
 0x3c0   :  { %v1016_v56 = vpack.c.bf16 %v1015_v55, %v1015_v55  ;;  %v3024_v55 = vld [vmem:[%s4212_s19 + $0x74] ss:$8 sps:$4 sm:$0xff]  }
 0x3c2   :  { %2745 = vmatmul.mubr.bf16.vlgmr.msra.gmra.mrb[4].mxu1 %v1016_v56  ;;  %v3022_v56 = vld [vmem:[%s4212_s19 + $0x70] ss:$8 sps:$4 sm:$0xff]  }
 0x3c3   :  { %2776 = vmatprep.mubr.msk.bf16.mxu1 %vm3170_vm0, %v3169_v18  ;;  %2769 = vmatpush3.bf16.msra.mxu1 %v2987_v59  ;;  %v3027_v59 = vld [vmem:[%s4214_s21 + $0x4] ss:$8 sps:$4 sm:$0xff]  }
 0x3c4   :  { %2770 = vmatprep.subr.bf16.mxu1 %v3169_v18 }
 0x3c7   :  { %2771 = vmatpush3.bf16.msra.mxu1 %v2988_v60  ;;  %v3030_v60 = vld [vmem:[%s4214_s21 + $0x14] ss:$8 sps:$4 sm:$0xff]  }
 0x3c8   :  { %2772 = vmatprep.subr.bf16.mxu1 %v3169_v18 }
 0x3cb   :  { %2773 = vmatpush3.bf16.msra.mxu1 %v2989_v61  ;;  %v3028_v61 = vld [vmem:[%s4214_s21 + $0x10] ss:$8 sps:$4 sm:$0xff]  }
 0x3cc   :  { %2774 = vmatprep.subr.bf16.mxu1 %v3169_v18 }
 0x3cf   :  { %2775 = vmatpush3.bf16.msra.mxu1 %v2990_v62  ;;  %v3033_v62 = vld [vmem:[%s4214_s21 + $0x24] ss:$8 sps:$4 sm:$0xff]  }
 0x3d0   :  { %2780 = vmatprep.subr.bf16.mxu1 %v3169_v18 }
 0x3d2   :  { %2777 = vmatmul.mubr.msk.bf16.vlgmr.msra.gmra.mrb[8].mxu1 %vm1282_vm1, %v1249_v0  ;;  %v3036_v0 = vld [vmem:[%s4214_s21 + $0x34] ss:$8 sps:$4 sm:$0xff]  }
 0x3d3   :  { %2781 = vmatpush3.bf16.msra.mxu1 %v2991_v1  ;;  %2784 = vmatprep.mubr.msk.bf16.mxu1 %vm3170_vm0, %v3169_v18  ;;  %v3034_v1 = vld [vmem:[%s4214_s21 + $0x30] ss:$8 sps:$4 sm:$0xff]  }
 0x3d4   :  { %2782 = vmatprep.subr.bf16.mxu1 %v3169_v18 }
 0x3d7   :  { %2783 = vmatpush3.bf16.msra.mxu1 %v2992_v10  ;;  %v3051_v10 = vld [vmem:[%s4214_s21 + $0x84] ss:$8 sps:$4 sm:$0xff]  }
 0x3d8   :  { %2788 = vmatprep.subr.bf16.mxu1 %v3169_v18 }
 0x495   :  { %v1122_v3 = vpop.f32.mrb[4].mxu1 }
 0x496   :  { %v1123_v4 = vadd.f32 %v2523_v2, %v1122_v3  ;;  %v2746_v5 = vpop.f32.mrb[5].mxu1  ;;  %v3039_v2 = vld [vmem:[%s4214_s21 + $0x44] ss:$8 sps:$4 sm:$0xff]   ;;  %v3037_v3 = vld [vmem:[%s4214_s21 + $0x40] ss:$8 sps:$4 sm:$0xff]  }
 0x497   :  { %v1125_v6 = vpop.f32.mrb[6].mxu1  ;;  %v3040_v5 = vld [vmem:[%s4214_s21 + $0x50] ss:$8 sps:$4 sm:$0xff]  }
 0x498   :  { %v1128_v7 = vmax.f32 %v1123_v4, 0.0  ;;  %v2747_v8 = vpop.f32.mrb[7].mxu1  ;;  %v3042_v4 = vld [vmem:[%s4214_s21 + $0x54] ss:$8 sps:$4 sm:$0xff]   ;;  %v3045_v6 = vld [vmem:[%s4214_s21 + $0x64] ss:$8 sps:$4 sm:$0xff]  }
 0x499   :  { %v3048_v8 = vld [vmem:[%s4214_s21 + $0x74] ss:$8 sps:$4 sm:$0xff]  }
 0x49a   :  { %v1129_v9 = vpack.c.bf16 %v1128_v7, %v1128_v7  ;;  %v3043_v7 = vld [vmem:[%s4214_s21 + $0x60] ss:$8 sps:$4 sm:$0xff]  }
 0x49c   :  { %2765 = vmatmul.mubr.bf16.vlgmr.msra.gmra.mrb[12].mxu0 %v1129_v9  ;;  %v3046_v9 = vld [vmem:[%s4214_s21 + $0x70] ss:$8 sps:$4 sm:$0xff]  }
 0x49d   :  { %1613 = vmatpush1.bf16.msra.mxu0 %v3001_v31  ;;  %1644 = vmatprep.mubr.bf16.mxu0 %v3171_v57  ;;  %v3069_v31 = vld [vmem:[%s4214_s21 + $0xe4] ss:$8 sps:$4 sm:$0xff]   ;;  %v3103_v57 = vld [vmem:[%s4216_s23 + $0xa0] ss:$8 sps:$4 sm:$0xff]  }
 0x49e   :  { %1614 = vmatprep.subr.bf16.mxu0 %v3006_v33  ;;  %v3072_v33 = vld [vmem:[%s4214_s21 + $0xf4] ss:$8 sps:$4 sm:$0xff]  }
 0x4a5   :  { %v3784_v11 = vpop.f32.mrb[8].mxu1 }
 0x4a6   :  { %v2778_v12 = vpop.f32.mrb[9].mxu1 }
 0x4a7   :  { %v1323_v13 = vpop.f32.mrb[10].mxu1  ;;  %v3054_v12 = vld [vmem:[%s4214_s21 + $0x94] ss:$8 sps:$4 sm:$0xff]  }
 0x4a8   :  { %v2779_v14 = vpop.f32.mrb[11].mxu1  ;;  %v3052_v13 = vld [vmem:[%s4214_s21 + $0x90] ss:$8 sps:$4 sm:$0xff]  }
 0x4a9   :  { %v3057_v14 = vld [vmem:[%s4214_s21 + $0xa4] ss:$8 sps:$4 sm:$0xff]  }
 0x56f   :  { %v1235_v16 = vpop.f32.mrb[12].mxu0 }
 0x570   :  { %v1236_v17 = vadd.f32 %v2532_v15, %v1235_v16  ;;  %v2766_v19 = vpop.f32.mrb[13].mxu0  ;;  %v3055_v15 = vld [vmem:[%s4214_s21 + $0xa0] ss:$8 sps:$4 sm:$0xff]   ;;  %v3060_v16 = vld [vmem:[%s4214_s21 + $0xb4] ss:$8 sps:$4 sm:$0xff]  }
 0x571   :  { %v1238_v20 = vpop.f32.mrb[14].mxu0  ;;  %v3063_v19 = vld [vmem:[%s4214_s21 + $0xc4] ss:$8 sps:$4 sm:$0xff]  }
 0x572   :  { %1242 = vst.msk [vmem:[%s4211_s28] sm:$0xff] %vm1241_vm2, %v1236_v17  ;;  %v1243_v22 = vpack.c.bf16 %v1236_v17, %v1236_v17  ;;  %v2767_v23 = vpop.f32.mrb[15].mxu0  ;;  %v3058_v17 = vld [vmem:[%s4214_s21 + $0xb0] ss:$8 sps:$4 sm:$0xff]   ;;  %v3061_v20 = vld [vmem:[%s4214_s21 + $0xc0] ss:$8 sps:$4 sm:$0xff]  }
 0x573   :  { %v2550_v23 = vld [vmem:[%s4215_s18] ss:$0 sm:$0xff] }
 0x574   :  { %2785 = vmatmul.mubr.msk.bf16.vlgmr.msra.gmra.mrb[12].mxu1 %vm1241_vm2, %v1243_v22  ;;  %v3064_v22 = vld [vmem:[%s4214_s21 + $0xd0] ss:$8 sps:$4 sm:$0xff]  }
 0x575   :  { %2789 = vmatpush3.bf16.msra.mxu1 %v2993_v21  ;;  %2804 = vmatprep.mubr.msk.bf16.mxu1 %vm3170_vm0, %v3169_v18  ;;  %v3066_v21 = vld [vmem:[%s4214_s21 + $0xd4] ss:$8 sps:$4 sm:$0xff]  }
 0x576   :  { %2790 = vmatprep.subr.bf16.mxu1 %v3169_v18 }
 0x579   :  { %2791 = vmatpush3.bf16.msra.mxu1 %v2994_v24 }
 0x57a   :  { %2792 = vmatprep.subr.bf16.mxu1 %v3169_v18 }
 0x57d   :  { %2793 = vmatpush3.bf16.msra.mxu1 %v2995_v25 }
 0x57e   :  { %2794 = vmatprep.subr.bf16.mxu1 %v3169_v18 }
 0x581   :  { %2795 = vmatpush3.bf16.msra.mxu1 %v2996_v26 }
 0x582   :  { %2796 = vmatprep.subr.bf16.mxu1 %v3169_v18 }
 0x585   :  { %2797 = vmatpush3.bf16.msra.mxu1 %v2997_v27 }
 0x586   :  { %2798 = vmatprep.subr.bf16.mxu1 %v3169_v18 }
 0x589   :  { %2799 = vmatpush3.bf16.msra.mxu1 %v2998_v28 }
 0x58a   :  { %2800 = vmatprep.subr.bf16.mxu1 %v3169_v18 }
 0x58d   :  { %2801 = vmatpush3.bf16.msra.mxu1 %v2999_v29 }
 0x58e   :  { %2802 = vmatprep.subr.bf16.mxu1 %v3169_v18  ;;  %v3004_v18 = vld [vmem:[%s4212_s19 + $0x10] ss:$8 sps:$4 sm:$0xff]  }
 0x58f   :  { %1615 = vmatpush1.bf16.msra.mxu0 %v3004_v18  ;;  %v3070_v18 = vld [vmem:[%s4214_s21 + $0xf0] ss:$8 sps:$4 sm:$0xff]  }
 0x590   :  { %1616 = vmatprep.subr.bf16.mxu0 %v3009_v35  ;;  %v3073_v35 = vld [vmem:[%s4216_s23] ss:$8 sps:$4 sm:$0xff]  }
 0x591   :  { %2803 = vmatpush3.bf16.msra.mxu1 %v3000_v30 }
 0x592   :  { %1861 = vmatprep.subr.bf16.mxu1 %v3027_v59  ;;  %v3106_v59 = vld [vmem:[%s4216_s23 + $0xb0] ss:$8 sps:$4 sm:$0xff]  }
 0x593   :  { %1617 = vmatpush1.bf16.msra.mxu0 %v3007_v37  ;;  %v3075_v37 = vld [vmem:[%s4216_s23 + $0x4] ss:$8 sps:$4 sm:$0xff]  }
 0x594   :  { %1618 = vmatprep.subr.bf16.mxu0 %v3012_v38  ;;  %v3078_v38 = vld [vmem:[%s4216_s23 + $0x14] ss:$8 sps:$4 sm:$0xff]  }
 0x597   :  { %1619 = vmatpush1.bf16.msra.mxu0 %v3010_v39  ;;  %v3076_v39 = vld [vmem:[%s4216_s23 + $0x10] ss:$8 sps:$4 sm:$0xff]  }
 0x598   :  { %1620 = vmatprep.subr.bf16.mxu0 %v3015_v40  ;;  %v3081_v40 = vld [vmem:[%s4216_s23 + $0x24] ss:$8 sps:$4 sm:$0xff]  }
 0x59b   :  { %1621 = vmatpush1.bf16.msra.mxu0 %v3013_v41  ;;  %v3079_v41 = vld [vmem:[%s4216_s23 + $0x20] ss:$8 sps:$4 sm:$0xff]  }
 0x59c   :  { %1622 = vmatprep.subr.bf16.mxu0 %v3018_v42  ;;  %v3084_v42 = vld [vmem:[%s4216_s23 + $0x34] ss:$8 sps:$4 sm:$0xff]  }
 0x59f   :  { %1623 = vmatpush1.bf16.msra.mxu0 %v3016_v43  ;;  %v3082_v43 = vld [vmem:[%s4216_s23 + $0x30] ss:$8 sps:$4 sm:$0xff]  }
 0x5a0   :  { %1624 = vmatprep.subr.bf16.mxu0 %v3021_v44  ;;  %v3087_v44 = vld [vmem:[%s4216_s23 + $0x44] ss:$8 sps:$4 sm:$0xff]  }
 0x5a3   :  { %1625 = vmatpush1.bf16.msra.mxu0 %v3019_v45  ;;  %v3085_v45 = vld [vmem:[%s4216_s23 + $0x40] ss:$8 sps:$4 sm:$0xff]  }
 0x5a4   :  { %1626 = vmatprep.subr.bf16.mxu0 %v3024_v55  ;;  %v3100_v55 = vld [vmem:[%s4216_s23 + $0x90] ss:$8 sps:$4 sm:$0xff]  }
 0x5a7   :  { %1627 = vmatpush1.bf16.msra.mxu0 %v3022_v56  ;;  %v3105_v56 = vld [vmem:[%s4216_s23 + $0xa4] ss:$8 sps:$4 sm:$0xff]  }
 0x5a8   :  { %2110 = vmatprep.subr.bf16.mxu0 %v3075_v37  ;;  %v3150_v37 = vld [vmem:[%s4218_s25 + $0x94] ss:$8 sps:$4 sm:$0xff]  }
 0x647   :  { %v1375_v46 = vpop.f32.mrb[12].mxu1 }
 0x648   :  { %v1376_v48 = vadd.f32 %v1375_v46, %v3784_v11  ;;  %v2786_v49 = vpop.f32.mrb[13].mxu1  ;;  %v3049_v11 = vld [vmem:[%s4214_s21 + $0x80] ss:$8 sps:$4 sm:$0xff]   ;;  %v3090_v46 = vld [vmem:[%s4216_s23 + $0x54] ss:$8 sps:$4 sm:$0xff]  }
 0x649   :  { %v1378_v50 = vpop.f32.mrb[14].mxu1  ;;  %v3091_v49 = vld [vmem:[%s4216_s23 + $0x60] ss:$8 sps:$4 sm:$0xff]  }
 0x64a   :  { %v1388_v51 = vadd.f32 %v2549_v47, %v1376_v48  ;;  %v2787_v52 = vpop.f32.mrb[15].mxu1  ;;  %v3088_v47 = vld [vmem:[%s4216_s23 + $0x50] ss:$8 sps:$4 sm:$0xff]   ;;  %v3093_v48 = vld [vmem:[%s4216_s23 + $0x64] ss:$8 sps:$4 sm:$0xff]  }
 0x64b   :  { %v3096_v50 = vld [vmem:[%s4216_s23 + $0x74] ss:$8 sps:$4 sm:$0xff]   ;;  %v3099_v52 = vld [vmem:[%s4216_s23 + $0x84] ss:$8 sps:$4 sm:$0xff]  }
 0x64c   :  { %v1389_v53 = vmax.f32 %v1388_v51, 0.0  ;;  %v3094_v51 = vld [vmem:[%s4216_s23 + $0x70] ss:$8 sps:$4 sm:$0xff]  }
 0x64e   :  { %v1390_v54 = vpack.c.bf16 %v1389_v53, %v1389_v53  ;;  %v3097_v53 = vld [vmem:[%s4216_s23 + $0x80] ss:$8 sps:$4 sm:$0xff]  }
 0x650   :  { %2805 = vmatmul.mubr.bf16.vlgmr.msra.gmra.mrb[16].mxu1 %v1390_v54  ;;  %v3102_v54 = vld [vmem:[%s4216_s23 + $0x94] ss:$8 sps:$4 sm:$0xff]  }
 0x651   :  { %1862 = vmatpush1.bf16.msra.mxu1 %v3025_v58  ;;  %v3108_v58 = vld [vmem:[%s4216_s23 + $0xb4] ss:$8 sps:$4 sm:$0xff]  }
 0x652   :  { %1863 = vmatprep.subr.bf16.mxu1 %v3030_v60  ;;  %v3111_v60 = vld [vmem:[%s4216_s23 + $0xc4] ss:$8 sps:$4 sm:$0xff]  }
 0x655   :  { %1864 = vmatpush1.bf16.msra.mxu1 %v3028_v61  ;;  %v3109_v61 = vld [vmem:[%s4216_s23 + $0xc0] ss:$8 sps:$4 sm:$0xff]  }
 0x656   :  { %1865 = vmatprep.subr.bf16.mxu1 %v3033_v62  ;;  %v3114_v62 = vld [vmem:[%s4216_s23 + $0xd4] ss:$8 sps:$4 sm:$0xff]  }
 0x659   :  { %1866 = vmatpush1.bf16.msra.mxu1 %v3031_v63  ;;  %v3112_v63 = vld [vmem:[%s4216_s23 + $0xd0] ss:$8 sps:$4 sm:$0xff]  }
 0x65a   :  { %1867 = vmatprep.subr.bf16.mxu1 %v3036_v0  ;;  %v1520_v0 = vld [vmem:[%s4217_s20] sm:$0x3] }
 0x65d   :  { %1868 = vmatpush1.bf16.msra.mxu1 %v3034_v1  ;;  %v1525_v1 = vrot.slane %v1520_v0, %v3599_v34 }
 0x65e   :  { %1869 = vmatprep.subr.bf16.mxu1 %v3039_v2  ;;  %v1529_v2 = vrot.slane %v1520_v0, %v3604_v36  ;;  %v1938_v0 = vld [vmem:[%s4220_s24] sm:$0x3] }
 0x661   :  { %1870 = vmatpush1.bf16.msra.mxu1 %v3037_v3 }
 0x662   :  { %1871 = vmatprep.subr.bf16.mxu1 %v3042_v4 }
 0x665   :  { %1872 = vmatpush1.bf16.msra.mxu1 %v3040_v5 }
 0x666   :  { %1873 = vmatprep.subr.bf16.mxu1 %v3045_v6 }
 0x669   :  { %1874 = vmatpush1.bf16.msra.mxu1 %v3043_v7 }
 0x66a   :  { %1875 = vmatprep.subr.bf16.mxu1 %v3048_v8 }
 0x66d   :  { %1876 = vmatpush1.bf16.msra.mxu1 %v3046_v9 }
 0x66e   :  { %1877 = vmatprep.subr.bf16.mxu1 %v3051_v10 }
 0x671   :  { %1878 = vmatpush1.bf16.msra.mxu1 %v3049_v11 }
 0x672   :  { %1879 = vmatprep.subr.bf16.mxu1 %v3054_v12 }
 0x675   :  { %1880 = vmatpush1.bf16.msra.mxu1 %v3052_v13  ;;  %v3117_v13 = vld [vmem:[%s4216_s23 + $0xe4] ss:$8 sps:$4 sm:$0xff]  }
 0x676   :  { %1881 = vmatprep.subr.bf16.mxu1 %v3057_v14  ;;  %v3115_v14 = vld [vmem:[%s4216_s23 + $0xe0] ss:$8 sps:$4 sm:$0xff]  }
 0x679   :  { %1882 = vmatpush1.bf16.msra.mxu1 %v3055_v15  ;;  %v3120_v15 = vld [vmem:[%s4216_s23 + $0xf4] ss:$8 sps:$4 sm:$0xff]  }
 0x67a   :  { %1883 = vmatprep.subr.bf16.mxu1 %v3060_v16  ;;  %v3118_v16 = vld [vmem:[%s4216_s23 + $0xf0] ss:$8 sps:$4 sm:$0xff]  }
 0x67d   :  { %1884 = vmatpush1.bf16.msra.mxu1 %v3058_v17  ;;  %v3121_v17 = vld [vmem:[%s4218_s25] ss:$8 sps:$4 sm:$0xff]  }
 0x67e   :  { %1885 = vmatprep.subr.bf16.mxu1 %v3063_v19  ;;  %v3123_v19 = vld [vmem:[%s4218_s25 + $0x4] ss:$8 sps:$4 sm:$0xff]  }
 0x681   :  { %1886 = vmatpush1.bf16.msra.mxu1 %v3061_v20  ;;  %v3126_v20 = vld [vmem:[%s4218_s25 + $0x14] ss:$8 sps:$4 sm:$0xff]  }
 0x682   :  { %1887 = vmatprep.subr.bf16.mxu1 %v3066_v21  ;;  %v3124_v21 = vld [vmem:[%s4218_s25 + $0x10] ss:$8 sps:$4 sm:$0xff]  }
 0x685   :  { %1888 = vmatpush1.bf16.msra.mxu1 %v3064_v22  ;;  %v3129_v22 = vld [vmem:[%s4218_s25 + $0x24] ss:$8 sps:$4 sm:$0xff]  }
 0x686   :  { %1889 = vmatprep.subr.bf16.mxu1 %v3069_v31  ;;  %v3139_v31 = vld [vmem:[%s4218_s25 + $0x60] ss:$8 sps:$4 sm:$0xff]  }
 0x689   :  { %1890 = vmatpush1.bf16.msra.mxu1 %v3067_v32  ;;  %v3144_v32 = vld [vmem:[%s4218_s25 + $0x74] ss:$8 sps:$4 sm:$0xff]  }
 0x68a   :  { %1891 = vmatprep.subr.bf16.mxu1 %v3072_v33  ;;  %v3142_v33 = vld [vmem:[%s4218_s25 + $0x70] ss:$8 sps:$4 sm:$0xff]  }
 0x68d   :  { %1892 = vmatpush1.bf16.msra.mxu1 %v3070_v18  ;;  %v3147_v18 = vld [vmem:[%s4218_s25 + $0x84] ss:$8 sps:$4 sm:$0xff]  }
 0x68e   :  { %2359 = vmatprep.subr.bf16.mxu1 %v3123_v19 }
 0x723   :  { %v1496_v24 = vpop.f32.mrb[16].mxu1 }
 0x724   :  { %v1497_v25 = vadd.f32 %v2550_v23, %v1496_v24  ;;  %v2806_v26 = vpop.f32.mrb[17].mxu1  ;;  %v3127_v23 = vld [vmem:[%s4218_s25 + $0x20] ss:$8 sps:$4 sm:$0xff]   ;;  %v3132_v24 = vld [vmem:[%s4218_s25 + $0x34] ss:$8 sps:$4 sm:$0xff]  }
 0x725   :  { %v1499_v27 = vpop.f32.mrb[18].mxu1  ;;  %v3135_v26 = vld [vmem:[%s4218_s25 + $0x44] ss:$8 sps:$4 sm:$0xff]  }
 0x726   :  { %v1502_v28 = vmax.f32 %v1497_v25, 0.0  ;;  %v2807_v29 = vpop.f32.mrb[19].mxu1  ;;  %v3130_v25 = vld [vmem:[%s4218_s25 + $0x30] ss:$8 sps:$4 sm:$0xff]   ;;  %v3133_v27 = vld [vmem:[%s4218_s25 + $0x40] ss:$8 sps:$4 sm:$0xff]  }
 0x727   :  { %v3136_v29 = vld [vmem:[%s4218_s25 + $0x50] ss:$8 sps:$4 sm:$0xff]  }
 0x728   :  { %v1503_v30 = vpack.c.bf16 %v1502_v28, %v1502_v28  ;;  %v3138_v28 = vld [vmem:[%s4218_s25 + $0x54] ss:$8 sps:$4 sm:$0xff]  }
 0x72a   :  { %1645 = vmatmul.mubr.bf16.vlgmr.msra.gmra.mrb[16].mxu0 %v1503_v30  ;;  %v3141_v30 = vld [vmem:[%s4218_s25 + $0x64] ss:$8 sps:$4 sm:$0xff]  }
 0x72b   :  { %2111 = vmatpush1.bf16.msra.mxu0 %v3073_v35  ;;  %v3145_v35 = vld [vmem:[%s4218_s25 + $0x80] ss:$8 sps:$4 sm:$0xff]  }
 0x72c   :  { %2112 = vmatprep.subr.bf16.mxu0 %v3078_v38  ;;  %v3148_v38 = vld [vmem:[%s4218_s25 + $0x90] ss:$8 sps:$4 sm:$0xff]  }
 0x72f   :  { %2113 = vmatpush1.bf16.msra.mxu0 %v3076_v39  ;;  %v3153_v39 = vld [vmem:[%s4218_s25 + $0xa4] ss:$8 sps:$4 sm:$0xff]  }
 0x730   :  { %2114 = vmatprep.subr.bf16.mxu0 %v3081_v40  ;;  %v3151_v40 = vld [vmem:[%s4218_s25 + $0xa0] ss:$8 sps:$4 sm:$0xff]  }
 0x733   :  { %2115 = vmatpush1.bf16.msra.mxu0 %v3079_v41  ;;  %v3156_v41 = vld [vmem:[%s4218_s25 + $0xb4] ss:$8 sps:$4 sm:$0xff]  }
 0x734   :  { %2116 = vmatprep.subr.bf16.mxu0 %v3084_v42  ;;  %v3154_v42 = vld [vmem:[%s4218_s25 + $0xb0] ss:$8 sps:$4 sm:$0xff]  }
 0x737   :  { %2117 = vmatpush1.bf16.msra.mxu0 %v3082_v43  ;;  %v3159_v43 = vld [vmem:[%s4218_s25 + $0xc4] ss:$8 sps:$4 sm:$0xff]  }
 0x738   :  { %2118 = vmatprep.subr.bf16.mxu0 %v3087_v44  ;;  %v3157_v44 = vld [vmem:[%s4218_s25 + $0xc0] ss:$8 sps:$4 sm:$0xff]  }
 0x73b   :  { %2119 = vmatpush1.bf16.msra.mxu0 %v3085_v45  ;;  %v3162_v45 = vld [vmem:[%s4218_s25 + $0xd4] ss:$8 sps:$4 sm:$0xff]  }
 0x73c   :  { %2120 = vmatprep.subr.bf16.mxu0 %v3090_v46  ;;  %v3160_v46 = vld [vmem:[%s4218_s25 + $0xd0] ss:$8 sps:$4 sm:$0xff]  }
 0x73f   :  { %2121 = vmatpush1.bf16.msra.mxu0 %v3088_v47  ;;  %v1689_v47 = vld [vmem:[%s4219_s22] sm:$0x3] }
 0x740   :  { %2122 = vmatprep.subr.bf16.mxu0 %v3093_v48  ;;  %v1694_v48 = vrot.slane %v1689_v47, %v3599_v34 }
 0x743   :  { %2123 = vmatpush1.bf16.msra.mxu0 %v3091_v49  ;;  %v1698_v49 = vrot.slane %v1689_v47, %v3604_v36 }
 0x744   :  { %2124 = vmatprep.subr.bf16.mxu0 %v3096_v50 }
 0x747   :  { %2125 = vmatpush1.bf16.msra.mxu0 %v3094_v51 }
 0x748   :  { %2126 = vmatprep.subr.bf16.mxu0 %v3099_v52 }
 0x74b   :  { %2127 = vmatpush1.bf16.msra.mxu0 %v3097_v53 }
 0x74c   :  { %2128 = vmatprep.subr.bf16.mxu0 %v3102_v54 }
 0x74f   :  { %2129 = vmatpush1.bf16.msra.mxu0 %v3100_v55 }
 0x750   :  { %2130 = vmatprep.subr.bf16.mxu0 %v3105_v56 }
 0x753   :  { %2131 = vmatpush1.bf16.msra.mxu0 %v3103_v57 }
 0x754   :  { %2132 = vmatprep.subr.bf16.mxu0 %v3108_v58 }
 0x757   :  { %2133 = vmatpush1.bf16.msra.mxu0 %v3106_v59 }
 0x758   :  { %2134 = vmatprep.subr.bf16.mxu0 %v3111_v60  ;;  %v3165_v60 = vld [vmem:[%s4218_s25 + $0xe4] ss:$8 sps:$4 sm:$0xff]  }
 0x75b   :  { %2135 = vmatpush1.bf16.msra.mxu0 %v3109_v61  ;;  %v3163_v61 = vld [vmem:[%s4218_s25 + $0xe0] ss:$8 sps:$4 sm:$0xff]  }
 0x75c   :  { %2136 = vmatprep.subr.bf16.mxu0 %v3114_v62  ;;  %v3168_v62 = vld [vmem:[%s4218_s25 + $0xf4] ss:$8 sps:$4 sm:$0xff]  }
 0x75f   :  { %2137 = vmatpush1.bf16.msra.mxu0 %v3112_v63  ;;  %v3166_v63 = vld [vmem:[%s4218_s25 + $0xf0] ss:$8 sps:$4 sm:$0xff]  }
 0x760   :  { %2138 = vmatprep.subr.bf16.mxu0 %v3117_v13  ;;  %v2187_v13 = vld [vmem:[%s4221_s26] sm:$0x3] }
 0x763   :  { %2139 = vmatpush1.bf16.msra.mxu0 %v3115_v14  ;;  %v2192_v14 = vrot.slane %v2187_v13, %v3599_v34 }
 0x764   :  { %2140 = vmatprep.subr.bf16.mxu0 %v3120_v15  ;;  %v2196_v15 = vrot.slane %v2187_v13, %v3604_v36 }
 0x767   :  { %2141 = vmatpush1.bf16.msra.mxu0 %v3118_v16 }
 0x7fd   :  { %v1646_v3 = vpop.f32.mrb[16].mxu0 }
 0x7fe   :  { %v1647_v4 = vadd.f32 %v1646_v3, %v1525_v1  ;;  %v1648_v5 = vpop.f32.mrb[17].mxu0  ;;  %v1943_v1 = vrot.slane %v1938_v0, %v3599_v34 }
 0x7ff   :  { %v1649_v6 = vadd.f32 %v1648_v5, %v1529_v2  ;;  %v1650_v7 = vpop.f32.mrb[18].mxu0  ;;  %v1947_v2 = vrot.slane %v1938_v0, %v3604_v36 }
 0x800   :  { %v1653_v8 = vmax.f32 %v1647_v4, 0.0  ;;  %v1651_v9 = vpop.f32.mrb[19].mxu0 }
 0x801   :  { %v1654_v10 = vmax.f32 %v1649_v6, 0.0 }
 0x802   :  { %v1655_v12 = vpack.c.bf16 %v1653_v8, %v1653_v8 }
 0x803   :  { %v1656_v11 = vpack.c.bf16 %v1654_v10, %v1654_v10 }
 0x805   :  { %1893 = vmatprep.mubr.bf16.mxu1 %v1656_v11 }
 0x806   :  { %1894 = vmatmul.mubr.bf16.vlgmr.msra.gmra.mrb[20].mxu1 %v1655_v12 }
 0x807   :  { %2360 = vmatpush1.bf16.msra.mxu1 %v3121_v17 }
 0x808   :  { %2361 = vmatprep.subr.bf16.mxu1 %v3126_v20 }
 0x80b   :  { %2362 = vmatpush1.bf16.msra.mxu1 %v3124_v21 }
 0x80c   :  { %2363 = vmatprep.subr.bf16.mxu1 %v3129_v22 }
 0x80f   :  { %2364 = vmatpush1.bf16.msra.mxu1 %v3127_v23 }
 0x810   :  { %2365 = vmatprep.subr.bf16.mxu1 %v3132_v24 }
 0x813   :  { %2366 = vmatpush1.bf16.msra.mxu1 %v3130_v25 }
 0x814   :  { %2367 = vmatprep.subr.bf16.mxu1 %v3135_v26 }
 0x817   :  { %2368 = vmatpush1.bf16.msra.mxu1 %v3133_v27 }
 0x818   :  { %2369 = vmatprep.subr.bf16.mxu1 %v3138_v28 }
 0x81b   :  { %2370 = vmatpush1.bf16.msra.mxu1 %v3136_v29 }
 0x81c   :  { %2371 = vmatprep.subr.bf16.mxu1 %v3141_v30 }
 0x81f   :  { %2372 = vmatpush1.bf16.msra.mxu1 %v3139_v31 }
 0x820   :  { %2373 = vmatprep.subr.bf16.mxu1 %v3144_v32 }
 0x823   :  { %2374 = vmatpush1.bf16.msra.mxu1 %v3142_v33 }
 0x824   :  { %2375 = vmatprep.subr.bf16.mxu1 %v3147_v18 }
 0x827   :  { %2376 = vmatpush1.bf16.msra.mxu1 %v3145_v35 }
 0x828   :  { %2377 = vmatprep.subr.bf16.mxu1 %v3150_v37 }
 0x82b   :  { %2378 = vmatpush1.bf16.msra.mxu1 %v3148_v38 }
 0x82c   :  { %2379 = vmatprep.subr.bf16.mxu1 %v3153_v39 }
 0x82f   :  { %2380 = vmatpush1.bf16.msra.mxu1 %v3151_v40 }
 0x830   :  { %2381 = vmatprep.subr.bf16.mxu1 %v3156_v41 }
 0x833   :  { %2382 = vmatpush1.bf16.msra.mxu1 %v3154_v42 }
 0x834   :  { %2383 = vmatprep.subr.bf16.mxu1 %v3159_v43 }
 0x837   :  { %2384 = vmatpush1.bf16.msra.mxu1 %v3157_v44 }
 0x838   :  { %2385 = vmatprep.subr.bf16.mxu1 %v3162_v45 }
 0x83b   :  { %2386 = vmatpush1.bf16.msra.mxu1 %v3160_v46 }
 0x83c   :  { %2387 = vmatprep.subr.bf16.mxu1 %v3165_v60 }
 0x83f   :  { %2388 = vmatpush1.bf16.msra.mxu1 %v3163_v61 }
 0x840   :  { %2389 = vmatprep.subr.bf16.mxu1 %v3168_v62 }
 0x843   :  { %2390 = vmatpush1.bf16.msra.mxu1 %v3166_v63 }
 0x8d9   :  { %v1895_v50 = vpop.f32.mrb[20].mxu1 }
 0x8da   :  { %v1896_v51 = vadd.f32 %v1895_v50, %v1694_v48  ;;  %v1897_v52 = vpop.f32.mrb[21].mxu1 }
 0x8db   :  { %v1898_v53 = vadd.f32 %v1897_v52, %v1698_v49  ;;  %v1899_v54 = vpop.f32.mrb[22].mxu1 }
 0x8dc   :  { %v1902_v55 = vmax.f32 %v1896_v51, 0.0  ;;  %v1900_v56 = vpop.f32.mrb[23].mxu1 }
 0x8dd   :  { %v1903_v57 = vmax.f32 %v1898_v53, 0.0 }
 0x8de   :  { %v1904_v59 = vpack.c.bf16 %v1902_v55, %v1902_v55 }
 0x8df   :  { %v1905_v58 = vpack.c.bf16 %v1903_v57, %v1903_v57 }
 0x8e1   :  { %2142 = vmatprep.mubr.bf16.mxu0 %v1905_v58 }
 0x8e2   :  { %2143 = vmatmul.mubr.bf16.vlgmr.msra.gmra.mrb[20].mxu0 %v1904_v59 }
 0x9b5   :  { %v2144_v3 = vpop.f32.mrb[20].mxu0 }
 0x9b6   :  { %v2145_v4 = vadd.f32 %v2144_v3, %v1943_v1  ;;  %v2146_v5 = vpop.f32.mrb[21].mxu0 }
 0x9b7   :  { %v2147_v6 = vadd.f32 %v2146_v5, %v1947_v2  ;;  %v2148_v7 = vpop.f32.mrb[22].mxu0 }
 0x9b8   :  { %v2151_v8 = vmax.f32 %v2145_v4, 0.0  ;;  %v2149_v9 = vpop.f32.mrb[23].mxu0 }
 0x9b9   :  { %v2152_v10 = vmax.f32 %v2147_v6, 0.0 }
 0x9ba   :  { %v2153_v12 = vpack.c.bf16 %v2151_v8, %v2151_v8 }
 0x9bb   :  { %v2154_v11 = vpack.c.bf16 %v2152_v10, %v2152_v10 }
 0x9bd   :  { %2391 = vmatprep.mubr.bf16.mxu1 %v2154_v11 }
 0x9be   :  { %2392 = vmatmul.mubr.bf16.vlgmr.msra.gmra.mrb[24].mxu1 %v2153_v12 }
 0xa91   :  { %v2393_v16 = vpop.f32.mrb[24].mxu1 }
 0xa92   :  { %v2394_v17 = vadd.f32 %v2393_v16, %v2192_v14  ;;  %v2395_v19 = vpop.f32.mrb[25].mxu1 }
 0xa93   :  { %v2396_v20 = vadd.f32 %v2395_v19, %v2196_v15  ;;  %v2397_v21 = vpop.f32.mrb[26].mxu1 }
 0xa94   :  { %2400 = vst [vmem:[%s4222_s27] sm:$0xff] %v2394_v17  ;;  %v2398_v22 = vpop.f32.mrb[27].mxu1 }
 0xa95   :  { %2401 = vst [vmem:[%s4222_s27 + $0x8] sm:$0xff] %v2396_v20 }

// kernel: conv_ae_forward.10
= control target key start
LH: loop header
LB: loop body
LE: loop exit
PB: predicated region body
PF: predicated region fallthrough
CT: control target
= control target key end

     0   :  { %v1508_v0 = vmov 0   ;;  %vm458_vm0 = vcmask 130048   ;;  %s2958_s1 = inlined_call_operand.vmem [shape: bf16[144,16], index: 1, kind: input, shape index: {}]   ;;  %s2959_s0 = inlined_call_operand.vmem [shape: f32[968,144], index: 0, kind: input, shape index: {}]   ;;  %s2960_s2 = inlined_call_operand.vmem [shape: f32[1,16], index: 2, kind: input, shape index: {}]   ;;  %s2961_s3 = inlined_call_operand.vmem [shape: f32[968,16], index: 3, kind: output, shape index: {}]  }
   0x1   :  { %642 = vmatprep.subr.bf16.mxu0 %v1508_v0  ;;  %v1498_v1 = vld [vmem:[%s2958_s1] sm:$0xff]   ;;  %1479 = vmatprep.subr.bf16.mxu1 %v1508_v0  ;;  %v1499_v2 = vld [vmem:[%s2958_s1 + $0x8] sm:$0xff]   ;;  %v1500_v3 = vld [vmem:[%s2958_s1 + $0x10] sm:$0xff]  }
   0x2   :  { %643 = vmatpush1.bf16.msra.mxu0 %v1498_v1  ;;  %1488 = vmatpush1.bf16.msra.mxu1 %v1498_v1  ;;  %v16_v4 = vld [vmem:[%s2959_s0 + $0x8] sm:$0xff]  ;;  %v18_v5 = vld [vmem:[%s2959_s0 + $0x18] sm:$0xff]  ;;  %v1502_v11 = vld [vmem:[%s2958_s1 + $0x20] sm:$0xff]  }
   0x3   :  { %644 = vmatprep.subr.bf16.mxu0 %v1508_v0  ;;  %1480 = vmatprep.subr.bf16.mxu1 %v1508_v0  ;;  %v1501_v6 = vld [vmem:[%s2958_s1 + $0x18] sm:$0xff]   ;;  %v258_v7 = vpack.c.bf16 %v18_v5, %v16_v4  ;;  %v140_v8 = vld [vmem:[%s2959_s0 + $0x3e8] sm:$0xff]  ;;  %v1504_v13 = vld [vmem:[%s2958_s1 + $0x30] sm:$0xff]  }
   0x4   :  { %v142_v9 = vld [vmem:[%s2959_s0 + $0x3f8] sm:$0xff]  ;;  %v1503_v12 = vld [vmem:[%s2958_s1 + $0x28] sm:$0xff]   ;;  %v1506_v15 = vld [vmem:[%s2958_s1 + $0x40] sm:$0xff]  }
   0x5   :  { %v320_v10 = vpack.c.bf16 %v142_v9, %v140_v8  ;;  %1418 = vmatprep.mubr.msk.bf16.mxu0 %vm458_vm0, %v258_v7  ;;  %v1505_v14 = vld [vmem:[%s2958_s1 + $0x38] sm:$0xff]   ;;  %v15_v16 = vld [vmem:[%s2959_s0] sm:$0xff]  ;;  %v17_v17 = vld [vmem:[%s2959_s0 + $0x10] sm:$0xff] }
   0x6   :  { %645 = vmatpush1.bf16.msra.mxu0 %v1499_v2  ;;  %1489 = vmatpush1.bf16.msra.mxu1 %v1499_v2  ;;  %v20_v18 = vld [vmem:[%s2959_s0 + $0x28] sm:$0xff]  ;;  %v139_v19 = vld [vmem:[%s2959_s0 + $0x3e0] sm:$0xff]  ;;  %v141_v20 = vld [vmem:[%s2959_s0 + $0x3f0] sm:$0xff]  ;;  %v257_v24 = vpack.c.bf16 %v17_v17, %v15_v16 }
   0x7   :  { %646 = vmatprep.subr.bf16.mxu0 %v1508_v0  ;;  %1481 = vmatprep.subr.bf16.mxu1 %v1508_v0  ;;  %v22_v21 = vld [vmem:[%s2959_s0 + $0x38] sm:$0xff]  ;;  %v144_v22 = vld [vmem:[%s2959_s0 + $0x408] sm:$0xff]  ;;  %v319_v25 = vpack.c.bf16 %v141_v20, %v139_v19  ;;  %v19_v28 = vld [vmem:[%s2959_s0 + $0x20] sm:$0xff] }
   0x8   :  { %1449 = vmatprep.mubr.msk.bf16.mxu1 %vm458_vm0, %v320_v10  ;;  %v146_v23 = vld [vmem:[%s2959_s0 + $0x418] sm:$0xff]  ;;  %v260_v26 = vpack.c.bf16 %v22_v21, %v20_v18  ;;  %v21_v29 = vld [vmem:[%s2959_s0 + $0x30] sm:$0xff]  ;;  %v24_v30 = vld [vmem:[%s2959_s0 + $0x48] sm:$0xff] }
   0x9   :  { %v322_v27 = vpack.c.bf16 %v146_v23, %v144_v22  ;;  %v143_v31 = vld [vmem:[%s2959_s0 + $0x400] sm:$0xff]  ;;  %v145_v32 = vld [vmem:[%s2959_s0 + $0x410] sm:$0xff]  ;;  %v26_v33 = vld [vmem:[%s2959_s0 + $0x58] sm:$0xff]  ;;  %v259_v36 = vpack.c.bf16 %v21_v29, %v19_v28 }
   0xa   :  { %647 = vmatpush1.bf16.msra.mxu0 %v1500_v3  ;;  %1490 = vmatpush1.bf16.msra.mxu1 %v1500_v3  ;;  %v148_v34 = vld [vmem:[%s2959_s0 + $0x428] sm:$0xff]  ;;  %v150_v35 = vld [vmem:[%s2959_s0 + $0x438] sm:$0xff]  ;;  %v321_v37 = vpack.c.bf16 %v145_v32, %v143_v31  ;;  %v262_v38 = vpack.c.bf16 %v26_v33, %v24_v30  ;;  %v23_v40 = vld [vmem:[%s2959_s0 + $0x40] sm:$0xff] }
   0xb   :  { %648 = vmatprep.subr.bf16.mxu0 %v1508_v0  ;;  %1482 = vmatprep.subr.bf16.mxu1 %v1508_v0  ;;  %v324_v39 = vpack.c.bf16 %v150_v35, %v148_v34  ;;  %v25_v41 = vld [vmem:[%s2959_s0 + $0x50] sm:$0xff]  ;;  %v28_v42 = vld [vmem:[%s2959_s0 + $0x68] sm:$0xff]  ;;  %v147_v43 = vld [vmem:[%s2959_s0 + $0x420] sm:$0xff] }
   0xc   :  { %v149_v44 = vld [vmem:[%s2959_s0 + $0x430] sm:$0xff]  ;;  %v30_v45 = vld [vmem:[%s2959_s0 + $0x78] sm:$0xff]  ;;  %v152_v46 = vld [vmem:[%s2959_s0 + $0x448] sm:$0xff]  ;;  %v261_v48 = vpack.c.bf16 %v25_v41, %v23_v40 }
   0xd   :  { %v154_v47 = vld [vmem:[%s2959_s0 + $0x458] sm:$0xff]  ;;  %v323_v49 = vpack.c.bf16 %v149_v44, %v147_v43  ;;  %v264_v50 = vpack.c.bf16 %v30_v45, %v28_v42  ;;  %v27_v52 = vld [vmem:[%s2959_s0 + $0x60] sm:$0xff]  ;;  %v29_v53 = vld [vmem:[%s2959_s0 + $0x70] sm:$0xff] }
   0xe   :  { %649 = vmatpush1.bf16.msra.mxu0 %v1501_v6  ;;  %1491 = vmatpush1.bf16.msra.mxu1 %v1501_v6  ;;  %v326_v51 = vpack.c.bf16 %v154_v47, %v152_v46  ;;  %v32_v54 = vld [vmem:[%s2959_s0 + $0x88] sm:$0xff]  ;;  %v151_v55 = vld [vmem:[%s2959_s0 + $0x440] sm:$0xff]  ;;  %v153_v56 = vld [vmem:[%s2959_s0 + $0x450] sm:$0xff]  ;;  %v263_v60 = vpack.c.bf16 %v29_v53, %v27_v52 }
   0xf   :  { %650 = vmatprep.subr.bf16.mxu0 %v1508_v0  ;;  %1483 = vmatprep.subr.bf16.mxu1 %v1508_v0  ;;  %v34_v57 = vld [vmem:[%s2959_s0 + $0x98] sm:$0xff]  ;;  %v156_v58 = vld [vmem:[%s2959_s0 + $0x468] sm:$0xff]  ;;  %v325_v61 = vpack.c.bf16 %v153_v56, %v151_v55  ;;  %v33_v1 = vld [vmem:[%s2959_s0 + $0x90] sm:$0xff] }
  0x10   :  { %v158_v59 = vld [vmem:[%s2959_s0 + $0x478] sm:$0xff]  ;;  %v266_v62 = vpack.c.bf16 %v34_v57, %v32_v54  ;;  %v36_v2 = vld [vmem:[%s2959_s0 + $0xa8] sm:$0xff]  ;;  %v155_v3 = vld [vmem:[%s2959_s0 + $0x460] sm:$0xff] }
  0x11   :  { %v328_v63 = vpack.c.bf16 %v158_v59, %v156_v58  ;;  %v157_v4 = vld [vmem:[%s2959_s0 + $0x470] sm:$0xff]  ;;  %v38_v5 = vld [vmem:[%s2959_s0 + $0xb8] sm:$0xff]  ;;  %v160_v6 = vld [vmem:[%s2959_s0 + $0x488] sm:$0xff] }
  0x12   :  { %651 = vmatpush1.bf16.msra.mxu0 %v1502_v11  ;;  %1492 = vmatpush1.bf16.msra.mxu1 %v1502_v11  ;;  %v162_v7 = vld [vmem:[%s2959_s0 + $0x498] sm:$0xff]  ;;  %v327_v9 = vpack.c.bf16 %v157_v4, %v155_v3  ;;  %v268_v10 = vpack.c.bf16 %v38_v5, %v36_v2  ;;  %v161_v16 = vld [vmem:[%s2959_s0 + $0x490] sm:$0xff]  ;;  %v164_v18 = vld [vmem:[%s2959_s0 + $0x4a8] sm:$0xff] }
  0x13   :  { %652 = vmatprep.subr.bf16.mxu0 %v1508_v0  ;;  %1484 = vmatprep.subr.bf16.mxu1 %v1508_v0  ;;  %v330_v11 = vpack.c.bf16 %v162_v7, %v160_v6  ;;  %v42_v17 = vld [vmem:[%s2959_s0 + $0xd8] sm:$0xff]  ;;  %v165_v28 = vld [vmem:[%s2959_s0 + $0x4b0] sm:$0xff]  ;;  %v168_v30 = vld [vmem:[%s2959_s0 + $0x4c8] sm:$0xff] }
  0x14   :  { %v166_v19 = vld [vmem:[%s2959_s0 + $0x4b8] sm:$0xff]  ;;  %v169_v40 = vld [vmem:[%s2959_s0 + $0x4d0] sm:$0xff]  ;;  %v172_v42 = vld [vmem:[%s2959_s0 + $0x4e8] sm:$0xff] }
  0x15   :  { %v332_v23 = vpack.c.bf16 %v166_v19, %v164_v18  ;;  %v46_v29 = vld [vmem:[%s2959_s0 + $0xf8] sm:$0xff]  ;;  %v173_v52 = vld [vmem:[%s2959_s0 + $0x4f0] sm:$0xff]  ;;  %v176_v54 = vld [vmem:[%s2959_s0 + $0x508] sm:$0xff] }
  0x16   :  { %653 = vmatpush1.bf16.msra.mxu0 %v1503_v12  ;;  %1493 = vmatpush1.bf16.msra.mxu1 %v1503_v12  ;;  %v35_v12 = vld [vmem:[%s2959_s0 + $0xa0] sm:$0xff]  ;;  %v170_v31 = vld [vmem:[%s2959_s0 + $0x4d8] sm:$0xff]  ;;  %v180_v2 = vld [vmem:[%s2959_s0 + $0x528] sm:$0xff] }
  0x17   :  { %654 = vmatprep.subr.bf16.mxu0 %v1508_v0  ;;  %1485 = vmatprep.subr.bf16.mxu1 %v1508_v0  ;;  %v334_v35 = vpack.c.bf16 %v170_v31, %v168_v30  ;;  %v50_v41 = vld [vmem:[%s2959_s0 + $0x118] sm:$0xff] }
  0x18   :  { %v174_v43 = vld [vmem:[%s2959_s0 + $0x4f8] sm:$0xff] }
  0x19   :  { %v336_v47 = vpack.c.bf16 %v174_v43, %v172_v42  ;;  %v54_v53 = vld [vmem:[%s2959_s0 + $0x138] sm:$0xff] }
  0x1a   :  { %655 = vmatpush1.bf16.msra.mxu0 %v1504_v13  ;;  %1494 = vmatpush1.bf16.msra.mxu1 %v1504_v13  ;;  %v37_v13 = vld [vmem:[%s2959_s0 + $0xb0] sm:$0xff]  ;;  %v178_v55 = vld [vmem:[%s2959_s0 + $0x518] sm:$0xff] }
  0x1b   :  { %656 = vmatprep.subr.bf16.mxu0 %v1508_v0  ;;  %1486 = vmatprep.subr.bf16.mxu1 %v1508_v0  ;;  %v267_v20 = vpack.c.bf16 %v37_v13, %v35_v12  ;;  %v338_v59 = vpack.c.bf16 %v178_v55, %v176_v54  ;;  %v182_v3 = vld [vmem:[%s2959_s0 + $0x538] sm:$0xff]  ;;  %v181_v12 = vld [vmem:[%s2959_s0 + $0x530] sm:$0xff] }
  0x1c   :  { %v340_v7 = vpack.c.bf16 %v182_v3, %v180_v2  ;;  %v62_v13 = vld [vmem:[%s2959_s0 + $0x178] sm:$0xff] }
  0x1e   :  { %657 = vmatpush1.bf16.msra.mxu0 %v1505_v14  ;;  %1495 = vmatpush1.bf16.msra.mxu1 %v1505_v14  ;;  %v40_v14 = vld [vmem:[%s2959_s0 + $0xc8] sm:$0xff] }
  0x1f   :  { %658 = vmatprep.subr.bf16.mxu0 %v1508_v0  ;;  %1487 = vmatprep.subr.bf16.mxu1 %v1508_v0  ;;  %v31_v0 = vld [vmem:[%s2959_s0 + $0x80] sm:$0xff]  ;;  %v270_v22 = vpack.c.bf16 %v42_v17, %v40_v14  ;;  %v184_v14 = vld [vmem:[%s2959_s0 + $0x548] sm:$0xff] }
  0x20   :  { %v265_v8 = vpack.c.bf16 %v33_v1, %v31_v0  ;;  %v177_v0 = vld [vmem:[%s2959_s0 + $0x510] sm:$0xff]  ;;  %v58_v1 = vld [vmem:[%s2959_s0 + $0x158] sm:$0xff] }
  0x22   :  { %659 = vmatpush1.bf16.msra.mxu0 %v1506_v15  ;;  %1496 = vmatpush1.bf16.msra.mxu1 %v1506_v15  ;;  %v159_v15 = vld [vmem:[%s2959_s0 + $0x480] sm:$0xff] }
  0x23   :  { %v329_v21 = vpack.c.bf16 %v161_v16, %v159_v15  ;;  %v186_v15 = vld [vmem:[%s2959_s0 + $0x558] sm:$0xff] }
  0x24   :  { %v342_v19 = vpack.c.bf16 %v186_v15, %v184_v14 }
  0x25   :  { %675 = vmatmul.mubr.bf16.vlgmr.msra.gmra.mrb[0].mxu0 %v257_v24  ;;  %923 = vmatmul.mubr.bf16.vlgmr.msra.gmra.mrb[0].mxu1 %v319_v25  ;;  %v39_v24 = vld [vmem:[%s2959_s0 + $0xc0] sm:$0xff]  ;;  %v41_v25 = vld [vmem:[%s2959_s0 + $0xd0] sm:$0xff] }
  0x26   :  { %1419 = vmatprep.mubr.msk.bf16.mxu0 %vm458_vm0, %v260_v26  ;;  %1450 = vmatprep.mubr.msk.bf16.mxu1 %vm458_vm0, %v322_v27  ;;  %v44_v26 = vld [vmem:[%s2959_s0 + $0xe8] sm:$0xff]  ;;  %v163_v27 = vld [vmem:[%s2959_s0 + $0x4a0] sm:$0xff]  ;;  %v269_v32 = vpack.c.bf16 %v41_v25, %v39_v24  ;;  %v185_v24 = vld [vmem:[%s2959_s0 + $0x550] sm:$0xff] }
  0x27   :  { %v331_v33 = vpack.c.bf16 %v165_v28, %v163_v27  ;;  %v272_v34 = vpack.c.bf16 %v46_v29, %v44_v26  ;;  %v66_v25 = vld [vmem:[%s2959_s0 + $0x198] sm:$0xff]  ;;  %v188_v26 = vld [vmem:[%s2959_s0 + $0x568] sm:$0xff] }
  0x28   :  { %v190_v27 = vld [vmem:[%s2959_s0 + $0x578] sm:$0xff] }
  0x29   :  { %v344_v31 = vpack.c.bf16 %v190_v27, %v188_v26 }
  0x2d   :  { %683 = vmatmul.mubr.bf16.gmra.mrb[4].mxu0 %v259_v36  ;;  %931 = vmatmul.mubr.bf16.gmra.mrb[4].mxu1 %v321_v37  ;;  %v43_v36 = vld [vmem:[%s2959_s0 + $0xe0] sm:$0xff]  ;;  %v45_v37 = vld [vmem:[%s2959_s0 + $0xf0] sm:$0xff] }
  0x2e   :  { %1420 = vmatprep.mubr.msk.bf16.mxu0 %vm458_vm0, %v262_v38  ;;  %1451 = vmatprep.mubr.msk.bf16.mxu1 %vm458_vm0, %v324_v39  ;;  %v48_v38 = vld [vmem:[%s2959_s0 + $0x108] sm:$0xff]  ;;  %v167_v39 = vld [vmem:[%s2959_s0 + $0x4c0] sm:$0xff]  ;;  %v271_v44 = vpack.c.bf16 %v45_v37, %v43_v36  ;;  %v189_v36 = vld [vmem:[%s2959_s0 + $0x570] sm:$0xff] }
  0x2f   :  { %v333_v45 = vpack.c.bf16 %v169_v40, %v167_v39  ;;  %v274_v46 = vpack.c.bf16 %v50_v41, %v48_v38  ;;  %v70_v37 = vld [vmem:[%s2959_s0 + $0x1b8] sm:$0xff]  ;;  %v192_v38 = vld [vmem:[%s2959_s0 + $0x588] sm:$0xff] }
  0x30   :  { %v194_v39 = vld [vmem:[%s2959_s0 + $0x598] sm:$0xff] }
  0x31   :  { %v346_v43 = vpack.c.bf16 %v194_v39, %v192_v38 }
  0x35   :  { %691 = vmatmul.mubr.bf16.gmra.mrb[8].mxu0 %v261_v48  ;;  %939 = vmatmul.mubr.bf16.gmra.mrb[8].mxu1 %v323_v49  ;;  %v47_v48 = vld [vmem:[%s2959_s0 + $0x100] sm:$0xff]  ;;  %v49_v49 = vld [vmem:[%s2959_s0 + $0x110] sm:$0xff] }
  0x36   :  { %1421 = vmatprep.mubr.msk.bf16.mxu0 %vm458_vm0, %v264_v50  ;;  %1452 = vmatprep.mubr.msk.bf16.mxu1 %vm458_vm0, %v326_v51  ;;  %v52_v50 = vld [vmem:[%s2959_s0 + $0x128] sm:$0xff]  ;;  %v171_v51 = vld [vmem:[%s2959_s0 + $0x4e0] sm:$0xff]  ;;  %v273_v56 = vpack.c.bf16 %v49_v49, %v47_v48  ;;  %v193_v48 = vld [vmem:[%s2959_s0 + $0x590] sm:$0xff] }
  0x37   :  { %v335_v57 = vpack.c.bf16 %v173_v52, %v171_v51  ;;  %v276_v58 = vpack.c.bf16 %v54_v53, %v52_v50  ;;  %v74_v49 = vld [vmem:[%s2959_s0 + $0x1d8] sm:$0xff]  ;;  %v196_v50 = vld [vmem:[%s2959_s0 + $0x5a8] sm:$0xff] }
  0x38   :  { %v198_v51 = vld [vmem:[%s2959_s0 + $0x5b8] sm:$0xff] }
  0x39   :  { %v348_v55 = vpack.c.bf16 %v198_v51, %v196_v50 }
  0x3d   :  { %699 = vmatmul.mubr.bf16.gmra.mrb[12].mxu0 %v263_v60  ;;  %947 = vmatmul.mubr.bf16.gmra.mrb[12].mxu1 %v325_v61  ;;  %v51_v60 = vld [vmem:[%s2959_s0 + $0x120] sm:$0xff]  ;;  %v53_v61 = vld [vmem:[%s2959_s0 + $0x130] sm:$0xff] }
  0x3e   :  { %1422 = vmatprep.mubr.msk.bf16.mxu0 %vm458_vm0, %v266_v62  ;;  %1453 = vmatprep.mubr.msk.bf16.mxu1 %vm458_vm0, %v328_v63  ;;  %v56_v62 = vld [vmem:[%s2959_s0 + $0x148] sm:$0xff]  ;;  %v175_v63 = vld [vmem:[%s2959_s0 + $0x500] sm:$0xff]  ;;  %v275_v4 = vpack.c.bf16 %v53_v61, %v51_v60  ;;  %v197_v60 = vld [vmem:[%s2959_s0 + $0x5b0] sm:$0xff] }
  0x3f   :  { %v337_v5 = vpack.c.bf16 %v177_v0, %v175_v63  ;;  %v278_v6 = vpack.c.bf16 %v58_v1, %v56_v62  ;;  %v78_v61 = vld [vmem:[%s2959_s0 + $0x1f8] sm:$0xff]  ;;  %v200_v62 = vld [vmem:[%s2959_s0 + $0x5c8] sm:$0xff] }
  0x40   :  { %v202_v63 = vld [vmem:[%s2959_s0 + $0x5d8] sm:$0xff] }
  0x41   :  { %v350_v3 = vpack.c.bf16 %v202_v63, %v200_v62 }
  0x45   :  { %707 = vmatmul.mubr.bf16.gmra.mrb[16].mxu0 %v265_v8  ;;  %955 = vmatmul.mubr.bf16.gmra.mrb[16].mxu1 %v327_v9  ;;  %v55_v8 = vld [vmem:[%s2959_s0 + $0x140] sm:$0xff]  ;;  %v57_v9 = vld [vmem:[%s2959_s0 + $0x150] sm:$0xff] }
  0x46   :  { %1423 = vmatprep.mubr.msk.bf16.mxu0 %vm458_vm0, %v268_v10  ;;  %1454 = vmatprep.mubr.msk.bf16.mxu1 %vm458_vm0, %v330_v11  ;;  %v60_v10 = vld [vmem:[%s2959_s0 + $0x168] sm:$0xff]  ;;  %v179_v11 = vld [vmem:[%s2959_s0 + $0x520] sm:$0xff]  ;;  %v277_v16 = vpack.c.bf16 %v57_v9, %v55_v8  ;;  %v201_v8 = vld [vmem:[%s2959_s0 + $0x5d0] sm:$0xff] }
  0x47   :  { %v339_v17 = vpack.c.bf16 %v181_v12, %v179_v11  ;;  %v280_v18 = vpack.c.bf16 %v62_v13, %v60_v10  ;;  %v82_v9 = vld [vmem:[%s2959_s0 + $0x218] sm:$0xff]  ;;  %v204_v10 = vld [vmem:[%s2959_s0 + $0x5e8] sm:$0xff] }
  0x48   :  { %v206_v11 = vld [vmem:[%s2959_s0 + $0x5f8] sm:$0xff] }
  0x49   :  { %v352_v15 = vpack.c.bf16 %v206_v11, %v204_v10 }
  0x4d   :  { %715 = vmatmul.mubr.bf16.gmra.mrb[20].mxu0 %v267_v20  ;;  %963 = vmatmul.mubr.bf16.gmra.mrb[20].mxu1 %v329_v21  ;;  %v59_v20 = vld [vmem:[%s2959_s0 + $0x160] sm:$0xff]  ;;  %v61_v21 = vld [vmem:[%s2959_s0 + $0x170] sm:$0xff] }
  0x4e   :  { %1424 = vmatprep.mubr.msk.bf16.mxu0 %vm458_vm0, %v270_v22  ;;  %1455 = vmatprep.mubr.msk.bf16.mxu1 %vm458_vm0, %v332_v23  ;;  %v64_v22 = vld [vmem:[%s2959_s0 + $0x188] sm:$0xff]  ;;  %v183_v23 = vld [vmem:[%s2959_s0 + $0x540] sm:$0xff]  ;;  %v279_v28 = vpack.c.bf16 %v61_v21, %v59_v20  ;;  %v205_v20 = vld [vmem:[%s2959_s0 + $0x5f0] sm:$0xff] }
  0x4f   :  { %v341_v29 = vpack.c.bf16 %v185_v24, %v183_v23  ;;  %v282_v30 = vpack.c.bf16 %v66_v25, %v64_v22  ;;  %v86_v21 = vld [vmem:[%s2959_s0 + $0x238] sm:$0xff]  ;;  %v208_v22 = vld [vmem:[%s2959_s0 + $0x608] sm:$0xff] }
  0x50   :  { %v210_v23 = vld [vmem:[%s2959_s0 + $0x618] sm:$0xff] }
  0x51   :  { %v354_v27 = vpack.c.bf16 %v210_v23, %v208_v22 }
  0x55   :  { %723 = vmatmul.mubr.bf16.gmra.mrb[24].mxu0 %v269_v32  ;;  %971 = vmatmul.mubr.bf16.gmra.mrb[24].mxu1 %v331_v33  ;;  %v63_v32 = vld [vmem:[%s2959_s0 + $0x180] sm:$0xff]  ;;  %v65_v33 = vld [vmem:[%s2959_s0 + $0x190] sm:$0xff] }
  0x56   :  { %1425 = vmatprep.mubr.msk.bf16.mxu0 %vm458_vm0, %v272_v34  ;;  %1456 = vmatprep.mubr.msk.bf16.mxu1 %vm458_vm0, %v334_v35  ;;  %v68_v34 = vld [vmem:[%s2959_s0 + $0x1a8] sm:$0xff]  ;;  %v187_v35 = vld [vmem:[%s2959_s0 + $0x560] sm:$0xff]  ;;  %v281_v40 = vpack.c.bf16 %v65_v33, %v63_v32  ;;  %v209_v32 = vld [vmem:[%s2959_s0 + $0x610] sm:$0xff] }
  0x57   :  { %v343_v41 = vpack.c.bf16 %v189_v36, %v187_v35  ;;  %v284_v42 = vpack.c.bf16 %v70_v37, %v68_v34  ;;  %v90_v33 = vld [vmem:[%s2959_s0 + $0x258] sm:$0xff]  ;;  %v212_v34 = vld [vmem:[%s2959_s0 + $0x628] sm:$0xff] }
  0x58   :  { %v214_v35 = vld [vmem:[%s2959_s0 + $0x638] sm:$0xff] }
  0x59   :  { %v356_v39 = vpack.c.bf16 %v214_v35, %v212_v34 }
  0x5d   :  { %731 = vmatmul.mubr.bf16.gmra.mrb[28].mxu0 %v271_v44  ;;  %979 = vmatmul.mubr.bf16.gmra.mrb[28].mxu1 %v333_v45  ;;  %v67_v44 = vld [vmem:[%s2959_s0 + $0x1a0] sm:$0xff]  ;;  %v69_v45 = vld [vmem:[%s2959_s0 + $0x1b0] sm:$0xff] }
  0x5e   :  { %1426 = vmatprep.mubr.msk.bf16.mxu0 %vm458_vm0, %v274_v46  ;;  %1457 = vmatprep.mubr.msk.bf16.mxu1 %vm458_vm0, %v336_v47  ;;  %v72_v46 = vld [vmem:[%s2959_s0 + $0x1c8] sm:$0xff]  ;;  %v191_v47 = vld [vmem:[%s2959_s0 + $0x580] sm:$0xff]  ;;  %v283_v52 = vpack.c.bf16 %v69_v45, %v67_v44  ;;  %v213_v44 = vld [vmem:[%s2959_s0 + $0x630] sm:$0xff] }
  0x5f   :  { %v345_v53 = vpack.c.bf16 %v193_v48, %v191_v47  ;;  %v286_v54 = vpack.c.bf16 %v74_v49, %v72_v46  ;;  %v94_v45 = vld [vmem:[%s2959_s0 + $0x278] sm:$0xff]  ;;  %v216_v46 = vld [vmem:[%s2959_s0 + $0x648] sm:$0xff] }
  0x60   :  { %v218_v47 = vld [vmem:[%s2959_s0 + $0x658] sm:$0xff] }
  0x61   :  { %v358_v51 = vpack.c.bf16 %v218_v47, %v216_v46 }
  0x65   :  { %739 = vmatmul.mubr.bf16.gmra.mrb[32].mxu0 %v273_v56  ;;  %987 = vmatmul.mubr.bf16.gmra.mrb[32].mxu1 %v335_v57  ;;  %v71_v56 = vld [vmem:[%s2959_s0 + $0x1c0] sm:$0xff]  ;;  %v73_v57 = vld [vmem:[%s2959_s0 + $0x1d0] sm:$0xff] }
  0x66   :  { %1427 = vmatprep.mubr.msk.bf16.mxu0 %vm458_vm0, %v276_v58  ;;  %1458 = vmatprep.mubr.msk.bf16.mxu1 %vm458_vm0, %v338_v59  ;;  %v76_v58 = vld [vmem:[%s2959_s0 + $0x1e8] sm:$0xff]  ;;  %v195_v59 = vld [vmem:[%s2959_s0 + $0x5a0] sm:$0xff]  ;;  %v285_v0 = vpack.c.bf16 %v73_v57, %v71_v56  ;;  %v217_v56 = vld [vmem:[%s2959_s0 + $0x650] sm:$0xff] }
  0x67   :  { %v347_v1 = vpack.c.bf16 %v197_v60, %v195_v59  ;;  %v288_v2 = vpack.c.bf16 %v78_v61, %v76_v58  ;;  %v98_v57 = vld [vmem:[%s2959_s0 + $0x298] sm:$0xff]  ;;  %v220_v58 = vld [vmem:[%s2959_s0 + $0x668] sm:$0xff] }
  0x68   :  { %v222_v59 = vld [vmem:[%s2959_s0 + $0x678] sm:$0xff] }
  0x69   :  { %v360_v63 = vpack.c.bf16 %v222_v59, %v220_v58 }
  0x6d   :  { %747 = vmatmul.mubr.bf16.gmra.mrb[36].mxu0 %v275_v4  ;;  %995 = vmatmul.mubr.bf16.gmra.mrb[36].mxu1 %v337_v5  ;;  %v75_v4 = vld [vmem:[%s2959_s0 + $0x1e0] sm:$0xff]  ;;  %v77_v5 = vld [vmem:[%s2959_s0 + $0x1f0] sm:$0xff] }
  0x6e   :  { %1428 = vmatprep.mubr.msk.bf16.mxu0 %vm458_vm0, %v278_v6  ;;  %1459 = vmatprep.mubr.msk.bf16.mxu1 %vm458_vm0, %v340_v7  ;;  %v80_v6 = vld [vmem:[%s2959_s0 + $0x208] sm:$0xff]  ;;  %v199_v7 = vld [vmem:[%s2959_s0 + $0x5c0] sm:$0xff]  ;;  %v287_v12 = vpack.c.bf16 %v77_v5, %v75_v4  ;;  %v221_v4 = vld [vmem:[%s2959_s0 + $0x670] sm:$0xff] }
  0x6f   :  { %v349_v13 = vpack.c.bf16 %v201_v8, %v199_v7  ;;  %v290_v14 = vpack.c.bf16 %v82_v9, %v80_v6  ;;  %v102_v5 = vld [vmem:[%s2959_s0 + $0x2b8] sm:$0xff]  ;;  %v224_v6 = vld [vmem:[%s2959_s0 + $0x688] sm:$0xff] }
  0x70   :  { %v226_v7 = vld [vmem:[%s2959_s0 + $0x698] sm:$0xff] }
  0x71   :  { %v362_v11 = vpack.c.bf16 %v226_v7, %v224_v6 }
  0x75   :  { %755 = vmatmul.mubr.bf16.gmra.mrb[40].mxu0 %v277_v16  ;;  %1003 = vmatmul.mubr.bf16.gmra.mrb[40].mxu1 %v339_v17  ;;  %v79_v16 = vld [vmem:[%s2959_s0 + $0x200] sm:$0xff]  ;;  %v81_v17 = vld [vmem:[%s2959_s0 + $0x210] sm:$0xff] }
  0x76   :  { %1429 = vmatprep.mubr.msk.bf16.mxu0 %vm458_vm0, %v280_v18  ;;  %1460 = vmatprep.mubr.msk.bf16.mxu1 %vm458_vm0, %v342_v19  ;;  %v84_v18 = vld [vmem:[%s2959_s0 + $0x228] sm:$0xff]  ;;  %v203_v19 = vld [vmem:[%s2959_s0 + $0x5e0] sm:$0xff]  ;;  %v289_v24 = vpack.c.bf16 %v81_v17, %v79_v16  ;;  %v225_v16 = vld [vmem:[%s2959_s0 + $0x690] sm:$0xff] }
  0x77   :  { %v351_v25 = vpack.c.bf16 %v205_v20, %v203_v19  ;;  %v292_v26 = vpack.c.bf16 %v86_v21, %v84_v18  ;;  %v106_v17 = vld [vmem:[%s2959_s0 + $0x2d8] sm:$0xff]  ;;  %v228_v18 = vld [vmem:[%s2959_s0 + $0x6a8] sm:$0xff] }
  0x78   :  { %v230_v19 = vld [vmem:[%s2959_s0 + $0x6b8] sm:$0xff] }
  0x79   :  { %v364_v23 = vpack.c.bf16 %v230_v19, %v228_v18 }
  0x7d   :  { %763 = vmatmul.mubr.bf16.gmra.mrb[44].mxu0 %v279_v28  ;;  %1011 = vmatmul.mubr.bf16.gmra.mrb[44].mxu1 %v341_v29  ;;  %v83_v28 = vld [vmem:[%s2959_s0 + $0x220] sm:$0xff]  ;;  %v85_v29 = vld [vmem:[%s2959_s0 + $0x230] sm:$0xff] }
  0x7e   :  { %1430 = vmatprep.mubr.msk.bf16.mxu0 %vm458_vm0, %v282_v30  ;;  %1461 = vmatprep.mubr.msk.bf16.mxu1 %vm458_vm0, %v344_v31  ;;  %v88_v30 = vld [vmem:[%s2959_s0 + $0x248] sm:$0xff]  ;;  %v207_v31 = vld [vmem:[%s2959_s0 + $0x600] sm:$0xff]  ;;  %v291_v36 = vpack.c.bf16 %v85_v29, %v83_v28  ;;  %v229_v28 = vld [vmem:[%s2959_s0 + $0x6b0] sm:$0xff] }
  0x7f   :  { %v353_v37 = vpack.c.bf16 %v209_v32, %v207_v31  ;;  %v294_v38 = vpack.c.bf16 %v90_v33, %v88_v30  ;;  %v110_v29 = vld [vmem:[%s2959_s0 + $0x2f8] sm:$0xff]  ;;  %v232_v30 = vld [vmem:[%s2959_s0 + $0x6c8] sm:$0xff] }
  0x80   :  { %v234_v31 = vld [vmem:[%s2959_s0 + $0x6d8] sm:$0xff] }
  0x81   :  { %v366_v35 = vpack.c.bf16 %v234_v31, %v232_v30 }
  0x85   :  { %771 = vmatmul.mubr.bf16.gmra.mrb[48].mxu0 %v281_v40  ;;  %1019 = vmatmul.mubr.bf16.gmra.mrb[48].mxu1 %v343_v41  ;;  %v87_v40 = vld [vmem:[%s2959_s0 + $0x240] sm:$0xff]  ;;  %v89_v41 = vld [vmem:[%s2959_s0 + $0x250] sm:$0xff] }
  0x86   :  { %1431 = vmatprep.mubr.msk.bf16.mxu0 %vm458_vm0, %v284_v42  ;;  %1462 = vmatprep.mubr.msk.bf16.mxu1 %vm458_vm0, %v346_v43  ;;  %v92_v42 = vld [vmem:[%s2959_s0 + $0x268] sm:$0xff]  ;;  %v211_v43 = vld [vmem:[%s2959_s0 + $0x620] sm:$0xff]  ;;  %v293_v48 = vpack.c.bf16 %v89_v41, %v87_v40  ;;  %v233_v40 = vld [vmem:[%s2959_s0 + $0x6d0] sm:$0xff] }
  0x87   :  { %v355_v49 = vpack.c.bf16 %v213_v44, %v211_v43  ;;  %v296_v50 = vpack.c.bf16 %v94_v45, %v92_v42  ;;  %v114_v41 = vld [vmem:[%s2959_s0 + $0x318] sm:$0xff]  ;;  %v236_v42 = vld [vmem:[%s2959_s0 + $0x6e8] sm:$0xff] }
  0x88   :  { %v238_v43 = vld [vmem:[%s2959_s0 + $0x6f8] sm:$0xff] }
  0x89   :  { %v368_v47 = vpack.c.bf16 %v238_v43, %v236_v42 }
  0x8d   :  { %779 = vmatmul.mubr.bf16.gmra.mrb[52].mxu0 %v283_v52  ;;  %1027 = vmatmul.mubr.bf16.gmra.mrb[52].mxu1 %v345_v53  ;;  %v91_v52 = vld [vmem:[%s2959_s0 + $0x260] sm:$0xff]  ;;  %v93_v53 = vld [vmem:[%s2959_s0 + $0x270] sm:$0xff] }
  0x8e   :  { %1432 = vmatprep.mubr.msk.bf16.mxu0 %vm458_vm0, %v286_v54  ;;  %1463 = vmatprep.mubr.msk.bf16.mxu1 %vm458_vm0, %v348_v55  ;;  %v96_v54 = vld [vmem:[%s2959_s0 + $0x288] sm:$0xff]  ;;  %v215_v55 = vld [vmem:[%s2959_s0 + $0x640] sm:$0xff]  ;;  %v295_v60 = vpack.c.bf16 %v93_v53, %v91_v52  ;;  %v237_v52 = vld [vmem:[%s2959_s0 + $0x6f0] sm:$0xff] }
  0x8f   :  { %v357_v61 = vpack.c.bf16 %v217_v56, %v215_v55  ;;  %v298_v62 = vpack.c.bf16 %v98_v57, %v96_v54  ;;  %v118_v53 = vld [vmem:[%s2959_s0 + $0x338] sm:$0xff]  ;;  %v240_v54 = vld [vmem:[%s2959_s0 + $0x708] sm:$0xff] }
  0x90   :  { %v242_v55 = vld [vmem:[%s2959_s0 + $0x718] sm:$0xff] }
  0x91   :  { %v370_v59 = vpack.c.bf16 %v242_v55, %v240_v54  ;;  %v134_v54 = vld [vmem:[%s2959_s0 + $0x3b8] sm:$0xff]  ;;  %v256_v55 = vld [vmem:[%s2959_s0 + $0x788] sm:$0xff] }
  0x95   :  { %787 = vmatmul.mubr.bf16.gmra.mrb[56].mxu0 %v285_v0  ;;  %1035 = vmatmul.mubr.bf16.gmra.mrb[56].mxu1 %v347_v1  ;;  %v95_v0 = vld [vmem:[%s2959_s0 + $0x280] sm:$0xff]  ;;  %v97_v1 = vld [vmem:[%s2959_s0 + $0x290] sm:$0xff] }
  0x96   :  { %1433 = vmatprep.mubr.msk.bf16.mxu0 %vm458_vm0, %v288_v2  ;;  %1464 = vmatprep.mubr.msk.bf16.mxu1 %vm458_vm0, %v350_v3  ;;  %v100_v2 = vld [vmem:[%s2959_s0 + $0x2a8] sm:$0xff]  ;;  %v219_v3 = vld [vmem:[%s2959_s0 + $0x660] sm:$0xff]  ;;  %v297_v8 = vpack.c.bf16 %v97_v1, %v95_v0  ;;  %v241_v0 = vld [vmem:[%s2959_s0 + $0x710] sm:$0xff] }
  0x97   :  { %v359_v9 = vpack.c.bf16 %v221_v4, %v219_v3  ;;  %v300_v10 = vpack.c.bf16 %v102_v5, %v100_v2  ;;  %v122_v1 = vld [vmem:[%s2959_s0 + $0x358] sm:$0xff]  ;;  %v244_v2 = vld [vmem:[%s2959_s0 + $0x728] sm:$0xff] }
  0x98   :  { %v246_v3 = vld [vmem:[%s2959_s0 + $0x738] sm:$0xff] }
  0x99   :  { %v372_v7 = vpack.c.bf16 %v246_v3, %v244_v2  ;;  %v378_v3 = vpack.c.bf16 %v256_v55, %v256_v55 }
  0x9d   :  { %795 = vmatmul.mubr.bf16.gmra.mrb[60].mxu0 %v287_v12  ;;  %1043 = vmatmul.mubr.bf16.gmra.mrb[60].mxu1 %v349_v13  ;;  %v99_v12 = vld [vmem:[%s2959_s0 + $0x2a0] sm:$0xff]  ;;  %v101_v13 = vld [vmem:[%s2959_s0 + $0x2b0] sm:$0xff] }
  0x9e   :  { %1434 = vmatprep.mubr.msk.bf16.mxu0 %vm458_vm0, %v290_v14  ;;  %1465 = vmatprep.mubr.msk.bf16.mxu1 %vm458_vm0, %v352_v15  ;;  %v104_v14 = vld [vmem:[%s2959_s0 + $0x2c8] sm:$0xff]  ;;  %v223_v15 = vld [vmem:[%s2959_s0 + $0x680] sm:$0xff]  ;;  %v299_v20 = vpack.c.bf16 %v101_v13, %v99_v12  ;;  %v245_v12 = vld [vmem:[%s2959_s0 + $0x730] sm:$0xff] }
  0x9f   :  { %v361_v21 = vpack.c.bf16 %v225_v16, %v223_v15  ;;  %v302_v22 = vpack.c.bf16 %v106_v17, %v104_v14  ;;  %v126_v13 = vld [vmem:[%s2959_s0 + $0x378] sm:$0xff]  ;;  %v248_v14 = vld [vmem:[%s2959_s0 + $0x748] sm:$0xff] }
  0xa0   :  { %v250_v15 = vld [vmem:[%s2959_s0 + $0x758] sm:$0xff] }
  0xa1   :  { %v374_v19 = vpack.c.bf16 %v250_v15, %v248_v14  ;;  %v255_v14 = vld [vmem:[%s2959_s0 + $0x780] sm:$0xff]  ;;  %v136_v15 = vld [vmem:[%s2959_s0 + $0x3c8] sm:$0xff] }
  0xa5   :  { %803 = vmatmul.mubr.bf16.gmra.mrb[64].mxu0 %v289_v24  ;;  %1051 = vmatmul.mubr.bf16.gmra.mrb[64].mxu1 %v351_v25  ;;  %v103_v24 = vld [vmem:[%s2959_s0 + $0x2c0] sm:$0xff]  ;;  %v105_v25 = vld [vmem:[%s2959_s0 + $0x2d0] sm:$0xff] }
  0xa6   :  { %1435 = vmatprep.mubr.msk.bf16.mxu0 %vm458_vm0, %v292_v26  ;;  %1466 = vmatprep.mubr.msk.bf16.mxu1 %vm458_vm0, %v354_v27  ;;  %v108_v26 = vld [vmem:[%s2959_s0 + $0x2e8] sm:$0xff]  ;;  %v227_v27 = vld [vmem:[%s2959_s0 + $0x6a0] sm:$0xff]  ;;  %v301_v32 = vpack.c.bf16 %v105_v25, %v103_v24  ;;  %v249_v25 = vld [vmem:[%s2959_s0 + $0x750] sm:$0xff] }
  0xa7   :  { %v363_v33 = vpack.c.bf16 %v229_v28, %v227_v27  ;;  %v304_v34 = vpack.c.bf16 %v110_v29, %v108_v26  ;;  %v247_v24 = vld [vmem:[%s2959_s0 + $0x740] sm:$0xff]  ;;  %v130_v26 = vld [vmem:[%s2959_s0 + $0x398] sm:$0xff]  ;;  %v252_v27 = vld [vmem:[%s2959_s0 + $0x768] sm:$0xff] }
  0xa8   :  { %v254_v28 = vld [vmem:[%s2959_s0 + $0x778] sm:$0xff] }
  0xad   :  { %811 = vmatmul.mubr.bf16.gmra.mrb[68].mxu0 %v291_v36  ;;  %1059 = vmatmul.mubr.bf16.gmra.mrb[68].mxu1 %v353_v37  ;;  %v107_v36 = vld [vmem:[%s2959_s0 + $0x2e0] sm:$0xff]  ;;  %v109_v37 = vld [vmem:[%s2959_s0 + $0x2f0] sm:$0xff] }
  0xae   :  { %1436 = vmatprep.mubr.msk.bf16.mxu0 %vm458_vm0, %v294_v38  ;;  %1467 = vmatprep.mubr.msk.bf16.mxu1 %vm458_vm0, %v356_v39  ;;  %v112_v38 = vld [vmem:[%s2959_s0 + $0x308] sm:$0xff]  ;;  %v231_v39 = vld [vmem:[%s2959_s0 + $0x6c0] sm:$0xff]  ;;  %v303_v44 = vpack.c.bf16 %v109_v37, %v107_v36  ;;  %v373_v36 = vpack.c.bf16 %v249_v25, %v247_v24  ;;  %v377_v25 = vpack.c.bf16 %v255_v14, %v255_v14 }
  0xaf   :  { %v365_v45 = vpack.c.bf16 %v233_v40, %v231_v39  ;;  %v306_v46 = vpack.c.bf16 %v114_v41, %v112_v38  ;;  %v376_v40 = vpack.c.bf16 %v254_v28, %v252_v27 }
  0xb5   :  { %819 = vmatmul.mubr.bf16.gmra.mrb[72].mxu0 %v293_v48  ;;  %1067 = vmatmul.mubr.bf16.gmra.mrb[72].mxu1 %v355_v49  ;;  %v111_v48 = vld [vmem:[%s2959_s0 + $0x300] sm:$0xff]  ;;  %v113_v49 = vld [vmem:[%s2959_s0 + $0x310] sm:$0xff] }
  0xb6   :  { %1437 = vmatprep.mubr.msk.bf16.mxu0 %vm458_vm0, %v296_v50  ;;  %1468 = vmatprep.mubr.msk.bf16.mxu1 %vm458_vm0, %v358_v51  ;;  %v116_v50 = vld [vmem:[%s2959_s0 + $0x328] sm:$0xff]  ;;  %v235_v51 = vld [vmem:[%s2959_s0 + $0x6e0] sm:$0xff]  ;;  %v305_v56 = vpack.c.bf16 %v113_v49, %v111_v48 }
  0xb7   :  { %v367_v57 = vpack.c.bf16 %v237_v52, %v235_v51  ;;  %v308_v58 = vpack.c.bf16 %v118_v53, %v116_v50  ;;  %v127_v49 = vld [vmem:[%s2959_s0 + $0x380] sm:$0xff]  ;;  %v129_v50 = vld [vmem:[%s2959_s0 + $0x390] sm:$0xff]  ;;  %v132_v53 = vld [vmem:[%s2959_s0 + $0x3a8] sm:$0xff] }
  0xb8   :  { %v251_v51 = vld [vmem:[%s2959_s0 + $0x760] sm:$0xff]  ;;  %v253_v52 = vld [vmem:[%s2959_s0 + $0x770] sm:$0xff]  ;;  %v316_v2 = vpack.c.bf16 %v134_v54, %v132_v53 }
  0xbd   :  { %827 = vmatmul.mubr.bf16.gmra.mrb[76].mxu0 %v295_v60  ;;  %1075 = vmatmul.mubr.bf16.gmra.mrb[76].mxu1 %v357_v61  ;;  %v115_v60 = vld [vmem:[%s2959_s0 + $0x320] sm:$0xff]  ;;  %v117_v61 = vld [vmem:[%s2959_s0 + $0x330] sm:$0xff] }
  0xbe   :  { %1438 = vmatprep.mubr.msk.bf16.mxu0 %vm458_vm0, %v298_v62  ;;  %1469 = vmatprep.mubr.msk.bf16.mxu1 %vm458_vm0, %v360_v63  ;;  %v120_v62 = vld [vmem:[%s2959_s0 + $0x348] sm:$0xff]  ;;  %v239_v63 = vld [vmem:[%s2959_s0 + $0x700] sm:$0xff]  ;;  %v307_v4 = vpack.c.bf16 %v117_v61, %v115_v60  ;;  %v313_v60 = vpack.c.bf16 %v129_v50, %v127_v49 }
  0xbf   :  { %v369_v5 = vpack.c.bf16 %v241_v0, %v239_v63  ;;  %v310_v6 = vpack.c.bf16 %v122_v1, %v120_v62  ;;  %v375_v63 = vpack.c.bf16 %v253_v52, %v251_v51 }
  0xc5   :  { %835 = vmatmul.mubr.bf16.gmra.mrb[80].mxu0 %v297_v8  ;;  %1083 = vmatmul.mubr.bf16.gmra.mrb[80].mxu1 %v359_v9  ;;  %v119_v8 = vld [vmem:[%s2959_s0 + $0x340] sm:$0xff]  ;;  %v121_v9 = vld [vmem:[%s2959_s0 + $0x350] sm:$0xff] }
  0xc6   :  { %1439 = vmatprep.mubr.msk.bf16.mxu0 %vm458_vm0, %v300_v10  ;;  %1470 = vmatprep.mubr.msk.bf16.mxu1 %vm458_vm0, %v362_v11  ;;  %v124_v10 = vld [vmem:[%s2959_s0 + $0x368] sm:$0xff]  ;;  %v243_v11 = vld [vmem:[%s2959_s0 + $0x720] sm:$0xff]  ;;  %v309_v16 = vpack.c.bf16 %v121_v9, %v119_v8 }
  0xc7   :  { %v371_v17 = vpack.c.bf16 %v245_v12, %v243_v11  ;;  %v312_v18 = vpack.c.bf16 %v126_v13, %v124_v10  ;;  %v131_v12 = vld [vmem:[%s2959_s0 + $0x3a0] sm:$0xff]  ;;  %v133_v13 = vld [vmem:[%s2959_s0 + $0x3b0] sm:$0xff] }
  0xcd   :  { %843 = vmatmul.mubr.bf16.gmra.mrb[84].mxu0 %v299_v20  ;;  %1091 = vmatmul.mubr.bf16.gmra.mrb[84].mxu1 %v361_v21  ;;  %v2273_v20 = vld [vmem:[%s2960_s2] ss:$0 sm:$0xff] }
  0xce   :  { %1440 = vmatprep.mubr.msk.bf16.mxu0 %vm458_vm0, %v302_v22  ;;  %1471 = vmatprep.mubr.msk.bf16.mxu1 %vm458_vm0, %v364_v23  ;;  %v123_v21 = vld [vmem:[%s2959_s0 + $0x360] sm:$0xff]  ;;  %v125_v22 = vld [vmem:[%s2959_s0 + $0x370] sm:$0xff]  ;;  %v128_v23 = vld [vmem:[%s2959_s0 + $0x388] sm:$0xff] }
  0xcf   :  { %v314_v39 = vpack.c.bf16 %v130_v26, %v128_v23 }
  0xd5   :  { %851 = vmatmul.mubr.bf16.gmra.mrb[88].mxu0 %v301_v32  ;;  %1099 = vmatmul.mubr.bf16.gmra.mrb[88].mxu1 %v363_v33  ;;  %v311_v33 = vpack.c.bf16 %v125_v22, %v123_v21  ;;  %v315_v22 = vpack.c.bf16 %v133_v13, %v131_v12 }
  0xd6   :  { %1441 = vmatprep.mubr.msk.bf16.mxu0 %vm458_vm0, %v304_v34  ;;  %1472 = vmatprep.mubr.msk.bf16.mxu1 %vm458_vm0, %v366_v35 }
  0xdd   :  { %859 = vmatmul.mubr.bf16.gmra.mrb[92].mxu0 %v303_v44  ;;  %1107 = vmatmul.mubr.bf16.gmra.mrb[92].mxu1 %v365_v45 }
  0xde   :  { %1442 = vmatprep.mubr.msk.bf16.mxu0 %vm458_vm0, %v306_v46  ;;  %1473 = vmatprep.mubr.msk.bf16.mxu1 %vm458_vm0, %v368_v47 }
  0xe5   :  { %867 = vmatmul.mubr.bf16.gmra.mrb[96].mxu0 %v305_v56  ;;  %1115 = vmatmul.mubr.bf16.gmra.mrb[96].mxu1 %v367_v57 }
  0xe6   :  { %1443 = vmatprep.mubr.msk.bf16.mxu0 %vm458_vm0, %v308_v58  ;;  %1474 = vmatprep.mubr.msk.bf16.mxu1 %vm458_vm0, %v370_v59 }
  0xed   :  { %875 = vmatmul.mubr.bf16.gmra.mrb[100].mxu0 %v307_v4  ;;  %1123 = vmatmul.mubr.bf16.gmra.mrb[100].mxu1 %v369_v5 }
  0xee   :  { %1444 = vmatprep.mubr.msk.bf16.mxu0 %vm458_vm0, %v310_v6  ;;  %1475 = vmatprep.mubr.msk.bf16.mxu1 %vm458_vm0, %v372_v7 }
  0xf5   :  { %883 = vmatmul.mubr.bf16.gmra.mrb[104].mxu0 %v309_v16  ;;  %1131 = vmatmul.mubr.bf16.gmra.mrb[104].mxu1 %v371_v17  ;;  %v138_v16 = vld [vmem:[%s2959_s0 + $0x3d8] sm:$0xff] }
  0xf6   :  { %1445 = vmatprep.mubr.msk.bf16.mxu0 %vm458_vm0, %v312_v18  ;;  %1476 = vmatprep.mubr.msk.bf16.mxu1 %vm458_vm0, %v374_v19  ;;  %v318_v28 = vpack.c.bf16 %v138_v16, %v136_v15 }
  0xf8   :  { %v676_v29 = vpop.f32.mrb[0].mxu0  ;;  %v924_v30 = vpop.f32.mrb[0].mxu1 }
  0xf9   :  { %v677_v31 = vadd.f32 %v2273_v20, %v676_v29  ;;  %v678_v32 = vpop.f32.mrb[1].mxu0  ;;  %v925_v34 = vadd.f32 %v2273_v20, %v924_v30  ;;  %v926_v35 = vpop.f32.mrb[1].mxu1 }
  0xfa   :  { %v679_v37 = vpop.f32.mrb[2].mxu0  ;;  %v927_v38 = vpop.f32.mrb[2].mxu1 }
  0xfb   :  { %v1162_v41 = vmax.f32 %v677_v31, 0.0  ;;  %v680_v42 = vadd.f32 %v2273_v20, %v679_v37  ;;  %v681_v43 = vpop.f32.mrb[3].mxu0  ;;  %v1224_v44 = vmax.f32 %v925_v34, 0.0  ;;  %v928_v45 = vadd.f32 %v2273_v20, %v927_v38  ;;  %v929_v46 = vpop.f32.mrb[3].mxu1  ;;  %v135_v37 = vld [vmem:[%s2959_s0 + $0x3c0] sm:$0xff]  ;;  %v137_v38 = vld [vmem:[%s2959_s0 + $0x3d0] sm:$0xff] }
  0xfc   :  { %v317_v43 = vpack.c.bf16 %v137_v38, %v135_v37 }
  0xfd   :  { %1283 = vst.msk [vmem:[%s2961_s3] sm:$0xff] %vm458_vm0, %v1162_v41  ;;  %v1163_v47 = vmax.f32 %v680_v42, 0.0  ;;  %891 = vmatmul.mubr.bf16.gmra.mrb[108].mxu0 %v311_v33  ;;  %1345 = vst.msk [vmem:[%s2961_s3 + $0x1f0] sm:$0xff] %vm458_vm0, %v1224_v44  ;;  %v1225_v48 = vmax.f32 %v928_v45, 0.0  ;;  %1139 = vmatmul.mubr.bf16.gmra.mrb[108].mxu1 %v373_v36 }
  0xfe   :  { %1446 = vmatprep.mubr.msk.bf16.mxu0 %vm458_vm0, %v314_v39  ;;  %1477 = vmatprep.mubr.msk.bf16.mxu1 %vm458_vm0, %v376_v40 }
  0xff   :  { %1284 = vst.msk [vmem:[%s2961_s3 + $0x8] sm:$0xff] %vm458_vm0, %v1163_v47  ;;  %1346 = vst.msk [vmem:[%s2961_s3 + $0x1f8] sm:$0xff] %vm458_vm0, %v1225_v48 }
 0x100   :  { %v684_v56 = vpop.f32.mrb[4].mxu0  ;;  %v932_v57 = vpop.f32.mrb[4].mxu1 }
 0x101   :  { %v685_v58 = vadd.f32 %v2273_v20, %v684_v56  ;;  %v686_v59 = vpop.f32.mrb[5].mxu0  ;;  %v933_v61 = vadd.f32 %v2273_v20, %v932_v57  ;;  %v934_v62 = vpop.f32.mrb[5].mxu1 }
 0x102   :  { %v687_v0 = vpop.f32.mrb[6].mxu0  ;;  %v935_v1 = vpop.f32.mrb[6].mxu1 }
 0x103   :  { %v1164_v4 = vmax.f32 %v685_v58, 0.0  ;;  %v688_v5 = vadd.f32 %v2273_v20, %v687_v0  ;;  %v689_v6 = vpop.f32.mrb[7].mxu0  ;;  %v1226_v7 = vmax.f32 %v933_v61, 0.0  ;;  %v936_v8 = vadd.f32 %v2273_v20, %v935_v1  ;;  %v937_v9 = vpop.f32.mrb[7].mxu1 }
 0x105   :  { %1285 = vst.msk [vmem:[%s2961_s3 + $0x10] sm:$0xff] %vm458_vm0, %v1164_v4  ;;  %v1165_v10 = vmax.f32 %v688_v5, 0.0  ;;  %899 = vmatmul.mubr.bf16.gmra.mrb[112].mxu0 %v313_v60  ;;  %1347 = vst.msk [vmem:[%s2961_s3 + $0x200] sm:$0xff] %vm458_vm0, %v1226_v7  ;;  %v1227_v11 = vmax.f32 %v936_v8, 0.0  ;;  %1147 = vmatmul.mubr.bf16.gmra.mrb[112].mxu1 %v375_v63 }
 0x106   :  { %1447 = vmatprep.mubr.msk.bf16.mxu0 %vm458_vm0, %v316_v2  ;;  %1478 = vmatprep.mubr.msk.bf16.mxu1 %vm458_vm0, %v378_v3 }
 0x107   :  { %1286 = vst.msk [vmem:[%s2961_s3 + $0x18] sm:$0xff] %vm458_vm0, %v1165_v10  ;;  %1348 = vst.msk [vmem:[%s2961_s3 + $0x208] sm:$0xff] %vm458_vm0, %v1227_v11 }
 0x108   :  { %v692_v17 = vpop.f32.mrb[8].mxu0  ;;  %v940_v18 = vpop.f32.mrb[8].mxu1 }
 0x109   :  { %v693_v19 = vadd.f32 %v2273_v20, %v692_v17  ;;  %v694_v21 = vpop.f32.mrb[9].mxu0  ;;  %v941_v23 = vadd.f32 %v2273_v20, %v940_v18  ;;  %v942_v24 = vpop.f32.mrb[9].mxu1 }
 0x10a   :  { %v695_v26 = vpop.f32.mrb[10].mxu0  ;;  %v943_v27 = vpop.f32.mrb[10].mxu1 }
 0x10b   :  { %v1166_v29 = vmax.f32 %v693_v19, 0.0  ;;  %v696_v30 = vadd.f32 %v2273_v20, %v695_v26  ;;  %v697_v31 = vpop.f32.mrb[11].mxu0  ;;  %v1228_v32 = vmax.f32 %v941_v23, 0.0  ;;  %v944_v33 = vadd.f32 %v2273_v20, %v943_v27  ;;  %v945_v34 = vpop.f32.mrb[11].mxu1 }
 0x10d   :  { %1287 = vst.msk [vmem:[%s2961_s3 + $0x20] sm:$0xff] %vm458_vm0, %v1166_v29  ;;  %v1167_v35 = vmax.f32 %v696_v30, 0.0  ;;  %907 = vmatmul.mubr.bf16.gmra.mrb[116].mxu0 %v315_v22  ;;  %1349 = vst.msk [vmem:[%s2961_s3 + $0x210] sm:$0xff] %vm458_vm0, %v1228_v32  ;;  %v1229_v36 = vmax.f32 %v944_v33, 0.0  ;;  %1155 = vmatmul.mubr.bf16.gmra.mrb[116].mxu1 %v377_v25 }
 0x10e   :  { %1448 = vmatprep.mubr.msk.bf16.mxu0 %vm458_vm0, %v318_v28 }
 0x10f   :  { %1288 = vst.msk [vmem:[%s2961_s3 + $0x28] sm:$0xff] %vm458_vm0, %v1167_v35  ;;  %1350 = vst.msk [vmem:[%s2961_s3 + $0x218] sm:$0xff] %vm458_vm0, %v1229_v36 }
 0x110   :  { %v700_v39 = vpop.f32.mrb[12].mxu0  ;;  %v948_v40 = vpop.f32.mrb[12].mxu1 }
 0x111   :  { %v701_v41 = vadd.f32 %v2273_v20, %v700_v39  ;;  %v702_v42 = vpop.f32.mrb[13].mxu0  ;;  %v949_v44 = vadd.f32 %v2273_v20, %v948_v40  ;;  %v950_v45 = vpop.f32.mrb[13].mxu1 }
 0x112   :  { %v703_v46 = vpop.f32.mrb[14].mxu0  ;;  %v951_v47 = vpop.f32.mrb[14].mxu1 }
 0x113   :  { %v1168_v48 = vmax.f32 %v701_v41, 0.0  ;;  %v704_v49 = vadd.f32 %v2273_v20, %v703_v46  ;;  %v705_v50 = vpop.f32.mrb[15].mxu0  ;;  %v1230_v51 = vmax.f32 %v949_v44, 0.0  ;;  %v952_v52 = vadd.f32 %v2273_v20, %v951_v47  ;;  %v953_v53 = vpop.f32.mrb[15].mxu1 }
 0x115   :  { %1289 = vst.msk [vmem:[%s2961_s3 + $0x30] sm:$0xff] %vm458_vm0, %v1168_v48  ;;  %v1169_v54 = vmax.f32 %v704_v49, 0.0  ;;  %915 = vmatmul.mubr.bf16.gmra.mrb[120].mxu0 %v317_v43  ;;  %1351 = vst.msk [vmem:[%s2961_s3 + $0x220] sm:$0xff] %vm458_vm0, %v1230_v51  ;;  %v1231_v55 = vmax.f32 %v952_v52, 0.0 }
 0x117   :  { %1290 = vst.msk [vmem:[%s2961_s3 + $0x38] sm:$0xff] %vm458_vm0, %v1169_v54  ;;  %1352 = vst.msk [vmem:[%s2961_s3 + $0x228] sm:$0xff] %vm458_vm0, %v1231_v55 }
 0x118   :  { %v708_v56 = vpop.f32.mrb[16].mxu0  ;;  %v956_v57 = vpop.f32.mrb[16].mxu1 }
 0x119   :  { %v709_v58 = vadd.f32 %v2273_v20, %v708_v56  ;;  %v710_v59 = vpop.f32.mrb[17].mxu0  ;;  %v957_v60 = vadd.f32 %v2273_v20, %v956_v57  ;;  %v958_v61 = vpop.f32.mrb[17].mxu1 }
 0x11a   :  { %v711_v62 = vpop.f32.mrb[18].mxu0  ;;  %v959_v63 = vpop.f32.mrb[18].mxu1 }
 0x11b   :  { %v1170_v0 = vmax.f32 %v709_v58, 0.0  ;;  %v712_v1 = vadd.f32 %v2273_v20, %v711_v62  ;;  %v713_v2 = vpop.f32.mrb[19].mxu0  ;;  %v1232_v3 = vmax.f32 %v957_v60, 0.0  ;;  %v960_v4 = vadd.f32 %v2273_v20, %v959_v63  ;;  %v961_v5 = vpop.f32.mrb[19].mxu1 }
 0x11d   :  { %1291 = vst.msk [vmem:[%s2961_s3 + $0x40] sm:$0xff] %vm458_vm0, %v1170_v0  ;;  %v1171_v6 = vmax.f32 %v712_v1, 0.0  ;;  %1353 = vst.msk [vmem:[%s2961_s3 + $0x230] sm:$0xff] %vm458_vm0, %v1232_v3  ;;  %v1233_v7 = vmax.f32 %v960_v4, 0.0 }
 0x11f   :  { %1292 = vst.msk [vmem:[%s2961_s3 + $0x48] sm:$0xff] %vm458_vm0, %v1171_v6  ;;  %1354 = vst.msk [vmem:[%s2961_s3 + $0x238] sm:$0xff] %vm458_vm0, %v1233_v7 }
 0x120   :  { %v716_v8 = vpop.f32.mrb[20].mxu0  ;;  %v964_v9 = vpop.f32.mrb[20].mxu1 }
 0x121   :  { %v717_v10 = vadd.f32 %v2273_v20, %v716_v8  ;;  %v718_v11 = vpop.f32.mrb[21].mxu0  ;;  %v965_v12 = vadd.f32 %v2273_v20, %v964_v9  ;;  %v966_v13 = vpop.f32.mrb[21].mxu1 }
 0x122   :  { %v719_v14 = vpop.f32.mrb[22].mxu0  ;;  %v967_v15 = vpop.f32.mrb[22].mxu1 }
 0x123   :  { %v1172_v16 = vmax.f32 %v717_v10, 0.0  ;;  %v720_v17 = vadd.f32 %v2273_v20, %v719_v14  ;;  %v721_v18 = vpop.f32.mrb[23].mxu0  ;;  %v1234_v19 = vmax.f32 %v965_v12, 0.0  ;;  %v968_v21 = vadd.f32 %v2273_v20, %v967_v15  ;;  %v969_v22 = vpop.f32.mrb[23].mxu1 }
 0x125   :  { %1293 = vst.msk [vmem:[%s2961_s3 + $0x50] sm:$0xff] %vm458_vm0, %v1172_v16  ;;  %v1173_v23 = vmax.f32 %v720_v17, 0.0  ;;  %1355 = vst.msk [vmem:[%s2961_s3 + $0x240] sm:$0xff] %vm458_vm0, %v1234_v19  ;;  %v1235_v24 = vmax.f32 %v968_v21, 0.0 }
 0x127   :  { %1294 = vst.msk [vmem:[%s2961_s3 + $0x58] sm:$0xff] %vm458_vm0, %v1173_v23  ;;  %1356 = vst.msk [vmem:[%s2961_s3 + $0x248] sm:$0xff] %vm458_vm0, %v1235_v24 }
 0x128   :  { %v724_v25 = vpop.f32.mrb[24].mxu0  ;;  %v972_v26 = vpop.f32.mrb[24].mxu1 }
 0x129   :  { %v725_v27 = vadd.f32 %v2273_v20, %v724_v25  ;;  %v726_v28 = vpop.f32.mrb[25].mxu0  ;;  %v973_v29 = vadd.f32 %v2273_v20, %v972_v26  ;;  %v974_v30 = vpop.f32.mrb[25].mxu1 }
 0x12a   :  { %v727_v31 = vpop.f32.mrb[26].mxu0  ;;  %v975_v32 = vpop.f32.mrb[26].mxu1 }
 0x12b   :  { %v1174_v33 = vmax.f32 %v725_v27, 0.0  ;;  %v728_v34 = vadd.f32 %v2273_v20, %v727_v31  ;;  %v729_v35 = vpop.f32.mrb[27].mxu0  ;;  %v1236_v36 = vmax.f32 %v973_v29, 0.0  ;;  %v976_v37 = vadd.f32 %v2273_v20, %v975_v32  ;;  %v977_v38 = vpop.f32.mrb[27].mxu1 }
 0x12d   :  { %1295 = vst.msk [vmem:[%s2961_s3 + $0x60] sm:$0xff] %vm458_vm0, %v1174_v33  ;;  %v1175_v39 = vmax.f32 %v728_v34, 0.0  ;;  %1357 = vst.msk [vmem:[%s2961_s3 + $0x250] sm:$0xff] %vm458_vm0, %v1236_v36  ;;  %v1237_v40 = vmax.f32 %v976_v37, 0.0 }
 0x12f   :  { %1296 = vst.msk [vmem:[%s2961_s3 + $0x68] sm:$0xff] %vm458_vm0, %v1175_v39  ;;  %1358 = vst.msk [vmem:[%s2961_s3 + $0x258] sm:$0xff] %vm458_vm0, %v1237_v40 }
 0x130   :  { %v732_v41 = vpop.f32.mrb[28].mxu0  ;;  %v980_v42 = vpop.f32.mrb[28].mxu1 }
 0x131   :  { %v733_v43 = vadd.f32 %v2273_v20, %v732_v41  ;;  %v734_v44 = vpop.f32.mrb[29].mxu0  ;;  %v981_v45 = vadd.f32 %v2273_v20, %v980_v42  ;;  %v982_v46 = vpop.f32.mrb[29].mxu1 }
 0x132   :  { %v735_v47 = vpop.f32.mrb[30].mxu0  ;;  %v983_v48 = vpop.f32.mrb[30].mxu1 }
 0x133   :  { %v1176_v49 = vmax.f32 %v733_v43, 0.0  ;;  %v736_v50 = vadd.f32 %v2273_v20, %v735_v47  ;;  %v737_v51 = vpop.f32.mrb[31].mxu0  ;;  %v1238_v52 = vmax.f32 %v981_v45, 0.0  ;;  %v984_v53 = vadd.f32 %v2273_v20, %v983_v48  ;;  %v985_v54 = vpop.f32.mrb[31].mxu1 }
 0x135   :  { %1297 = vst.msk [vmem:[%s2961_s3 + $0x70] sm:$0xff] %vm458_vm0, %v1176_v49  ;;  %v1177_v55 = vmax.f32 %v736_v50, 0.0  ;;  %1359 = vst.msk [vmem:[%s2961_s3 + $0x260] sm:$0xff] %vm458_vm0, %v1238_v52  ;;  %v1239_v56 = vmax.f32 %v984_v53, 0.0 }
 0x137   :  { %1298 = vst.msk [vmem:[%s2961_s3 + $0x78] sm:$0xff] %vm458_vm0, %v1177_v55  ;;  %1360 = vst.msk [vmem:[%s2961_s3 + $0x268] sm:$0xff] %vm458_vm0, %v1239_v56 }
 0x138   :  { %v740_v57 = vpop.f32.mrb[32].mxu0  ;;  %v988_v58 = vpop.f32.mrb[32].mxu1 }
 0x139   :  { %v741_v59 = vadd.f32 %v2273_v20, %v740_v57  ;;  %v742_v60 = vpop.f32.mrb[33].mxu0  ;;  %v989_v61 = vadd.f32 %v2273_v20, %v988_v58  ;;  %v990_v62 = vpop.f32.mrb[33].mxu1 }
 0x13a   :  { %v743_v63 = vpop.f32.mrb[34].mxu0  ;;  %v991_v0 = vpop.f32.mrb[34].mxu1 }
 0x13b   :  { %v1178_v1 = vmax.f32 %v741_v59, 0.0  ;;  %v744_v2 = vadd.f32 %v2273_v20, %v743_v63  ;;  %v745_v3 = vpop.f32.mrb[35].mxu0  ;;  %v1240_v4 = vmax.f32 %v989_v61, 0.0  ;;  %v992_v5 = vadd.f32 %v2273_v20, %v991_v0  ;;  %v993_v6 = vpop.f32.mrb[35].mxu1 }
 0x13d   :  { %1299 = vst.msk [vmem:[%s2961_s3 + $0x80] sm:$0xff] %vm458_vm0, %v1178_v1  ;;  %v1179_v7 = vmax.f32 %v744_v2, 0.0  ;;  %1361 = vst.msk [vmem:[%s2961_s3 + $0x270] sm:$0xff] %vm458_vm0, %v1240_v4  ;;  %v1241_v8 = vmax.f32 %v992_v5, 0.0 }
 0x13f   :  { %1300 = vst.msk [vmem:[%s2961_s3 + $0x88] sm:$0xff] %vm458_vm0, %v1179_v7  ;;  %1362 = vst.msk [vmem:[%s2961_s3 + $0x278] sm:$0xff] %vm458_vm0, %v1241_v8 }
 0x140   :  { %v748_v9 = vpop.f32.mrb[36].mxu0  ;;  %v996_v10 = vpop.f32.mrb[36].mxu1 }
 0x141   :  { %v749_v11 = vadd.f32 %v2273_v20, %v748_v9  ;;  %v750_v12 = vpop.f32.mrb[37].mxu0  ;;  %v997_v13 = vadd.f32 %v2273_v20, %v996_v10  ;;  %v998_v14 = vpop.f32.mrb[37].mxu1 }
 0x142   :  { %v751_v15 = vpop.f32.mrb[38].mxu0  ;;  %v999_v16 = vpop.f32.mrb[38].mxu1 }
 0x143   :  { %v1180_v17 = vmax.f32 %v749_v11, 0.0  ;;  %v752_v18 = vadd.f32 %v2273_v20, %v751_v15  ;;  %v753_v19 = vpop.f32.mrb[39].mxu0  ;;  %v1242_v21 = vmax.f32 %v997_v13, 0.0  ;;  %v1000_v22 = vadd.f32 %v2273_v20, %v999_v16  ;;  %v1001_v23 = vpop.f32.mrb[39].mxu1 }
 0x145   :  { %1301 = vst.msk [vmem:[%s2961_s3 + $0x90] sm:$0xff] %vm458_vm0, %v1180_v17  ;;  %v1181_v24 = vmax.f32 %v752_v18, 0.0  ;;  %1363 = vst.msk [vmem:[%s2961_s3 + $0x280] sm:$0xff] %vm458_vm0, %v1242_v21  ;;  %v1243_v25 = vmax.f32 %v1000_v22, 0.0 }
 0x147   :  { %1302 = vst.msk [vmem:[%s2961_s3 + $0x98] sm:$0xff] %vm458_vm0, %v1181_v24  ;;  %1364 = vst.msk [vmem:[%s2961_s3 + $0x288] sm:$0xff] %vm458_vm0, %v1243_v25 }
 0x148   :  { %v756_v26 = vpop.f32.mrb[40].mxu0  ;;  %v1004_v27 = vpop.f32.mrb[40].mxu1 }
 0x149   :  { %v757_v28 = vadd.f32 %v2273_v20, %v756_v26  ;;  %v758_v29 = vpop.f32.mrb[41].mxu0  ;;  %v1005_v30 = vadd.f32 %v2273_v20, %v1004_v27  ;;  %v1006_v31 = vpop.f32.mrb[41].mxu1 }
 0x14a   :  { %v759_v32 = vpop.f32.mrb[42].mxu0  ;;  %v1007_v33 = vpop.f32.mrb[42].mxu1 }
 0x14b   :  { %v1182_v34 = vmax.f32 %v757_v28, 0.0  ;;  %v760_v35 = vadd.f32 %v2273_v20, %v759_v32  ;;  %v761_v36 = vpop.f32.mrb[43].mxu0  ;;  %v1244_v37 = vmax.f32 %v1005_v30, 0.0  ;;  %v1008_v38 = vadd.f32 %v2273_v20, %v1007_v33  ;;  %v1009_v39 = vpop.f32.mrb[43].mxu1 }
 0x14d   :  { %1303 = vst.msk [vmem:[%s2961_s3 + $0xa0] sm:$0xff] %vm458_vm0, %v1182_v34  ;;  %v1183_v40 = vmax.f32 %v760_v35, 0.0  ;;  %1365 = vst.msk [vmem:[%s2961_s3 + $0x290] sm:$0xff] %vm458_vm0, %v1244_v37  ;;  %v1245_v41 = vmax.f32 %v1008_v38, 0.0 }
 0x14f   :  { %1304 = vst.msk [vmem:[%s2961_s3 + $0xa8] sm:$0xff] %vm458_vm0, %v1183_v40  ;;  %1366 = vst.msk [vmem:[%s2961_s3 + $0x298] sm:$0xff] %vm458_vm0, %v1245_v41 }
 0x150   :  { %v764_v42 = vpop.f32.mrb[44].mxu0  ;;  %v1012_v43 = vpop.f32.mrb[44].mxu1 }
 0x151   :  { %v765_v44 = vadd.f32 %v2273_v20, %v764_v42  ;;  %v766_v45 = vpop.f32.mrb[45].mxu0  ;;  %v1013_v46 = vadd.f32 %v2273_v20, %v1012_v43  ;;  %v1014_v47 = vpop.f32.mrb[45].mxu1 }
 0x152   :  { %v767_v48 = vpop.f32.mrb[46].mxu0  ;;  %v1015_v49 = vpop.f32.mrb[46].mxu1 }
 0x153   :  { %v1184_v50 = vmax.f32 %v765_v44, 0.0  ;;  %v768_v51 = vadd.f32 %v2273_v20, %v767_v48  ;;  %v769_v52 = vpop.f32.mrb[47].mxu0  ;;  %v1246_v53 = vmax.f32 %v1013_v46, 0.0  ;;  %v1016_v54 = vadd.f32 %v2273_v20, %v1015_v49  ;;  %v1017_v55 = vpop.f32.mrb[47].mxu1 }
 0x155   :  { %1305 = vst.msk [vmem:[%s2961_s3 + $0xb0] sm:$0xff] %vm458_vm0, %v1184_v50  ;;  %v1185_v56 = vmax.f32 %v768_v51, 0.0  ;;  %1367 = vst.msk [vmem:[%s2961_s3 + $0x2a0] sm:$0xff] %vm458_vm0, %v1246_v53  ;;  %v1247_v57 = vmax.f32 %v1016_v54, 0.0 }
 0x157   :  { %1306 = vst.msk [vmem:[%s2961_s3 + $0xb8] sm:$0xff] %vm458_vm0, %v1185_v56  ;;  %1368 = vst.msk [vmem:[%s2961_s3 + $0x2a8] sm:$0xff] %vm458_vm0, %v1247_v57 }
 0x158   :  { %v772_v58 = vpop.f32.mrb[48].mxu0  ;;  %v1020_v59 = vpop.f32.mrb[48].mxu1 }
 0x159   :  { %v773_v60 = vadd.f32 %v2273_v20, %v772_v58  ;;  %v774_v61 = vpop.f32.mrb[49].mxu0  ;;  %v1021_v62 = vadd.f32 %v2273_v20, %v1020_v59  ;;  %v1022_v63 = vpop.f32.mrb[49].mxu1 }
 0x15a   :  { %v775_v0 = vpop.f32.mrb[50].mxu0  ;;  %v1023_v1 = vpop.f32.mrb[50].mxu1 }
 0x15b   :  { %v1186_v2 = vmax.f32 %v773_v60, 0.0  ;;  %v776_v3 = vadd.f32 %v2273_v20, %v775_v0  ;;  %v777_v4 = vpop.f32.mrb[51].mxu0  ;;  %v1248_v5 = vmax.f32 %v1021_v62, 0.0  ;;  %v1024_v6 = vadd.f32 %v2273_v20, %v1023_v1  ;;  %v1025_v7 = vpop.f32.mrb[51].mxu1 }
 0x15d   :  { %1307 = vst.msk [vmem:[%s2961_s3 + $0xc0] sm:$0xff] %vm458_vm0, %v1186_v2  ;;  %v1187_v8 = vmax.f32 %v776_v3, 0.0  ;;  %1369 = vst.msk [vmem:[%s2961_s3 + $0x2b0] sm:$0xff] %vm458_vm0, %v1248_v5  ;;  %v1249_v9 = vmax.f32 %v1024_v6, 0.0 }
 0x15f   :  { %1308 = vst.msk [vmem:[%s2961_s3 + $0xc8] sm:$0xff] %vm458_vm0, %v1187_v8  ;;  %1370 = vst.msk [vmem:[%s2961_s3 + $0x2b8] sm:$0xff] %vm458_vm0, %v1249_v9 }
 0x160   :  { %v780_v10 = vpop.f32.mrb[52].mxu0  ;;  %v1028_v11 = vpop.f32.mrb[52].mxu1 }
 0x161   :  { %v781_v12 = vadd.f32 %v2273_v20, %v780_v10  ;;  %v782_v13 = vpop.f32.mrb[53].mxu0  ;;  %v1029_v14 = vadd.f32 %v2273_v20, %v1028_v11  ;;  %v1030_v15 = vpop.f32.mrb[53].mxu1 }
 0x162   :  { %v783_v16 = vpop.f32.mrb[54].mxu0  ;;  %v1031_v17 = vpop.f32.mrb[54].mxu1 }
 0x163   :  { %v1188_v18 = vmax.f32 %v781_v12, 0.0  ;;  %v784_v19 = vadd.f32 %v2273_v20, %v783_v16  ;;  %v785_v21 = vpop.f32.mrb[55].mxu0  ;;  %v1250_v22 = vmax.f32 %v1029_v14, 0.0  ;;  %v1032_v23 = vadd.f32 %v2273_v20, %v1031_v17  ;;  %v1033_v24 = vpop.f32.mrb[55].mxu1 }
 0x165   :  { %1309 = vst.msk [vmem:[%s2961_s3 + $0xd0] sm:$0xff] %vm458_vm0, %v1188_v18  ;;  %v1189_v25 = vmax.f32 %v784_v19, 0.0  ;;  %1371 = vst.msk [vmem:[%s2961_s3 + $0x2c0] sm:$0xff] %vm458_vm0, %v1250_v22  ;;  %v1251_v26 = vmax.f32 %v1032_v23, 0.0 }
 0x167   :  { %1310 = vst.msk [vmem:[%s2961_s3 + $0xd8] sm:$0xff] %vm458_vm0, %v1189_v25  ;;  %1372 = vst.msk [vmem:[%s2961_s3 + $0x2c8] sm:$0xff] %vm458_vm0, %v1251_v26 }
 0x168   :  { %v788_v27 = vpop.f32.mrb[56].mxu0  ;;  %v1036_v28 = vpop.f32.mrb[56].mxu1 }
 0x169   :  { %v789_v29 = vadd.f32 %v2273_v20, %v788_v27  ;;  %v790_v30 = vpop.f32.mrb[57].mxu0  ;;  %v1037_v31 = vadd.f32 %v2273_v20, %v1036_v28  ;;  %v1038_v32 = vpop.f32.mrb[57].mxu1 }
 0x16a   :  { %v791_v33 = vpop.f32.mrb[58].mxu0  ;;  %v1039_v34 = vpop.f32.mrb[58].mxu1 }
 0x16b   :  { %v1190_v35 = vmax.f32 %v789_v29, 0.0  ;;  %v792_v36 = vadd.f32 %v2273_v20, %v791_v33  ;;  %v793_v37 = vpop.f32.mrb[59].mxu0  ;;  %v1252_v38 = vmax.f32 %v1037_v31, 0.0  ;;  %v1040_v39 = vadd.f32 %v2273_v20, %v1039_v34  ;;  %v1041_v40 = vpop.f32.mrb[59].mxu1 }
 0x16d   :  { %1311 = vst.msk [vmem:[%s2961_s3 + $0xe0] sm:$0xff] %vm458_vm0, %v1190_v35  ;;  %v1191_v41 = vmax.f32 %v792_v36, 0.0  ;;  %1373 = vst.msk [vmem:[%s2961_s3 + $0x2d0] sm:$0xff] %vm458_vm0, %v1252_v38  ;;  %v1253_v42 = vmax.f32 %v1040_v39, 0.0 }
 0x16f   :  { %1312 = vst.msk [vmem:[%s2961_s3 + $0xe8] sm:$0xff] %vm458_vm0, %v1191_v41  ;;  %1374 = vst.msk [vmem:[%s2961_s3 + $0x2d8] sm:$0xff] %vm458_vm0, %v1253_v42 }
 0x170   :  { %v796_v43 = vpop.f32.mrb[60].mxu0  ;;  %v1044_v44 = vpop.f32.mrb[60].mxu1 }
 0x171   :  { %v797_v45 = vadd.f32 %v2273_v20, %v796_v43  ;;  %v798_v46 = vpop.f32.mrb[61].mxu0  ;;  %v1045_v47 = vadd.f32 %v2273_v20, %v1044_v44  ;;  %v1046_v48 = vpop.f32.mrb[61].mxu1 }
 0x172   :  { %v799_v49 = vpop.f32.mrb[62].mxu0  ;;  %v1047_v50 = vpop.f32.mrb[62].mxu1 }
 0x173   :  { %v1192_v51 = vmax.f32 %v797_v45, 0.0  ;;  %v800_v52 = vadd.f32 %v2273_v20, %v799_v49  ;;  %v801_v53 = vpop.f32.mrb[63].mxu0  ;;  %v1254_v54 = vmax.f32 %v1045_v47, 0.0  ;;  %v1048_v55 = vadd.f32 %v2273_v20, %v1047_v50  ;;  %v1049_v56 = vpop.f32.mrb[63].mxu1 }
 0x175   :  { %1313 = vst.msk [vmem:[%s2961_s3 + $0xf0] sm:$0xff] %vm458_vm0, %v1192_v51  ;;  %v1193_v57 = vmax.f32 %v800_v52, 0.0  ;;  %1375 = vst.msk [vmem:[%s2961_s3 + $0x2e0] sm:$0xff] %vm458_vm0, %v1254_v54  ;;  %v1255_v58 = vmax.f32 %v1048_v55, 0.0 }
 0x177   :  { %1314 = vst.msk [vmem:[%s2961_s3 + $0xf8] sm:$0xff] %vm458_vm0, %v1193_v57  ;;  %1376 = vst.msk [vmem:[%s2961_s3 + $0x2e8] sm:$0xff] %vm458_vm0, %v1255_v58 }
 0x178   :  { %v804_v59 = vpop.f32.mrb[64].mxu0  ;;  %v1052_v60 = vpop.f32.mrb[64].mxu1 }
 0x179   :  { %v805_v61 = vadd.f32 %v2273_v20, %v804_v59  ;;  %v806_v62 = vpop.f32.mrb[65].mxu0  ;;  %v1053_v63 = vadd.f32 %v2273_v20, %v1052_v60  ;;  %v1054_v0 = vpop.f32.mrb[65].mxu1 }
 0x17a   :  { %v807_v1 = vpop.f32.mrb[66].mxu0  ;;  %v1055_v2 = vpop.f32.mrb[66].mxu1 }
 0x17b   :  { %v1194_v3 = vmax.f32 %v805_v61, 0.0  ;;  %v808_v4 = vadd.f32 %v2273_v20, %v807_v1  ;;  %v809_v5 = vpop.f32.mrb[67].mxu0  ;;  %v1256_v6 = vmax.f32 %v1053_v63, 0.0  ;;  %v1056_v7 = vadd.f32 %v2273_v20, %v1055_v2  ;;  %v1057_v8 = vpop.f32.mrb[67].mxu1 }
 0x17d   :  { %1315 = vst.msk [vmem:[%s2961_s3 + $0x100] sm:$0xff] %vm458_vm0, %v1194_v3  ;;  %v1195_v9 = vmax.f32 %v808_v4, 0.0  ;;  %1377 = vst.msk [vmem:[%s2961_s3 + $0x2f0] sm:$0xff] %vm458_vm0, %v1256_v6  ;;  %v1257_v10 = vmax.f32 %v1056_v7, 0.0 }
 0x17f   :  { %1316 = vst.msk [vmem:[%s2961_s3 + $0x108] sm:$0xff] %vm458_vm0, %v1195_v9  ;;  %1378 = vst.msk [vmem:[%s2961_s3 + $0x2f8] sm:$0xff] %vm458_vm0, %v1257_v10 }
 0x180   :  { %v812_v11 = vpop.f32.mrb[68].mxu0  ;;  %v1060_v12 = vpop.f32.mrb[68].mxu1 }
 0x181   :  { %v813_v13 = vadd.f32 %v2273_v20, %v812_v11  ;;  %v814_v14 = vpop.f32.mrb[69].mxu0  ;;  %v1061_v15 = vadd.f32 %v2273_v20, %v1060_v12  ;;  %v1062_v16 = vpop.f32.mrb[69].mxu1 }
 0x182   :  { %v815_v17 = vpop.f32.mrb[70].mxu0  ;;  %v1063_v18 = vpop.f32.mrb[70].mxu1 }
 0x183   :  { %v1196_v19 = vmax.f32 %v813_v13, 0.0  ;;  %v816_v21 = vadd.f32 %v2273_v20, %v815_v17  ;;  %v817_v22 = vpop.f32.mrb[71].mxu0  ;;  %v1258_v23 = vmax.f32 %v1061_v15, 0.0  ;;  %v1064_v24 = vadd.f32 %v2273_v20, %v1063_v18  ;;  %v1065_v25 = vpop.f32.mrb[71].mxu1 }
 0x185   :  { %1317 = vst.msk [vmem:[%s2961_s3 + $0x110] sm:$0xff] %vm458_vm0, %v1196_v19  ;;  %v1197_v26 = vmax.f32 %v816_v21, 0.0  ;;  %1379 = vst.msk [vmem:[%s2961_s3 + $0x300] sm:$0xff] %vm458_vm0, %v1258_v23  ;;  %v1259_v27 = vmax.f32 %v1064_v24, 0.0 }
 0x187   :  { %1318 = vst.msk [vmem:[%s2961_s3 + $0x118] sm:$0xff] %vm458_vm0, %v1197_v26  ;;  %1380 = vst.msk [vmem:[%s2961_s3 + $0x308] sm:$0xff] %vm458_vm0, %v1259_v27 }
 0x188   :  { %v820_v28 = vpop.f32.mrb[72].mxu0  ;;  %v1068_v29 = vpop.f32.mrb[72].mxu1 }
 0x189   :  { %v821_v30 = vadd.f32 %v2273_v20, %v820_v28  ;;  %v822_v31 = vpop.f32.mrb[73].mxu0  ;;  %v1069_v32 = vadd.f32 %v2273_v20, %v1068_v29  ;;  %v1070_v33 = vpop.f32.mrb[73].mxu1 }
 0x18a   :  { %v823_v34 = vpop.f32.mrb[74].mxu0  ;;  %v1071_v35 = vpop.f32.mrb[74].mxu1 }
 0x18b   :  { %v1198_v36 = vmax.f32 %v821_v30, 0.0  ;;  %v824_v37 = vadd.f32 %v2273_v20, %v823_v34  ;;  %v825_v38 = vpop.f32.mrb[75].mxu0  ;;  %v1260_v39 = vmax.f32 %v1069_v32, 0.0  ;;  %v1072_v40 = vadd.f32 %v2273_v20, %v1071_v35  ;;  %v1073_v41 = vpop.f32.mrb[75].mxu1 }
 0x18d   :  { %1319 = vst.msk [vmem:[%s2961_s3 + $0x120] sm:$0xff] %vm458_vm0, %v1198_v36  ;;  %v1199_v42 = vmax.f32 %v824_v37, 0.0  ;;  %1381 = vst.msk [vmem:[%s2961_s3 + $0x310] sm:$0xff] %vm458_vm0, %v1260_v39  ;;  %v1261_v43 = vmax.f32 %v1072_v40, 0.0 }
 0x18f   :  { %1320 = vst.msk [vmem:[%s2961_s3 + $0x128] sm:$0xff] %vm458_vm0, %v1199_v42  ;;  %1382 = vst.msk [vmem:[%s2961_s3 + $0x318] sm:$0xff] %vm458_vm0, %v1261_v43 }
 0x190   :  { %v828_v44 = vpop.f32.mrb[76].mxu0  ;;  %v1076_v45 = vpop.f32.mrb[76].mxu1 }
 0x191   :  { %v829_v46 = vadd.f32 %v2273_v20, %v828_v44  ;;  %v830_v47 = vpop.f32.mrb[77].mxu0  ;;  %v1077_v48 = vadd.f32 %v2273_v20, %v1076_v45  ;;  %v1078_v49 = vpop.f32.mrb[77].mxu1 }
 0x192   :  { %v831_v50 = vpop.f32.mrb[78].mxu0  ;;  %v1079_v51 = vpop.f32.mrb[78].mxu1 }
 0x193   :  { %v1200_v52 = vmax.f32 %v829_v46, 0.0  ;;  %v832_v53 = vadd.f32 %v2273_v20, %v831_v50  ;;  %v833_v54 = vpop.f32.mrb[79].mxu0  ;;  %v1262_v55 = vmax.f32 %v1077_v48, 0.0  ;;  %v1080_v56 = vadd.f32 %v2273_v20, %v1079_v51  ;;  %v1081_v57 = vpop.f32.mrb[79].mxu1  ;;  %v2811_v46 = vld [vmem:[%s2960_s2] ss:$0 sm:$0xff] }
 0x195   :  { %1321 = vst.msk [vmem:[%s2961_s3 + $0x130] sm:$0xff] %vm458_vm0, %v1200_v52  ;;  %v1201_v58 = vmax.f32 %v832_v53, 0.0  ;;  %1383 = vst.msk [vmem:[%s2961_s3 + $0x320] sm:$0xff] %vm458_vm0, %v1262_v55  ;;  %v1263_v59 = vmax.f32 %v1080_v56, 0.0 }
 0x197   :  { %1322 = vst.msk [vmem:[%s2961_s3 + $0x138] sm:$0xff] %vm458_vm0, %v1201_v58  ;;  %1384 = vst.msk [vmem:[%s2961_s3 + $0x328] sm:$0xff] %vm458_vm0, %v1263_v59 }
 0x198   :  { %v836_v60 = vpop.f32.mrb[80].mxu0  ;;  %v1084_v61 = vpop.f32.mrb[80].mxu1 }
 0x199   :  { %v837_v62 = vadd.f32 %v2273_v20, %v836_v60  ;;  %v838_v63 = vpop.f32.mrb[81].mxu0  ;;  %v1085_v0 = vadd.f32 %v2273_v20, %v1084_v61  ;;  %v1086_v1 = vpop.f32.mrb[81].mxu1 }
 0x19a   :  { %v839_v2 = vpop.f32.mrb[82].mxu0  ;;  %v1087_v3 = vpop.f32.mrb[82].mxu1 }
 0x19b   :  { %v1202_v4 = vmax.f32 %v837_v62, 0.0  ;;  %v840_v5 = vadd.f32 %v2273_v20, %v839_v2  ;;  %v841_v6 = vpop.f32.mrb[83].mxu0  ;;  %v1264_v7 = vmax.f32 %v1085_v0, 0.0  ;;  %v1088_v8 = vadd.f32 %v2273_v20, %v1087_v3  ;;  %v1089_v9 = vpop.f32.mrb[83].mxu1 }
 0x19d   :  { %1323 = vst.msk [vmem:[%s2961_s3 + $0x140] sm:$0xff] %vm458_vm0, %v1202_v4  ;;  %v1203_v10 = vmax.f32 %v840_v5, 0.0  ;;  %1385 = vst.msk [vmem:[%s2961_s3 + $0x330] sm:$0xff] %vm458_vm0, %v1264_v7  ;;  %v1265_v11 = vmax.f32 %v1088_v8, 0.0 }
 0x19f   :  { %1324 = vst.msk [vmem:[%s2961_s3 + $0x148] sm:$0xff] %vm458_vm0, %v1203_v10  ;;  %1386 = vst.msk [vmem:[%s2961_s3 + $0x338] sm:$0xff] %vm458_vm0, %v1265_v11 }
 0x1a0   :  { %v844_v12 = vpop.f32.mrb[84].mxu0  ;;  %v1092_v13 = vpop.f32.mrb[84].mxu1 }
 0x1a1   :  { %v845_v14 = vadd.f32 %v2273_v20, %v844_v12  ;;  %v846_v15 = vpop.f32.mrb[85].mxu0  ;;  %v1093_v16 = vadd.f32 %v2273_v20, %v1092_v13  ;;  %v1094_v17 = vpop.f32.mrb[85].mxu1 }
 0x1a2   :  { %v847_v18 = vpop.f32.mrb[86].mxu0  ;;  %v1095_v19 = vpop.f32.mrb[86].mxu1 }
 0x1a3   :  { %v1204_v21 = vmax.f32 %v845_v14, 0.0  ;;  %v848_v22 = vadd.f32 %v2273_v20, %v847_v18  ;;  %v849_v23 = vpop.f32.mrb[87].mxu0  ;;  %v1266_v24 = vmax.f32 %v1093_v16, 0.0  ;;  %v1096_v25 = vadd.f32 %v2273_v20, %v1095_v19  ;;  %v1097_v26 = vpop.f32.mrb[87].mxu1 }
 0x1a5   :  { %1325 = vst.msk [vmem:[%s2961_s3 + $0x150] sm:$0xff] %vm458_vm0, %v1204_v21  ;;  %v1205_v27 = vmax.f32 %v848_v22, 0.0  ;;  %1387 = vst.msk [vmem:[%s2961_s3 + $0x340] sm:$0xff] %vm458_vm0, %v1266_v24  ;;  %v1267_v28 = vmax.f32 %v1096_v25, 0.0 }
 0x1a7   :  { %1326 = vst.msk [vmem:[%s2961_s3 + $0x158] sm:$0xff] %vm458_vm0, %v1205_v27  ;;  %1388 = vst.msk [vmem:[%s2961_s3 + $0x348] sm:$0xff] %vm458_vm0, %v1267_v28 }
 0x1a8   :  { %v852_v29 = vpop.f32.mrb[88].mxu0  ;;  %v1100_v30 = vpop.f32.mrb[88].mxu1 }
 0x1a9   :  { %v853_v31 = vadd.f32 %v2273_v20, %v852_v29  ;;  %v854_v32 = vpop.f32.mrb[89].mxu0  ;;  %v1101_v33 = vadd.f32 %v2273_v20, %v1100_v30  ;;  %v1102_v34 = vpop.f32.mrb[89].mxu1 }
 0x1aa   :  { %v855_v35 = vpop.f32.mrb[90].mxu0  ;;  %v1103_v36 = vpop.f32.mrb[90].mxu1 }
 0x1ab   :  { %v1206_v37 = vmax.f32 %v853_v31, 0.0  ;;  %v856_v38 = vadd.f32 %v2273_v20, %v855_v35  ;;  %v857_v39 = vpop.f32.mrb[91].mxu0  ;;  %v1268_v40 = vmax.f32 %v1101_v33, 0.0  ;;  %v1104_v41 = vadd.f32 %v2273_v20, %v1103_v36  ;;  %v1105_v42 = vpop.f32.mrb[91].mxu1 }
 0x1ad   :  { %1327 = vst.msk [vmem:[%s2961_s3 + $0x160] sm:$0xff] %vm458_vm0, %v1206_v37  ;;  %v1207_v43 = vmax.f32 %v856_v38, 0.0  ;;  %1389 = vst.msk [vmem:[%s2961_s3 + $0x350] sm:$0xff] %vm458_vm0, %v1268_v40  ;;  %v1269_v44 = vmax.f32 %v1104_v41, 0.0 }
 0x1af   :  { %1328 = vst.msk [vmem:[%s2961_s3 + $0x168] sm:$0xff] %vm458_vm0, %v1207_v43  ;;  %1390 = vst.msk [vmem:[%s2961_s3 + $0x358] sm:$0xff] %vm458_vm0, %v1269_v44 }
 0x1b0   :  { %v860_v20 = vpop.f32.mrb[92].mxu0  ;;  %v1108_v45 = vpop.f32.mrb[92].mxu1 }
 0x1b1   :  { %v861_v47 = vadd.f32 %v2811_v46, %v860_v20  ;;  %v862_v48 = vpop.f32.mrb[93].mxu0  ;;  %v1109_v49 = vadd.f32 %v2811_v46, %v1108_v45  ;;  %v1110_v50 = vpop.f32.mrb[93].mxu1 }
 0x1b2   :  { %v863_v51 = vpop.f32.mrb[94].mxu0  ;;  %v1111_v52 = vpop.f32.mrb[94].mxu1 }
 0x1b3   :  { %v1208_v53 = vmax.f32 %v861_v47, 0.0  ;;  %v864_v54 = vadd.f32 %v2811_v46, %v863_v51  ;;  %v865_v55 = vpop.f32.mrb[95].mxu0  ;;  %v1270_v56 = vmax.f32 %v1109_v49, 0.0  ;;  %v1112_v57 = vadd.f32 %v2811_v46, %v1111_v52  ;;  %v1113_v58 = vpop.f32.mrb[95].mxu1 }
 0x1b5   :  { %1329 = vst.msk [vmem:[%s2961_s3 + $0x170] sm:$0xff] %vm458_vm0, %v1208_v53  ;;  %v1209_v59 = vmax.f32 %v864_v54, 0.0  ;;  %1391 = vst.msk [vmem:[%s2961_s3 + $0x360] sm:$0xff] %vm458_vm0, %v1270_v56  ;;  %v1271_v60 = vmax.f32 %v1112_v57, 0.0 }
 0x1b7   :  { %1330 = vst.msk [vmem:[%s2961_s3 + $0x178] sm:$0xff] %vm458_vm0, %v1209_v59  ;;  %1392 = vst.msk [vmem:[%s2961_s3 + $0x368] sm:$0xff] %vm458_vm0, %v1271_v60 }
 0x1b8   :  { %v868_v61 = vpop.f32.mrb[96].mxu0  ;;  %v1116_v62 = vpop.f32.mrb[96].mxu1 }
 0x1b9   :  { %v869_v63 = vadd.f32 %v2811_v46, %v868_v61  ;;  %v870_v0 = vpop.f32.mrb[97].mxu0  ;;  %v1117_v1 = vadd.f32 %v2811_v46, %v1116_v62  ;;  %v1118_v2 = vpop.f32.mrb[97].mxu1 }
 0x1ba   :  { %v871_v3 = vpop.f32.mrb[98].mxu0  ;;  %v1119_v4 = vpop.f32.mrb[98].mxu1 }
 0x1bb   :  { %v1210_v5 = vmax.f32 %v869_v63, 0.0  ;;  %v872_v6 = vadd.f32 %v2811_v46, %v871_v3  ;;  %v873_v7 = vpop.f32.mrb[99].mxu0  ;;  %v1272_v8 = vmax.f32 %v1117_v1, 0.0  ;;  %v1120_v9 = vadd.f32 %v2811_v46, %v1119_v4  ;;  %v1121_v10 = vpop.f32.mrb[99].mxu1 }
 0x1bd   :  { %1331 = vst.msk [vmem:[%s2961_s3 + $0x180] sm:$0xff] %vm458_vm0, %v1210_v5  ;;  %v1211_v11 = vmax.f32 %v872_v6, 0.0  ;;  %1393 = vst.msk [vmem:[%s2961_s3 + $0x370] sm:$0xff] %vm458_vm0, %v1272_v8  ;;  %v1273_v12 = vmax.f32 %v1120_v9, 0.0 }
 0x1bf   :  { %1332 = vst.msk [vmem:[%s2961_s3 + $0x188] sm:$0xff] %vm458_vm0, %v1211_v11  ;;  %1394 = vst.msk [vmem:[%s2961_s3 + $0x378] sm:$0xff] %vm458_vm0, %v1273_v12 }
 0x1c0   :  { %v876_v13 = vpop.f32.mrb[100].mxu0  ;;  %v1124_v14 = vpop.f32.mrb[100].mxu1 }
 0x1c1   :  { %v877_v15 = vadd.f32 %v2811_v46, %v876_v13  ;;  %v878_v16 = vpop.f32.mrb[101].mxu0  ;;  %v1125_v17 = vadd.f32 %v2811_v46, %v1124_v14  ;;  %v1126_v18 = vpop.f32.mrb[101].mxu1 }
 0x1c2   :  { %v879_v19 = vpop.f32.mrb[102].mxu0  ;;  %v1127_v21 = vpop.f32.mrb[102].mxu1 }
 0x1c3   :  { %v1212_v22 = vmax.f32 %v877_v15, 0.0  ;;  %v880_v23 = vadd.f32 %v2811_v46, %v879_v19  ;;  %v881_v24 = vpop.f32.mrb[103].mxu0  ;;  %v1274_v25 = vmax.f32 %v1125_v17, 0.0  ;;  %v1128_v26 = vadd.f32 %v2811_v46, %v1127_v21  ;;  %v1129_v27 = vpop.f32.mrb[103].mxu1 }
 0x1c5   :  { %1333 = vst.msk [vmem:[%s2961_s3 + $0x190] sm:$0xff] %vm458_vm0, %v1212_v22  ;;  %v1213_v28 = vmax.f32 %v880_v23, 0.0  ;;  %1395 = vst.msk [vmem:[%s2961_s3 + $0x380] sm:$0xff] %vm458_vm0, %v1274_v25  ;;  %v1275_v29 = vmax.f32 %v1128_v26, 0.0 }
 0x1c7   :  { %1334 = vst.msk [vmem:[%s2961_s3 + $0x198] sm:$0xff] %vm458_vm0, %v1213_v28  ;;  %1396 = vst.msk [vmem:[%s2961_s3 + $0x388] sm:$0xff] %vm458_vm0, %v1275_v29 }
 0x1c8   :  { %v884_v30 = vpop.f32.mrb[104].mxu0  ;;  %v1132_v31 = vpop.f32.mrb[104].mxu1 }
 0x1c9   :  { %v885_v32 = vadd.f32 %v2811_v46, %v884_v30  ;;  %v886_v33 = vpop.f32.mrb[105].mxu0  ;;  %v1133_v34 = vadd.f32 %v2811_v46, %v1132_v31  ;;  %v1134_v35 = vpop.f32.mrb[105].mxu1 }
 0x1ca   :  { %v887_v36 = vpop.f32.mrb[106].mxu0  ;;  %v1135_v37 = vpop.f32.mrb[106].mxu1 }
 0x1cb   :  { %v1214_v38 = vmax.f32 %v885_v32, 0.0  ;;  %v888_v39 = vadd.f32 %v2811_v46, %v887_v36  ;;  %v889_v40 = vpop.f32.mrb[107].mxu0  ;;  %v1276_v41 = vmax.f32 %v1133_v34, 0.0  ;;  %v1136_v42 = vadd.f32 %v2811_v46, %v1135_v37  ;;  %v1137_v43 = vpop.f32.mrb[107].mxu1 }
 0x1cd   :  { %1335 = vst.msk [vmem:[%s2961_s3 + $0x1a0] sm:$0xff] %vm458_vm0, %v1214_v38  ;;  %v1215_v44 = vmax.f32 %v888_v39, 0.0  ;;  %1397 = vst.msk [vmem:[%s2961_s3 + $0x390] sm:$0xff] %vm458_vm0, %v1276_v41  ;;  %v1277_v20 = vmax.f32 %v1136_v42, 0.0 }
 0x1cf   :  { %1336 = vst.msk [vmem:[%s2961_s3 + $0x1a8] sm:$0xff] %vm458_vm0, %v1215_v44  ;;  %1398 = vst.msk [vmem:[%s2961_s3 + $0x398] sm:$0xff] %vm458_vm0, %v1277_v20 }
 0x1d0   :  { %v892_v45 = vpop.f32.mrb[108].mxu0  ;;  %v1140_v47 = vpop.f32.mrb[108].mxu1 }
 0x1d1   :  { %v893_v48 = vadd.f32 %v2811_v46, %v892_v45  ;;  %v894_v49 = vpop.f32.mrb[109].mxu0  ;;  %v1141_v50 = vadd.f32 %v2811_v46, %v1140_v47  ;;  %v1142_v51 = vpop.f32.mrb[109].mxu1 }
 0x1d2   :  { %v895_v52 = vpop.f32.mrb[110].mxu0  ;;  %v1143_v53 = vpop.f32.mrb[110].mxu1 }
 0x1d3   :  { %v1216_v54 = vmax.f32 %v893_v48, 0.0  ;;  %v896_v55 = vadd.f32 %v2811_v46, %v895_v52  ;;  %v897_v56 = vpop.f32.mrb[111].mxu0  ;;  %v1278_v57 = vmax.f32 %v1141_v50, 0.0  ;;  %v1144_v58 = vadd.f32 %v2811_v46, %v1143_v53  ;;  %v1145_v59 = vpop.f32.mrb[111].mxu1 }
 0x1d5   :  { %1337 = vst.msk [vmem:[%s2961_s3 + $0x1b0] sm:$0xff] %vm458_vm0, %v1216_v54  ;;  %v1217_v60 = vmax.f32 %v896_v55, 0.0  ;;  %1399 = vst.msk [vmem:[%s2961_s3 + $0x3a0] sm:$0xff] %vm458_vm0, %v1278_v57  ;;  %v1279_v61 = vmax.f32 %v1144_v58, 0.0 }
 0x1d7   :  { %1338 = vst.msk [vmem:[%s2961_s3 + $0x1b8] sm:$0xff] %vm458_vm0, %v1217_v60  ;;  %1400 = vst.msk [vmem:[%s2961_s3 + $0x3a8] sm:$0xff] %vm458_vm0, %v1279_v61 }
 0x1d8   :  { %v900_v62 = vpop.f32.mrb[112].mxu0  ;;  %v1148_v63 = vpop.f32.mrb[112].mxu1 }
 0x1d9   :  { %v901_v0 = vadd.f32 %v2811_v46, %v900_v62  ;;  %v902_v1 = vpop.f32.mrb[113].mxu0  ;;  %v1149_v2 = vadd.f32 %v2811_v46, %v1148_v63  ;;  %v1150_v3 = vpop.f32.mrb[113].mxu1 }
 0x1da   :  { %v903_v4 = vpop.f32.mrb[114].mxu0  ;;  %v1151_v5 = vpop.f32.mrb[114].mxu1 }
 0x1db   :  { %v1218_v6 = vmax.f32 %v901_v0, 0.0  ;;  %v904_v7 = vadd.f32 %v2811_v46, %v903_v4  ;;  %v905_v8 = vpop.f32.mrb[115].mxu0  ;;  %v1280_v9 = vmax.f32 %v1149_v2, 0.0  ;;  %v1152_v10 = vadd.f32 %v2811_v46, %v1151_v5  ;;  %v1153_v11 = vpop.f32.mrb[115].mxu1 }
 0x1dd   :  { %1339 = vst.msk [vmem:[%s2961_s3 + $0x1c0] sm:$0xff] %vm458_vm0, %v1218_v6  ;;  %v1219_v12 = vmax.f32 %v904_v7, 0.0  ;;  %1401 = vst.msk [vmem:[%s2961_s3 + $0x3b0] sm:$0xff] %vm458_vm0, %v1280_v9  ;;  %v1281_v13 = vmax.f32 %v1152_v10, 0.0 }
 0x1df   :  { %1340 = vst.msk [vmem:[%s2961_s3 + $0x1c8] sm:$0xff] %vm458_vm0, %v1219_v12  ;;  %1402 = vst.msk [vmem:[%s2961_s3 + $0x3b8] sm:$0xff] %vm458_vm0, %v1281_v13 }
 0x1e0   :  { %v908_v14 = vpop.f32.mrb[116].mxu0  ;;  %v1156_v15 = vpop.f32.mrb[116].mxu1 }
 0x1e1   :  { %v909_v16 = vadd.f32 %v2811_v46, %v908_v14  ;;  %v910_v17 = vpop.f32.mrb[117].mxu0  ;;  %v1157_v18 = vadd.f32 %v2811_v46, %v1156_v15  ;;  %v1158_v19 = vpop.f32.mrb[117].mxu1 }
 0x1e2   :  { %v911_v21 = vpop.f32.mrb[118].mxu0  ;;  %v1159_v22 = vpop.f32.mrb[118].mxu1 }
 0x1e3   :  { %v1220_v23 = vmax.f32 %v909_v16, 0.0  ;;  %v912_v24 = vadd.f32 %v2811_v46, %v911_v21  ;;  %v913_v25 = vpop.f32.mrb[119].mxu0  ;;  %v1282_v26 = vmax.f32 %v1157_v18, 0.0  ;;  %v1160_v27 = vpop.f32.mrb[119].mxu1 }
 0x1e5   :  { %1341 = vst.msk [vmem:[%s2961_s3 + $0x1d0] sm:$0xff] %vm458_vm0, %v1220_v23  ;;  %v1221_v28 = vmax.f32 %v912_v24, 0.0  ;;  %1403 = vst.msk [vmem:[%s2961_s3 + $0x3c0] sm:$0xff] %vm458_vm0, %v1282_v26 }
 0x1e7   :  { %1342 = vst.msk [vmem:[%s2961_s3 + $0x1d8] sm:$0xff] %vm458_vm0, %v1221_v28 }
 0x1e8   :  { %v916_v29 = vpop.f32.mrb[120].mxu0 }
 0x1e9   :  { %v917_v30 = vadd.f32 %v2811_v46, %v916_v29  ;;  %v918_v31 = vpop.f32.mrb[121].mxu0 }
 0x1ea   :  { %v919_v32 = vpop.f32.mrb[122].mxu0 }
 0x1eb   :  { %v1222_v33 = vmax.f32 %v917_v30, 0.0  ;;  %v920_v34 = vadd.f32 %v2811_v46, %v919_v32  ;;  %v921_v35 = vpop.f32.mrb[123].mxu0 }
 0x1ed   :  { %1343 = vst.msk [vmem:[%s2961_s3 + $0x1e0] sm:$0xff] %vm458_vm0, %v1222_v33  ;;  %v1223_v36 = vmax.f32 %v920_v34, 0.0 }
 0x1ef   :  { %1344 = vst.msk [vmem:[%s2961_s3 + $0x1e8] sm:$0xff] %vm458_vm0, %v1223_v36 }

// kernel: conv_ae_forward.11
= control target key start
LH: loop header
LB: loop body
LE: loop exit
PB: predicated region body
PF: predicated region fallthrough
CT: control target
= control target key end

     0   :  { %s5505_s12 = smov 0   ;;  %s7874_s0 = inlined_call_operand.vmem [shape: f32[8192,64], index: 0, kind: input, shape index: {}]   ;;  %s7875_s1 = inlined_call_operand.vmem [shape: bf16[64,3], index: 1, kind: input, shape index: {}]   ;;  %s7876_s2 = inlined_call_operand.vmem [shape: f32[1,3], index: 2, kind: input, shape index: {}]   ;;  %s7877_s3 = inlined_call_operand.vmem [shape: f32[8192,3], index: 3, kind: output, shape index: {}]  }
   0x1 LB: > { %s4401_s13 = sadd.s32 4294967295, %s5483_s12   ;;  %p4405_p0 = scmp.ge.s32.totalorder %s5483_s12, 1  ;;  %s5483_s12 = sphi %s5505_s12, %s13_s12  }
   0x2   : > { %p138_p1 = scmp.lt.s32.totalorder %s5483_s12, 3 }
   0x4   : > { %p139_p2 = pnand %p4405_p0, %p138_p1 }
   0x5   : > { %v5469_v0 = vld [vmem:[%s7875_s1] sm:$0xff] (!%p139_p2)   ;;  %s4406_s16 = sshll.u32 (!%p139_p2), %s4401_s13, 9  ;;  %v5470_v1 = vld [vmem:[%s7875_s1 + $0x8] sm:$0xff] (!%p139_p2)   ;;  %v5471_v2 = vld [vmem:[%s7875_s1 + $0x10] sm:$0xff] (!%p139_p2)   ;;  %vm982_vm0 = vcmask (!%p139_p2), 523264   ;;  %vm3832_vm1 = vcmask (!%p139_p2), 23552  }
   0x6   : > { %142 = sbr.rel (%p139_p2) target bundleno = 745 (0x2e9), region = 32  ;;  %p163_p3 = scmp.lt.s32.totalorder (!%p139_p2), %s4406_s16, 1023  ;;  %4933 = vmatprep.subr.bf16.mxu0 (!%p139_p2), %v5469_v0  ;;  %5453 = vmatprep.subr.bf16.mxu1 (!%p139_p2), %v5469_v0  ;;  %v5472_v6 = vld [vmem:[%s7875_s1 + $0x18] sm:$0xff] (!%p139_p2)  }
   0x7   : > { %4934 = vmatpush3.bf16.msra.mxu0 (!%p139_p2), %v5469_v0  ;;  %5457 = vmatpush3.bf16.msra.mxu1 (!%p139_p2), %v5469_v0 }
   0x8   : > { %4935 = vmatprep.subr.bf16.mxu0 (!%p139_p2), %v5470_v1  ;;  %5454 = vmatprep.subr.bf16.mxu1 (!%p139_p2), %v5470_v1 }
   0xb   : > { %4936 = vmatpush3.bf16.msra.mxu0 (!%p139_p2), %v5470_v1  ;;  %5458 = vmatpush3.bf16.msra.mxu1 (!%p139_p2), %v5470_v1 }
   0xc   : > { %4937 = vmatprep.subr.bf16.mxu0 (!%p139_p2), %v5471_v2  ;;  %5455 = vmatprep.subr.bf16.mxu1 (!%p139_p2), %v5471_v2 }
   0xd   : > { %s7879_s16 = smov (!%p163_p3, %s4406_s16), 1023 }
   0xe   : > { %s4407_s21 = sshll.u32 %s7879_s16, 3 }
   0xf   : > { %s5530_s24 = scalar_lea.vmem %s7874_s0, %s4407_s21  ;;  %4938 = vmatpush3.bf16.msra.mxu0 %v5471_v2  ;;  %5459 = vmatpush3.bf16.msra.mxu1 %v5471_v2  ;;  %s5883_s4 = scalar_lea.vmem %s7877_s3, %s4407_s21 }
  0x10   : > { %v175_v3 = vld [vmem:[%s5530_s24] sm:$0xff]  ;;  %v176_v4 = vld [vmem:[%s5530_s24 + $0x8] sm:$0xff]  ;;  %v177_v10 = vld [vmem:[%s5530_s24 + $0x10] sm:$0xff]  ;;  %4939 = vmatprep.subr.bf16.mxu0 %v5472_v6  ;;  %5456 = vmatprep.subr.bf16.mxu1 %v5472_v6 }
  0x11   : > { %v431_v5 = vld [vmem:[%s5530_s24 + $0x800] sm:$0xff]  ;;  %v687_v7 = vpack.c.bf16 %v176_v4, %v175_v3  ;;  %v432_v8 = vld [vmem:[%s5530_s24 + $0x808] sm:$0xff]  ;;  %v178_v11 = vld [vmem:[%s5530_s24 + $0x18] sm:$0xff] }
  0x12   : > { %v815_v9 = vpack.c.bf16 %v432_v8, %v431_v5  ;;  %v433_v12 = vld [vmem:[%s5530_s24 + $0x810] sm:$0xff]  ;;  %v434_v13 = vld [vmem:[%s5530_s24 + $0x818] sm:$0xff]  ;;  %v179_v14 = vld [vmem:[%s5530_s24 + $0x20] sm:$0xff]  ;;  %v688_v18 = vpack.c.bf16 %v178_v11, %v177_v10 }
  0x13   : > { %4941 = vmatprep.mubr.msk.bf16.mxu0 %vm982_vm0, %v687_v7  ;;  %v180_v15 = vld [vmem:[%s5530_s24 + $0x28] sm:$0xff]  ;;  %v435_v16 = vld [vmem:[%s5530_s24 + $0x820] sm:$0xff]  ;;  %v816_v19 = vpack.c.bf16 %v434_v13, %v433_v12  ;;  %4940 = vmatpush3.bf16.msra.mxu0 %v5472_v6  ;;  %v181_v22 = vld [vmem:[%s5530_s24 + $0x30] sm:$0xff] }
  0x14   : > { %v436_v17 = vld [vmem:[%s5530_s24 + $0x828] sm:$0xff]  ;;  %5197 = vmatprep.mubr.msk.bf16.mxu1 %vm982_vm0, %v815_v9  ;;  %5460 = vmatpush3.bf16.msra.mxu1 %v5472_v6  ;;  %v689_v20 = vpack.c.bf16 %v180_v15, %v179_v14  ;;  %v182_v23 = vld [vmem:[%s5530_s24 + $0x38] sm:$0xff]  ;;  %v437_v24 = vld [vmem:[%s5530_s24 + $0x830] sm:$0xff] }
  0x15   : > { %v817_v21 = vpack.c.bf16 %v436_v17, %v435_v16  ;;  %v438_v25 = vld [vmem:[%s5530_s24 + $0x838] sm:$0xff]  ;;  %v183_v26 = vld [vmem:[%s5530_s24 + $0x40] sm:$0xff]  ;;  %v184_v27 = vld [vmem:[%s5530_s24 + $0x48] sm:$0xff]  ;;  %v690_v30 = vpack.c.bf16 %v182_v23, %v181_v22 }
  0x16   : > { %4942 = vmatmul.mubr.msk.bf16.vlgmr.msra.gmra.mrb[0].mxu0 %vm982_vm0, %v688_v18  ;;  %v439_v28 = vld [vmem:[%s5530_s24 + $0x840] sm:$0xff]  ;;  %v440_v29 = vld [vmem:[%s5530_s24 + $0x848] sm:$0xff]  ;;  %v818_v31 = vpack.c.bf16 %v438_v25, %v437_v24  ;;  %v691_v32 = vpack.c.bf16 %v184_v27, %v183_v26  ;;  %v185_v34 = vld [vmem:[%s5530_s24 + $0x50] sm:$0xff] }
  0x17   : > { %5198 = vmatmul.mubr.msk.bf16.vlgmr.msra.gmra.mrb[0].mxu1 %vm982_vm0, %v816_v19  ;;  %4945 = vmatprep.mubr.msk.bf16.mxu0 %vm982_vm0, %v689_v20  ;;  %v819_v33 = vpack.c.bf16 %v440_v29, %v439_v28  ;;  %v186_v35 = vld [vmem:[%s5530_s24 + $0x58] sm:$0xff]  ;;  %v441_v36 = vld [vmem:[%s5530_s24 + $0x850] sm:$0xff]  ;;  %v187_v38 = vld [vmem:[%s5530_s24 + $0x60] sm:$0xff] }
  0x18   : > { %5201 = vmatprep.mubr.msk.bf16.mxu1 %vm982_vm0, %v817_v21  ;;  %v442_v37 = vld [vmem:[%s5530_s24 + $0x858] sm:$0xff]  ;;  %v188_v39 = vld [vmem:[%s5530_s24 + $0x68] sm:$0xff]  ;;  %v443_v40 = vld [vmem:[%s5530_s24 + $0x860] sm:$0xff]  ;;  %v692_v42 = vpack.c.bf16 %v186_v35, %v185_v34 }
  0x19   : > { %v444_v41 = vld [vmem:[%s5530_s24 + $0x868] sm:$0xff]  ;;  %v820_v43 = vpack.c.bf16 %v442_v37, %v441_v36  ;;  %v693_v44 = vpack.c.bf16 %v188_v39, %v187_v38  ;;  %v189_v46 = vld [vmem:[%s5530_s24 + $0x70] sm:$0xff]  ;;  %v190_v47 = vld [vmem:[%s5530_s24 + $0x78] sm:$0xff] }
  0x1a   : > { %v821_v45 = vpack.c.bf16 %v444_v41, %v443_v40  ;;  %v445_v48 = vld [vmem:[%s5530_s24 + $0x870] sm:$0xff]  ;;  %v446_v49 = vld [vmem:[%s5530_s24 + $0x878] sm:$0xff]  ;;  %v191_v50 = vld [vmem:[%s5530_s24 + $0x80] sm:$0xff]  ;;  %v694_v54 = vpack.c.bf16 %v190_v47, %v189_v46 }
  0x1b   : > { %v192_v51 = vld [vmem:[%s5530_s24 + $0x88] sm:$0xff]  ;;  %v447_v52 = vld [vmem:[%s5530_s24 + $0x880] sm:$0xff]  ;;  %v822_v55 = vpack.c.bf16 %v446_v49, %v445_v48  ;;  %v193_v58 = vld [vmem:[%s5530_s24 + $0x90] sm:$0xff] }
  0x1c   : > { %v448_v53 = vld [vmem:[%s5530_s24 + $0x888] sm:$0xff]  ;;  %v695_v56 = vpack.c.bf16 %v192_v51, %v191_v50  ;;  %v194_v59 = vld [vmem:[%s5530_s24 + $0x98] sm:$0xff]  ;;  %v449_v60 = vld [vmem:[%s5530_s24 + $0x890] sm:$0xff] }
  0x1d   : > { %v823_v57 = vpack.c.bf16 %v448_v53, %v447_v52  ;;  %v450_v61 = vld [vmem:[%s5530_s24 + $0x898] sm:$0xff]  ;;  %v195_v62 = vld [vmem:[%s5530_s24 + $0xa0] sm:$0xff]  ;;  %v196_v63 = vld [vmem:[%s5530_s24 + $0xa8] sm:$0xff]  ;;  %v696_v2 = vpack.c.bf16 %v194_v59, %v193_v58 }
  0x1e   : > { %4946 = vmatmul.mubr.msk.bf16.gmra.mrb[4].mxu0 %vm982_vm0, %v690_v30  ;;  %v451_v0 = vld [vmem:[%s5530_s24 + $0x8a0] sm:$0xff]  ;;  %v452_v1 = vld [vmem:[%s5530_s24 + $0x8a8] sm:$0xff]  ;;  %v824_v3 = vpack.c.bf16 %v450_v61, %v449_v60  ;;  %v697_v4 = vpack.c.bf16 %v196_v63, %v195_v62  ;;  %v197_v6 = vld [vmem:[%s5530_s24 + $0xb0] sm:$0xff] }
  0x1f   : > { %5202 = vmatmul.mubr.msk.bf16.gmra.mrb[4].mxu1 %vm982_vm0, %v818_v31  ;;  %4949 = vmatprep.mubr.msk.bf16.mxu0 %vm982_vm0, %v691_v32  ;;  %v825_v5 = vpack.c.bf16 %v452_v1, %v451_v0  ;;  %v198_v7 = vld [vmem:[%s5530_s24 + $0xb8] sm:$0xff]  ;;  %v453_v8 = vld [vmem:[%s5530_s24 + $0x8b0] sm:$0xff]  ;;  %v199_v10 = vld [vmem:[%s5530_s24 + $0xc0] sm:$0xff] }
  0x20   : > { %5205 = vmatprep.mubr.msk.bf16.mxu1 %vm982_vm0, %v819_v33  ;;  %v454_v9 = vld [vmem:[%s5530_s24 + $0x8b8] sm:$0xff]  ;;  %v200_v11 = vld [vmem:[%s5530_s24 + $0xc8] sm:$0xff]  ;;  %v455_v12 = vld [vmem:[%s5530_s24 + $0x8c0] sm:$0xff]  ;;  %v698_v14 = vpack.c.bf16 %v198_v7, %v197_v6 }
  0x21   : > { %v456_v13 = vld [vmem:[%s5530_s24 + $0x8c8] sm:$0xff]  ;;  %v826_v15 = vpack.c.bf16 %v454_v9, %v453_v8  ;;  %v699_v16 = vpack.c.bf16 %v200_v11, %v199_v10  ;;  %v201_v18 = vld [vmem:[%s5530_s24 + $0xd0] sm:$0xff]  ;;  %v202_v19 = vld [vmem:[%s5530_s24 + $0xd8] sm:$0xff] }
  0x22   : > { %v827_v17 = vpack.c.bf16 %v456_v13, %v455_v12  ;;  %v457_v20 = vld [vmem:[%s5530_s24 + $0x8d0] sm:$0xff]  ;;  %v458_v21 = vld [vmem:[%s5530_s24 + $0x8d8] sm:$0xff]  ;;  %v203_v22 = vld [vmem:[%s5530_s24 + $0xe0] sm:$0xff]  ;;  %v700_v26 = vpack.c.bf16 %v202_v19, %v201_v18 }
  0x23   : > { %v204_v23 = vld [vmem:[%s5530_s24 + $0xe8] sm:$0xff]  ;;  %v459_v24 = vld [vmem:[%s5530_s24 + $0x8e0] sm:$0xff]  ;;  %v828_v27 = vpack.c.bf16 %v458_v21, %v457_v20  ;;  %v205_v30 = vld [vmem:[%s5530_s24 + $0xf0] sm:$0xff] }
  0x24   : > { %v460_v25 = vld [vmem:[%s5530_s24 + $0x8e8] sm:$0xff]  ;;  %v701_v28 = vpack.c.bf16 %v204_v23, %v203_v22  ;;  %v206_v31 = vld [vmem:[%s5530_s24 + $0xf8] sm:$0xff]  ;;  %v461_v32 = vld [vmem:[%s5530_s24 + $0x8f0] sm:$0xff] }
  0x25   : > { %v829_v29 = vpack.c.bf16 %v460_v25, %v459_v24  ;;  %v462_v33 = vld [vmem:[%s5530_s24 + $0x8f8] sm:$0xff]  ;;  %v207_v34 = vld [vmem:[%s5530_s24 + $0x100] sm:$0xff]  ;;  %v208_v35 = vld [vmem:[%s5530_s24 + $0x108] sm:$0xff]  ;;  %v702_v38 = vpack.c.bf16 %v206_v31, %v205_v30 }
  0x26   : > { %4950 = vmatmul.mubr.msk.bf16.gmra.mrb[8].mxu0 %vm982_vm0, %v692_v42  ;;  %v463_v36 = vld [vmem:[%s5530_s24 + $0x900] sm:$0xff]  ;;  %v464_v37 = vld [vmem:[%s5530_s24 + $0x908] sm:$0xff]  ;;  %v830_v39 = vpack.c.bf16 %v462_v33, %v461_v32  ;;  %v703_v40 = vpack.c.bf16 %v208_v35, %v207_v34  ;;  %v209_v42 = vld [vmem:[%s5530_s24 + $0x110] sm:$0xff] }
  0x27   : > { %5206 = vmatmul.mubr.msk.bf16.gmra.mrb[8].mxu1 %vm982_vm0, %v820_v43  ;;  %4953 = vmatprep.mubr.msk.bf16.mxu0 %vm982_vm0, %v693_v44  ;;  %v831_v41 = vpack.c.bf16 %v464_v37, %v463_v36  ;;  %v210_v43 = vld [vmem:[%s5530_s24 + $0x118] sm:$0xff]  ;;  %v465_v44 = vld [vmem:[%s5530_s24 + $0x910] sm:$0xff]  ;;  %v211_v46 = vld [vmem:[%s5530_s24 + $0x120] sm:$0xff] }
  0x28   : > { %5209 = vmatprep.mubr.msk.bf16.mxu1 %vm982_vm0, %v821_v45  ;;  %v466_v45 = vld [vmem:[%s5530_s24 + $0x918] sm:$0xff]  ;;  %v212_v47 = vld [vmem:[%s5530_s24 + $0x128] sm:$0xff]  ;;  %v467_v48 = vld [vmem:[%s5530_s24 + $0x920] sm:$0xff]  ;;  %v704_v50 = vpack.c.bf16 %v210_v43, %v209_v42 }
  0x29   : > { %v468_v49 = vld [vmem:[%s5530_s24 + $0x928] sm:$0xff]  ;;  %v832_v51 = vpack.c.bf16 %v466_v45, %v465_v44  ;;  %v705_v52 = vpack.c.bf16 %v212_v47, %v211_v46  ;;  %v215_v58 = vld [vmem:[%s5530_s24 + $0x140] sm:$0xff] }
  0x2a   : > { %v833_v53 = vpack.c.bf16 %v468_v49, %v467_v48  ;;  %v216_v59 = vld [vmem:[%s5530_s24 + $0x148] sm:$0xff]  ;;  %v471_v60 = vld [vmem:[%s5530_s24 + $0x940] sm:$0xff] }
  0x2b   : > { %v472_v61 = vld [vmem:[%s5530_s24 + $0x948] sm:$0xff]  ;;  %v707_v0 = vpack.c.bf16 %v216_v59, %v215_v58  ;;  %v219_v6 = vld [vmem:[%s5530_s24 + $0x160] sm:$0xff] }
  0x2c   : > { %v835_v1 = vpack.c.bf16 %v472_v61, %v471_v60  ;;  %v220_v7 = vld [vmem:[%s5530_s24 + $0x168] sm:$0xff]  ;;  %v475_v8 = vld [vmem:[%s5530_s24 + $0x960] sm:$0xff] }
  0x2d   : > { %v476_v9 = vld [vmem:[%s5530_s24 + $0x968] sm:$0xff]  ;;  %v709_v12 = vpack.c.bf16 %v220_v7, %v219_v6  ;;  %v223_v18 = vld [vmem:[%s5530_s24 + $0x180] sm:$0xff] }
  0x2e   : > { %4954 = vmatmul.mubr.msk.bf16.gmra.mrb[12].mxu0 %vm982_vm0, %v694_v54  ;;  %v213_v54 = vld [vmem:[%s5530_s24 + $0x130] sm:$0xff]  ;;  %v837_v13 = vpack.c.bf16 %v476_v9, %v475_v8  ;;  %v224_v19 = vld [vmem:[%s5530_s24 + $0x188] sm:$0xff]  ;;  %v479_v20 = vld [vmem:[%s5530_s24 + $0x980] sm:$0xff] }
  0x2f   : > { %5210 = vmatmul.mubr.msk.bf16.gmra.mrb[12].mxu1 %vm982_vm0, %v822_v55  ;;  %4957 = vmatprep.mubr.msk.bf16.mxu0 %vm982_vm0, %v695_v56  ;;  %v214_v55 = vld [vmem:[%s5530_s24 + $0x138] sm:$0xff]  ;;  %v469_v56 = vld [vmem:[%s5530_s24 + $0x930] sm:$0xff]  ;;  %v480_v21 = vld [vmem:[%s5530_s24 + $0x988] sm:$0xff]  ;;  %v711_v24 = vpack.c.bf16 %v224_v19, %v223_v18 }
  0x30   : > { %5213 = vmatprep.mubr.msk.bf16.mxu1 %vm982_vm0, %v823_v57  ;;  %v470_v57 = vld [vmem:[%s5530_s24 + $0x938] sm:$0xff]  ;;  %v706_v62 = vpack.c.bf16 %v214_v55, %v213_v54  ;;  %v839_v25 = vpack.c.bf16 %v480_v21, %v479_v20  ;;  %v227_v30 = vld [vmem:[%s5530_s24 + $0x1a0] sm:$0xff]  ;;  %v228_v31 = vld [vmem:[%s5530_s24 + $0x1a8] sm:$0xff] }
  0x31   : > { %v834_v63 = vpack.c.bf16 %v470_v57, %v469_v56  ;;  %v483_v32 = vld [vmem:[%s5530_s24 + $0x9a0] sm:$0xff]  ;;  %v484_v33 = vld [vmem:[%s5530_s24 + $0x9a8] sm:$0xff]  ;;  %v713_v36 = vpack.c.bf16 %v228_v31, %v227_v30 }
  0x32   : > { %v841_v37 = vpack.c.bf16 %v484_v33, %v483_v32  ;;  %v231_v42 = vld [vmem:[%s5530_s24 + $0x1c0] sm:$0xff]  ;;  %v232_v43 = vld [vmem:[%s5530_s24 + $0x1c8] sm:$0xff] }
  0x33   : > { %v487_v44 = vld [vmem:[%s5530_s24 + $0x9c0] sm:$0xff]  ;;  %v488_v45 = vld [vmem:[%s5530_s24 + $0x9c8] sm:$0xff]  ;;  %v715_v48 = vpack.c.bf16 %v232_v43, %v231_v42 }
  0x34   : > { %v843_v49 = vpack.c.bf16 %v488_v45, %v487_v44  ;;  %v235_v54 = vld [vmem:[%s5530_s24 + $0x1e0] sm:$0xff]  ;;  %v236_v55 = vld [vmem:[%s5530_s24 + $0x1e8] sm:$0xff] }
  0x35   : > { %v491_v56 = vld [vmem:[%s5530_s24 + $0x9e0] sm:$0xff]  ;;  %v492_v57 = vld [vmem:[%s5530_s24 + $0x9e8] sm:$0xff]  ;;  %v717_v60 = vpack.c.bf16 %v236_v55, %v235_v54 }
  0x36   : > { %4958 = vmatmul.mubr.msk.bf16.gmra.mrb[16].mxu0 %vm982_vm0, %v696_v2  ;;  %v217_v2 = vld [vmem:[%s5530_s24 + $0x150] sm:$0xff]  ;;  %v845_v61 = vpack.c.bf16 %v492_v57, %v491_v56 }
  0x37   : > { %5214 = vmatmul.mubr.msk.bf16.gmra.mrb[16].mxu1 %vm982_vm0, %v824_v3  ;;  %4961 = vmatprep.mubr.msk.bf16.mxu0 %vm982_vm0, %v697_v4  ;;  %v218_v3 = vld [vmem:[%s5530_s24 + $0x158] sm:$0xff]  ;;  %v473_v4 = vld [vmem:[%s5530_s24 + $0x950] sm:$0xff] }
  0x38   : > { %5217 = vmatprep.mubr.msk.bf16.mxu1 %vm982_vm0, %v825_v5  ;;  %v474_v5 = vld [vmem:[%s5530_s24 + $0x958] sm:$0xff]  ;;  %v708_v10 = vpack.c.bf16 %v218_v3, %v217_v2  ;;  %v239_v2 = vld [vmem:[%s5530_s24 + $0x200] sm:$0xff]  ;;  %v240_v3 = vld [vmem:[%s5530_s24 + $0x208] sm:$0xff] }
  0x39   : > { %v836_v11 = vpack.c.bf16 %v474_v5, %v473_v4  ;;  %v495_v4 = vld [vmem:[%s5530_s24 + $0xa00] sm:$0xff]  ;;  %v496_v5 = vld [vmem:[%s5530_s24 + $0xa08] sm:$0xff]  ;;  %v719_v8 = vpack.c.bf16 %v240_v3, %v239_v2 }
  0x3a   : > { %v847_v9 = vpack.c.bf16 %v496_v5, %v495_v4 }
  0x3e   : > { %4962 = vmatmul.mubr.msk.bf16.gmra.mrb[20].mxu0 %vm982_vm0, %v698_v14  ;;  %v221_v14 = vld [vmem:[%s5530_s24 + $0x170] sm:$0xff] }
  0x3f   : > { %5218 = vmatmul.mubr.msk.bf16.gmra.mrb[20].mxu1 %vm982_vm0, %v826_v15  ;;  %4965 = vmatprep.mubr.msk.bf16.mxu0 %vm982_vm0, %v699_v16  ;;  %v222_v15 = vld [vmem:[%s5530_s24 + $0x178] sm:$0xff]  ;;  %v477_v16 = vld [vmem:[%s5530_s24 + $0x970] sm:$0xff] }
  0x40   : > { %5221 = vmatprep.mubr.msk.bf16.mxu1 %vm982_vm0, %v827_v17  ;;  %v478_v17 = vld [vmem:[%s5530_s24 + $0x978] sm:$0xff]  ;;  %v710_v22 = vpack.c.bf16 %v222_v15, %v221_v14  ;;  %v243_v14 = vld [vmem:[%s5530_s24 + $0x220] sm:$0xff]  ;;  %v244_v15 = vld [vmem:[%s5530_s24 + $0x228] sm:$0xff] }
  0x41   : > { %v838_v23 = vpack.c.bf16 %v478_v17, %v477_v16  ;;  %v499_v16 = vld [vmem:[%s5530_s24 + $0xa20] sm:$0xff]  ;;  %v500_v17 = vld [vmem:[%s5530_s24 + $0xa28] sm:$0xff]  ;;  %v721_v20 = vpack.c.bf16 %v244_v15, %v243_v14 }
  0x42   : > { %v849_v21 = vpack.c.bf16 %v500_v17, %v499_v16 }
  0x46   : > { %4966 = vmatmul.mubr.msk.bf16.gmra.mrb[24].mxu0 %vm982_vm0, %v700_v26  ;;  %v225_v26 = vld [vmem:[%s5530_s24 + $0x190] sm:$0xff] }
  0x47   : > { %5222 = vmatmul.mubr.msk.bf16.gmra.mrb[24].mxu1 %vm982_vm0, %v828_v27  ;;  %4969 = vmatprep.mubr.msk.bf16.mxu0 %vm982_vm0, %v701_v28  ;;  %v226_v27 = vld [vmem:[%s5530_s24 + $0x198] sm:$0xff]  ;;  %v481_v28 = vld [vmem:[%s5530_s24 + $0x990] sm:$0xff] }
  0x48   : > { %5225 = vmatprep.mubr.msk.bf16.mxu1 %vm982_vm0, %v829_v29  ;;  %v482_v29 = vld [vmem:[%s5530_s24 + $0x998] sm:$0xff]  ;;  %v712_v34 = vpack.c.bf16 %v226_v27, %v225_v26  ;;  %v247_v26 = vld [vmem:[%s5530_s24 + $0x240] sm:$0xff]  ;;  %v248_v27 = vld [vmem:[%s5530_s24 + $0x248] sm:$0xff] }
  0x49   : > { %v840_v35 = vpack.c.bf16 %v482_v29, %v481_v28  ;;  %v503_v28 = vld [vmem:[%s5530_s24 + $0xa40] sm:$0xff]  ;;  %v504_v29 = vld [vmem:[%s5530_s24 + $0xa48] sm:$0xff]  ;;  %v723_v32 = vpack.c.bf16 %v248_v27, %v247_v26 }
  0x4a   : > { %v851_v33 = vpack.c.bf16 %v504_v29, %v503_v28 }
  0x4e   : > { %4970 = vmatmul.mubr.msk.bf16.gmra.mrb[28].mxu0 %vm982_vm0, %v702_v38  ;;  %v229_v38 = vld [vmem:[%s5530_s24 + $0x1b0] sm:$0xff] }
  0x4f   : > { %5226 = vmatmul.mubr.msk.bf16.gmra.mrb[28].mxu1 %vm982_vm0, %v830_v39  ;;  %4973 = vmatprep.mubr.msk.bf16.mxu0 %vm982_vm0, %v703_v40  ;;  %v230_v39 = vld [vmem:[%s5530_s24 + $0x1b8] sm:$0xff]  ;;  %v485_v40 = vld [vmem:[%s5530_s24 + $0x9b0] sm:$0xff] }
  0x50   : > { %5229 = vmatprep.mubr.msk.bf16.mxu1 %vm982_vm0, %v831_v41  ;;  %v486_v41 = vld [vmem:[%s5530_s24 + $0x9b8] sm:$0xff]  ;;  %v714_v46 = vpack.c.bf16 %v230_v39, %v229_v38  ;;  %v251_v38 = vld [vmem:[%s5530_s24 + $0x260] sm:$0xff]  ;;  %v252_v39 = vld [vmem:[%s5530_s24 + $0x268] sm:$0xff] }
  0x51   : > { %v842_v47 = vpack.c.bf16 %v486_v41, %v485_v40  ;;  %v507_v40 = vld [vmem:[%s5530_s24 + $0xa60] sm:$0xff]  ;;  %v508_v41 = vld [vmem:[%s5530_s24 + $0xa68] sm:$0xff]  ;;  %v725_v44 = vpack.c.bf16 %v252_v39, %v251_v38 }
  0x52   : > { %v853_v45 = vpack.c.bf16 %v508_v41, %v507_v40 }
  0x56   : > { %4974 = vmatmul.mubr.msk.bf16.gmra.mrb[32].mxu0 %vm982_vm0, %v704_v50  ;;  %v233_v50 = vld [vmem:[%s5530_s24 + $0x1d0] sm:$0xff] }
  0x57   : > { %5230 = vmatmul.mubr.msk.bf16.gmra.mrb[32].mxu1 %vm982_vm0, %v832_v51  ;;  %4977 = vmatprep.mubr.msk.bf16.mxu0 %vm982_vm0, %v705_v52  ;;  %v234_v51 = vld [vmem:[%s5530_s24 + $0x1d8] sm:$0xff]  ;;  %v489_v52 = vld [vmem:[%s5530_s24 + $0x9d0] sm:$0xff] }
  0x58   : > { %5233 = vmatprep.mubr.msk.bf16.mxu1 %vm982_vm0, %v833_v53  ;;  %v490_v53 = vld [vmem:[%s5530_s24 + $0x9d8] sm:$0xff]  ;;  %v716_v58 = vpack.c.bf16 %v234_v51, %v233_v50  ;;  %v255_v50 = vld [vmem:[%s5530_s24 + $0x280] sm:$0xff]  ;;  %v256_v51 = vld [vmem:[%s5530_s24 + $0x288] sm:$0xff] }
  0x59   : > { %v844_v59 = vpack.c.bf16 %v490_v53, %v489_v52  ;;  %v511_v52 = vld [vmem:[%s5530_s24 + $0xa80] sm:$0xff]  ;;  %v512_v53 = vld [vmem:[%s5530_s24 + $0xa88] sm:$0xff]  ;;  %v727_v56 = vpack.c.bf16 %v256_v51, %v255_v50 }
  0x5a   : > { %v855_v57 = vpack.c.bf16 %v512_v53, %v511_v52 }
  0x5e   : > { %4978 = vmatmul.mubr.msk.bf16.gmra.mrb[36].mxu0 %vm982_vm0, %v706_v62  ;;  %v237_v62 = vld [vmem:[%s5530_s24 + $0x1f0] sm:$0xff] }
  0x5f   : > { %5234 = vmatmul.mubr.msk.bf16.gmra.mrb[36].mxu1 %vm982_vm0, %v834_v63  ;;  %4981 = vmatprep.mubr.msk.bf16.mxu0 %vm982_vm0, %v707_v0  ;;  %v238_v63 = vld [vmem:[%s5530_s24 + $0x1f8] sm:$0xff]  ;;  %v493_v0 = vld [vmem:[%s5530_s24 + $0x9f0] sm:$0xff] }
  0x60   : > { %5237 = vmatprep.mubr.msk.bf16.mxu1 %vm982_vm0, %v835_v1  ;;  %v494_v1 = vld [vmem:[%s5530_s24 + $0x9f8] sm:$0xff]  ;;  %v718_v6 = vpack.c.bf16 %v238_v63, %v237_v62  ;;  %v259_v62 = vld [vmem:[%s5530_s24 + $0x2a0] sm:$0xff]  ;;  %v260_v63 = vld [vmem:[%s5530_s24 + $0x2a8] sm:$0xff] }
  0x61   : > { %v846_v7 = vpack.c.bf16 %v494_v1, %v493_v0  ;;  %v515_v0 = vld [vmem:[%s5530_s24 + $0xaa0] sm:$0xff]  ;;  %v516_v1 = vld [vmem:[%s5530_s24 + $0xaa8] sm:$0xff]  ;;  %v729_v4 = vpack.c.bf16 %v260_v63, %v259_v62 }
  0x62   : > { %v857_v5 = vpack.c.bf16 %v516_v1, %v515_v0 }
  0x66   : > { %4982 = vmatmul.mubr.msk.bf16.gmra.mrb[40].mxu0 %vm982_vm0, %v708_v10  ;;  %v241_v10 = vld [vmem:[%s5530_s24 + $0x210] sm:$0xff] }
  0x67   : > { %5238 = vmatmul.mubr.msk.bf16.gmra.mrb[40].mxu1 %vm982_vm0, %v836_v11  ;;  %4985 = vmatprep.mubr.msk.bf16.mxu0 %vm982_vm0, %v709_v12  ;;  %v242_v11 = vld [vmem:[%s5530_s24 + $0x218] sm:$0xff]  ;;  %v497_v12 = vld [vmem:[%s5530_s24 + $0xa10] sm:$0xff] }
  0x68   : > { %5241 = vmatprep.mubr.msk.bf16.mxu1 %vm982_vm0, %v837_v13  ;;  %v498_v13 = vld [vmem:[%s5530_s24 + $0xa18] sm:$0xff]  ;;  %v720_v18 = vpack.c.bf16 %v242_v11, %v241_v10  ;;  %v263_v10 = vld [vmem:[%s5530_s24 + $0x2c0] sm:$0xff]  ;;  %v264_v11 = vld [vmem:[%s5530_s24 + $0x2c8] sm:$0xff] }
  0x69   : > { %v848_v19 = vpack.c.bf16 %v498_v13, %v497_v12  ;;  %v519_v12 = vld [vmem:[%s5530_s24 + $0xac0] sm:$0xff]  ;;  %v520_v13 = vld [vmem:[%s5530_s24 + $0xac8] sm:$0xff]  ;;  %v731_v16 = vpack.c.bf16 %v264_v11, %v263_v10 }
  0x6a   : > { %v859_v17 = vpack.c.bf16 %v520_v13, %v519_v12 }
  0x6e   : > { %4986 = vmatmul.mubr.msk.bf16.gmra.mrb[44].mxu0 %vm982_vm0, %v710_v22  ;;  %v245_v22 = vld [vmem:[%s5530_s24 + $0x230] sm:$0xff] }
  0x6f   : > { %5242 = vmatmul.mubr.msk.bf16.gmra.mrb[44].mxu1 %vm982_vm0, %v838_v23  ;;  %4989 = vmatprep.mubr.msk.bf16.mxu0 %vm982_vm0, %v711_v24  ;;  %v246_v23 = vld [vmem:[%s5530_s24 + $0x238] sm:$0xff]  ;;  %v501_v24 = vld [vmem:[%s5530_s24 + $0xa30] sm:$0xff] }
  0x70   : > { %5245 = vmatprep.mubr.msk.bf16.mxu1 %vm982_vm0, %v839_v25  ;;  %v502_v25 = vld [vmem:[%s5530_s24 + $0xa38] sm:$0xff]  ;;  %v722_v30 = vpack.c.bf16 %v246_v23, %v245_v22  ;;  %v267_v22 = vld [vmem:[%s5530_s24 + $0x2e0] sm:$0xff]  ;;  %v268_v23 = vld [vmem:[%s5530_s24 + $0x2e8] sm:$0xff] }
  0x71   : > { %v850_v31 = vpack.c.bf16 %v502_v25, %v501_v24  ;;  %v523_v24 = vld [vmem:[%s5530_s24 + $0xae0] sm:$0xff]  ;;  %v524_v25 = vld [vmem:[%s5530_s24 + $0xae8] sm:$0xff]  ;;  %v733_v28 = vpack.c.bf16 %v268_v23, %v267_v22 }
  0x72   : > { %v861_v29 = vpack.c.bf16 %v524_v25, %v523_v24  ;;  %v544_v22 = vld [vmem:[%s5530_s24 + $0xb88] sm:$0xff] }
  0x76   : > { %4990 = vmatmul.mubr.msk.bf16.gmra.mrb[48].mxu0 %vm982_vm0, %v712_v34  ;;  %v249_v34 = vld [vmem:[%s5530_s24 + $0x250] sm:$0xff] }
  0x77   : > { %5246 = vmatmul.mubr.msk.bf16.gmra.mrb[48].mxu1 %vm982_vm0, %v840_v35  ;;  %4993 = vmatprep.mubr.msk.bf16.mxu0 %vm982_vm0, %v713_v36  ;;  %v250_v35 = vld [vmem:[%s5530_s24 + $0x258] sm:$0xff]  ;;  %v505_v36 = vld [vmem:[%s5530_s24 + $0xa50] sm:$0xff] }
  0x78   : > { %5249 = vmatprep.mubr.msk.bf16.mxu1 %vm982_vm0, %v841_v37  ;;  %v506_v37 = vld [vmem:[%s5530_s24 + $0xa58] sm:$0xff]  ;;  %v724_v42 = vpack.c.bf16 %v250_v35, %v249_v34  ;;  %v271_v34 = vld [vmem:[%s5530_s24 + $0x300] sm:$0xff]  ;;  %v272_v35 = vld [vmem:[%s5530_s24 + $0x308] sm:$0xff] }
  0x79   : > { %v852_v43 = vpack.c.bf16 %v506_v37, %v505_v36  ;;  %v527_v36 = vld [vmem:[%s5530_s24 + $0xb00] sm:$0xff]  ;;  %v528_v37 = vld [vmem:[%s5530_s24 + $0xb08] sm:$0xff]  ;;  %v735_v40 = vpack.c.bf16 %v272_v35, %v271_v34 }
  0x7a   : > { %v863_v41 = vpack.c.bf16 %v528_v37, %v527_v36 }
  0x7e   : > { %4994 = vmatmul.mubr.msk.bf16.gmra.mrb[52].mxu0 %vm982_vm0, %v714_v46  ;;  %v253_v46 = vld [vmem:[%s5530_s24 + $0x270] sm:$0xff] }
  0x7f   : > { %5250 = vmatmul.mubr.msk.bf16.gmra.mrb[52].mxu1 %vm982_vm0, %v842_v47  ;;  %4997 = vmatprep.mubr.msk.bf16.mxu0 %vm982_vm0, %v715_v48  ;;  %v254_v47 = vld [vmem:[%s5530_s24 + $0x278] sm:$0xff]  ;;  %v509_v48 = vld [vmem:[%s5530_s24 + $0xa70] sm:$0xff] }
  0x80   : > { %5253 = vmatprep.mubr.msk.bf16.mxu1 %vm982_vm0, %v843_v49  ;;  %v510_v49 = vld [vmem:[%s5530_s24 + $0xa78] sm:$0xff]  ;;  %v726_v54 = vpack.c.bf16 %v254_v47, %v253_v46  ;;  %v275_v46 = vld [vmem:[%s5530_s24 + $0x320] sm:$0xff]  ;;  %v276_v47 = vld [vmem:[%s5530_s24 + $0x328] sm:$0xff] }
  0x81   : > { %v854_v55 = vpack.c.bf16 %v510_v49, %v509_v48  ;;  %v531_v48 = vld [vmem:[%s5530_s24 + $0xb20] sm:$0xff]  ;;  %v532_v49 = vld [vmem:[%s5530_s24 + $0xb28] sm:$0xff]  ;;  %v737_v52 = vpack.c.bf16 %v276_v47, %v275_v46  ;;  %v546_v46 = vld [vmem:[%s5530_s24 + $0xb98] sm:$0xff] }
  0x82   : > { %v865_v53 = vpack.c.bf16 %v532_v49, %v531_v48  ;;  %v291_v47 = vld [vmem:[%s5530_s24 + $0x3a0] sm:$0xff]  ;;  %v292_v48 = vld [vmem:[%s5530_s24 + $0x3a8] sm:$0xff] }
  0x83   : > { %v547_v49 = vld [vmem:[%s5530_s24 + $0xba0] sm:$0xff] }
  0x86   : > { %4998 = vmatmul.mubr.msk.bf16.gmra.mrb[56].mxu0 %vm982_vm0, %v716_v58  ;;  %v257_v58 = vld [vmem:[%s5530_s24 + $0x290] sm:$0xff] }
  0x87   : > { %5254 = vmatmul.mubr.msk.bf16.gmra.mrb[56].mxu1 %vm982_vm0, %v844_v59  ;;  %5001 = vmatprep.mubr.msk.bf16.mxu0 %vm982_vm0, %v717_v60  ;;  %v258_v59 = vld [vmem:[%s5530_s24 + $0x298] sm:$0xff]  ;;  %v513_v60 = vld [vmem:[%s5530_s24 + $0xa90] sm:$0xff] }
  0x88   : > { %5257 = vmatprep.mubr.msk.bf16.mxu1 %vm982_vm0, %v845_v61  ;;  %v514_v61 = vld [vmem:[%s5530_s24 + $0xa98] sm:$0xff]  ;;  %v728_v2 = vpack.c.bf16 %v258_v59, %v257_v58  ;;  %v279_v58 = vld [vmem:[%s5530_s24 + $0x340] sm:$0xff]  ;;  %v280_v59 = vld [vmem:[%s5530_s24 + $0x348] sm:$0xff] }
  0x89   : > { %v856_v3 = vpack.c.bf16 %v514_v61, %v513_v60  ;;  %v535_v60 = vld [vmem:[%s5530_s24 + $0xb40] sm:$0xff]  ;;  %v536_v61 = vld [vmem:[%s5530_s24 + $0xb48] sm:$0xff]  ;;  %v739_v0 = vpack.c.bf16 %v280_v59, %v279_v58 }
  0x8a   : > { %v867_v1 = vpack.c.bf16 %v536_v61, %v535_v60 }
  0x8e   : > { %5002 = vmatmul.mubr.msk.bf16.gmra.mrb[60].mxu0 %vm982_vm0, %v718_v6  ;;  %v261_v6 = vld [vmem:[%s5530_s24 + $0x2b0] sm:$0xff] }
  0x8f   : > { %5258 = vmatmul.mubr.msk.bf16.gmra.mrb[60].mxu1 %vm982_vm0, %v846_v7  ;;  %5005 = vmatprep.mubr.msk.bf16.mxu0 %vm982_vm0, %v719_v8  ;;  %v262_v7 = vld [vmem:[%s5530_s24 + $0x2b8] sm:$0xff]  ;;  %v517_v8 = vld [vmem:[%s5530_s24 + $0xab0] sm:$0xff] }
  0x90   : > { %5261 = vmatprep.mubr.msk.bf16.mxu1 %vm982_vm0, %v847_v9  ;;  %v518_v9 = vld [vmem:[%s5530_s24 + $0xab8] sm:$0xff]  ;;  %v730_v14 = vpack.c.bf16 %v262_v7, %v261_v6  ;;  %v283_v6 = vld [vmem:[%s5530_s24 + $0x360] sm:$0xff]  ;;  %v284_v7 = vld [vmem:[%s5530_s24 + $0x368] sm:$0xff] }
  0x91   : > { %v858_v15 = vpack.c.bf16 %v518_v9, %v517_v8  ;;  %v539_v8 = vld [vmem:[%s5530_s24 + $0xb60] sm:$0xff]  ;;  %v540_v9 = vld [vmem:[%s5530_s24 + $0xb68] sm:$0xff]  ;;  %v741_v12 = vpack.c.bf16 %v284_v7, %v283_v6  ;;  %v293_v7 = vld [vmem:[%s5530_s24 + $0x3b0] sm:$0xff] }
  0x92   : > { %v869_v13 = vpack.c.bf16 %v540_v9, %v539_v8  ;;  %v294_v8 = vld [vmem:[%s5530_s24 + $0x3b8] sm:$0xff]  ;;  %v549_v9 = vld [vmem:[%s5530_s24 + $0xbb0] sm:$0xff] }
  0x96   : > { %5006 = vmatmul.mubr.msk.bf16.gmra.mrb[64].mxu0 %vm982_vm0, %v720_v18  ;;  %v265_v18 = vld [vmem:[%s5530_s24 + $0x2d0] sm:$0xff] }
  0x97   : > { %5262 = vmatmul.mubr.msk.bf16.gmra.mrb[64].mxu1 %vm982_vm0, %v848_v19  ;;  %5009 = vmatprep.mubr.msk.bf16.mxu0 %vm982_vm0, %v721_v20  ;;  %v266_v19 = vld [vmem:[%s5530_s24 + $0x2d8] sm:$0xff]  ;;  %v521_v20 = vld [vmem:[%s5530_s24 + $0xad0] sm:$0xff] }
  0x98   : > { %5265 = vmatprep.mubr.msk.bf16.mxu1 %vm982_vm0, %v849_v21  ;;  %v522_v21 = vld [vmem:[%s5530_s24 + $0xad8] sm:$0xff]  ;;  %v732_v26 = vpack.c.bf16 %v266_v19, %v265_v18  ;;  %v287_v19 = vld [vmem:[%s5530_s24 + $0x380] sm:$0xff] }
  0x99   : > { %v860_v27 = vpack.c.bf16 %v522_v21, %v521_v20  ;;  %v542_v18 = vld [vmem:[%s5530_s24 + $0xb78] sm:$0xff]  ;;  %v288_v20 = vld [vmem:[%s5530_s24 + $0x388] sm:$0xff]  ;;  %v543_v21 = vld [vmem:[%s5530_s24 + $0xb80] sm:$0xff] }
  0x9a   : > { %v743_v35 = vpack.c.bf16 %v288_v20, %v287_v19  ;;  %v871_v36 = vpack.c.bf16 %v544_v22, %v543_v21  ;;  %v746_v22 = vpack.c.bf16 %v294_v8, %v293_v7  ;;  %v560_v7 = vld [vmem:[%s5530_s24 + $0xc08] sm:$0xff] }
  0x9e   : > { %5010 = vmatmul.mubr.msk.bf16.gmra.mrb[68].mxu0 %vm982_vm0, %v722_v30  ;;  %v269_v30 = vld [vmem:[%s5530_s24 + $0x2f0] sm:$0xff] }
  0x9f   : > { %5266 = vmatmul.mubr.msk.bf16.gmra.mrb[68].mxu1 %vm982_vm0, %v850_v31  ;;  %5013 = vmatprep.mubr.msk.bf16.mxu0 %vm982_vm0, %v723_v32  ;;  %v270_v31 = vld [vmem:[%s5530_s24 + $0x2f8] sm:$0xff]  ;;  %v525_v32 = vld [vmem:[%s5530_s24 + $0xaf0] sm:$0xff] }
  0xa0   : > { %5269 = vmatprep.mubr.msk.bf16.mxu1 %vm982_vm0, %v851_v33  ;;  %v526_v33 = vld [vmem:[%s5530_s24 + $0xaf8] sm:$0xff]  ;;  %v734_v38 = vpack.c.bf16 %v270_v31, %v269_v30 }
  0xa1   : > { %v862_v39 = vpack.c.bf16 %v526_v33, %v525_v32 }
  0xa6   : > { %5014 = vmatmul.mubr.msk.bf16.gmra.mrb[72].mxu0 %vm982_vm0, %v724_v42  ;;  %v273_v42 = vld [vmem:[%s5530_s24 + $0x310] sm:$0xff] }
  0xa7   : > { %5270 = vmatmul.mubr.msk.bf16.gmra.mrb[72].mxu1 %vm982_vm0, %v852_v43  ;;  %5017 = vmatprep.mubr.msk.bf16.mxu0 %vm982_vm0, %v725_v44  ;;  %v274_v43 = vld [vmem:[%s5530_s24 + $0x318] sm:$0xff]  ;;  %v529_v44 = vld [vmem:[%s5530_s24 + $0xb10] sm:$0xff] }
  0xa8   : > { %5273 = vmatprep.mubr.msk.bf16.mxu1 %vm982_vm0, %v853_v45  ;;  %v530_v45 = vld [vmem:[%s5530_s24 + $0xb18] sm:$0xff]  ;;  %v736_v50 = vpack.c.bf16 %v274_v43, %v273_v42  ;;  %v289_v43 = vld [vmem:[%s5530_s24 + $0x390] sm:$0xff] }
  0xa9   : > { %v864_v51 = vpack.c.bf16 %v530_v45, %v529_v44  ;;  %v290_v44 = vld [vmem:[%s5530_s24 + $0x398] sm:$0xff]  ;;  %v545_v45 = vld [vmem:[%s5530_s24 + $0xb90] sm:$0xff] }
  0xaa   : > { %v872_v58 = vpack.c.bf16 %v546_v46, %v545_v45 }
  0xae   : > { %5018 = vmatmul.mubr.msk.bf16.gmra.mrb[76].mxu0 %vm982_vm0, %v726_v54  ;;  %v277_v54 = vld [vmem:[%s5530_s24 + $0x330] sm:$0xff] }
  0xaf   : > { %5274 = vmatmul.mubr.msk.bf16.gmra.mrb[76].mxu1 %vm982_vm0, %v854_v55  ;;  %5021 = vmatprep.mubr.msk.bf16.mxu0 %vm982_vm0, %v727_v56  ;;  %v278_v55 = vld [vmem:[%s5530_s24 + $0x338] sm:$0xff]  ;;  %v533_v56 = vld [vmem:[%s5530_s24 + $0xb30] sm:$0xff] }
  0xb0   : > { %5277 = vmatprep.mubr.msk.bf16.mxu1 %vm982_vm0, %v855_v57  ;;  %v534_v57 = vld [vmem:[%s5530_s24 + $0xb38] sm:$0xff]  ;;  %v738_v62 = vpack.c.bf16 %v278_v55, %v277_v54 }
  0xb1   : > { %v866_v63 = vpack.c.bf16 %v534_v57, %v533_v56  ;;  %v744_v57 = vpack.c.bf16 %v290_v44, %v289_v43  ;;  %v556_v43 = vld [vmem:[%s5530_s24 + $0xbe8] sm:$0xff] }
  0xb6   : > { %5022 = vmatmul.mubr.msk.bf16.gmra.mrb[80].mxu0 %vm982_vm0, %v728_v2  ;;  %v281_v2 = vld [vmem:[%s5530_s24 + $0x350] sm:$0xff] }
  0xb7   : > { %5278 = vmatmul.mubr.msk.bf16.gmra.mrb[80].mxu1 %vm982_vm0, %v856_v3  ;;  %5025 = vmatprep.mubr.msk.bf16.mxu0 %vm982_vm0, %v729_v4  ;;  %v282_v3 = vld [vmem:[%s5530_s24 + $0x358] sm:$0xff]  ;;  %v537_v4 = vld [vmem:[%s5530_s24 + $0xb50] sm:$0xff] }
  0xb8   : > { %5281 = vmatprep.mubr.msk.bf16.mxu1 %vm982_vm0, %v857_v5  ;;  %v538_v5 = vld [vmem:[%s5530_s24 + $0xb58] sm:$0xff]  ;;  %v740_v10 = vpack.c.bf16 %v282_v3, %v281_v2 }
  0xb9   : > { %v868_v11 = vpack.c.bf16 %v538_v5, %v537_v4 }
  0xbe   : > { %5026 = vmatmul.mubr.msk.bf16.gmra.mrb[84].mxu0 %vm982_vm0, %v730_v14  ;;  %v5866_v14 = vld [vmem:[%s7876_s2] ss:$0 sm:$0xff] }
  0xbf   : > { %5282 = vmatmul.mubr.msk.bf16.gmra.mrb[84].mxu1 %vm982_vm0, %v858_v15  ;;  %5029 = vmatprep.mubr.msk.bf16.mxu0 %vm982_vm0, %v731_v16  ;;  %v285_v15 = vld [vmem:[%s5530_s24 + $0x370] sm:$0xff]  ;;  %v286_v16 = vld [vmem:[%s5530_s24 + $0x378] sm:$0xff] }
  0xc0   : > { %5285 = vmatprep.mubr.msk.bf16.mxu1 %vm982_vm0, %v859_v17  ;;  %v541_v17 = vld [vmem:[%s5530_s24 + $0xb70] sm:$0xff] }
  0xc1   : > { %v870_v30 = vpack.c.bf16 %v542_v18, %v541_v17 }
  0xc6   : > { %5030 = vmatmul.mubr.msk.bf16.gmra.mrb[88].mxu0 %vm982_vm0, %v732_v26 }
  0xc7   : > { %5286 = vmatmul.mubr.msk.bf16.gmra.mrb[88].mxu1 %vm982_vm0, %v860_v27  ;;  %5033 = vmatprep.mubr.msk.bf16.mxu0 %vm982_vm0, %v733_v28 }
  0xc8   : > { %5289 = vmatprep.mubr.msk.bf16.mxu1 %vm982_vm0, %v861_v29  ;;  %v742_v29 = vpack.c.bf16 %v286_v16, %v285_v15  ;;  %v552_v15 = vld [vmem:[%s5530_s24 + $0xbc8] sm:$0xff] }
  0xce   : > { %5034 = vmatmul.mubr.msk.bf16.gmra.mrb[92].mxu0 %vm982_vm0, %v734_v38 }
  0xcf   : > { %5290 = vmatmul.mubr.msk.bf16.gmra.mrb[92].mxu1 %vm982_vm0, %v862_v39  ;;  %5037 = vmatprep.mubr.msk.bf16.mxu0 %vm982_vm0, %v735_v40 }
  0xd0   : > { %5293 = vmatprep.mubr.msk.bf16.mxu1 %vm982_vm0, %v863_v41 }
  0xd6   : > { %5038 = vmatmul.mubr.msk.bf16.gmra.mrb[96].mxu0 %vm982_vm0, %v736_v50  ;;  %v548_v50 = vld [vmem:[%s5530_s24 + $0xba8] sm:$0xff] }
  0xd7   : > { %5294 = vmatmul.mubr.msk.bf16.gmra.mrb[96].mxu1 %vm982_vm0, %v864_v51  ;;  %5041 = vmatprep.mubr.msk.bf16.mxu0 %vm982_vm0, %v737_v52 }
  0xd8   : > { %5297 = vmatprep.mubr.msk.bf16.mxu1 %vm982_vm0, %v865_v53 }
  0xde   : > { %5042 = vmatmul.mubr.msk.bf16.gmra.mrb[100].mxu0 %vm982_vm0, %v738_v62 }
  0xdf   : > { %5298 = vmatmul.mubr.msk.bf16.gmra.mrb[100].mxu1 %vm982_vm0, %v866_v63  ;;  %5045 = vmatprep.mubr.msk.bf16.mxu0 %vm982_vm0, %v739_v0  ;;  %v745_v63 = vpack.c.bf16 %v292_v48, %v291_v47  ;;  %v873_v0 = vpack.c.bf16 %v548_v50, %v547_v49 }
  0xe0   : > { %5301 = vmatprep.mubr.msk.bf16.mxu1 %vm982_vm0, %v867_v1 }
  0xe6   : > { %5046 = vmatmul.mubr.msk.bf16.gmra.mrb[104].mxu0 %vm982_vm0, %v740_v10  ;;  %v550_v10 = vld [vmem:[%s5530_s24 + $0xbb8] sm:$0xff] }
  0xe7   : > { %5302 = vmatmul.mubr.msk.bf16.gmra.mrb[104].mxu1 %vm982_vm0, %v868_v11  ;;  %5049 = vmatprep.mubr.msk.bf16.mxu0 %vm982_vm0, %v741_v12  ;;  %v295_v11 = vld [vmem:[%s5530_s24 + $0x3c0] sm:$0xff]  ;;  %v296_v12 = vld [vmem:[%s5530_s24 + $0x3c8] sm:$0xff] }
  0xe8   : > { %5305 = vmatprep.mubr.msk.bf16.mxu1 %vm982_vm0, %v869_v13  ;;  %v551_v13 = vld [vmem:[%s5530_s24 + $0xbc0] sm:$0xff] }
  0xe9   : > { %v4943_v23 = vpop.f32.mrb[0].mxu0 }
  0xea   : > { %v5199_v24 = vpop.f32.mrb[0].mxu1  ;;  %v1794_v25 = vadd.f32 %v4943_v23, %v5866_v14  ;;  %v1785_v27 = vpop.f32.mrb[1].mxu0  ;;  %v874_v23 = vpack.c.bf16 %v550_v10, %v549_v9 }
  0xeb   : > { %v2818_v26 = vadd.f32 %v5199_v24, %v5866_v14  ;;  %v2809_v28 = vpop.f32.mrb[1].mxu1  ;;  %v1786_v31 = vadd.f32 %v5866_v14, %v1785_v27  ;;  %v4944_v33 = vpop.f32.mrb[2].mxu0 }
  0xec   : > { %v2810_v32 = vadd.f32 %v5866_v14, %v2809_v28  ;;  %v5200_v34 = vpop.f32.mrb[2].mxu1  ;;  %3835 = vst.msk [vmem:[%s5883_s4 + $0x10] sm:$0xff] %vm3832_vm1, %v1794_v25  ;;  %v1797_v37 = vadd.f32 %v4944_v33, %v5866_v14  ;;  %v1788_v39 = vpop.f32.mrb[3].mxu0  ;;  %v747_v28 = vpack.c.bf16 %v296_v12, %v295_v11 }
  0xed   : > { %4091 = vst.msk [vmem:[%s5883_s4 + $0x810] sm:$0xff] %vm3832_vm1, %v2818_v26  ;;  %v2821_v38 = vadd.f32 %v5200_v34, %v5866_v14  ;;  %v2812_v40 = vpop.f32.mrb[3].mxu1  ;;  %3833 = vst.msk [vmem:[%s5883_s4] sm:$0xff] %vm3832_vm1, %v1786_v31  ;;  %v1789_v41 = vadd.f32 %v5866_v14, %v1788_v39  ;;  %v554_v39 = vld [vmem:[%s5530_s24 + $0xbd8] sm:$0xff] }
  0xee   : > { %4089 = vst.msk [vmem:[%s5883_s4 + $0x800] sm:$0xff] %vm3832_vm1, %v2810_v32  ;;  %v2813_v42 = vadd.f32 %v5866_v14, %v2812_v40  ;;  %3836 = vst.msk [vmem:[%s5883_s4 + $0x18] sm:$0xff] %vm3832_vm1, %v1797_v37  ;;  %5050 = vmatmul.mubr.msk.bf16.gmra.mrb[108].mxu0 %vm982_vm0, %v742_v29  ;;  %v875_v29 = vpack.c.bf16 %v552_v15, %v551_v13  ;;  %v298_v37 = vld [vmem:[%s5530_s24 + $0x3d8] sm:$0xff]  ;;  %v299_v40 = vld [vmem:[%s5530_s24 + $0x3e0] sm:$0xff] }
  0xef   : > { %4092 = vst.msk [vmem:[%s5883_s4 + $0x818] sm:$0xff] %vm3832_vm1, %v2821_v38  ;;  %5306 = vmatmul.mubr.msk.bf16.gmra.mrb[108].mxu1 %vm982_vm0, %v870_v30  ;;  %3834 = vst.msk [vmem:[%s5883_s4 + $0x8] sm:$0xff] %vm3832_vm1, %v1789_v41  ;;  %5053 = vmatprep.mubr.msk.bf16.mxu0 %vm982_vm0, %v743_v35  ;;  %v553_v38 = vld [vmem:[%s5530_s24 + $0xbd0] sm:$0xff]  ;;  %v300_v41 = vld [vmem:[%s5530_s24 + $0x3e8] sm:$0xff] }
  0xf0   : > { %4090 = vst.msk [vmem:[%s5883_s4 + $0x808] sm:$0xff] %vm3832_vm1, %v2813_v42  ;;  %5309 = vmatprep.mubr.msk.bf16.mxu1 %vm982_vm0, %v871_v36  ;;  %v297_v36 = vld [vmem:[%s5530_s24 + $0x3d0] sm:$0xff]  ;;  %v555_v42 = vld [vmem:[%s5530_s24 + $0xbe0] sm:$0xff] }
  0xf1   : > { %v4947_v51 = vpop.f32.mrb[4].mxu0  ;;  %v748_v50 = vpack.c.bf16 %v298_v37, %v297_v36  ;;  %v564_v36 = vld [vmem:[%s5530_s24 + $0xc28] sm:$0xff] }
  0xf2   : > { %v5203_v52 = vpop.f32.mrb[4].mxu1  ;;  %v1810_v53 = vadd.f32 %v4947_v51, %v5866_v14  ;;  %v1801_v55 = vpop.f32.mrb[5].mxu0  ;;  %v876_v51 = vpack.c.bf16 %v554_v39, %v553_v38 }
  0xf3   : > { %v2834_v54 = vadd.f32 %v5203_v52, %v5866_v14  ;;  %v2825_v56 = vpop.f32.mrb[5].mxu1  ;;  %v1802_v59 = vadd.f32 %v5866_v14, %v1801_v55  ;;  %v4948_v61 = vpop.f32.mrb[6].mxu0 }
  0xf4   : > { %v2826_v60 = vadd.f32 %v5866_v14, %v2825_v56  ;;  %v5204_v62 = vpop.f32.mrb[6].mxu1  ;;  %3839 = vst.msk [vmem:[%s5883_s4 + $0x30] sm:$0xff] %vm3832_vm1, %v1810_v53  ;;  %v1813_v1 = vadd.f32 %v4948_v61, %v5866_v14  ;;  %v1804_v3 = vpop.f32.mrb[7].mxu0  ;;  %v749_v56 = vpack.c.bf16 %v300_v41, %v299_v40 }
  0xf5   : > { %4095 = vst.msk [vmem:[%s5883_s4 + $0x830] sm:$0xff] %vm3832_vm1, %v2834_v54  ;;  %v2837_v2 = vadd.f32 %v5204_v62, %v5866_v14  ;;  %v2828_v4 = vpop.f32.mrb[7].mxu1  ;;  %3837 = vst.msk [vmem:[%s5883_s4 + $0x20] sm:$0xff] %vm3832_vm1, %v1802_v59  ;;  %v1805_v5 = vadd.f32 %v5866_v14, %v1804_v3  ;;  %v558_v3 = vld [vmem:[%s5530_s24 + $0xbf8] sm:$0xff] }
  0xf6   : > { %4093 = vst.msk [vmem:[%s5883_s4 + $0x820] sm:$0xff] %vm3832_vm1, %v2826_v60  ;;  %v2829_v6 = vadd.f32 %v5866_v14, %v2828_v4  ;;  %3840 = vst.msk [vmem:[%s5883_s4 + $0x38] sm:$0xff] %vm3832_vm1, %v1813_v1  ;;  %5054 = vmatmul.mubr.msk.bf16.gmra.mrb[112].mxu0 %vm982_vm0, %v744_v57  ;;  %v877_v57 = vpack.c.bf16 %v556_v43, %v555_v42  ;;  %v302_v1 = vld [vmem:[%s5530_s24 + $0x3f8] sm:$0xff]  ;;  %v303_v4 = vld [vmem:[%s5530_s24 + $0x400] sm:$0xff] }
  0xf7   : > { %4096 = vst.msk [vmem:[%s5883_s4 + $0x838] sm:$0xff] %vm3832_vm1, %v2837_v2  ;;  %5310 = vmatmul.mubr.msk.bf16.gmra.mrb[112].mxu1 %vm982_vm0, %v872_v58  ;;  %3838 = vst.msk [vmem:[%s5883_s4 + $0x28] sm:$0xff] %vm3832_vm1, %v1805_v5  ;;  %5057 = vmatprep.mubr.msk.bf16.mxu0 %vm982_vm0, %v745_v63  ;;  %v557_v2 = vld [vmem:[%s5530_s24 + $0xbf0] sm:$0xff]  ;;  %v304_v5 = vld [vmem:[%s5530_s24 + $0x408] sm:$0xff] }
  0xf8   : > { %4094 = vst.msk [vmem:[%s5883_s4 + $0x828] sm:$0xff] %vm3832_vm1, %v2829_v6  ;;  %5313 = vmatprep.mubr.msk.bf16.mxu1 %vm982_vm0, %v873_v0  ;;  %v301_v0 = vld [vmem:[%s5530_s24 + $0x3f0] sm:$0xff]  ;;  %v559_v6 = vld [vmem:[%s5530_s24 + $0xc00] sm:$0xff] }
  0xf9   : > { %v4951_v16 = vpop.f32.mrb[8].mxu0  ;;  %v750_v15 = vpack.c.bf16 %v302_v1, %v301_v0  ;;  %v568_v0 = vld [vmem:[%s5530_s24 + $0xc48] sm:$0xff] }
  0xfa   : > { %v5207_v17 = vpop.f32.mrb[8].mxu1  ;;  %v1826_v18 = vadd.f32 %v4951_v16, %v5866_v14  ;;  %v1817_v20 = vpop.f32.mrb[9].mxu0  ;;  %v878_v16 = vpack.c.bf16 %v558_v3, %v557_v2 }
  0xfb   : > { %v2850_v19 = vadd.f32 %v5207_v17, %v5866_v14  ;;  %v2841_v21 = vpop.f32.mrb[9].mxu1  ;;  %v1818_v24 = vadd.f32 %v5866_v14, %v1817_v20  ;;  %v4952_v26 = vpop.f32.mrb[10].mxu0 }
  0xfc   : > { %v2842_v25 = vadd.f32 %v5866_v14, %v2841_v21  ;;  %v5208_v27 = vpop.f32.mrb[10].mxu1  ;;  %3843 = vst.msk [vmem:[%s5883_s4 + $0x50] sm:$0xff] %vm3832_vm1, %v1826_v18  ;;  %v1829_v30 = vadd.f32 %v4952_v26, %v5866_v14  ;;  %v1820_v32 = vpop.f32.mrb[11].mxu0  ;;  %v751_v21 = vpack.c.bf16 %v304_v5, %v303_v4 }
  0xfd   : > { %4099 = vst.msk [vmem:[%s5883_s4 + $0x850] sm:$0xff] %vm3832_vm1, %v2850_v19  ;;  %v2853_v31 = vadd.f32 %v5208_v27, %v5866_v14  ;;  %v2844_v33 = vpop.f32.mrb[11].mxu1  ;;  %3841 = vst.msk [vmem:[%s5883_s4 + $0x40] sm:$0xff] %vm3832_vm1, %v1818_v24  ;;  %v1821_v34 = vadd.f32 %v5866_v14, %v1820_v32  ;;  %v562_v32 = vld [vmem:[%s5530_s24 + $0xc18] sm:$0xff] }
  0xfe   : > { %4097 = vst.msk [vmem:[%s5883_s4 + $0x840] sm:$0xff] %vm3832_vm1, %v2842_v25  ;;  %v2845_v35 = vadd.f32 %v5866_v14, %v2844_v33  ;;  %3844 = vst.msk [vmem:[%s5883_s4 + $0x58] sm:$0xff] %vm3832_vm1, %v1829_v30  ;;  %5058 = vmatmul.mubr.msk.bf16.gmra.mrb[116].mxu0 %vm982_vm0, %v746_v22  ;;  %v879_v22 = vpack.c.bf16 %v560_v7, %v559_v6  ;;  %v306_v30 = vld [vmem:[%s5530_s24 + $0x418] sm:$0xff]  ;;  %v307_v33 = vld [vmem:[%s5530_s24 + $0x420] sm:$0xff] }
  0xff   : > { %4100 = vst.msk [vmem:[%s5883_s4 + $0x858] sm:$0xff] %vm3832_vm1, %v2853_v31  ;;  %5314 = vmatmul.mubr.msk.bf16.gmra.mrb[116].mxu1 %vm982_vm0, %v874_v23  ;;  %3842 = vst.msk [vmem:[%s5883_s4 + $0x48] sm:$0xff] %vm3832_vm1, %v1821_v34  ;;  %5061 = vmatprep.mubr.msk.bf16.mxu0 %vm982_vm0, %v747_v28  ;;  %v561_v31 = vld [vmem:[%s5530_s24 + $0xc10] sm:$0xff]  ;;  %v308_v34 = vld [vmem:[%s5530_s24 + $0x428] sm:$0xff] }
 0x100   : > { %4098 = vst.msk [vmem:[%s5883_s4 + $0x848] sm:$0xff] %vm3832_vm1, %v2845_v35  ;;  %5317 = vmatprep.mubr.msk.bf16.mxu1 %vm982_vm0, %v875_v29  ;;  %v305_v29 = vld [vmem:[%s5530_s24 + $0x410] sm:$0xff]  ;;  %v563_v35 = vld [vmem:[%s5530_s24 + $0xc20] sm:$0xff] }
 0x101   : > { %v4955_v44 = vpop.f32.mrb[12].mxu0  ;;  %v752_v43 = vpack.c.bf16 %v306_v30, %v305_v29  ;;  %v572_v29 = vld [vmem:[%s5530_s24 + $0xc68] sm:$0xff] }
 0x102   : > { %v5211_v45 = vpop.f32.mrb[12].mxu1  ;;  %v1842_v46 = vadd.f32 %v4955_v44, %v5866_v14  ;;  %v1833_v48 = vpop.f32.mrb[13].mxu0  ;;  %v880_v44 = vpack.c.bf16 %v562_v32, %v561_v31 }
 0x103   : > { %v2866_v47 = vadd.f32 %v5211_v45, %v5866_v14  ;;  %v2857_v49 = vpop.f32.mrb[13].mxu1  ;;  %v1834_v52 = vadd.f32 %v5866_v14, %v1833_v48  ;;  %v4956_v54 = vpop.f32.mrb[14].mxu0 }
 0x104   : > { %v2858_v53 = vadd.f32 %v5866_v14, %v2857_v49  ;;  %v5212_v55 = vpop.f32.mrb[14].mxu1  ;;  %3847 = vst.msk [vmem:[%s5883_s4 + $0x70] sm:$0xff] %vm3832_vm1, %v1842_v46  ;;  %v1845_v58 = vadd.f32 %v4956_v54, %v5866_v14  ;;  %v1836_v60 = vpop.f32.mrb[15].mxu0  ;;  %v753_v49 = vpack.c.bf16 %v308_v34, %v307_v33 }
 0x105   : > { %4103 = vst.msk [vmem:[%s5883_s4 + $0x870] sm:$0xff] %vm3832_vm1, %v2866_v47  ;;  %v2869_v59 = vadd.f32 %v5212_v55, %v5866_v14  ;;  %v2860_v61 = vpop.f32.mrb[15].mxu1  ;;  %3845 = vst.msk [vmem:[%s5883_s4 + $0x60] sm:$0xff] %vm3832_vm1, %v1834_v52  ;;  %v1837_v62 = vadd.f32 %v5866_v14, %v1836_v60  ;;  %v566_v60 = vld [vmem:[%s5530_s24 + $0xc38] sm:$0xff] }
 0x106   : > { %4101 = vst.msk [vmem:[%s5883_s4 + $0x860] sm:$0xff] %vm3832_vm1, %v2858_v53  ;;  %v2861_v63 = vadd.f32 %v5866_v14, %v2860_v61  ;;  %3848 = vst.msk [vmem:[%s5883_s4 + $0x78] sm:$0xff] %vm3832_vm1, %v1845_v58  ;;  %5062 = vmatmul.mubr.msk.bf16.gmra.mrb[120].mxu0 %vm982_vm0, %v748_v50  ;;  %v881_v50 = vpack.c.bf16 %v564_v36, %v563_v35  ;;  %v310_v58 = vld [vmem:[%s5530_s24 + $0x438] sm:$0xff]  ;;  %v311_v61 = vld [vmem:[%s5530_s24 + $0x440] sm:$0xff] }
 0x107   : > { %4104 = vst.msk [vmem:[%s5883_s4 + $0x878] sm:$0xff] %vm3832_vm1, %v2869_v59  ;;  %5318 = vmatmul.mubr.msk.bf16.gmra.mrb[120].mxu1 %vm982_vm0, %v876_v51  ;;  %3846 = vst.msk [vmem:[%s5883_s4 + $0x68] sm:$0xff] %vm3832_vm1, %v1837_v62  ;;  %5065 = vmatprep.mubr.msk.bf16.mxu0 %vm982_vm0, %v749_v56  ;;  %v565_v59 = vld [vmem:[%s5530_s24 + $0xc30] sm:$0xff]  ;;  %v312_v62 = vld [vmem:[%s5530_s24 + $0x448] sm:$0xff] }
 0x108   : > { %4102 = vst.msk [vmem:[%s5883_s4 + $0x868] sm:$0xff] %vm3832_vm1, %v2861_v63  ;;  %5321 = vmatprep.mubr.msk.bf16.mxu1 %vm982_vm0, %v877_v57  ;;  %v309_v57 = vld [vmem:[%s5530_s24 + $0x430] sm:$0xff]  ;;  %v567_v63 = vld [vmem:[%s5530_s24 + $0xc40] sm:$0xff] }
 0x109   : > { %v4959_v8 = vpop.f32.mrb[16].mxu0  ;;  %v754_v7 = vpack.c.bf16 %v310_v58, %v309_v57  ;;  %v576_v57 = vld [vmem:[%s5530_s24 + $0xc88] sm:$0xff] }
 0x10a   : > { %v5215_v9 = vpop.f32.mrb[16].mxu1  ;;  %v1858_v10 = vadd.f32 %v4959_v8, %v5866_v14  ;;  %v1849_v12 = vpop.f32.mrb[17].mxu0  ;;  %v882_v8 = vpack.c.bf16 %v566_v60, %v565_v59 }
 0x10b   : > { %v2882_v11 = vadd.f32 %v5215_v9, %v5866_v14  ;;  %v2873_v13 = vpop.f32.mrb[17].mxu1  ;;  %v1850_v17 = vadd.f32 %v5866_v14, %v1849_v12  ;;  %v4960_v19 = vpop.f32.mrb[18].mxu0 }
 0x10c   : > { %v2874_v18 = vadd.f32 %v5866_v14, %v2873_v13  ;;  %v5216_v20 = vpop.f32.mrb[18].mxu1  ;;  %3851 = vst.msk [vmem:[%s5883_s4 + $0x90] sm:$0xff] %vm3832_vm1, %v1858_v10  ;;  %v1861_v23 = vadd.f32 %v4960_v19, %v5866_v14  ;;  %v1852_v25 = vpop.f32.mrb[19].mxu0  ;;  %v755_v13 = vpack.c.bf16 %v312_v62, %v311_v61 }
 0x10d   : > { %4107 = vst.msk [vmem:[%s5883_s4 + $0x890] sm:$0xff] %vm3832_vm1, %v2882_v11  ;;  %v2885_v24 = vadd.f32 %v5216_v20, %v5866_v14  ;;  %v2876_v26 = vpop.f32.mrb[19].mxu1  ;;  %3849 = vst.msk [vmem:[%s5883_s4 + $0x80] sm:$0xff] %vm3832_vm1, %v1850_v17  ;;  %v1853_v27 = vadd.f32 %v5866_v14, %v1852_v25  ;;  %v570_v25 = vld [vmem:[%s5530_s24 + $0xc58] sm:$0xff] }
 0x10e   : > { %4105 = vst.msk [vmem:[%s5883_s4 + $0x880] sm:$0xff] %vm3832_vm1, %v2874_v18  ;;  %v2877_v28 = vadd.f32 %v5866_v14, %v2876_v26  ;;  %3852 = vst.msk [vmem:[%s5883_s4 + $0x98] sm:$0xff] %vm3832_vm1, %v1861_v23  ;;  %5066 = vmatmul.mubr.msk.bf16.gmra.mrb[124].mxu0 %vm982_vm0, %v750_v15  ;;  %v883_v15 = vpack.c.bf16 %v568_v0, %v567_v63  ;;  %v314_v23 = vld [vmem:[%s5530_s24 + $0x458] sm:$0xff]  ;;  %v315_v26 = vld [vmem:[%s5530_s24 + $0x460] sm:$0xff] }
 0x10f   : > { %4108 = vst.msk [vmem:[%s5883_s4 + $0x898] sm:$0xff] %vm3832_vm1, %v2885_v24  ;;  %5322 = vmatmul.mubr.msk.bf16.gmra.mrb[124].mxu1 %vm982_vm0, %v878_v16  ;;  %3850 = vst.msk [vmem:[%s5883_s4 + $0x88] sm:$0xff] %vm3832_vm1, %v1853_v27  ;;  %5069 = vmatprep.mubr.msk.bf16.mxu0 %vm982_vm0, %v751_v21  ;;  %v569_v24 = vld [vmem:[%s5530_s24 + $0xc50] sm:$0xff]  ;;  %v316_v27 = vld [vmem:[%s5530_s24 + $0x468] sm:$0xff] }
 0x110   : > { %4106 = vst.msk [vmem:[%s5883_s4 + $0x888] sm:$0xff] %vm3832_vm1, %v2877_v28  ;;  %5325 = vmatprep.mubr.msk.bf16.mxu1 %vm982_vm0, %v879_v22  ;;  %v313_v22 = vld [vmem:[%s5530_s24 + $0x450] sm:$0xff]  ;;  %v571_v28 = vld [vmem:[%s5530_s24 + $0xc60] sm:$0xff] }
 0x111   : > { %v4963_v37 = vpop.f32.mrb[20].mxu0  ;;  %v756_v36 = vpack.c.bf16 %v314_v23, %v313_v22  ;;  %v580_v22 = vld [vmem:[%s5530_s24 + $0xca8] sm:$0xff] }
 0x112   : > { %v5219_v38 = vpop.f32.mrb[20].mxu1  ;;  %v1874_v39 = vadd.f32 %v4963_v37, %v5866_v14  ;;  %v1865_v41 = vpop.f32.mrb[21].mxu0  ;;  %v884_v37 = vpack.c.bf16 %v570_v25, %v569_v24 }
 0x113   : > { %v2898_v40 = vadd.f32 %v5219_v38, %v5866_v14  ;;  %v2889_v42 = vpop.f32.mrb[21].mxu1  ;;  %v1866_v45 = vadd.f32 %v5866_v14, %v1865_v41  ;;  %v4964_v47 = vpop.f32.mrb[22].mxu0 }
 0x114   : > { %v2890_v46 = vadd.f32 %v5866_v14, %v2889_v42  ;;  %v5220_v48 = vpop.f32.mrb[22].mxu1  ;;  %3855 = vst.msk [vmem:[%s5883_s4 + $0xb0] sm:$0xff] %vm3832_vm1, %v1874_v39  ;;  %v1877_v51 = vadd.f32 %v4964_v47, %v5866_v14  ;;  %v1868_v53 = vpop.f32.mrb[23].mxu0  ;;  %v757_v42 = vpack.c.bf16 %v316_v27, %v315_v26 }
 0x115   : > { %4111 = vst.msk [vmem:[%s5883_s4 + $0x8b0] sm:$0xff] %vm3832_vm1, %v2898_v40  ;;  %v2901_v52 = vadd.f32 %v5220_v48, %v5866_v14  ;;  %v2892_v54 = vpop.f32.mrb[23].mxu1  ;;  %3853 = vst.msk [vmem:[%s5883_s4 + $0xa0] sm:$0xff] %vm3832_vm1, %v1866_v45  ;;  %v1869_v55 = vadd.f32 %v5866_v14, %v1868_v53  ;;  %v574_v53 = vld [vmem:[%s5530_s24 + $0xc78] sm:$0xff] }
 0x116   : > { %4109 = vst.msk [vmem:[%s5883_s4 + $0x8a0] sm:$0xff] %vm3832_vm1, %v2890_v46  ;;  %v2893_v56 = vadd.f32 %v5866_v14, %v2892_v54  ;;  %3856 = vst.msk [vmem:[%s5883_s4 + $0xb8] sm:$0xff] %vm3832_vm1, %v1877_v51  ;;  %5070 = vmatmul.mubr.msk.bf16.gmra.mrb[128].mxu0 %vm982_vm0, %v752_v43  ;;  %v885_v43 = vpack.c.bf16 %v572_v29, %v571_v28  ;;  %v318_v51 = vld [vmem:[%s5530_s24 + $0x478] sm:$0xff]  ;;  %v319_v54 = vld [vmem:[%s5530_s24 + $0x480] sm:$0xff] }
 0x117   : > { %4112 = vst.msk [vmem:[%s5883_s4 + $0x8b8] sm:$0xff] %vm3832_vm1, %v2901_v52  ;;  %5326 = vmatmul.mubr.msk.bf16.gmra.mrb[128].mxu1 %vm982_vm0, %v880_v44  ;;  %3854 = vst.msk [vmem:[%s5883_s4 + $0xa8] sm:$0xff] %vm3832_vm1, %v1869_v55  ;;  %5073 = vmatprep.mubr.msk.bf16.mxu0 %vm982_vm0, %v753_v49  ;;  %v573_v52 = vld [vmem:[%s5530_s24 + $0xc70] sm:$0xff]  ;;  %v320_v55 = vld [vmem:[%s5530_s24 + $0x488] sm:$0xff] }
 0x118   : > { %4110 = vst.msk [vmem:[%s5883_s4 + $0x8a8] sm:$0xff] %vm3832_vm1, %v2893_v56  ;;  %5329 = vmatprep.mubr.msk.bf16.mxu1 %vm982_vm0, %v881_v50  ;;  %v317_v50 = vld [vmem:[%s5530_s24 + $0x470] sm:$0xff]  ;;  %v575_v56 = vld [vmem:[%s5530_s24 + $0xc80] sm:$0xff] }
 0x119   : > { %v4967_v1 = vpop.f32.mrb[24].mxu0  ;;  %v758_v0 = vpack.c.bf16 %v318_v51, %v317_v50  ;;  %v584_v50 = vld [vmem:[%s5530_s24 + $0xcc8] sm:$0xff] }
 0x11a   : > { %v5223_v2 = vpop.f32.mrb[24].mxu1  ;;  %v1890_v3 = vadd.f32 %v4967_v1, %v5866_v14  ;;  %v1881_v5 = vpop.f32.mrb[25].mxu0  ;;  %v886_v1 = vpack.c.bf16 %v574_v53, %v573_v52 }
 0x11b   : > { %v2914_v4 = vadd.f32 %v5223_v2, %v5866_v14  ;;  %v2905_v6 = vpop.f32.mrb[25].mxu1  ;;  %v1882_v9 = vadd.f32 %v5866_v14, %v1881_v5  ;;  %v4968_v11 = vpop.f32.mrb[26].mxu0 }
 0x11c   : > { %v2906_v10 = vadd.f32 %v5866_v14, %v2905_v6  ;;  %v5224_v12 = vpop.f32.mrb[26].mxu1  ;;  %3859 = vst.msk [vmem:[%s5883_s4 + $0xd0] sm:$0xff] %vm3832_vm1, %v1890_v3  ;;  %v1893_v16 = vadd.f32 %v4968_v11, %v5866_v14  ;;  %v1884_v18 = vpop.f32.mrb[27].mxu0  ;;  %v759_v6 = vpack.c.bf16 %v320_v55, %v319_v54 }
 0x11d   : > { %4115 = vst.msk [vmem:[%s5883_s4 + $0x8d0] sm:$0xff] %vm3832_vm1, %v2914_v4  ;;  %v2917_v17 = vadd.f32 %v5224_v12, %v5866_v14  ;;  %v2908_v19 = vpop.f32.mrb[27].mxu1  ;;  %3857 = vst.msk [vmem:[%s5883_s4 + $0xc0] sm:$0xff] %vm3832_vm1, %v1882_v9  ;;  %v1885_v20 = vadd.f32 %v5866_v14, %v1884_v18  ;;  %v578_v18 = vld [vmem:[%s5530_s24 + $0xc98] sm:$0xff] }
 0x11e   : > { %4113 = vst.msk [vmem:[%s5883_s4 + $0x8c0] sm:$0xff] %vm3832_vm1, %v2906_v10  ;;  %v2909_v21 = vadd.f32 %v5866_v14, %v2908_v19  ;;  %3860 = vst.msk [vmem:[%s5883_s4 + $0xd8] sm:$0xff] %vm3832_vm1, %v1893_v16  ;;  %5074 = vmatmul.mubr.msk.bf16.gmra.mrb[132].mxu0 %vm982_vm0, %v754_v7  ;;  %v887_v7 = vpack.c.bf16 %v576_v57, %v575_v56  ;;  %v322_v16 = vld [vmem:[%s5530_s24 + $0x498] sm:$0xff]  ;;  %v323_v19 = vld [vmem:[%s5530_s24 + $0x4a0] sm:$0xff] }
 0x11f   : > { %4116 = vst.msk [vmem:[%s5883_s4 + $0x8d8] sm:$0xff] %vm3832_vm1, %v2917_v17  ;;  %5330 = vmatmul.mubr.msk.bf16.gmra.mrb[132].mxu1 %vm982_vm0, %v882_v8  ;;  %3858 = vst.msk [vmem:[%s5883_s4 + $0xc8] sm:$0xff] %vm3832_vm1, %v1885_v20  ;;  %5077 = vmatprep.mubr.msk.bf16.mxu0 %vm982_vm0, %v755_v13  ;;  %v577_v17 = vld [vmem:[%s5530_s24 + $0xc90] sm:$0xff]  ;;  %v324_v20 = vld [vmem:[%s5530_s24 + $0x4a8] sm:$0xff] }
 0x120   : > { %4114 = vst.msk [vmem:[%s5883_s4 + $0x8c8] sm:$0xff] %vm3832_vm1, %v2909_v21  ;;  %5333 = vmatprep.mubr.msk.bf16.mxu1 %vm982_vm0, %v883_v15  ;;  %v321_v15 = vld [vmem:[%s5530_s24 + $0x490] sm:$0xff]  ;;  %v579_v21 = vld [vmem:[%s5530_s24 + $0xca0] sm:$0xff] }
 0x121   : > { %v4971_v30 = vpop.f32.mrb[28].mxu0  ;;  %v760_v29 = vpack.c.bf16 %v322_v16, %v321_v15  ;;  %v588_v15 = vld [vmem:[%s5530_s24 + $0xce8] sm:$0xff] }
 0x122   : > { %v5227_v31 = vpop.f32.mrb[28].mxu1  ;;  %v1906_v32 = vadd.f32 %v4971_v30, %v5866_v14  ;;  %v1897_v34 = vpop.f32.mrb[29].mxu0  ;;  %v888_v30 = vpack.c.bf16 %v578_v18, %v577_v17 }
 0x123   : > { %v2930_v33 = vadd.f32 %v5227_v31, %v5866_v14  ;;  %v2921_v35 = vpop.f32.mrb[29].mxu1  ;;  %v1898_v38 = vadd.f32 %v5866_v14, %v1897_v34  ;;  %v4972_v40 = vpop.f32.mrb[30].mxu0 }
 0x124   : > { %v2922_v39 = vadd.f32 %v5866_v14, %v2921_v35  ;;  %v5228_v41 = vpop.f32.mrb[30].mxu1  ;;  %3863 = vst.msk [vmem:[%s5883_s4 + $0xf0] sm:$0xff] %vm3832_vm1, %v1906_v32  ;;  %v1909_v44 = vadd.f32 %v4972_v40, %v5866_v14  ;;  %v1900_v46 = vpop.f32.mrb[31].mxu0  ;;  %v761_v35 = vpack.c.bf16 %v324_v20, %v323_v19 }
 0x125   : > { %4119 = vst.msk [vmem:[%s5883_s4 + $0x8f0] sm:$0xff] %vm3832_vm1, %v2930_v33  ;;  %v2933_v45 = vadd.f32 %v5228_v41, %v5866_v14  ;;  %v2924_v47 = vpop.f32.mrb[31].mxu1  ;;  %3861 = vst.msk [vmem:[%s5883_s4 + $0xe0] sm:$0xff] %vm3832_vm1, %v1898_v38  ;;  %v1901_v48 = vadd.f32 %v5866_v14, %v1900_v46  ;;  %v582_v46 = vld [vmem:[%s5530_s24 + $0xcb8] sm:$0xff] }
 0x126   : > { %4117 = vst.msk [vmem:[%s5883_s4 + $0x8e0] sm:$0xff] %vm3832_vm1, %v2922_v39  ;;  %v2925_v49 = vadd.f32 %v5866_v14, %v2924_v47  ;;  %3864 = vst.msk [vmem:[%s5883_s4 + $0xf8] sm:$0xff] %vm3832_vm1, %v1909_v44  ;;  %5078 = vmatmul.mubr.msk.bf16.gmra.mrb[136].mxu0 %vm982_vm0, %v756_v36  ;;  %v889_v36 = vpack.c.bf16 %v580_v22, %v579_v21  ;;  %v326_v44 = vld [vmem:[%s5530_s24 + $0x4b8] sm:$0xff]  ;;  %v327_v47 = vld [vmem:[%s5530_s24 + $0x4c0] sm:$0xff] }
 0x127   : > { %4120 = vst.msk [vmem:[%s5883_s4 + $0x8f8] sm:$0xff] %vm3832_vm1, %v2933_v45  ;;  %5334 = vmatmul.mubr.msk.bf16.gmra.mrb[136].mxu1 %vm982_vm0, %v884_v37  ;;  %3862 = vst.msk [vmem:[%s5883_s4 + $0xe8] sm:$0xff] %vm3832_vm1, %v1901_v48  ;;  %5081 = vmatprep.mubr.msk.bf16.mxu0 %vm982_vm0, %v757_v42  ;;  %v581_v45 = vld [vmem:[%s5530_s24 + $0xcb0] sm:$0xff]  ;;  %v328_v48 = vld [vmem:[%s5530_s24 + $0x4c8] sm:$0xff] }
 0x128   : > { %4118 = vst.msk [vmem:[%s5883_s4 + $0x8e8] sm:$0xff] %vm3832_vm1, %v2925_v49  ;;  %5337 = vmatprep.mubr.msk.bf16.mxu1 %vm982_vm0, %v885_v43  ;;  %v325_v43 = vld [vmem:[%s5530_s24 + $0x4b0] sm:$0xff]  ;;  %v583_v49 = vld [vmem:[%s5530_s24 + $0xcc0] sm:$0xff] }
 0x129   : > { %v4975_v58 = vpop.f32.mrb[32].mxu0  ;;  %v762_v57 = vpack.c.bf16 %v326_v44, %v325_v43  ;;  %v592_v43 = vld [vmem:[%s5530_s24 + $0xd08] sm:$0xff] }
 0x12a   : > { %v5231_v59 = vpop.f32.mrb[32].mxu1  ;;  %v1922_v60 = vadd.f32 %v4975_v58, %v5866_v14  ;;  %v1913_v62 = vpop.f32.mrb[33].mxu0  ;;  %v890_v58 = vpack.c.bf16 %v582_v46, %v581_v45 }
 0x12b   : > { %v2946_v61 = vadd.f32 %v5231_v59, %v5866_v14  ;;  %v2937_v63 = vpop.f32.mrb[33].mxu1  ;;  %v1914_v2 = vadd.f32 %v5866_v14, %v1913_v62  ;;  %v4976_v4 = vpop.f32.mrb[34].mxu0 }
 0x12c   : > { %v2938_v3 = vadd.f32 %v5866_v14, %v2937_v63  ;;  %v5232_v5 = vpop.f32.mrb[34].mxu1  ;;  %3867 = vst.msk [vmem:[%s5883_s4 + $0x110] sm:$0xff] %vm3832_vm1, %v1922_v60  ;;  %v1925_v8 = vadd.f32 %v4976_v4, %v5866_v14  ;;  %v1916_v10 = vpop.f32.mrb[35].mxu0  ;;  %v763_v63 = vpack.c.bf16 %v328_v48, %v327_v47 }
 0x12d   : > { %4123 = vst.msk [vmem:[%s5883_s4 + $0x910] sm:$0xff] %vm3832_vm1, %v2946_v61  ;;  %v2949_v9 = vadd.f32 %v5232_v5, %v5866_v14  ;;  %v2940_v11 = vpop.f32.mrb[35].mxu1  ;;  %3865 = vst.msk [vmem:[%s5883_s4 + $0x100] sm:$0xff] %vm3832_vm1, %v1914_v2  ;;  %v1917_v12 = vadd.f32 %v5866_v14, %v1916_v10  ;;  %v586_v10 = vld [vmem:[%s5530_s24 + $0xcd8] sm:$0xff] }
 0x12e   : > { %4121 = vst.msk [vmem:[%s5883_s4 + $0x900] sm:$0xff] %vm3832_vm1, %v2938_v3  ;;  %v2941_v13 = vadd.f32 %v5866_v14, %v2940_v11  ;;  %3868 = vst.msk [vmem:[%s5883_s4 + $0x118] sm:$0xff] %vm3832_vm1, %v1925_v8  ;;  %5082 = vmatmul.mubr.msk.bf16.gmra.mrb[140].mxu0 %vm982_vm0, %v758_v0  ;;  %v891_v0 = vpack.c.bf16 %v584_v50, %v583_v49  ;;  %v330_v8 = vld [vmem:[%s5530_s24 + $0x4d8] sm:$0xff]  ;;  %v331_v11 = vld [vmem:[%s5530_s24 + $0x4e0] sm:$0xff] }
 0x12f   : > { %4124 = vst.msk [vmem:[%s5883_s4 + $0x918] sm:$0xff] %vm3832_vm1, %v2949_v9  ;;  %5338 = vmatmul.mubr.msk.bf16.gmra.mrb[140].mxu1 %vm982_vm0, %v886_v1  ;;  %3866 = vst.msk [vmem:[%s5883_s4 + $0x108] sm:$0xff] %vm3832_vm1, %v1917_v12  ;;  %5085 = vmatprep.mubr.msk.bf16.mxu0 %vm982_vm0, %v759_v6  ;;  %v585_v9 = vld [vmem:[%s5530_s24 + $0xcd0] sm:$0xff]  ;;  %v332_v12 = vld [vmem:[%s5530_s24 + $0x4e8] sm:$0xff] }
 0x130   : > { %4122 = vst.msk [vmem:[%s5883_s4 + $0x908] sm:$0xff] %vm3832_vm1, %v2941_v13  ;;  %5341 = vmatprep.mubr.msk.bf16.mxu1 %vm982_vm0, %v887_v7  ;;  %v329_v7 = vld [vmem:[%s5530_s24 + $0x4d0] sm:$0xff]  ;;  %v587_v13 = vld [vmem:[%s5530_s24 + $0xce0] sm:$0xff] }
 0x131   : > { %v4979_v23 = vpop.f32.mrb[36].mxu0  ;;  %v764_v22 = vpack.c.bf16 %v330_v8, %v329_v7  ;;  %v596_v7 = vld [vmem:[%s5530_s24 + $0xd28] sm:$0xff] }
 0x132   : > { %v5235_v24 = vpop.f32.mrb[36].mxu1  ;;  %v1938_v25 = vadd.f32 %v4979_v23, %v5866_v14  ;;  %v1929_v27 = vpop.f32.mrb[37].mxu0  ;;  %v892_v23 = vpack.c.bf16 %v586_v10, %v585_v9 }
 0x133   : > { %v2962_v26 = vadd.f32 %v5235_v24, %v5866_v14  ;;  %v2953_v28 = vpop.f32.mrb[37].mxu1  ;;  %v1930_v31 = vadd.f32 %v5866_v14, %v1929_v27  ;;  %v4980_v33 = vpop.f32.mrb[38].mxu0 }
 0x134   : > { %v2954_v32 = vadd.f32 %v5866_v14, %v2953_v28  ;;  %v5236_v34 = vpop.f32.mrb[38].mxu1  ;;  %3871 = vst.msk [vmem:[%s5883_s4 + $0x130] sm:$0xff] %vm3832_vm1, %v1938_v25  ;;  %v1941_v37 = vadd.f32 %v4980_v33, %v5866_v14  ;;  %v1932_v39 = vpop.f32.mrb[39].mxu0  ;;  %v765_v28 = vpack.c.bf16 %v332_v12, %v331_v11 }
 0x135   : > { %4127 = vst.msk [vmem:[%s5883_s4 + $0x930] sm:$0xff] %vm3832_vm1, %v2962_v26  ;;  %v2965_v38 = vadd.f32 %v5236_v34, %v5866_v14  ;;  %v2956_v40 = vpop.f32.mrb[39].mxu1  ;;  %3869 = vst.msk [vmem:[%s5883_s4 + $0x120] sm:$0xff] %vm3832_vm1, %v1930_v31  ;;  %v1933_v41 = vadd.f32 %v5866_v14, %v1932_v39  ;;  %v590_v39 = vld [vmem:[%s5530_s24 + $0xcf8] sm:$0xff] }
 0x136   : > { %4125 = vst.msk [vmem:[%s5883_s4 + $0x920] sm:$0xff] %vm3832_vm1, %v2954_v32  ;;  %v2957_v42 = vadd.f32 %v5866_v14, %v2956_v40  ;;  %3872 = vst.msk [vmem:[%s5883_s4 + $0x138] sm:$0xff] %vm3832_vm1, %v1941_v37  ;;  %5086 = vmatmul.mubr.msk.bf16.gmra.mrb[144].mxu0 %vm982_vm0, %v760_v29  ;;  %v893_v29 = vpack.c.bf16 %v588_v15, %v587_v13  ;;  %v334_v37 = vld [vmem:[%s5530_s24 + $0x4f8] sm:$0xff]  ;;  %v335_v40 = vld [vmem:[%s5530_s24 + $0x500] sm:$0xff] }
 0x137   : > { %4128 = vst.msk [vmem:[%s5883_s4 + $0x938] sm:$0xff] %vm3832_vm1, %v2965_v38  ;;  %5342 = vmatmul.mubr.msk.bf16.gmra.mrb[144].mxu1 %vm982_vm0, %v888_v30  ;;  %3870 = vst.msk [vmem:[%s5883_s4 + $0x128] sm:$0xff] %vm3832_vm1, %v1933_v41  ;;  %5089 = vmatprep.mubr.msk.bf16.mxu0 %vm982_vm0, %v761_v35  ;;  %v589_v38 = vld [vmem:[%s5530_s24 + $0xcf0] sm:$0xff]  ;;  %v336_v41 = vld [vmem:[%s5530_s24 + $0x508] sm:$0xff] }
 0x138   : > { %4126 = vst.msk [vmem:[%s5883_s4 + $0x928] sm:$0xff] %vm3832_vm1, %v2957_v42  ;;  %5345 = vmatprep.mubr.msk.bf16.mxu1 %vm982_vm0, %v889_v36  ;;  %v333_v36 = vld [vmem:[%s5530_s24 + $0x4f0] sm:$0xff]  ;;  %v591_v42 = vld [vmem:[%s5530_s24 + $0xd00] sm:$0xff] }
 0x139   : > { %v4983_v51 = vpop.f32.mrb[40].mxu0  ;;  %v766_v50 = vpack.c.bf16 %v334_v37, %v333_v36  ;;  %v600_v36 = vld [vmem:[%s5530_s24 + $0xd48] sm:$0xff] }
 0x13a   : > { %v5239_v52 = vpop.f32.mrb[40].mxu1  ;;  %v1954_v53 = vadd.f32 %v4983_v51, %v5866_v14  ;;  %v1945_v55 = vpop.f32.mrb[41].mxu0  ;;  %v894_v51 = vpack.c.bf16 %v590_v39, %v589_v38 }
 0x13b   : > { %v2978_v54 = vadd.f32 %v5239_v52, %v5866_v14  ;;  %v2969_v56 = vpop.f32.mrb[41].mxu1  ;;  %v1946_v59 = vadd.f32 %v5866_v14, %v1945_v55  ;;  %v4984_v61 = vpop.f32.mrb[42].mxu0 }
 0x13c   : > { %v2970_v60 = vadd.f32 %v5866_v14, %v2969_v56  ;;  %v5240_v62 = vpop.f32.mrb[42].mxu1  ;;  %3875 = vst.msk [vmem:[%s5883_s4 + $0x150] sm:$0xff] %vm3832_vm1, %v1954_v53  ;;  %v1957_v1 = vadd.f32 %v4984_v61, %v5866_v14  ;;  %v1948_v3 = vpop.f32.mrb[43].mxu0  ;;  %v767_v56 = vpack.c.bf16 %v336_v41, %v335_v40 }
 0x13d   : > { %4131 = vst.msk [vmem:[%s5883_s4 + $0x950] sm:$0xff] %vm3832_vm1, %v2978_v54  ;;  %v2981_v2 = vadd.f32 %v5240_v62, %v5866_v14  ;;  %v2972_v4 = vpop.f32.mrb[43].mxu1  ;;  %3873 = vst.msk [vmem:[%s5883_s4 + $0x140] sm:$0xff] %vm3832_vm1, %v1946_v59  ;;  %v1949_v5 = vadd.f32 %v5866_v14, %v1948_v3  ;;  %v6334_v62 = vld [vmem:[%s7876_s2] ss:$0 sm:$0xff]  ;;  %v594_v3 = vld [vmem:[%s5530_s24 + $0xd18] sm:$0xff] }
 0x13e   : > { %4129 = vst.msk [vmem:[%s5883_s4 + $0x940] sm:$0xff] %vm3832_vm1, %v2970_v60  ;;  %v2973_v6 = vadd.f32 %v5866_v14, %v2972_v4  ;;  %3876 = vst.msk [vmem:[%s5883_s4 + $0x158] sm:$0xff] %vm3832_vm1, %v1957_v1  ;;  %5090 = vmatmul.mubr.msk.bf16.gmra.mrb[148].mxu0 %vm982_vm0, %v762_v57  ;;  %v895_v57 = vpack.c.bf16 %v592_v43, %v591_v42  ;;  %v338_v1 = vld [vmem:[%s5530_s24 + $0x518] sm:$0xff]  ;;  %v339_v4 = vld [vmem:[%s5530_s24 + $0x520] sm:$0xff] }
 0x13f   : > { %4132 = vst.msk [vmem:[%s5883_s4 + $0x958] sm:$0xff] %vm3832_vm1, %v2981_v2  ;;  %5346 = vmatmul.mubr.msk.bf16.gmra.mrb[148].mxu1 %vm982_vm0, %v890_v58  ;;  %3874 = vst.msk [vmem:[%s5883_s4 + $0x148] sm:$0xff] %vm3832_vm1, %v1949_v5  ;;  %5093 = vmatprep.mubr.msk.bf16.mxu0 %vm982_vm0, %v763_v63  ;;  %v593_v2 = vld [vmem:[%s5530_s24 + $0xd10] sm:$0xff]  ;;  %v340_v5 = vld [vmem:[%s5530_s24 + $0x528] sm:$0xff] }
 0x140   : > { %4130 = vst.msk [vmem:[%s5883_s4 + $0x948] sm:$0xff] %vm3832_vm1, %v2973_v6  ;;  %5349 = vmatprep.mubr.msk.bf16.mxu1 %vm982_vm0, %v891_v0  ;;  %v337_v0 = vld [vmem:[%s5530_s24 + $0x510] sm:$0xff]  ;;  %v595_v6 = vld [vmem:[%s5530_s24 + $0xd20] sm:$0xff] }
 0x141   : > { %v4987_v16 = vpop.f32.mrb[44].mxu0  ;;  %v768_v15 = vpack.c.bf16 %v338_v1, %v337_v0  ;;  %v604_v0 = vld [vmem:[%s5530_s24 + $0xd68] sm:$0xff] }
 0x142   : > { %v5243_v17 = vpop.f32.mrb[44].mxu1  ;;  %v1970_v18 = vadd.f32 %v4987_v16, %v5866_v14  ;;  %v1961_v20 = vpop.f32.mrb[45].mxu0  ;;  %v896_v16 = vpack.c.bf16 %v594_v3, %v593_v2 }
 0x143   : > { %v2994_v19 = vadd.f32 %v5243_v17, %v5866_v14  ;;  %v2985_v21 = vpop.f32.mrb[45].mxu1  ;;  %v1962_v24 = vadd.f32 %v5866_v14, %v1961_v20  ;;  %v4988_v26 = vpop.f32.mrb[46].mxu0 }
 0x144   : > { %v2986_v25 = vadd.f32 %v5866_v14, %v2985_v21  ;;  %v5244_v27 = vpop.f32.mrb[46].mxu1  ;;  %3879 = vst.msk [vmem:[%s5883_s4 + $0x170] sm:$0xff] %vm3832_vm1, %v1970_v18  ;;  %v1973_v30 = vadd.f32 %v4988_v26, %v5866_v14  ;;  %v1964_v32 = vpop.f32.mrb[47].mxu0  ;;  %v769_v21 = vpack.c.bf16 %v340_v5, %v339_v4 }
 0x145   : > { %4135 = vst.msk [vmem:[%s5883_s4 + $0x970] sm:$0xff] %vm3832_vm1, %v2994_v19  ;;  %v2997_v31 = vadd.f32 %v5244_v27, %v5866_v14  ;;  %v2988_v33 = vpop.f32.mrb[47].mxu1  ;;  %3877 = vst.msk [vmem:[%s5883_s4 + $0x160] sm:$0xff] %vm3832_vm1, %v1962_v24  ;;  %v1965_v34 = vadd.f32 %v5866_v14, %v1964_v32  ;;  %v598_v32 = vld [vmem:[%s5530_s24 + $0xd38] sm:$0xff] }
 0x146   : > { %4133 = vst.msk [vmem:[%s5883_s4 + $0x960] sm:$0xff] %vm3832_vm1, %v2986_v25  ;;  %v2989_v35 = vadd.f32 %v5866_v14, %v2988_v33  ;;  %3880 = vst.msk [vmem:[%s5883_s4 + $0x178] sm:$0xff] %vm3832_vm1, %v1973_v30  ;;  %5094 = vmatmul.mubr.msk.bf16.gmra.mrb[152].mxu0 %vm982_vm0, %v764_v22  ;;  %v897_v22 = vpack.c.bf16 %v596_v7, %v595_v6  ;;  %v342_v30 = vld [vmem:[%s5530_s24 + $0x538] sm:$0xff]  ;;  %v343_v33 = vld [vmem:[%s5530_s24 + $0x540] sm:$0xff] }
 0x147   : > { %4136 = vst.msk [vmem:[%s5883_s4 + $0x978] sm:$0xff] %vm3832_vm1, %v2997_v31  ;;  %5350 = vmatmul.mubr.msk.bf16.gmra.mrb[152].mxu1 %vm982_vm0, %v892_v23  ;;  %3878 = vst.msk [vmem:[%s5883_s4 + $0x168] sm:$0xff] %vm3832_vm1, %v1965_v34  ;;  %5097 = vmatprep.mubr.msk.bf16.mxu0 %vm982_vm0, %v765_v28  ;;  %v597_v31 = vld [vmem:[%s5530_s24 + $0xd30] sm:$0xff]  ;;  %v344_v34 = vld [vmem:[%s5530_s24 + $0x548] sm:$0xff] }
 0x148   : > { %4134 = vst.msk [vmem:[%s5883_s4 + $0x968] sm:$0xff] %vm3832_vm1, %v2989_v35  ;;  %5353 = vmatprep.mubr.msk.bf16.mxu1 %vm982_vm0, %v893_v29  ;;  %v341_v29 = vld [vmem:[%s5530_s24 + $0x530] sm:$0xff]  ;;  %v599_v35 = vld [vmem:[%s5530_s24 + $0xd40] sm:$0xff] }
 0x149   : > { %v4991_v44 = vpop.f32.mrb[48].mxu0  ;;  %v770_v43 = vpack.c.bf16 %v342_v30, %v341_v29  ;;  %v608_v29 = vld [vmem:[%s5530_s24 + $0xd88] sm:$0xff] }
 0x14a   : > { %v5247_v45 = vpop.f32.mrb[48].mxu1  ;;  %v1986_v46 = vadd.f32 %v4991_v44, %v5866_v14  ;;  %v1977_v48 = vpop.f32.mrb[49].mxu0  ;;  %v898_v44 = vpack.c.bf16 %v598_v32, %v597_v31 }
 0x14b   : > { %v3010_v47 = vadd.f32 %v5247_v45, %v5866_v14  ;;  %v3001_v49 = vpop.f32.mrb[49].mxu1  ;;  %v1978_v52 = vadd.f32 %v5866_v14, %v1977_v48  ;;  %v4992_v54 = vpop.f32.mrb[50].mxu0 }
 0x14c   : > { %v3002_v53 = vadd.f32 %v5866_v14, %v3001_v49  ;;  %v5248_v55 = vpop.f32.mrb[50].mxu1  ;;  %3883 = vst.msk [vmem:[%s5883_s4 + $0x190] sm:$0xff] %vm3832_vm1, %v1986_v46  ;;  %v1989_v58 = vadd.f32 %v4992_v54, %v5866_v14  ;;  %v1980_v60 = vpop.f32.mrb[51].mxu0  ;;  %v771_v49 = vpack.c.bf16 %v344_v34, %v343_v33 }
 0x14d   : > { %4139 = vst.msk [vmem:[%s5883_s4 + $0x990] sm:$0xff] %vm3832_vm1, %v3010_v47  ;;  %v3013_v59 = vadd.f32 %v5248_v55, %v5866_v14  ;;  %v3004_v61 = vpop.f32.mrb[51].mxu1  ;;  %3881 = vst.msk [vmem:[%s5883_s4 + $0x180] sm:$0xff] %vm3832_vm1, %v1978_v52  ;;  %v1981_v63 = vadd.f32 %v6334_v62, %v1980_v60  ;;  %v602_v60 = vld [vmem:[%s5530_s24 + $0xd58] sm:$0xff] }
 0x14e   : > { %4137 = vst.msk [vmem:[%s5883_s4 + $0x980] sm:$0xff] %vm3832_vm1, %v3002_v53  ;;  %v3005_v14 = vadd.f32 %v6334_v62, %v3004_v61  ;;  %3884 = vst.msk [vmem:[%s5883_s4 + $0x198] sm:$0xff] %vm3832_vm1, %v1989_v58  ;;  %5098 = vmatmul.mubr.msk.bf16.gmra.mrb[156].mxu0 %vm982_vm0, %v766_v50  ;;  %v899_v50 = vpack.c.bf16 %v600_v36, %v599_v35  ;;  %v346_v58 = vld [vmem:[%s5530_s24 + $0x558] sm:$0xff]  ;;  %v347_v61 = vld [vmem:[%s5530_s24 + $0x560] sm:$0xff] }
 0x14f   : > { %4140 = vst.msk [vmem:[%s5883_s4 + $0x998] sm:$0xff] %vm3832_vm1, %v3013_v59  ;;  %5354 = vmatmul.mubr.msk.bf16.gmra.mrb[156].mxu1 %vm982_vm0, %v894_v51  ;;  %3882 = vst.msk [vmem:[%s5883_s4 + $0x188] sm:$0xff] %vm3832_vm1, %v1981_v63  ;;  %5101 = vmatprep.mubr.msk.bf16.mxu0 %vm982_vm0, %v767_v56  ;;  %v601_v59 = vld [vmem:[%s5530_s24 + $0xd50] sm:$0xff]  ;;  %v348_v63 = vld [vmem:[%s5530_s24 + $0x568] sm:$0xff] }
 0x150   : > { %4138 = vst.msk [vmem:[%s5883_s4 + $0x988] sm:$0xff] %vm3832_vm1, %v3005_v14  ;;  %5357 = vmatprep.mubr.msk.bf16.mxu1 %vm982_vm0, %v895_v57  ;;  %v345_v57 = vld [vmem:[%s5530_s24 + $0x550] sm:$0xff]  ;;  %v603_v14 = vld [vmem:[%s5530_s24 + $0xd60] sm:$0xff] }
 0x151   : > { %v4995_v8 = vpop.f32.mrb[52].mxu0  ;;  %v772_v7 = vpack.c.bf16 %v346_v58, %v345_v57  ;;  %v612_v57 = vld [vmem:[%s5530_s24 + $0xda8] sm:$0xff] }
 0x152   : > { %v5251_v9 = vpop.f32.mrb[52].mxu1  ;;  %v2002_v10 = vadd.f32 %v6334_v62, %v4995_v8  ;;  %v1993_v12 = vpop.f32.mrb[53].mxu0  ;;  %v900_v8 = vpack.c.bf16 %v602_v60, %v601_v59 }
 0x153   : > { %v3026_v11 = vadd.f32 %v6334_v62, %v5251_v9  ;;  %v3017_v13 = vpop.f32.mrb[53].mxu1  ;;  %v1994_v17 = vadd.f32 %v6334_v62, %v1993_v12  ;;  %v4996_v19 = vpop.f32.mrb[54].mxu0 }
 0x154   : > { %v3018_v18 = vadd.f32 %v6334_v62, %v3017_v13  ;;  %v5252_v20 = vpop.f32.mrb[54].mxu1  ;;  %3887 = vst.msk [vmem:[%s5883_s4 + $0x1b0] sm:$0xff] %vm3832_vm1, %v2002_v10  ;;  %v2005_v23 = vadd.f32 %v6334_v62, %v4996_v19  ;;  %v1996_v25 = vpop.f32.mrb[55].mxu0  ;;  %v773_v13 = vpack.c.bf16 %v348_v63, %v347_v61 }
 0x155   : > { %4143 = vst.msk [vmem:[%s5883_s4 + $0x9b0] sm:$0xff] %vm3832_vm1, %v3026_v11  ;;  %v3029_v24 = vadd.f32 %v6334_v62, %v5252_v20  ;;  %v3020_v26 = vpop.f32.mrb[55].mxu1  ;;  %3885 = vst.msk [vmem:[%s5883_s4 + $0x1a0] sm:$0xff] %vm3832_vm1, %v1994_v17  ;;  %v1997_v27 = vadd.f32 %v6334_v62, %v1996_v25  ;;  %v606_v25 = vld [vmem:[%s5530_s24 + $0xd78] sm:$0xff] }
 0x156   : > { %4141 = vst.msk [vmem:[%s5883_s4 + $0x9a0] sm:$0xff] %vm3832_vm1, %v3018_v18  ;;  %v3021_v28 = vadd.f32 %v6334_v62, %v3020_v26  ;;  %3888 = vst.msk [vmem:[%s5883_s4 + $0x1b8] sm:$0xff] %vm3832_vm1, %v2005_v23  ;;  %5102 = vmatmul.mubr.msk.bf16.gmra.mrb[160].mxu0 %vm982_vm0, %v768_v15  ;;  %v901_v15 = vpack.c.bf16 %v604_v0, %v603_v14  ;;  %v350_v23 = vld [vmem:[%s5530_s24 + $0x578] sm:$0xff]  ;;  %v351_v26 = vld [vmem:[%s5530_s24 + $0x580] sm:$0xff] }
 0x157   : > { %4144 = vst.msk [vmem:[%s5883_s4 + $0x9b8] sm:$0xff] %vm3832_vm1, %v3029_v24  ;;  %5358 = vmatmul.mubr.msk.bf16.gmra.mrb[160].mxu1 %vm982_vm0, %v896_v16  ;;  %3886 = vst.msk [vmem:[%s5883_s4 + $0x1a8] sm:$0xff] %vm3832_vm1, %v1997_v27  ;;  %5105 = vmatprep.mubr.msk.bf16.mxu0 %vm982_vm0, %v769_v21  ;;  %v605_v24 = vld [vmem:[%s5530_s24 + $0xd70] sm:$0xff]  ;;  %v352_v27 = vld [vmem:[%s5530_s24 + $0x588] sm:$0xff] }
 0x158   : > { %4142 = vst.msk [vmem:[%s5883_s4 + $0x9a8] sm:$0xff] %vm3832_vm1, %v3021_v28  ;;  %5361 = vmatprep.mubr.msk.bf16.mxu1 %vm982_vm0, %v897_v22  ;;  %v349_v22 = vld [vmem:[%s5530_s24 + $0x570] sm:$0xff]  ;;  %v607_v28 = vld [vmem:[%s5530_s24 + $0xd80] sm:$0xff] }
 0x159   : > { %v4999_v37 = vpop.f32.mrb[56].mxu0  ;;  %v774_v36 = vpack.c.bf16 %v350_v23, %v349_v22  ;;  %v616_v22 = vld [vmem:[%s5530_s24 + $0xdc8] sm:$0xff] }
 0x15a   : > { %v5255_v38 = vpop.f32.mrb[56].mxu1  ;;  %v2018_v39 = vadd.f32 %v6334_v62, %v4999_v37  ;;  %v2009_v41 = vpop.f32.mrb[57].mxu0  ;;  %v902_v37 = vpack.c.bf16 %v606_v25, %v605_v24 }
 0x15b   : > { %v3042_v40 = vadd.f32 %v6334_v62, %v5255_v38  ;;  %v3033_v42 = vpop.f32.mrb[57].mxu1  ;;  %v2010_v45 = vadd.f32 %v6334_v62, %v2009_v41  ;;  %v5000_v47 = vpop.f32.mrb[58].mxu0 }
 0x15c   : > { %v3034_v46 = vadd.f32 %v6334_v62, %v3033_v42  ;;  %v5256_v48 = vpop.f32.mrb[58].mxu1  ;;  %3891 = vst.msk [vmem:[%s5883_s4 + $0x1d0] sm:$0xff] %vm3832_vm1, %v2018_v39  ;;  %v2021_v51 = vadd.f32 %v6334_v62, %v5000_v47  ;;  %v2012_v53 = vpop.f32.mrb[59].mxu0  ;;  %v775_v42 = vpack.c.bf16 %v352_v27, %v351_v26 }
 0x15d   : > { %4147 = vst.msk [vmem:[%s5883_s4 + $0x9d0] sm:$0xff] %vm3832_vm1, %v3042_v40  ;;  %v3045_v52 = vadd.f32 %v6334_v62, %v5256_v48  ;;  %v3036_v54 = vpop.f32.mrb[59].mxu1  ;;  %3889 = vst.msk [vmem:[%s5883_s4 + $0x1c0] sm:$0xff] %vm3832_vm1, %v2010_v45  ;;  %v2013_v55 = vadd.f32 %v6334_v62, %v2012_v53  ;;  %v610_v53 = vld [vmem:[%s5530_s24 + $0xd98] sm:$0xff] }
 0x15e   : > { %4145 = vst.msk [vmem:[%s5883_s4 + $0x9c0] sm:$0xff] %vm3832_vm1, %v3034_v46  ;;  %v3037_v56 = vadd.f32 %v6334_v62, %v3036_v54  ;;  %3892 = vst.msk [vmem:[%s5883_s4 + $0x1d8] sm:$0xff] %vm3832_vm1, %v2021_v51  ;;  %5106 = vmatmul.mubr.msk.bf16.gmra.mrb[164].mxu0 %vm982_vm0, %v770_v43  ;;  %v903_v43 = vpack.c.bf16 %v608_v29, %v607_v28  ;;  %v354_v51 = vld [vmem:[%s5530_s24 + $0x598] sm:$0xff]  ;;  %v355_v54 = vld [vmem:[%s5530_s24 + $0x5a0] sm:$0xff] }
 0x15f   : > { %4148 = vst.msk [vmem:[%s5883_s4 + $0x9d8] sm:$0xff] %vm3832_vm1, %v3045_v52  ;;  %5362 = vmatmul.mubr.msk.bf16.gmra.mrb[164].mxu1 %vm982_vm0, %v898_v44  ;;  %3890 = vst.msk [vmem:[%s5883_s4 + $0x1c8] sm:$0xff] %vm3832_vm1, %v2013_v55  ;;  %5109 = vmatprep.mubr.msk.bf16.mxu0 %vm982_vm0, %v771_v49  ;;  %v609_v52 = vld [vmem:[%s5530_s24 + $0xd90] sm:$0xff]  ;;  %v356_v55 = vld [vmem:[%s5530_s24 + $0x5a8] sm:$0xff] }
 0x160   : > { %4146 = vst.msk [vmem:[%s5883_s4 + $0x9c8] sm:$0xff] %vm3832_vm1, %v3037_v56  ;;  %5365 = vmatprep.mubr.msk.bf16.mxu1 %vm982_vm0, %v899_v50  ;;  %v353_v50 = vld [vmem:[%s5530_s24 + $0x590] sm:$0xff]  ;;  %v611_v56 = vld [vmem:[%s5530_s24 + $0xda0] sm:$0xff] }
 0x161   : > { %v5003_v1 = vpop.f32.mrb[60].mxu0  ;;  %v776_v0 = vpack.c.bf16 %v354_v51, %v353_v50  ;;  %v620_v50 = vld [vmem:[%s5530_s24 + $0xde8] sm:$0xff] }
 0x162   : > { %v5259_v2 = vpop.f32.mrb[60].mxu1  ;;  %v2034_v3 = vadd.f32 %v6334_v62, %v5003_v1  ;;  %v2025_v5 = vpop.f32.mrb[61].mxu0  ;;  %v904_v1 = vpack.c.bf16 %v610_v53, %v609_v52 }
 0x163   : > { %v3058_v4 = vadd.f32 %v6334_v62, %v5259_v2  ;;  %v3049_v6 = vpop.f32.mrb[61].mxu1  ;;  %v2026_v9 = vadd.f32 %v6334_v62, %v2025_v5  ;;  %v5004_v11 = vpop.f32.mrb[62].mxu0 }
 0x164   : > { %v3050_v10 = vadd.f32 %v6334_v62, %v3049_v6  ;;  %v5260_v12 = vpop.f32.mrb[62].mxu1  ;;  %3895 = vst.msk [vmem:[%s5883_s4 + $0x1f0] sm:$0xff] %vm3832_vm1, %v2034_v3  ;;  %v2037_v16 = vadd.f32 %v6334_v62, %v5004_v11  ;;  %v2028_v18 = vpop.f32.mrb[63].mxu0  ;;  %v777_v6 = vpack.c.bf16 %v356_v55, %v355_v54 }
 0x165   : > { %4151 = vst.msk [vmem:[%s5883_s4 + $0x9f0] sm:$0xff] %vm3832_vm1, %v3058_v4  ;;  %v3061_v17 = vadd.f32 %v6334_v62, %v5260_v12  ;;  %v3052_v19 = vpop.f32.mrb[63].mxu1  ;;  %3893 = vst.msk [vmem:[%s5883_s4 + $0x1e0] sm:$0xff] %vm3832_vm1, %v2026_v9  ;;  %v2029_v20 = vadd.f32 %v6334_v62, %v2028_v18  ;;  %v614_v18 = vld [vmem:[%s5530_s24 + $0xdb8] sm:$0xff] }
 0x166   : > { %4149 = vst.msk [vmem:[%s5883_s4 + $0x9e0] sm:$0xff] %vm3832_vm1, %v3050_v10  ;;  %v3053_v21 = vadd.f32 %v6334_v62, %v3052_v19  ;;  %3896 = vst.msk [vmem:[%s5883_s4 + $0x1f8] sm:$0xff] %vm3832_vm1, %v2037_v16  ;;  %5110 = vmatmul.mubr.msk.bf16.gmra.mrb[168].mxu0 %vm982_vm0, %v772_v7  ;;  %v905_v7 = vpack.c.bf16 %v612_v57, %v611_v56  ;;  %v358_v16 = vld [vmem:[%s5530_s24 + $0x5b8] sm:$0xff]  ;;  %v359_v19 = vld [vmem:[%s5530_s24 + $0x5c0] sm:$0xff] }
 0x167   : > { %4152 = vst.msk [vmem:[%s5883_s4 + $0x9f8] sm:$0xff] %vm3832_vm1, %v3061_v17  ;;  %5366 = vmatmul.mubr.msk.bf16.gmra.mrb[168].mxu1 %vm982_vm0, %v900_v8  ;;  %3894 = vst.msk [vmem:[%s5883_s4 + $0x1e8] sm:$0xff] %vm3832_vm1, %v2029_v20  ;;  %5113 = vmatprep.mubr.msk.bf16.mxu0 %vm982_vm0, %v773_v13  ;;  %v613_v17 = vld [vmem:[%s5530_s24 + $0xdb0] sm:$0xff]  ;;  %v360_v20 = vld [vmem:[%s5530_s24 + $0x5c8] sm:$0xff] }
 0x168   : > { %4150 = vst.msk [vmem:[%s5883_s4 + $0x9e8] sm:$0xff] %vm3832_vm1, %v3053_v21  ;;  %5369 = vmatprep.mubr.msk.bf16.mxu1 %vm982_vm0, %v901_v15  ;;  %v357_v15 = vld [vmem:[%s5530_s24 + $0x5b0] sm:$0xff]  ;;  %v615_v21 = vld [vmem:[%s5530_s24 + $0xdc0] sm:$0xff] }
 0x169   : > { %v5007_v30 = vpop.f32.mrb[64].mxu0  ;;  %v778_v29 = vpack.c.bf16 %v358_v16, %v357_v15  ;;  %v624_v15 = vld [vmem:[%s5530_s24 + $0xe08] sm:$0xff] }
 0x16a   : > { %v5263_v31 = vpop.f32.mrb[64].mxu1  ;;  %v2050_v32 = vadd.f32 %v6334_v62, %v5007_v30  ;;  %v2041_v34 = vpop.f32.mrb[65].mxu0  ;;  %v906_v30 = vpack.c.bf16 %v614_v18, %v613_v17 }
 0x16b   : > { %v3074_v33 = vadd.f32 %v6334_v62, %v5263_v31  ;;  %v3065_v35 = vpop.f32.mrb[65].mxu1  ;;  %v2042_v38 = vadd.f32 %v6334_v62, %v2041_v34  ;;  %v5008_v40 = vpop.f32.mrb[66].mxu0 }
 0x16c   : > { %v3066_v39 = vadd.f32 %v6334_v62, %v3065_v35  ;;  %v5264_v41 = vpop.f32.mrb[66].mxu1  ;;  %3899 = vst.msk [vmem:[%s5883_s4 + $0x210] sm:$0xff] %vm3832_vm1, %v2050_v32  ;;  %v2053_v44 = vadd.f32 %v6334_v62, %v5008_v40  ;;  %v2044_v46 = vpop.f32.mrb[67].mxu0  ;;  %v779_v35 = vpack.c.bf16 %v360_v20, %v359_v19 }
 0x16d   : > { %4155 = vst.msk [vmem:[%s5883_s4 + $0xa10] sm:$0xff] %vm3832_vm1, %v3074_v33  ;;  %v3077_v45 = vadd.f32 %v6334_v62, %v5264_v41  ;;  %v3068_v47 = vpop.f32.mrb[67].mxu1  ;;  %3897 = vst.msk [vmem:[%s5883_s4 + $0x200] sm:$0xff] %vm3832_vm1, %v2042_v38  ;;  %v2045_v48 = vadd.f32 %v6334_v62, %v2044_v46  ;;  %v618_v46 = vld [vmem:[%s5530_s24 + $0xdd8] sm:$0xff] }
 0x16e   : > { %4153 = vst.msk [vmem:[%s5883_s4 + $0xa00] sm:$0xff] %vm3832_vm1, %v3066_v39  ;;  %v3069_v49 = vadd.f32 %v6334_v62, %v3068_v47  ;;  %3900 = vst.msk [vmem:[%s5883_s4 + $0x218] sm:$0xff] %vm3832_vm1, %v2053_v44  ;;  %5114 = vmatmul.mubr.msk.bf16.gmra.mrb[172].mxu0 %vm982_vm0, %v774_v36  ;;  %v907_v36 = vpack.c.bf16 %v616_v22, %v615_v21  ;;  %v362_v44 = vld [vmem:[%s5530_s24 + $0x5d8] sm:$0xff]  ;;  %v363_v47 = vld [vmem:[%s5530_s24 + $0x5e0] sm:$0xff] }
 0x16f   : > { %4156 = vst.msk [vmem:[%s5883_s4 + $0xa18] sm:$0xff] %vm3832_vm1, %v3077_v45  ;;  %5370 = vmatmul.mubr.msk.bf16.gmra.mrb[172].mxu1 %vm982_vm0, %v902_v37  ;;  %3898 = vst.msk [vmem:[%s5883_s4 + $0x208] sm:$0xff] %vm3832_vm1, %v2045_v48  ;;  %5117 = vmatprep.mubr.msk.bf16.mxu0 %vm982_vm0, %v775_v42  ;;  %v617_v45 = vld [vmem:[%s5530_s24 + $0xdd0] sm:$0xff]  ;;  %v364_v48 = vld [vmem:[%s5530_s24 + $0x5e8] sm:$0xff] }
 0x170   : > { %4154 = vst.msk [vmem:[%s5883_s4 + $0xa08] sm:$0xff] %vm3832_vm1, %v3069_v49  ;;  %5373 = vmatprep.mubr.msk.bf16.mxu1 %vm982_vm0, %v903_v43  ;;  %v361_v43 = vld [vmem:[%s5530_s24 + $0x5d0] sm:$0xff]  ;;  %v619_v49 = vld [vmem:[%s5530_s24 + $0xde0] sm:$0xff] }
 0x171   : > { %v5011_v58 = vpop.f32.mrb[68].mxu0  ;;  %v780_v57 = vpack.c.bf16 %v362_v44, %v361_v43  ;;  %v628_v43 = vld [vmem:[%s5530_s24 + $0xe28] sm:$0xff] }
 0x172   : > { %v5267_v59 = vpop.f32.mrb[68].mxu1  ;;  %v2066_v60 = vadd.f32 %v6334_v62, %v5011_v58  ;;  %v2057_v63 = vpop.f32.mrb[69].mxu0  ;;  %v908_v58 = vpack.c.bf16 %v618_v46, %v617_v45 }
 0x173   : > { %v3090_v61 = vadd.f32 %v6334_v62, %v5267_v59  ;;  %v3081_v14 = vpop.f32.mrb[69].mxu1  ;;  %v2058_v2 = vadd.f32 %v6334_v62, %v2057_v63  ;;  %v5012_v4 = vpop.f32.mrb[70].mxu0 }
 0x174   : > { %v3082_v3 = vadd.f32 %v6334_v62, %v3081_v14  ;;  %v5268_v5 = vpop.f32.mrb[70].mxu1  ;;  %3903 = vst.msk [vmem:[%s5883_s4 + $0x230] sm:$0xff] %vm3832_vm1, %v2066_v60  ;;  %v2069_v8 = vadd.f32 %v6334_v62, %v5012_v4  ;;  %v2060_v10 = vpop.f32.mrb[71].mxu0  ;;  %v781_v14 = vpack.c.bf16 %v364_v48, %v363_v47 }
 0x175   : > { %4159 = vst.msk [vmem:[%s5883_s4 + $0xa30] sm:$0xff] %vm3832_vm1, %v3090_v61  ;;  %v3093_v9 = vadd.f32 %v6334_v62, %v5268_v5  ;;  %v3084_v11 = vpop.f32.mrb[71].mxu1  ;;  %3901 = vst.msk [vmem:[%s5883_s4 + $0x220] sm:$0xff] %vm3832_vm1, %v2058_v2  ;;  %v2061_v12 = vadd.f32 %v6334_v62, %v2060_v10  ;;  %v622_v10 = vld [vmem:[%s5530_s24 + $0xdf8] sm:$0xff] }
 0x176   : > { %4157 = vst.msk [vmem:[%s5883_s4 + $0xa20] sm:$0xff] %vm3832_vm1, %v3082_v3  ;;  %v3085_v13 = vadd.f32 %v6334_v62, %v3084_v11  ;;  %3904 = vst.msk [vmem:[%s5883_s4 + $0x238] sm:$0xff] %vm3832_vm1, %v2069_v8  ;;  %5118 = vmatmul.mubr.msk.bf16.gmra.mrb[176].mxu0 %vm982_vm0, %v776_v0  ;;  %v909_v0 = vpack.c.bf16 %v620_v50, %v619_v49  ;;  %v366_v8 = vld [vmem:[%s5530_s24 + $0x5f8] sm:$0xff]  ;;  %v367_v11 = vld [vmem:[%s5530_s24 + $0x600] sm:$0xff] }
 0x177   : > { %4160 = vst.msk [vmem:[%s5883_s4 + $0xa38] sm:$0xff] %vm3832_vm1, %v3093_v9  ;;  %5374 = vmatmul.mubr.msk.bf16.gmra.mrb[176].mxu1 %vm982_vm0, %v904_v1  ;;  %3902 = vst.msk [vmem:[%s5883_s4 + $0x228] sm:$0xff] %vm3832_vm1, %v2061_v12  ;;  %5121 = vmatprep.mubr.msk.bf16.mxu0 %vm982_vm0, %v777_v6  ;;  %v621_v9 = vld [vmem:[%s5530_s24 + $0xdf0] sm:$0xff]  ;;  %v368_v12 = vld [vmem:[%s5530_s24 + $0x608] sm:$0xff] }
 0x178   : > { %4158 = vst.msk [vmem:[%s5883_s4 + $0xa28] sm:$0xff] %vm3832_vm1, %v3085_v13  ;;  %5377 = vmatprep.mubr.msk.bf16.mxu1 %vm982_vm0, %v905_v7  ;;  %v365_v7 = vld [vmem:[%s5530_s24 + $0x5f0] sm:$0xff]  ;;  %v623_v13 = vld [vmem:[%s5530_s24 + $0xe00] sm:$0xff] }
 0x179   : > { %v5015_v23 = vpop.f32.mrb[72].mxu0  ;;  %v782_v22 = vpack.c.bf16 %v366_v8, %v365_v7  ;;  %v632_v7 = vld [vmem:[%s5530_s24 + $0xe48] sm:$0xff] }
 0x17a   : > { %v5271_v24 = vpop.f32.mrb[72].mxu1  ;;  %v2082_v25 = vadd.f32 %v6334_v62, %v5015_v23  ;;  %v2073_v27 = vpop.f32.mrb[73].mxu0  ;;  %v910_v23 = vpack.c.bf16 %v622_v10, %v621_v9 }
 0x17b   : > { %v3106_v26 = vadd.f32 %v6334_v62, %v5271_v24  ;;  %v3097_v28 = vpop.f32.mrb[73].mxu1  ;;  %v2074_v31 = vadd.f32 %v6334_v62, %v2073_v27  ;;  %v5016_v33 = vpop.f32.mrb[74].mxu0 }
 0x17c   : > { %v3098_v32 = vadd.f32 %v6334_v62, %v3097_v28  ;;  %v5272_v34 = vpop.f32.mrb[74].mxu1  ;;  %3907 = vst.msk [vmem:[%s5883_s4 + $0x250] sm:$0xff] %vm3832_vm1, %v2082_v25  ;;  %v2085_v37 = vadd.f32 %v6334_v62, %v5016_v33  ;;  %v2076_v39 = vpop.f32.mrb[75].mxu0  ;;  %v783_v28 = vpack.c.bf16 %v368_v12, %v367_v11 }
 0x17d   : > { %4163 = vst.msk [vmem:[%s5883_s4 + $0xa50] sm:$0xff] %vm3832_vm1, %v3106_v26  ;;  %v3109_v38 = vadd.f32 %v6334_v62, %v5272_v34  ;;  %v3100_v40 = vpop.f32.mrb[75].mxu1  ;;  %3905 = vst.msk [vmem:[%s5883_s4 + $0x240] sm:$0xff] %vm3832_vm1, %v2074_v31  ;;  %v2077_v41 = vadd.f32 %v6334_v62, %v2076_v39  ;;  %v626_v39 = vld [vmem:[%s5530_s24 + $0xe18] sm:$0xff] }
 0x17e   : > { %4161 = vst.msk [vmem:[%s5883_s4 + $0xa40] sm:$0xff] %vm3832_vm1, %v3098_v32  ;;  %v3101_v42 = vadd.f32 %v6334_v62, %v3100_v40  ;;  %3908 = vst.msk [vmem:[%s5883_s4 + $0x258] sm:$0xff] %vm3832_vm1, %v2085_v37  ;;  %5122 = vmatmul.mubr.msk.bf16.gmra.mrb[180].mxu0 %vm982_vm0, %v778_v29  ;;  %v911_v29 = vpack.c.bf16 %v624_v15, %v623_v13  ;;  %v370_v37 = vld [vmem:[%s5530_s24 + $0x618] sm:$0xff]  ;;  %v371_v40 = vld [vmem:[%s5530_s24 + $0x620] sm:$0xff] }
 0x17f   : > { %4164 = vst.msk [vmem:[%s5883_s4 + $0xa58] sm:$0xff] %vm3832_vm1, %v3109_v38  ;;  %5378 = vmatmul.mubr.msk.bf16.gmra.mrb[180].mxu1 %vm982_vm0, %v906_v30  ;;  %3906 = vst.msk [vmem:[%s5883_s4 + $0x248] sm:$0xff] %vm3832_vm1, %v2077_v41  ;;  %5125 = vmatprep.mubr.msk.bf16.mxu0 %vm982_vm0, %v779_v35  ;;  %v625_v38 = vld [vmem:[%s5530_s24 + $0xe10] sm:$0xff]  ;;  %v372_v41 = vld [vmem:[%s5530_s24 + $0x628] sm:$0xff] }
 0x180   : > { %4162 = vst.msk [vmem:[%s5883_s4 + $0xa48] sm:$0xff] %vm3832_vm1, %v3101_v42  ;;  %5381 = vmatprep.mubr.msk.bf16.mxu1 %vm982_vm0, %v907_v36  ;;  %v369_v36 = vld [vmem:[%s5530_s24 + $0x610] sm:$0xff]  ;;  %v627_v42 = vld [vmem:[%s5530_s24 + $0xe20] sm:$0xff] }
 0x181   : > { %v5019_v51 = vpop.f32.mrb[76].mxu0  ;;  %v784_v50 = vpack.c.bf16 %v370_v37, %v369_v36  ;;  %v636_v36 = vld [vmem:[%s5530_s24 + $0xe68] sm:$0xff] }
 0x182   : > { %v5275_v52 = vpop.f32.mrb[76].mxu1  ;;  %v2098_v53 = vadd.f32 %v6334_v62, %v5019_v51  ;;  %v2089_v55 = vpop.f32.mrb[77].mxu0  ;;  %v912_v51 = vpack.c.bf16 %v626_v39, %v625_v38 }
 0x183   : > { %v3122_v54 = vadd.f32 %v6334_v62, %v5275_v52  ;;  %v3113_v56 = vpop.f32.mrb[77].mxu1  ;;  %v2090_v59 = vadd.f32 %v6334_v62, %v2089_v55  ;;  %v5020_v61 = vpop.f32.mrb[78].mxu0 }
 0x184   : > { %v3114_v60 = vadd.f32 %v6334_v62, %v3113_v56  ;;  %v5276_v63 = vpop.f32.mrb[78].mxu1  ;;  %3911 = vst.msk [vmem:[%s5883_s4 + $0x270] sm:$0xff] %vm3832_vm1, %v2098_v53  ;;  %v2101_v1 = vadd.f32 %v6334_v62, %v5020_v61  ;;  %v2092_v3 = vpop.f32.mrb[79].mxu0  ;;  %v785_v56 = vpack.c.bf16 %v372_v41, %v371_v40 }
 0x185   : > { %4167 = vst.msk [vmem:[%s5883_s4 + $0xa70] sm:$0xff] %vm3832_vm1, %v3122_v54  ;;  %v3125_v2 = vadd.f32 %v6334_v62, %v5276_v63  ;;  %v3116_v4 = vpop.f32.mrb[79].mxu1  ;;  %3909 = vst.msk [vmem:[%s5883_s4 + $0x260] sm:$0xff] %vm3832_vm1, %v2090_v59  ;;  %v2093_v5 = vadd.f32 %v6334_v62, %v2092_v3  ;;  %v630_v3 = vld [vmem:[%s5530_s24 + $0xe38] sm:$0xff] }
 0x186   : > { %4165 = vst.msk [vmem:[%s5883_s4 + $0xa60] sm:$0xff] %vm3832_vm1, %v3114_v60  ;;  %v3117_v6 = vadd.f32 %v6334_v62, %v3116_v4  ;;  %3912 = vst.msk [vmem:[%s5883_s4 + $0x278] sm:$0xff] %vm3832_vm1, %v2101_v1  ;;  %5126 = vmatmul.mubr.msk.bf16.gmra.mrb[184].mxu0 %vm982_vm0, %v780_v57  ;;  %v913_v57 = vpack.c.bf16 %v628_v43, %v627_v42  ;;  %v374_v1 = vld [vmem:[%s5530_s24 + $0x638] sm:$0xff]  ;;  %v375_v4 = vld [vmem:[%s5530_s24 + $0x640] sm:$0xff] }
 0x187   : > { %4168 = vst.msk [vmem:[%s5883_s4 + $0xa78] sm:$0xff] %vm3832_vm1, %v3125_v2  ;;  %5382 = vmatmul.mubr.msk.bf16.gmra.mrb[184].mxu1 %vm982_vm0, %v908_v58  ;;  %3910 = vst.msk [vmem:[%s5883_s4 + $0x268] sm:$0xff] %vm3832_vm1, %v2093_v5  ;;  %5129 = vmatprep.mubr.msk.bf16.mxu0 %vm982_vm0, %v781_v14  ;;  %v629_v2 = vld [vmem:[%s5530_s24 + $0xe30] sm:$0xff]  ;;  %v376_v5 = vld [vmem:[%s5530_s24 + $0x648] sm:$0xff] }
 0x188   : > { %4166 = vst.msk [vmem:[%s5883_s4 + $0xa68] sm:$0xff] %vm3832_vm1, %v3117_v6  ;;  %5385 = vmatprep.mubr.msk.bf16.mxu1 %vm982_vm0, %v909_v0  ;;  %v373_v0 = vld [vmem:[%s5530_s24 + $0x630] sm:$0xff]  ;;  %v631_v6 = vld [vmem:[%s5530_s24 + $0xe40] sm:$0xff] }
 0x189   : > { %v5023_v16 = vpop.f32.mrb[80].mxu0  ;;  %v786_v15 = vpack.c.bf16 %v374_v1, %v373_v0  ;;  %v640_v0 = vld [vmem:[%s5530_s24 + $0xe88] sm:$0xff] }
 0x18a   : > { %v5279_v17 = vpop.f32.mrb[80].mxu1  ;;  %v2114_v18 = vadd.f32 %v6334_v62, %v5023_v16  ;;  %v2105_v20 = vpop.f32.mrb[81].mxu0  ;;  %v914_v16 = vpack.c.bf16 %v630_v3, %v629_v2 }
 0x18b   : > { %v3138_v19 = vadd.f32 %v6334_v62, %v5279_v17  ;;  %v3129_v21 = vpop.f32.mrb[81].mxu1  ;;  %v2106_v24 = vadd.f32 %v6334_v62, %v2105_v20  ;;  %v5024_v26 = vpop.f32.mrb[82].mxu0 }
 0x18c   : > { %v3130_v25 = vadd.f32 %v6334_v62, %v3129_v21  ;;  %v5280_v27 = vpop.f32.mrb[82].mxu1  ;;  %3915 = vst.msk [vmem:[%s5883_s4 + $0x290] sm:$0xff] %vm3832_vm1, %v2114_v18  ;;  %v2117_v30 = vadd.f32 %v6334_v62, %v5024_v26  ;;  %v2108_v32 = vpop.f32.mrb[83].mxu0  ;;  %v787_v21 = vpack.c.bf16 %v376_v5, %v375_v4 }
 0x18d   : > { %4171 = vst.msk [vmem:[%s5883_s4 + $0xa90] sm:$0xff] %vm3832_vm1, %v3138_v19  ;;  %v3141_v31 = vadd.f32 %v6334_v62, %v5280_v27  ;;  %v3132_v33 = vpop.f32.mrb[83].mxu1  ;;  %3913 = vst.msk [vmem:[%s5883_s4 + $0x280] sm:$0xff] %vm3832_vm1, %v2106_v24  ;;  %v2109_v34 = vadd.f32 %v6334_v62, %v2108_v32  ;;  %v634_v32 = vld [vmem:[%s5530_s24 + $0xe58] sm:$0xff] }
 0x18e   : > { %4169 = vst.msk [vmem:[%s5883_s4 + $0xa80] sm:$0xff] %vm3832_vm1, %v3130_v25  ;;  %v3133_v35 = vadd.f32 %v6334_v62, %v3132_v33  ;;  %3916 = vst.msk [vmem:[%s5883_s4 + $0x298] sm:$0xff] %vm3832_vm1, %v2117_v30  ;;  %5130 = vmatmul.mubr.msk.bf16.gmra.mrb[188].mxu0 %vm982_vm0, %v782_v22  ;;  %v915_v22 = vpack.c.bf16 %v632_v7, %v631_v6  ;;  %v378_v30 = vld [vmem:[%s5530_s24 + $0x658] sm:$0xff]  ;;  %v379_v33 = vld [vmem:[%s5530_s24 + $0x660] sm:$0xff] }
 0x18f   : > { %4172 = vst.msk [vmem:[%s5883_s4 + $0xa98] sm:$0xff] %vm3832_vm1, %v3141_v31  ;;  %5386 = vmatmul.mubr.msk.bf16.gmra.mrb[188].mxu1 %vm982_vm0, %v910_v23  ;;  %3914 = vst.msk [vmem:[%s5883_s4 + $0x288] sm:$0xff] %vm3832_vm1, %v2109_v34  ;;  %5133 = vmatprep.mubr.msk.bf16.mxu0 %vm982_vm0, %v783_v28  ;;  %v633_v31 = vld [vmem:[%s5530_s24 + $0xe50] sm:$0xff]  ;;  %v380_v34 = vld [vmem:[%s5530_s24 + $0x668] sm:$0xff] }
 0x190   : > { %4170 = vst.msk [vmem:[%s5883_s4 + $0xa88] sm:$0xff] %vm3832_vm1, %v3133_v35  ;;  %5389 = vmatprep.mubr.msk.bf16.mxu1 %vm982_vm0, %v911_v29  ;;  %v377_v29 = vld [vmem:[%s5530_s24 + $0x650] sm:$0xff]  ;;  %v635_v35 = vld [vmem:[%s5530_s24 + $0xe60] sm:$0xff] }
 0x191   : > { %v5027_v44 = vpop.f32.mrb[84].mxu0  ;;  %v788_v43 = vpack.c.bf16 %v378_v30, %v377_v29  ;;  %v644_v29 = vld [vmem:[%s5530_s24 + $0xea8] sm:$0xff] }
 0x192   : > { %v5283_v45 = vpop.f32.mrb[84].mxu1  ;;  %v2130_v46 = vadd.f32 %v6334_v62, %v5027_v44  ;;  %v2121_v48 = vpop.f32.mrb[85].mxu0  ;;  %v916_v44 = vpack.c.bf16 %v634_v32, %v633_v31 }
 0x193   : > { %v3154_v47 = vadd.f32 %v6334_v62, %v5283_v45  ;;  %v3145_v49 = vpop.f32.mrb[85].mxu1  ;;  %v2122_v52 = vadd.f32 %v6334_v62, %v2121_v48  ;;  %v5028_v54 = vpop.f32.mrb[86].mxu0 }
 0x194   : > { %v3146_v53 = vadd.f32 %v6334_v62, %v3145_v49  ;;  %v5284_v55 = vpop.f32.mrb[86].mxu1  ;;  %3919 = vst.msk [vmem:[%s5883_s4 + $0x2b0] sm:$0xff] %vm3832_vm1, %v2130_v46  ;;  %v2133_v58 = vadd.f32 %v6334_v62, %v5028_v54  ;;  %v2124_v60 = vpop.f32.mrb[87].mxu0  ;;  %v789_v49 = vpack.c.bf16 %v380_v34, %v379_v33 }
 0x195   : > { %4175 = vst.msk [vmem:[%s5883_s4 + $0xab0] sm:$0xff] %vm3832_vm1, %v3154_v47  ;;  %v3157_v59 = vadd.f32 %v6334_v62, %v5284_v55  ;;  %v3148_v61 = vpop.f32.mrb[87].mxu1  ;;  %3917 = vst.msk [vmem:[%s5883_s4 + $0x2a0] sm:$0xff] %vm3832_vm1, %v2122_v52  ;;  %v2125_v63 = vadd.f32 %v6334_v62, %v2124_v60  ;;  %v638_v60 = vld [vmem:[%s5530_s24 + $0xe78] sm:$0xff] }
 0x196   : > { %4173 = vst.msk [vmem:[%s5883_s4 + $0xaa0] sm:$0xff] %vm3832_vm1, %v3146_v53  ;;  %v3149_v14 = vadd.f32 %v6334_v62, %v3148_v61  ;;  %3920 = vst.msk [vmem:[%s5883_s4 + $0x2b8] sm:$0xff] %vm3832_vm1, %v2133_v58  ;;  %5134 = vmatmul.mubr.msk.bf16.gmra.mrb[192].mxu0 %vm982_vm0, %v784_v50  ;;  %v917_v50 = vpack.c.bf16 %v636_v36, %v635_v35  ;;  %v382_v58 = vld [vmem:[%s5530_s24 + $0x678] sm:$0xff]  ;;  %v383_v61 = vld [vmem:[%s5530_s24 + $0x680] sm:$0xff] }
 0x197   : > { %4176 = vst.msk [vmem:[%s5883_s4 + $0xab8] sm:$0xff] %vm3832_vm1, %v3157_v59  ;;  %5390 = vmatmul.mubr.msk.bf16.gmra.mrb[192].mxu1 %vm982_vm0, %v912_v51  ;;  %3918 = vst.msk [vmem:[%s5883_s4 + $0x2a8] sm:$0xff] %vm3832_vm1, %v2125_v63  ;;  %5137 = vmatprep.mubr.msk.bf16.mxu0 %vm982_vm0, %v785_v56  ;;  %v637_v59 = vld [vmem:[%s5530_s24 + $0xe70] sm:$0xff]  ;;  %v384_v63 = vld [vmem:[%s5530_s24 + $0x688] sm:$0xff] }
 0x198   : > { %4174 = vst.msk [vmem:[%s5883_s4 + $0xaa8] sm:$0xff] %vm3832_vm1, %v3149_v14  ;;  %5393 = vmatprep.mubr.msk.bf16.mxu1 %vm982_vm0, %v913_v57  ;;  %v381_v57 = vld [vmem:[%s5530_s24 + $0x670] sm:$0xff]  ;;  %v639_v14 = vld [vmem:[%s5530_s24 + $0xe80] sm:$0xff] }
 0x199   : > { %v5031_v8 = vpop.f32.mrb[88].mxu0  ;;  %v790_v7 = vpack.c.bf16 %v382_v58, %v381_v57  ;;  %v648_v57 = vld [vmem:[%s5530_s24 + $0xec8] sm:$0xff] }
 0x19a   : > { %v5287_v9 = vpop.f32.mrb[88].mxu1  ;;  %v2146_v10 = vadd.f32 %v6334_v62, %v5031_v8  ;;  %v2137_v12 = vpop.f32.mrb[89].mxu0  ;;  %v918_v8 = vpack.c.bf16 %v638_v60, %v637_v59 }
 0x19b   : > { %v3170_v11 = vadd.f32 %v6334_v62, %v5287_v9  ;;  %v3161_v13 = vpop.f32.mrb[89].mxu1  ;;  %v2138_v17 = vadd.f32 %v6334_v62, %v2137_v12  ;;  %v5032_v19 = vpop.f32.mrb[90].mxu0 }
 0x19c   : > { %v3162_v18 = vadd.f32 %v6334_v62, %v3161_v13  ;;  %v5288_v20 = vpop.f32.mrb[90].mxu1  ;;  %3923 = vst.msk [vmem:[%s5883_s4 + $0x2d0] sm:$0xff] %vm3832_vm1, %v2146_v10  ;;  %v2149_v23 = vadd.f32 %v6334_v62, %v5032_v19  ;;  %v2140_v25 = vpop.f32.mrb[91].mxu0  ;;  %v791_v13 = vpack.c.bf16 %v384_v63, %v383_v61 }
 0x19d   : > { %4179 = vst.msk [vmem:[%s5883_s4 + $0xad0] sm:$0xff] %vm3832_vm1, %v3170_v11  ;;  %v3173_v24 = vadd.f32 %v6334_v62, %v5288_v20  ;;  %v3164_v26 = vpop.f32.mrb[91].mxu1  ;;  %3921 = vst.msk [vmem:[%s5883_s4 + $0x2c0] sm:$0xff] %vm3832_vm1, %v2138_v17  ;;  %v2141_v27 = vadd.f32 %v6334_v62, %v2140_v25  ;;  %v642_v25 = vld [vmem:[%s5530_s24 + $0xe98] sm:$0xff] }
 0x19e   : > { %4177 = vst.msk [vmem:[%s5883_s4 + $0xac0] sm:$0xff] %vm3832_vm1, %v3162_v18  ;;  %v3165_v28 = vadd.f32 %v6334_v62, %v3164_v26  ;;  %3924 = vst.msk [vmem:[%s5883_s4 + $0x2d8] sm:$0xff] %vm3832_vm1, %v2149_v23  ;;  %5138 = vmatmul.mubr.msk.bf16.gmra.mrb[196].mxu0 %vm982_vm0, %v786_v15  ;;  %v919_v15 = vpack.c.bf16 %v640_v0, %v639_v14  ;;  %v386_v23 = vld [vmem:[%s5530_s24 + $0x698] sm:$0xff]  ;;  %v387_v26 = vld [vmem:[%s5530_s24 + $0x6a0] sm:$0xff] }
 0x19f   : > { %4180 = vst.msk [vmem:[%s5883_s4 + $0xad8] sm:$0xff] %vm3832_vm1, %v3173_v24  ;;  %5394 = vmatmul.mubr.msk.bf16.gmra.mrb[196].mxu1 %vm982_vm0, %v914_v16  ;;  %3922 = vst.msk [vmem:[%s5883_s4 + $0x2c8] sm:$0xff] %vm3832_vm1, %v2141_v27  ;;  %5141 = vmatprep.mubr.msk.bf16.mxu0 %vm982_vm0, %v787_v21  ;;  %v641_v24 = vld [vmem:[%s5530_s24 + $0xe90] sm:$0xff]  ;;  %v388_v27 = vld [vmem:[%s5530_s24 + $0x6a8] sm:$0xff] }
 0x1a0   : > { %4178 = vst.msk [vmem:[%s5883_s4 + $0xac8] sm:$0xff] %vm3832_vm1, %v3165_v28  ;;  %5397 = vmatprep.mubr.msk.bf16.mxu1 %vm982_vm0, %v915_v22  ;;  %v385_v22 = vld [vmem:[%s5530_s24 + $0x690] sm:$0xff]  ;;  %v643_v28 = vld [vmem:[%s5530_s24 + $0xea0] sm:$0xff] }
 0x1a1   : > { %v5035_v37 = vpop.f32.mrb[92].mxu0  ;;  %v792_v36 = vpack.c.bf16 %v386_v23, %v385_v22  ;;  %v652_v22 = vld [vmem:[%s5530_s24 + $0xee8] sm:$0xff] }
 0x1a2   : > { %v5291_v38 = vpop.f32.mrb[92].mxu1  ;;  %v2162_v39 = vadd.f32 %v6334_v62, %v5035_v37  ;;  %v2153_v41 = vpop.f32.mrb[93].mxu0  ;;  %v920_v37 = vpack.c.bf16 %v642_v25, %v641_v24 }
 0x1a3   : > { %v3186_v40 = vadd.f32 %v6334_v62, %v5291_v38  ;;  %v3177_v42 = vpop.f32.mrb[93].mxu1  ;;  %v2154_v45 = vadd.f32 %v6334_v62, %v2153_v41  ;;  %v5036_v47 = vpop.f32.mrb[94].mxu0 }
 0x1a4   : > { %v3178_v46 = vadd.f32 %v6334_v62, %v3177_v42  ;;  %v5292_v48 = vpop.f32.mrb[94].mxu1  ;;  %3927 = vst.msk [vmem:[%s5883_s4 + $0x2f0] sm:$0xff] %vm3832_vm1, %v2162_v39  ;;  %v2165_v51 = vadd.f32 %v6334_v62, %v5036_v47  ;;  %v2156_v53 = vpop.f32.mrb[95].mxu0  ;;  %v793_v42 = vpack.c.bf16 %v388_v27, %v387_v26 }
 0x1a5   : > { %4183 = vst.msk [vmem:[%s5883_s4 + $0xaf0] sm:$0xff] %vm3832_vm1, %v3186_v40  ;;  %v3189_v52 = vadd.f32 %v6334_v62, %v5292_v48  ;;  %v3180_v54 = vpop.f32.mrb[95].mxu1  ;;  %3925 = vst.msk [vmem:[%s5883_s4 + $0x2e0] sm:$0xff] %vm3832_vm1, %v2154_v45  ;;  %v2157_v55 = vadd.f32 %v6334_v62, %v2156_v53  ;;  %v646_v53 = vld [vmem:[%s5530_s24 + $0xeb8] sm:$0xff] }
 0x1a6   : > { %4181 = vst.msk [vmem:[%s5883_s4 + $0xae0] sm:$0xff] %vm3832_vm1, %v3178_v46  ;;  %v3181_v56 = vadd.f32 %v6334_v62, %v3180_v54  ;;  %3928 = vst.msk [vmem:[%s5883_s4 + $0x2f8] sm:$0xff] %vm3832_vm1, %v2165_v51  ;;  %5142 = vmatmul.mubr.msk.bf16.gmra.mrb[200].mxu0 %vm982_vm0, %v788_v43  ;;  %v921_v43 = vpack.c.bf16 %v644_v29, %v643_v28  ;;  %v390_v51 = vld [vmem:[%s5530_s24 + $0x6b8] sm:$0xff]  ;;  %v391_v54 = vld [vmem:[%s5530_s24 + $0x6c0] sm:$0xff] }
 0x1a7   : > { %4184 = vst.msk [vmem:[%s5883_s4 + $0xaf8] sm:$0xff] %vm3832_vm1, %v3189_v52  ;;  %5398 = vmatmul.mubr.msk.bf16.gmra.mrb[200].mxu1 %vm982_vm0, %v916_v44  ;;  %3926 = vst.msk [vmem:[%s5883_s4 + $0x2e8] sm:$0xff] %vm3832_vm1, %v2157_v55  ;;  %5145 = vmatprep.mubr.msk.bf16.mxu0 %vm982_vm0, %v789_v49  ;;  %v6801_v44 = vld [vmem:[%s7876_s2] ss:$0 sm:$0xff]  ;;  %v645_v52 = vld [vmem:[%s5530_s24 + $0xeb0] sm:$0xff] }
 0x1a8   : > { %4182 = vst.msk [vmem:[%s5883_s4 + $0xae8] sm:$0xff] %vm3832_vm1, %v3181_v56  ;;  %5401 = vmatprep.mubr.msk.bf16.mxu1 %vm982_vm0, %v917_v50  ;;  %v389_v50 = vld [vmem:[%s5530_s24 + $0x6b0] sm:$0xff]  ;;  %v392_v55 = vld [vmem:[%s5530_s24 + $0x6c8] sm:$0xff]  ;;  %v647_v56 = vld [vmem:[%s5530_s24 + $0xec0] sm:$0xff] }
 0x1a9   : > { %v5039_v1 = vpop.f32.mrb[96].mxu0  ;;  %v794_v0 = vpack.c.bf16 %v390_v51, %v389_v50  ;;  %v656_v50 = vld [vmem:[%s5530_s24 + $0xf08] sm:$0xff] }
 0x1aa   : > { %v5295_v2 = vpop.f32.mrb[96].mxu1  ;;  %v2178_v3 = vadd.f32 %v6334_v62, %v5039_v1  ;;  %v2169_v5 = vpop.f32.mrb[97].mxu0  ;;  %v922_v1 = vpack.c.bf16 %v646_v53, %v645_v52 }
 0x1ab   : > { %v3202_v4 = vadd.f32 %v6334_v62, %v5295_v2  ;;  %v3193_v6 = vpop.f32.mrb[97].mxu1  ;;  %v2170_v9 = vadd.f32 %v6334_v62, %v2169_v5  ;;  %v5040_v11 = vpop.f32.mrb[98].mxu0 }
 0x1ac   : > { %v3194_v10 = vadd.f32 %v6334_v62, %v3193_v6  ;;  %v5296_v12 = vpop.f32.mrb[98].mxu1  ;;  %3931 = vst.msk [vmem:[%s5883_s4 + $0x310] sm:$0xff] %vm3832_vm1, %v2178_v3  ;;  %v2181_v16 = vadd.f32 %v6334_v62, %v5040_v11  ;;  %v2172_v18 = vpop.f32.mrb[99].mxu0  ;;  %v795_v6 = vpack.c.bf16 %v392_v55, %v391_v54 }
 0x1ad   : > { %4187 = vst.msk [vmem:[%s5883_s4 + $0xb10] sm:$0xff] %vm3832_vm1, %v3202_v4  ;;  %v3205_v17 = vadd.f32 %v6334_v62, %v5296_v12  ;;  %v3196_v19 = vpop.f32.mrb[99].mxu1  ;;  %3929 = vst.msk [vmem:[%s5883_s4 + $0x300] sm:$0xff] %vm3832_vm1, %v2170_v9  ;;  %v2173_v20 = vadd.f32 %v6334_v62, %v2172_v18  ;;  %v650_v18 = vld [vmem:[%s5530_s24 + $0xed8] sm:$0xff] }
 0x1ae   : > { %4185 = vst.msk [vmem:[%s5883_s4 + $0xb00] sm:$0xff] %vm3832_vm1, %v3194_v10  ;;  %v3197_v21 = vadd.f32 %v6334_v62, %v3196_v19  ;;  %3932 = vst.msk [vmem:[%s5883_s4 + $0x318] sm:$0xff] %vm3832_vm1, %v2181_v16  ;;  %5146 = vmatmul.mubr.msk.bf16.gmra.mrb[204].mxu0 %vm982_vm0, %v790_v7  ;;  %v923_v7 = vpack.c.bf16 %v648_v57, %v647_v56  ;;  %v394_v16 = vld [vmem:[%s5530_s24 + $0x6d8] sm:$0xff]  ;;  %v395_v19 = vld [vmem:[%s5530_s24 + $0x6e0] sm:$0xff] }
 0x1af   : > { %4188 = vst.msk [vmem:[%s5883_s4 + $0xb18] sm:$0xff] %vm3832_vm1, %v3205_v17  ;;  %5402 = vmatmul.mubr.msk.bf16.gmra.mrb[204].mxu1 %vm982_vm0, %v918_v8  ;;  %3930 = vst.msk [vmem:[%s5883_s4 + $0x308] sm:$0xff] %vm3832_vm1, %v2173_v20  ;;  %5149 = vmatprep.mubr.msk.bf16.mxu0 %vm982_vm0, %v791_v13  ;;  %v649_v17 = vld [vmem:[%s5530_s24 + $0xed0] sm:$0xff]  ;;  %v396_v20 = vld [vmem:[%s5530_s24 + $0x6e8] sm:$0xff] }
 0x1b0   : > { %4186 = vst.msk [vmem:[%s5883_s4 + $0xb08] sm:$0xff] %vm3832_vm1, %v3197_v21  ;;  %5405 = vmatprep.mubr.msk.bf16.mxu1 %vm982_vm0, %v919_v15  ;;  %v393_v15 = vld [vmem:[%s5530_s24 + $0x6d0] sm:$0xff]  ;;  %v651_v21 = vld [vmem:[%s5530_s24 + $0xee0] sm:$0xff] }
 0x1b1   : > { %v5043_v30 = vpop.f32.mrb[100].mxu0  ;;  %v796_v29 = vpack.c.bf16 %v394_v16, %v393_v15  ;;  %v660_v15 = vld [vmem:[%s5530_s24 + $0xf28] sm:$0xff] }
 0x1b2   : > { %v5299_v31 = vpop.f32.mrb[100].mxu1  ;;  %v2194_v32 = vadd.f32 %v6334_v62, %v5043_v30  ;;  %v2185_v34 = vpop.f32.mrb[101].mxu0  ;;  %v924_v30 = vpack.c.bf16 %v650_v18, %v649_v17 }
 0x1b3   : > { %v3218_v33 = vadd.f32 %v6334_v62, %v5299_v31  ;;  %v3209_v35 = vpop.f32.mrb[101].mxu1  ;;  %v2186_v38 = vadd.f32 %v6334_v62, %v2185_v34  ;;  %v5044_v40 = vpop.f32.mrb[102].mxu0 }
 0x1b4   : > { %v3210_v39 = vadd.f32 %v6334_v62, %v3209_v35  ;;  %v5300_v41 = vpop.f32.mrb[102].mxu1  ;;  %3935 = vst.msk [vmem:[%s5883_s4 + $0x330] sm:$0xff] %vm3832_vm1, %v2194_v32  ;;  %v2197_v62 = vadd.f32 %v6801_v44, %v5044_v40  ;;  %v2188_v46 = vpop.f32.mrb[103].mxu0  ;;  %v797_v35 = vpack.c.bf16 %v396_v20, %v395_v19 }
 0x1b5   : > { %4191 = vst.msk [vmem:[%s5883_s4 + $0xb30] sm:$0xff] %vm3832_vm1, %v3218_v33  ;;  %v3221_v45 = vadd.f32 %v6801_v44, %v5300_v41  ;;  %v3212_v47 = vpop.f32.mrb[103].mxu1  ;;  %3933 = vst.msk [vmem:[%s5883_s4 + $0x320] sm:$0xff] %vm3832_vm1, %v2186_v38  ;;  %v2189_v48 = vadd.f32 %v6801_v44, %v2188_v46  ;;  %v654_v46 = vld [vmem:[%s5530_s24 + $0xef8] sm:$0xff] }
 0x1b6   : > { %4189 = vst.msk [vmem:[%s5883_s4 + $0xb20] sm:$0xff] %vm3832_vm1, %v3210_v39  ;;  %v3213_v49 = vadd.f32 %v6801_v44, %v3212_v47  ;;  %3936 = vst.msk [vmem:[%s5883_s4 + $0x338] sm:$0xff] %vm3832_vm1, %v2197_v62  ;;  %5150 = vmatmul.mubr.msk.bf16.gmra.mrb[208].mxu0 %vm982_vm0, %v792_v36  ;;  %v925_v36 = vpack.c.bf16 %v652_v22, %v651_v21  ;;  %v398_v62 = vld [vmem:[%s5530_s24 + $0x6f8] sm:$0xff]  ;;  %v399_v47 = vld [vmem:[%s5530_s24 + $0x700] sm:$0xff] }
 0x1b7   : > { %4192 = vst.msk [vmem:[%s5883_s4 + $0xb38] sm:$0xff] %vm3832_vm1, %v3221_v45  ;;  %5406 = vmatmul.mubr.msk.bf16.gmra.mrb[208].mxu1 %vm982_vm0, %v920_v37  ;;  %3934 = vst.msk [vmem:[%s5883_s4 + $0x328] sm:$0xff] %vm3832_vm1, %v2189_v48  ;;  %5153 = vmatprep.mubr.msk.bf16.mxu0 %vm982_vm0, %v793_v42  ;;  %v653_v45 = vld [vmem:[%s5530_s24 + $0xef0] sm:$0xff]  ;;  %v400_v48 = vld [vmem:[%s5530_s24 + $0x708] sm:$0xff] }
 0x1b8   : > { %4190 = vst.msk [vmem:[%s5883_s4 + $0xb28] sm:$0xff] %vm3832_vm1, %v3213_v49  ;;  %5409 = vmatprep.mubr.msk.bf16.mxu1 %vm982_vm0, %v921_v43  ;;  %v397_v43 = vld [vmem:[%s5530_s24 + $0x6f0] sm:$0xff]  ;;  %v655_v49 = vld [vmem:[%s5530_s24 + $0xf00] sm:$0xff] }
 0x1b9   : > { %v5047_v58 = vpop.f32.mrb[104].mxu0  ;;  %v798_v57 = vpack.c.bf16 %v398_v62, %v397_v43  ;;  %v664_v43 = vld [vmem:[%s5530_s24 + $0xf48] sm:$0xff] }
 0x1ba   : > { %v5303_v59 = vpop.f32.mrb[104].mxu1  ;;  %v2210_v60 = vadd.f32 %v6801_v44, %v5047_v58  ;;  %v2201_v63 = vpop.f32.mrb[105].mxu0  ;;  %v926_v58 = vpack.c.bf16 %v654_v46, %v653_v45 }
 0x1bb   : > { %v3234_v61 = vadd.f32 %v6801_v44, %v5303_v59  ;;  %v3225_v14 = vpop.f32.mrb[105].mxu1  ;;  %v2202_v2 = vadd.f32 %v6801_v44, %v2201_v63  ;;  %v5048_v4 = vpop.f32.mrb[106].mxu0 }
 0x1bc   : > { %v3226_v3 = vadd.f32 %v6801_v44, %v3225_v14  ;;  %v5304_v5 = vpop.f32.mrb[106].mxu1  ;;  %3939 = vst.msk [vmem:[%s5883_s4 + $0x350] sm:$0xff] %vm3832_vm1, %v2210_v60  ;;  %v2213_v8 = vadd.f32 %v6801_v44, %v5048_v4  ;;  %v2204_v10 = vpop.f32.mrb[107].mxu0  ;;  %v799_v14 = vpack.c.bf16 %v400_v48, %v399_v47 }
 0x1bd   : > { %4195 = vst.msk [vmem:[%s5883_s4 + $0xb50] sm:$0xff] %vm3832_vm1, %v3234_v61  ;;  %v3237_v9 = vadd.f32 %v6801_v44, %v5304_v5  ;;  %v3228_v11 = vpop.f32.mrb[107].mxu1  ;;  %3937 = vst.msk [vmem:[%s5883_s4 + $0x340] sm:$0xff] %vm3832_vm1, %v2202_v2  ;;  %v2205_v12 = vadd.f32 %v6801_v44, %v2204_v10  ;;  %v658_v10 = vld [vmem:[%s5530_s24 + $0xf18] sm:$0xff] }
 0x1be   : > { %4193 = vst.msk [vmem:[%s5883_s4 + $0xb40] sm:$0xff] %vm3832_vm1, %v3226_v3  ;;  %v3229_v13 = vadd.f32 %v6801_v44, %v3228_v11  ;;  %3940 = vst.msk [vmem:[%s5883_s4 + $0x358] sm:$0xff] %vm3832_vm1, %v2213_v8  ;;  %5154 = vmatmul.mubr.msk.bf16.gmra.mrb[212].mxu0 %vm982_vm0, %v794_v0  ;;  %v927_v0 = vpack.c.bf16 %v656_v50, %v655_v49  ;;  %v402_v8 = vld [vmem:[%s5530_s24 + $0x718] sm:$0xff]  ;;  %v403_v11 = vld [vmem:[%s5530_s24 + $0x720] sm:$0xff] }
 0x1bf   : > { %4196 = vst.msk [vmem:[%s5883_s4 + $0xb58] sm:$0xff] %vm3832_vm1, %v3237_v9  ;;  %5410 = vmatmul.mubr.msk.bf16.gmra.mrb[212].mxu1 %vm982_vm0, %v922_v1  ;;  %3938 = vst.msk [vmem:[%s5883_s4 + $0x348] sm:$0xff] %vm3832_vm1, %v2205_v12  ;;  %5157 = vmatprep.mubr.msk.bf16.mxu0 %vm982_vm0, %v795_v6  ;;  %v657_v9 = vld [vmem:[%s5530_s24 + $0xf10] sm:$0xff]  ;;  %v404_v12 = vld [vmem:[%s5530_s24 + $0x728] sm:$0xff] }
 0x1c0   : > { %4194 = vst.msk [vmem:[%s5883_s4 + $0xb48] sm:$0xff] %vm3832_vm1, %v3229_v13  ;;  %5413 = vmatprep.mubr.msk.bf16.mxu1 %vm982_vm0, %v923_v7  ;;  %v401_v7 = vld [vmem:[%s5530_s24 + $0x710] sm:$0xff]  ;;  %v659_v13 = vld [vmem:[%s5530_s24 + $0xf20] sm:$0xff] }
 0x1c1   : > { %v5051_v23 = vpop.f32.mrb[108].mxu0  ;;  %v800_v22 = vpack.c.bf16 %v402_v8, %v401_v7  ;;  %v668_v7 = vld [vmem:[%s5530_s24 + $0xf68] sm:$0xff] }
 0x1c2   : > { %v5307_v24 = vpop.f32.mrb[108].mxu1  ;;  %v2226_v25 = vadd.f32 %v6801_v44, %v5051_v23  ;;  %v2217_v27 = vpop.f32.mrb[109].mxu0  ;;  %v928_v23 = vpack.c.bf16 %v658_v10, %v657_v9 }
 0x1c3   : > { %v3250_v26 = vadd.f32 %v6801_v44, %v5307_v24  ;;  %v3241_v28 = vpop.f32.mrb[109].mxu1  ;;  %v2218_v31 = vadd.f32 %v6801_v44, %v2217_v27  ;;  %v5052_v33 = vpop.f32.mrb[110].mxu0 }
 0x1c4   : > { %v3242_v32 = vadd.f32 %v6801_v44, %v3241_v28  ;;  %v5308_v34 = vpop.f32.mrb[110].mxu1  ;;  %3943 = vst.msk [vmem:[%s5883_s4 + $0x370] sm:$0xff] %vm3832_vm1, %v2226_v25  ;;  %v2229_v37 = vadd.f32 %v6801_v44, %v5052_v33  ;;  %v2220_v39 = vpop.f32.mrb[111].mxu0  ;;  %v801_v28 = vpack.c.bf16 %v404_v12, %v403_v11 }
 0x1c5   : > { %4199 = vst.msk [vmem:[%s5883_s4 + $0xb70] sm:$0xff] %vm3832_vm1, %v3250_v26  ;;  %v3253_v38 = vadd.f32 %v6801_v44, %v5308_v34  ;;  %v3244_v40 = vpop.f32.mrb[111].mxu1  ;;  %3941 = vst.msk [vmem:[%s5883_s4 + $0x360] sm:$0xff] %vm3832_vm1, %v2218_v31  ;;  %v2221_v41 = vadd.f32 %v6801_v44, %v2220_v39  ;;  %v662_v39 = vld [vmem:[%s5530_s24 + $0xf38] sm:$0xff] }
 0x1c6   : > { %4197 = vst.msk [vmem:[%s5883_s4 + $0xb60] sm:$0xff] %vm3832_vm1, %v3242_v32  ;;  %v3245_v42 = vadd.f32 %v6801_v44, %v3244_v40  ;;  %3944 = vst.msk [vmem:[%s5883_s4 + $0x378] sm:$0xff] %vm3832_vm1, %v2229_v37  ;;  %5158 = vmatmul.mubr.msk.bf16.gmra.mrb[216].mxu0 %vm982_vm0, %v796_v29  ;;  %v929_v29 = vpack.c.bf16 %v660_v15, %v659_v13  ;;  %v406_v37 = vld [vmem:[%s5530_s24 + $0x738] sm:$0xff]  ;;  %v407_v40 = vld [vmem:[%s5530_s24 + $0x740] sm:$0xff] }
 0x1c7   : > { %4200 = vst.msk [vmem:[%s5883_s4 + $0xb78] sm:$0xff] %vm3832_vm1, %v3253_v38  ;;  %5414 = vmatmul.mubr.msk.bf16.gmra.mrb[216].mxu1 %vm982_vm0, %v924_v30  ;;  %3942 = vst.msk [vmem:[%s5883_s4 + $0x368] sm:$0xff] %vm3832_vm1, %v2221_v41  ;;  %5161 = vmatprep.mubr.msk.bf16.mxu0 %vm982_vm0, %v797_v35  ;;  %v661_v38 = vld [vmem:[%s5530_s24 + $0xf30] sm:$0xff]  ;;  %v408_v41 = vld [vmem:[%s5530_s24 + $0x748] sm:$0xff] }
 0x1c8   : > { %4198 = vst.msk [vmem:[%s5883_s4 + $0xb68] sm:$0xff] %vm3832_vm1, %v3245_v42  ;;  %5417 = vmatprep.mubr.msk.bf16.mxu1 %vm982_vm0, %v925_v36  ;;  %v405_v36 = vld [vmem:[%s5530_s24 + $0x730] sm:$0xff]  ;;  %v663_v42 = vld [vmem:[%s5530_s24 + $0xf40] sm:$0xff] }
 0x1c9   : > { %v5055_v51 = vpop.f32.mrb[112].mxu0  ;;  %v802_v50 = vpack.c.bf16 %v406_v37, %v405_v36  ;;  %v672_v36 = vld [vmem:[%s5530_s24 + $0xf88] sm:$0xff] }
 0x1ca   : > { %v5311_v52 = vpop.f32.mrb[112].mxu1  ;;  %v2242_v53 = vadd.f32 %v6801_v44, %v5055_v51  ;;  %v2233_v55 = vpop.f32.mrb[113].mxu0  ;;  %v930_v51 = vpack.c.bf16 %v662_v39, %v661_v38 }
 0x1cb   : > { %v3266_v54 = vadd.f32 %v6801_v44, %v5311_v52  ;;  %v3257_v56 = vpop.f32.mrb[113].mxu1  ;;  %v2234_v59 = vadd.f32 %v6801_v44, %v2233_v55  ;;  %v5056_v61 = vpop.f32.mrb[114].mxu0 }
 0x1cc   : > { %v3258_v60 = vadd.f32 %v6801_v44, %v3257_v56  ;;  %v5312_v63 = vpop.f32.mrb[114].mxu1  ;;  %3947 = vst.msk [vmem:[%s5883_s4 + $0x390] sm:$0xff] %vm3832_vm1, %v2242_v53  ;;  %v2245_v1 = vadd.f32 %v6801_v44, %v5056_v61  ;;  %v2236_v3 = vpop.f32.mrb[115].mxu0  ;;  %v803_v56 = vpack.c.bf16 %v408_v41, %v407_v40 }
 0x1cd   : > { %4203 = vst.msk [vmem:[%s5883_s4 + $0xb90] sm:$0xff] %vm3832_vm1, %v3266_v54  ;;  %v3269_v2 = vadd.f32 %v6801_v44, %v5312_v63  ;;  %v3260_v4 = vpop.f32.mrb[115].mxu1  ;;  %3945 = vst.msk [vmem:[%s5883_s4 + $0x380] sm:$0xff] %vm3832_vm1, %v2234_v59  ;;  %v2237_v5 = vadd.f32 %v6801_v44, %v2236_v3  ;;  %v666_v3 = vld [vmem:[%s5530_s24 + $0xf58] sm:$0xff] }
 0x1ce   : > { %4201 = vst.msk [vmem:[%s5883_s4 + $0xb80] sm:$0xff] %vm3832_vm1, %v3258_v60  ;;  %v3261_v6 = vadd.f32 %v6801_v44, %v3260_v4  ;;  %3948 = vst.msk [vmem:[%s5883_s4 + $0x398] sm:$0xff] %vm3832_vm1, %v2245_v1  ;;  %5162 = vmatmul.mubr.msk.bf16.gmra.mrb[220].mxu0 %vm982_vm0, %v798_v57  ;;  %v931_v57 = vpack.c.bf16 %v664_v43, %v663_v42  ;;  %v410_v1 = vld [vmem:[%s5530_s24 + $0x758] sm:$0xff]  ;;  %v411_v4 = vld [vmem:[%s5530_s24 + $0x760] sm:$0xff] }
 0x1cf   : > { %4204 = vst.msk [vmem:[%s5883_s4 + $0xb98] sm:$0xff] %vm3832_vm1, %v3269_v2  ;;  %5418 = vmatmul.mubr.msk.bf16.gmra.mrb[220].mxu1 %vm982_vm0, %v926_v58  ;;  %3946 = vst.msk [vmem:[%s5883_s4 + $0x388] sm:$0xff] %vm3832_vm1, %v2237_v5  ;;  %5165 = vmatprep.mubr.msk.bf16.mxu0 %vm982_vm0, %v799_v14  ;;  %v665_v2 = vld [vmem:[%s5530_s24 + $0xf50] sm:$0xff]  ;;  %v412_v5 = vld [vmem:[%s5530_s24 + $0x768] sm:$0xff] }
 0x1d0   : > { %4202 = vst.msk [vmem:[%s5883_s4 + $0xb88] sm:$0xff] %vm3832_vm1, %v3261_v6  ;;  %5421 = vmatprep.mubr.msk.bf16.mxu1 %vm982_vm0, %v927_v0  ;;  %v409_v0 = vld [vmem:[%s5530_s24 + $0x750] sm:$0xff]  ;;  %v667_v6 = vld [vmem:[%s5530_s24 + $0xf60] sm:$0xff] }
 0x1d1   : > { %v5059_v16 = vpop.f32.mrb[116].mxu0  ;;  %v804_v15 = vpack.c.bf16 %v410_v1, %v409_v0  ;;  %v676_v0 = vld [vmem:[%s5530_s24 + $0xfa8] sm:$0xff] }
 0x1d2   : > { %v5315_v17 = vpop.f32.mrb[116].mxu1  ;;  %v2258_v18 = vadd.f32 %v6801_v44, %v5059_v16  ;;  %v2249_v20 = vpop.f32.mrb[117].mxu0  ;;  %v932_v16 = vpack.c.bf16 %v666_v3, %v665_v2 }
 0x1d3   : > { %v3282_v19 = vadd.f32 %v6801_v44, %v5315_v17  ;;  %v3273_v21 = vpop.f32.mrb[117].mxu1  ;;  %v2250_v24 = vadd.f32 %v6801_v44, %v2249_v20  ;;  %v5060_v26 = vpop.f32.mrb[118].mxu0 }
 0x1d4   : > { %v3274_v25 = vadd.f32 %v6801_v44, %v3273_v21  ;;  %v5316_v27 = vpop.f32.mrb[118].mxu1  ;;  %3951 = vst.msk [vmem:[%s5883_s4 + $0x3b0] sm:$0xff] %vm3832_vm1, %v2258_v18  ;;  %v2261_v30 = vadd.f32 %v6801_v44, %v5060_v26  ;;  %v2252_v32 = vpop.f32.mrb[119].mxu0  ;;  %v805_v21 = vpack.c.bf16 %v412_v5, %v411_v4 }
 0x1d5   : > { %4207 = vst.msk [vmem:[%s5883_s4 + $0xbb0] sm:$0xff] %vm3832_vm1, %v3282_v19  ;;  %v3285_v31 = vadd.f32 %v6801_v44, %v5316_v27  ;;  %v3276_v33 = vpop.f32.mrb[119].mxu1  ;;  %3949 = vst.msk [vmem:[%s5883_s4 + $0x3a0] sm:$0xff] %vm3832_vm1, %v2250_v24  ;;  %v2253_v34 = vadd.f32 %v6801_v44, %v2252_v32  ;;  %v670_v32 = vld [vmem:[%s5530_s24 + $0xf78] sm:$0xff] }
 0x1d6   : > { %4205 = vst.msk [vmem:[%s5883_s4 + $0xba0] sm:$0xff] %vm3832_vm1, %v3274_v25  ;;  %v3277_v35 = vadd.f32 %v6801_v44, %v3276_v33  ;;  %3952 = vst.msk [vmem:[%s5883_s4 + $0x3b8] sm:$0xff] %vm3832_vm1, %v2261_v30  ;;  %5166 = vmatmul.mubr.msk.bf16.gmra.mrb[224].mxu0 %vm982_vm0, %v800_v22  ;;  %v933_v22 = vpack.c.bf16 %v668_v7, %v667_v6  ;;  %v414_v30 = vld [vmem:[%s5530_s24 + $0x778] sm:$0xff]  ;;  %v415_v33 = vld [vmem:[%s5530_s24 + $0x780] sm:$0xff] }
 0x1d7   : > { %4208 = vst.msk [vmem:[%s5883_s4 + $0xbb8] sm:$0xff] %vm3832_vm1, %v3285_v31  ;;  %5422 = vmatmul.mubr.msk.bf16.gmra.mrb[224].mxu1 %vm982_vm0, %v928_v23  ;;  %3950 = vst.msk [vmem:[%s5883_s4 + $0x3a8] sm:$0xff] %vm3832_vm1, %v2253_v34  ;;  %5169 = vmatprep.mubr.msk.bf16.mxu0 %vm982_vm0, %v801_v28  ;;  %v669_v31 = vld [vmem:[%s5530_s24 + $0xf70] sm:$0xff]  ;;  %v416_v34 = vld [vmem:[%s5530_s24 + $0x788] sm:$0xff] }
 0x1d8   : > { %4206 = vst.msk [vmem:[%s5883_s4 + $0xba8] sm:$0xff] %vm3832_vm1, %v3277_v35  ;;  %5425 = vmatprep.mubr.msk.bf16.mxu1 %vm982_vm0, %v929_v29  ;;  %v413_v29 = vld [vmem:[%s5530_s24 + $0x770] sm:$0xff]  ;;  %v671_v35 = vld [vmem:[%s5530_s24 + $0xf80] sm:$0xff] }
 0x1d9   : > { %v5063_v62 = vpop.f32.mrb[120].mxu0  ;;  %v806_v43 = vpack.c.bf16 %v414_v30, %v413_v29  ;;  %v680_v29 = vld [vmem:[%s5530_s24 + $0xfc8] sm:$0xff] }
 0x1da   : > { %v5319_v45 = vpop.f32.mrb[120].mxu1  ;;  %v2274_v46 = vadd.f32 %v6801_v44, %v5063_v62  ;;  %v2265_v48 = vpop.f32.mrb[121].mxu0  ;;  %v934_v62 = vpack.c.bf16 %v670_v32, %v669_v31 }
 0x1db   : > { %v3298_v47 = vadd.f32 %v6801_v44, %v5319_v45  ;;  %v3289_v49 = vpop.f32.mrb[121].mxu1  ;;  %v2266_v52 = vadd.f32 %v6801_v44, %v2265_v48  ;;  %v5064_v54 = vpop.f32.mrb[122].mxu0 }
 0x1dc   : > { %v3290_v53 = vadd.f32 %v6801_v44, %v3289_v49  ;;  %v5320_v55 = vpop.f32.mrb[122].mxu1  ;;  %3955 = vst.msk [vmem:[%s5883_s4 + $0x3d0] sm:$0xff] %vm3832_vm1, %v2274_v46  ;;  %v2277_v58 = vadd.f32 %v6801_v44, %v5064_v54  ;;  %v2268_v60 = vpop.f32.mrb[123].mxu0  ;;  %v807_v49 = vpack.c.bf16 %v416_v34, %v415_v33 }
 0x1dd   : > { %4211 = vst.msk [vmem:[%s5883_s4 + $0xbd0] sm:$0xff] %vm3832_vm1, %v3298_v47  ;;  %v3301_v59 = vadd.f32 %v6801_v44, %v5320_v55  ;;  %v3292_v61 = vpop.f32.mrb[123].mxu1  ;;  %3953 = vst.msk [vmem:[%s5883_s4 + $0x3c0] sm:$0xff] %vm3832_vm1, %v2266_v52  ;;  %v2269_v63 = vadd.f32 %v6801_v44, %v2268_v60  ;;  %v674_v60 = vld [vmem:[%s5530_s24 + $0xf98] sm:$0xff] }
 0x1de   : > { %4209 = vst.msk [vmem:[%s5883_s4 + $0xbc0] sm:$0xff] %vm3832_vm1, %v3290_v53  ;;  %v3293_v14 = vadd.f32 %v6801_v44, %v3292_v61  ;;  %3956 = vst.msk [vmem:[%s5883_s4 + $0x3d8] sm:$0xff] %vm3832_vm1, %v2277_v58  ;;  %5170 = vmatmul.mubr.msk.bf16.gmra.mrb[228].mxu0 %vm982_vm0, %v802_v50  ;;  %v935_v50 = vpack.c.bf16 %v672_v36, %v671_v35  ;;  %v418_v58 = vld [vmem:[%s5530_s24 + $0x798] sm:$0xff]  ;;  %v419_v61 = vld [vmem:[%s5530_s24 + $0x7a0] sm:$0xff] }
 0x1df   : > { %4212 = vst.msk [vmem:[%s5883_s4 + $0xbd8] sm:$0xff] %vm3832_vm1, %v3301_v59  ;;  %5426 = vmatmul.mubr.msk.bf16.gmra.mrb[228].mxu1 %vm982_vm0, %v930_v51  ;;  %3954 = vst.msk [vmem:[%s5883_s4 + $0x3c8] sm:$0xff] %vm3832_vm1, %v2269_v63  ;;  %5173 = vmatprep.mubr.msk.bf16.mxu0 %vm982_vm0, %v803_v56  ;;  %v673_v59 = vld [vmem:[%s5530_s24 + $0xf90] sm:$0xff]  ;;  %v420_v63 = vld [vmem:[%s5530_s24 + $0x7a8] sm:$0xff] }
 0x1e0   : > { %4210 = vst.msk [vmem:[%s5883_s4 + $0xbc8] sm:$0xff] %vm3832_vm1, %v3293_v14  ;;  %5429 = vmatprep.mubr.msk.bf16.mxu1 %vm982_vm0, %v931_v57  ;;  %v417_v57 = vld [vmem:[%s5530_s24 + $0x790] sm:$0xff]  ;;  %v675_v14 = vld [vmem:[%s5530_s24 + $0xfa0] sm:$0xff] }
 0x1e1   : > { %v5067_v8 = vpop.f32.mrb[124].mxu0  ;;  %v808_v7 = vpack.c.bf16 %v418_v58, %v417_v57  ;;  %v684_v57 = vld [vmem:[%s5530_s24 + $0xfe8] sm:$0xff] }
 0x1e2   : > { %v5323_v9 = vpop.f32.mrb[124].mxu1  ;;  %v2290_v10 = vadd.f32 %v6801_v44, %v5067_v8  ;;  %v2281_v12 = vpop.f32.mrb[125].mxu0  ;;  %v936_v8 = vpack.c.bf16 %v674_v60, %v673_v59 }
 0x1e3   : > { %v3314_v11 = vadd.f32 %v6801_v44, %v5323_v9  ;;  %v3305_v13 = vpop.f32.mrb[125].mxu1  ;;  %v2282_v17 = vadd.f32 %v6801_v44, %v2281_v12  ;;  %v5068_v19 = vpop.f32.mrb[126].mxu0 }
 0x1e4   : > { %v3306_v18 = vadd.f32 %v6801_v44, %v3305_v13  ;;  %v5324_v20 = vpop.f32.mrb[126].mxu1  ;;  %3959 = vst.msk [vmem:[%s5883_s4 + $0x3f0] sm:$0xff] %vm3832_vm1, %v2290_v10  ;;  %v2293_v23 = vadd.f32 %v6801_v44, %v5068_v19  ;;  %v2284_v25 = vpop.f32.mrb[127].mxu0  ;;  %v809_v13 = vpack.c.bf16 %v420_v63, %v419_v61 }
 0x1e5   : > { %4215 = vst.msk [vmem:[%s5883_s4 + $0xbf0] sm:$0xff] %vm3832_vm1, %v3314_v11  ;;  %v3317_v24 = vadd.f32 %v6801_v44, %v5324_v20  ;;  %v3308_v26 = vpop.f32.mrb[127].mxu1  ;;  %3957 = vst.msk [vmem:[%s5883_s4 + $0x3e0] sm:$0xff] %vm3832_vm1, %v2282_v17  ;;  %v2285_v27 = vadd.f32 %v6801_v44, %v2284_v25  ;;  %v678_v25 = vld [vmem:[%s5530_s24 + $0xfb8] sm:$0xff] }
 0x1e6   : > { %4213 = vst.msk [vmem:[%s5883_s4 + $0xbe0] sm:$0xff] %vm3832_vm1, %v3306_v18  ;;  %v3309_v28 = vadd.f32 %v6801_v44, %v3308_v26  ;;  %3960 = vst.msk [vmem:[%s5883_s4 + $0x3f8] sm:$0xff] %vm3832_vm1, %v2293_v23  ;;  %5174 = vmatmul.mubr.msk.bf16.gmra.mrb[232].mxu0 %vm982_vm0, %v804_v15  ;;  %v937_v15 = vpack.c.bf16 %v676_v0, %v675_v14  ;;  %v422_v23 = vld [vmem:[%s5530_s24 + $0x7b8] sm:$0xff]  ;;  %v423_v26 = vld [vmem:[%s5530_s24 + $0x7c0] sm:$0xff] }
 0x1e7   : > { %4216 = vst.msk [vmem:[%s5883_s4 + $0xbf8] sm:$0xff] %vm3832_vm1, %v3317_v24  ;;  %5430 = vmatmul.mubr.msk.bf16.gmra.mrb[232].mxu1 %vm982_vm0, %v932_v16  ;;  %3958 = vst.msk [vmem:[%s5883_s4 + $0x3e8] sm:$0xff] %vm3832_vm1, %v2285_v27  ;;  %5177 = vmatprep.mubr.msk.bf16.mxu0 %vm982_vm0, %v805_v21  ;;  %v677_v24 = vld [vmem:[%s5530_s24 + $0xfb0] sm:$0xff]  ;;  %v424_v27 = vld [vmem:[%s5530_s24 + $0x7c8] sm:$0xff] }
 0x1e8   : > { %4214 = vst.msk [vmem:[%s5883_s4 + $0xbe8] sm:$0xff] %vm3832_vm1, %v3309_v28  ;;  %5433 = vmatprep.mubr.msk.bf16.mxu1 %vm982_vm0, %v933_v22  ;;  %v421_v22 = vld [vmem:[%s5530_s24 + $0x7b0] sm:$0xff]  ;;  %v679_v28 = vld [vmem:[%s5530_s24 + $0xfc0] sm:$0xff] }
 0x1e9   : > { %v5071_v37 = vpop.f32.mrb[128].mxu0  ;;  %v810_v36 = vpack.c.bf16 %v422_v23, %v421_v22 }
 0x1ea   : > { %v5327_v38 = vpop.f32.mrb[128].mxu1  ;;  %v2306_v39 = vadd.f32 %v6801_v44, %v5071_v37  ;;  %v2297_v41 = vpop.f32.mrb[129].mxu0  ;;  %v938_v37 = vpack.c.bf16 %v678_v25, %v677_v24 }
 0x1eb   : > { %v3330_v40 = vadd.f32 %v6801_v44, %v5327_v38  ;;  %v3321_v42 = vpop.f32.mrb[129].mxu1  ;;  %v2298_v45 = vadd.f32 %v6801_v44, %v2297_v41  ;;  %v5072_v47 = vpop.f32.mrb[130].mxu0 }
 0x1ec   : > { %v3322_v46 = vadd.f32 %v6801_v44, %v3321_v42  ;;  %v5328_v48 = vpop.f32.mrb[130].mxu1  ;;  %3963 = vst.msk [vmem:[%s5883_s4 + $0x410] sm:$0xff] %vm3832_vm1, %v2306_v39  ;;  %v2309_v51 = vadd.f32 %v6801_v44, %v5072_v47  ;;  %v2300_v53 = vpop.f32.mrb[131].mxu0  ;;  %v811_v42 = vpack.c.bf16 %v424_v27, %v423_v26 }
 0x1ed   : > { %4219 = vst.msk [vmem:[%s5883_s4 + $0xc10] sm:$0xff] %vm3832_vm1, %v3330_v40  ;;  %v3333_v52 = vadd.f32 %v6801_v44, %v5328_v48  ;;  %v3324_v54 = vpop.f32.mrb[131].mxu1  ;;  %3961 = vst.msk [vmem:[%s5883_s4 + $0x400] sm:$0xff] %vm3832_vm1, %v2298_v45  ;;  %v2301_v55 = vadd.f32 %v6801_v44, %v2300_v53  ;;  %v682_v53 = vld [vmem:[%s5530_s24 + $0xfd8] sm:$0xff] }
 0x1ee   : > { %4217 = vst.msk [vmem:[%s5883_s4 + $0xc00] sm:$0xff] %vm3832_vm1, %v3322_v46  ;;  %v3325_v56 = vadd.f32 %v6801_v44, %v3324_v54  ;;  %3964 = vst.msk [vmem:[%s5883_s4 + $0x418] sm:$0xff] %vm3832_vm1, %v2309_v51  ;;  %5178 = vmatmul.mubr.msk.bf16.gmra.mrb[236].mxu0 %vm982_vm0, %v806_v43  ;;  %v939_v43 = vpack.c.bf16 %v680_v29, %v679_v28  ;;  %v426_v51 = vld [vmem:[%s5530_s24 + $0x7d8] sm:$0xff]  ;;  %v427_v54 = vld [vmem:[%s5530_s24 + $0x7e0] sm:$0xff] }
 0x1ef   : > { %4220 = vst.msk [vmem:[%s5883_s4 + $0xc18] sm:$0xff] %vm3832_vm1, %v3333_v52  ;;  %5434 = vmatmul.mubr.msk.bf16.gmra.mrb[236].mxu1 %vm982_vm0, %v934_v62  ;;  %3962 = vst.msk [vmem:[%s5883_s4 + $0x408] sm:$0xff] %vm3832_vm1, %v2301_v55  ;;  %5181 = vmatprep.mubr.msk.bf16.mxu0 %vm982_vm0, %v807_v49  ;;  %v681_v52 = vld [vmem:[%s5530_s24 + $0xfd0] sm:$0xff]  ;;  %v428_v55 = vld [vmem:[%s5530_s24 + $0x7e8] sm:$0xff] }
 0x1f0   : > { %4218 = vst.msk [vmem:[%s5883_s4 + $0xc08] sm:$0xff] %vm3832_vm1, %v3325_v56  ;;  %5437 = vmatprep.mubr.msk.bf16.mxu1 %vm982_vm0, %v935_v50  ;;  %v425_v50 = vld [vmem:[%s5530_s24 + $0x7d0] sm:$0xff]  ;;  %v683_v56 = vld [vmem:[%s5530_s24 + $0xfe0] sm:$0xff] }
 0x1f1   : > { %v5075_v1 = vpop.f32.mrb[132].mxu0  ;;  %v812_v0 = vpack.c.bf16 %v426_v51, %v425_v50 }
 0x1f2   : > { %v5331_v2 = vpop.f32.mrb[132].mxu1  ;;  %v2322_v3 = vadd.f32 %v6801_v44, %v5075_v1  ;;  %v2313_v5 = vpop.f32.mrb[133].mxu0  ;;  %v940_v1 = vpack.c.bf16 %v682_v53, %v681_v52 }
 0x1f3   : > { %v3346_v4 = vadd.f32 %v6801_v44, %v5331_v2  ;;  %v3337_v6 = vpop.f32.mrb[133].mxu1  ;;  %v2314_v9 = vadd.f32 %v6801_v44, %v2313_v5  ;;  %v5076_v11 = vpop.f32.mrb[134].mxu0 }
 0x1f4   : > { %v3338_v10 = vadd.f32 %v6801_v44, %v3337_v6  ;;  %v5332_v12 = vpop.f32.mrb[134].mxu1  ;;  %3967 = vst.msk [vmem:[%s5883_s4 + $0x430] sm:$0xff] %vm3832_vm1, %v2322_v3  ;;  %v2325_v16 = vadd.f32 %v6801_v44, %v5076_v11  ;;  %v2316_v18 = vpop.f32.mrb[135].mxu0  ;;  %v813_v6 = vpack.c.bf16 %v428_v55, %v427_v54 }
 0x1f5   : > { %4223 = vst.msk [vmem:[%s5883_s4 + $0xc30] sm:$0xff] %vm3832_vm1, %v3346_v4  ;;  %v3349_v17 = vadd.f32 %v6801_v44, %v5332_v12  ;;  %v3340_v19 = vpop.f32.mrb[135].mxu1  ;;  %3965 = vst.msk [vmem:[%s5883_s4 + $0x420] sm:$0xff] %vm3832_vm1, %v2314_v9  ;;  %v2317_v20 = vadd.f32 %v6801_v44, %v2316_v18  ;;  %v686_v18 = vld [vmem:[%s5530_s24 + $0xff8] sm:$0xff] }
 0x1f6   : > { %4221 = vst.msk [vmem:[%s5883_s4 + $0xc20] sm:$0xff] %vm3832_vm1, %v3338_v10  ;;  %v3341_v21 = vadd.f32 %v6801_v44, %v3340_v19  ;;  %3968 = vst.msk [vmem:[%s5883_s4 + $0x438] sm:$0xff] %vm3832_vm1, %v2325_v16  ;;  %5182 = vmatmul.mubr.msk.bf16.gmra.mrb[240].mxu0 %vm982_vm0, %v808_v7  ;;  %v941_v7 = vpack.c.bf16 %v684_v57, %v683_v56  ;;  %v430_v16 = vld [vmem:[%s5530_s24 + $0x7f8] sm:$0xff] }
 0x1f7   : > { %4224 = vst.msk [vmem:[%s5883_s4 + $0xc38] sm:$0xff] %vm3832_vm1, %v3349_v17  ;;  %5438 = vmatmul.mubr.msk.bf16.gmra.mrb[240].mxu1 %vm982_vm0, %v936_v8  ;;  %3966 = vst.msk [vmem:[%s5883_s4 + $0x428] sm:$0xff] %vm3832_vm1, %v2317_v20  ;;  %5185 = vmatprep.mubr.msk.bf16.mxu0 %vm982_vm0, %v809_v13  ;;  %v685_v17 = vld [vmem:[%s5530_s24 + $0xff0] sm:$0xff] }
 0x1f8   : > { %4222 = vst.msk [vmem:[%s5883_s4 + $0xc28] sm:$0xff] %vm3832_vm1, %v3341_v21  ;;  %5441 = vmatprep.mubr.msk.bf16.mxu1 %vm982_vm0, %v937_v15  ;;  %v429_v15 = vld [vmem:[%s5530_s24 + $0x7f0] sm:$0xff]  ;;  %v942_v26 = vpack.c.bf16 %v686_v18, %v685_v17 }
 0x1f9   : > { %v5079_v30 = vpop.f32.mrb[136].mxu0  ;;  %v814_v25 = vpack.c.bf16 %v430_v16, %v429_v15 }
 0x1fa   : > { %v5335_v31 = vpop.f32.mrb[136].mxu1  ;;  %v2338_v32 = vadd.f32 %v6801_v44, %v5079_v30  ;;  %v2329_v34 = vpop.f32.mrb[137].mxu0 }
 0x1fb   : > { %v3362_v33 = vadd.f32 %v6801_v44, %v5335_v31  ;;  %v3353_v35 = vpop.f32.mrb[137].mxu1  ;;  %v2330_v38 = vadd.f32 %v6801_v44, %v2329_v34  ;;  %v5080_v40 = vpop.f32.mrb[138].mxu0 }
 0x1fc   : > { %v3354_v39 = vadd.f32 %v6801_v44, %v3353_v35  ;;  %v5336_v41 = vpop.f32.mrb[138].mxu1  ;;  %3971 = vst.msk [vmem:[%s5883_s4 + $0x450] sm:$0xff] %vm3832_vm1, %v2338_v32  ;;  %v2341_v62 = vadd.f32 %v6801_v44, %v5080_v40  ;;  %v2332_v46 = vpop.f32.mrb[139].mxu0 }
 0x1fd   : > { %4227 = vst.msk [vmem:[%s5883_s4 + $0xc50] sm:$0xff] %vm3832_vm1, %v3362_v33  ;;  %v3365_v45 = vadd.f32 %v6801_v44, %v5336_v41  ;;  %v3356_v47 = vpop.f32.mrb[139].mxu1  ;;  %3969 = vst.msk [vmem:[%s5883_s4 + $0x440] sm:$0xff] %vm3832_vm1, %v2330_v38  ;;  %v2333_v48 = vadd.f32 %v6801_v44, %v2332_v46 }
 0x1fe   : > { %4225 = vst.msk [vmem:[%s5883_s4 + $0xc40] sm:$0xff] %vm3832_vm1, %v3354_v39  ;;  %v3357_v49 = vadd.f32 %v6801_v44, %v3356_v47  ;;  %3972 = vst.msk [vmem:[%s5883_s4 + $0x458] sm:$0xff] %vm3832_vm1, %v2341_v62  ;;  %5186 = vmatmul.mubr.msk.bf16.gmra.mrb[244].mxu0 %vm982_vm0, %v810_v36 }
 0x1ff   : > { %4228 = vst.msk [vmem:[%s5883_s4 + $0xc58] sm:$0xff] %vm3832_vm1, %v3365_v45  ;;  %5442 = vmatmul.mubr.msk.bf16.gmra.mrb[244].mxu1 %vm982_vm0, %v938_v37  ;;  %3970 = vst.msk [vmem:[%s5883_s4 + $0x448] sm:$0xff] %vm3832_vm1, %v2333_v48  ;;  %5189 = vmatprep.mubr.msk.bf16.mxu0 %vm982_vm0, %v811_v42 }
 0x200   : > { %4226 = vst.msk [vmem:[%s5883_s4 + $0xc48] sm:$0xff] %vm3832_vm1, %v3357_v49  ;;  %5445 = vmatprep.mubr.msk.bf16.mxu1 %vm982_vm0, %v939_v43 }
 0x201   : > { %v5083_v58 = vpop.f32.mrb[140].mxu0 }
 0x202   : > { %v5339_v59 = vpop.f32.mrb[140].mxu1  ;;  %v2354_v60 = vadd.f32 %v6801_v44, %v5083_v58  ;;  %v2345_v63 = vpop.f32.mrb[141].mxu0 }
 0x203   : > { %v3378_v61 = vadd.f32 %v6801_v44, %v5339_v59  ;;  %v3369_v14 = vpop.f32.mrb[141].mxu1  ;;  %v2346_v2 = vadd.f32 %v6801_v44, %v2345_v63  ;;  %v5084_v4 = vpop.f32.mrb[142].mxu0 }
 0x204   : > { %v3370_v3 = vadd.f32 %v6801_v44, %v3369_v14  ;;  %v5340_v5 = vpop.f32.mrb[142].mxu1  ;;  %3975 = vst.msk [vmem:[%s5883_s4 + $0x470] sm:$0xff] %vm3832_vm1, %v2354_v60  ;;  %v2357_v8 = vadd.f32 %v6801_v44, %v5084_v4  ;;  %v2348_v10 = vpop.f32.mrb[143].mxu0 }
 0x205   : > { %4231 = vst.msk [vmem:[%s5883_s4 + $0xc70] sm:$0xff] %vm3832_vm1, %v3378_v61  ;;  %v3381_v9 = vadd.f32 %v6801_v44, %v5340_v5  ;;  %v3372_v11 = vpop.f32.mrb[143].mxu1  ;;  %3973 = vst.msk [vmem:[%s5883_s4 + $0x460] sm:$0xff] %vm3832_vm1, %v2346_v2  ;;  %v2349_v12 = vadd.f32 %v6801_v44, %v2348_v10 }
 0x206   : > { %4229 = vst.msk [vmem:[%s5883_s4 + $0xc60] sm:$0xff] %vm3832_vm1, %v3370_v3  ;;  %v3373_v13 = vadd.f32 %v6801_v44, %v3372_v11  ;;  %3976 = vst.msk [vmem:[%s5883_s4 + $0x478] sm:$0xff] %vm3832_vm1, %v2357_v8  ;;  %5190 = vmatmul.mubr.msk.bf16.gmra.mrb[248].mxu0 %vm982_vm0, %v812_v0 }
 0x207   : > { %4232 = vst.msk [vmem:[%s5883_s4 + $0xc78] sm:$0xff] %vm3832_vm1, %v3381_v9  ;;  %5446 = vmatmul.mubr.msk.bf16.gmra.mrb[248].mxu1 %vm982_vm0, %v940_v1  ;;  %3974 = vst.msk [vmem:[%s5883_s4 + $0x468] sm:$0xff] %vm3832_vm1, %v2349_v12  ;;  %5193 = vmatprep.mubr.msk.bf16.mxu0 %vm982_vm0, %v813_v6 }
 0x208   : > { %4230 = vst.msk [vmem:[%s5883_s4 + $0xc68] sm:$0xff] %vm3832_vm1, %v3373_v13  ;;  %5449 = vmatprep.mubr.msk.bf16.mxu1 %vm982_vm0, %v941_v7 }
 0x209   : > { %v5087_v19 = vpop.f32.mrb[144].mxu0 }
 0x20a   : > { %v5343_v20 = vpop.f32.mrb[144].mxu1  ;;  %v2370_v21 = vadd.f32 %v6801_v44, %v5087_v19  ;;  %v2361_v23 = vpop.f32.mrb[145].mxu0 }
 0x20b   : > { %v3394_v22 = vadd.f32 %v6801_v44, %v5343_v20  ;;  %v3385_v24 = vpop.f32.mrb[145].mxu1  ;;  %v2362_v27 = vadd.f32 %v6801_v44, %v2361_v23  ;;  %v5088_v29 = vpop.f32.mrb[146].mxu0  ;;  %v7278_v20 = vld [vmem:[%s7876_s2] ss:$0 sm:$0xff] }
 0x20c   : > { %v3386_v28 = vadd.f32 %v6801_v44, %v3385_v24  ;;  %v5344_v30 = vpop.f32.mrb[146].mxu1  ;;  %3979 = vst.msk [vmem:[%s5883_s4 + $0x490] sm:$0xff] %vm3832_vm1, %v2370_v21  ;;  %v2373_v31 = vadd.f32 %v6801_v44, %v5088_v29  ;;  %v2364_v33 = vpop.f32.mrb[147].mxu0 }
 0x20d   : > { %4235 = vst.msk [vmem:[%s5883_s4 + $0xc90] sm:$0xff] %vm3832_vm1, %v3394_v22  ;;  %v3397_v32 = vadd.f32 %v6801_v44, %v5344_v30  ;;  %v3388_v34 = vpop.f32.mrb[147].mxu1  ;;  %3977 = vst.msk [vmem:[%s5883_s4 + $0x480] sm:$0xff] %vm3832_vm1, %v2362_v27  ;;  %v2365_v35 = vadd.f32 %v6801_v44, %v2364_v33 }
 0x20e   : > { %4233 = vst.msk [vmem:[%s5883_s4 + $0xc80] sm:$0xff] %vm3832_vm1, %v3386_v28  ;;  %v3389_v36 = vadd.f32 %v6801_v44, %v3388_v34  ;;  %3980 = vst.msk [vmem:[%s5883_s4 + $0x498] sm:$0xff] %vm3832_vm1, %v2373_v31  ;;  %5194 = vmatmul.mubr.msk.bf16.gmra.mrb[252].mxu0 %vm982_vm0, %v814_v25 }
 0x20f   : > { %4236 = vst.msk [vmem:[%s5883_s4 + $0xc98] sm:$0xff] %vm3832_vm1, %v3397_v32  ;;  %5450 = vmatmul.mubr.msk.bf16.gmra.mrb[252].mxu1 %vm982_vm0, %v942_v26  ;;  %3978 = vst.msk [vmem:[%s5883_s4 + $0x488] sm:$0xff] %vm3832_vm1, %v2365_v35 }
 0x210   : > { %4234 = vst.msk [vmem:[%s5883_s4 + $0xc88] sm:$0xff] %vm3832_vm1, %v3389_v36 }
 0x211   : > { %v5091_v37 = vpop.f32.mrb[148].mxu0 }
 0x212   : > { %v5347_v38 = vpop.f32.mrb[148].mxu1  ;;  %v2386_v39 = vadd.f32 %v6801_v44, %v5091_v37  ;;  %v2377_v41 = vpop.f32.mrb[149].mxu0 }
 0x213   : > { %v3410_v40 = vadd.f32 %v6801_v44, %v5347_v38  ;;  %v3401_v42 = vpop.f32.mrb[149].mxu1  ;;  %v2378_v43 = vadd.f32 %v6801_v44, %v2377_v41  ;;  %v5092_v45 = vpop.f32.mrb[150].mxu0 }
 0x214   : > { %v3402_v62 = vadd.f32 %v6801_v44, %v3401_v42  ;;  %v5348_v46 = vpop.f32.mrb[150].mxu1  ;;  %3983 = vst.msk [vmem:[%s5883_s4 + $0x4b0] sm:$0xff] %vm3832_vm1, %v2386_v39  ;;  %v2389_v47 = vadd.f32 %v6801_v44, %v5092_v45  ;;  %v2380_v49 = vpop.f32.mrb[151].mxu0 }
 0x215   : > { %4239 = vst.msk [vmem:[%s5883_s4 + $0xcb0] sm:$0xff] %vm3832_vm1, %v3410_v40  ;;  %v3413_v48 = vadd.f32 %v6801_v44, %v5348_v46  ;;  %v3404_v50 = vpop.f32.mrb[151].mxu1  ;;  %3981 = vst.msk [vmem:[%s5883_s4 + $0x4a0] sm:$0xff] %vm3832_vm1, %v2378_v43  ;;  %v2381_v51 = vadd.f32 %v6801_v44, %v2380_v49 }
 0x216   : > { %4237 = vst.msk [vmem:[%s5883_s4 + $0xca0] sm:$0xff] %vm3832_vm1, %v3402_v62  ;;  %v3405_v52 = vadd.f32 %v6801_v44, %v3404_v50  ;;  %3984 = vst.msk [vmem:[%s5883_s4 + $0x4b8] sm:$0xff] %vm3832_vm1, %v2389_v47 }
 0x217   : > { %4240 = vst.msk [vmem:[%s5883_s4 + $0xcb8] sm:$0xff] %vm3832_vm1, %v3413_v48  ;;  %3982 = vst.msk [vmem:[%s5883_s4 + $0x4a8] sm:$0xff] %vm3832_vm1, %v2381_v51 }
 0x218   : > { %4238 = vst.msk [vmem:[%s5883_s4 + $0xca8] sm:$0xff] %vm3832_vm1, %v3405_v52 }
 0x219   : > { %v5095_v53 = vpop.f32.mrb[152].mxu0 }
 0x21a   : > { %v5351_v54 = vpop.f32.mrb[152].mxu1  ;;  %v2402_v55 = vadd.f32 %v6801_v44, %v5095_v53  ;;  %v2393_v57 = vpop.f32.mrb[153].mxu0 }
 0x21b   : > { %v3426_v56 = vadd.f32 %v6801_v44, %v5351_v54  ;;  %v3417_v58 = vpop.f32.mrb[153].mxu1  ;;  %v2394_v59 = vadd.f32 %v6801_v44, %v2393_v57  ;;  %v5096_v61 = vpop.f32.mrb[154].mxu0 }
 0x21c   : > { %v3418_v60 = vadd.f32 %v6801_v44, %v3417_v58  ;;  %v5352_v63 = vpop.f32.mrb[154].mxu1  ;;  %3987 = vst.msk [vmem:[%s5883_s4 + $0x4d0] sm:$0xff] %vm3832_vm1, %v2402_v55  ;;  %v2405_v14 = vadd.f32 %v6801_v44, %v5096_v61  ;;  %v2396_v1 = vpop.f32.mrb[155].mxu0 }
 0x21d   : > { %4243 = vst.msk [vmem:[%s5883_s4 + $0xcd0] sm:$0xff] %vm3832_vm1, %v3426_v56  ;;  %v3429_v0 = vadd.f32 %v6801_v44, %v5352_v63  ;;  %v3420_v2 = vpop.f32.mrb[155].mxu1  ;;  %3985 = vst.msk [vmem:[%s5883_s4 + $0x4c0] sm:$0xff] %vm3832_vm1, %v2394_v59  ;;  %v2397_v3 = vadd.f32 %v6801_v44, %v2396_v1 }
 0x21e   : > { %4241 = vst.msk [vmem:[%s5883_s4 + $0xcc0] sm:$0xff] %vm3832_vm1, %v3418_v60  ;;  %v3421_v4 = vadd.f32 %v6801_v44, %v3420_v2  ;;  %3988 = vst.msk [vmem:[%s5883_s4 + $0x4d8] sm:$0xff] %vm3832_vm1, %v2405_v14 }
 0x21f   : > { %4244 = vst.msk [vmem:[%s5883_s4 + $0xcd8] sm:$0xff] %vm3832_vm1, %v3429_v0  ;;  %3986 = vst.msk [vmem:[%s5883_s4 + $0x4c8] sm:$0xff] %vm3832_vm1, %v2397_v3 }
 0x220   : > { %4242 = vst.msk [vmem:[%s5883_s4 + $0xcc8] sm:$0xff] %vm3832_vm1, %v3421_v4 }
 0x221   : > { %v5099_v5 = vpop.f32.mrb[156].mxu0 }
 0x222   : > { %v5355_v6 = vpop.f32.mrb[156].mxu1  ;;  %v2418_v7 = vadd.f32 %v6801_v44, %v5099_v5  ;;  %v2409_v9 = vpop.f32.mrb[157].mxu0 }
 0x223   : > { %v3442_v8 = vadd.f32 %v6801_v44, %v5355_v6  ;;  %v3433_v10 = vpop.f32.mrb[157].mxu1  ;;  %v2410_v11 = vadd.f32 %v6801_v44, %v2409_v9  ;;  %v5100_v13 = vpop.f32.mrb[158].mxu0 }
 0x224   : > { %v3434_v12 = vadd.f32 %v6801_v44, %v3433_v10  ;;  %v5356_v15 = vpop.f32.mrb[158].mxu1  ;;  %3991 = vst.msk [vmem:[%s5883_s4 + $0x4f0] sm:$0xff] %vm3832_vm1, %v2418_v7  ;;  %v2421_v16 = vadd.f32 %v6801_v44, %v5100_v13  ;;  %v2412_v18 = vpop.f32.mrb[159].mxu0 }
 0x225   : > { %4247 = vst.msk [vmem:[%s5883_s4 + $0xcf0] sm:$0xff] %vm3832_vm1, %v3442_v8  ;;  %v3445_v17 = vadd.f32 %v6801_v44, %v5356_v15  ;;  %v3436_v19 = vpop.f32.mrb[159].mxu1  ;;  %3989 = vst.msk [vmem:[%s5883_s4 + $0x4e0] sm:$0xff] %vm3832_vm1, %v2410_v11  ;;  %v2413_v21 = vadd.f32 %v7278_v20, %v2412_v18 }
 0x226   : > { %4245 = vst.msk [vmem:[%s5883_s4 + $0xce0] sm:$0xff] %vm3832_vm1, %v3434_v12  ;;  %v3437_v22 = vadd.f32 %v7278_v20, %v3436_v19  ;;  %3992 = vst.msk [vmem:[%s5883_s4 + $0x4f8] sm:$0xff] %vm3832_vm1, %v2421_v16 }
 0x227   : > { %4248 = vst.msk [vmem:[%s5883_s4 + $0xcf8] sm:$0xff] %vm3832_vm1, %v3445_v17  ;;  %3990 = vst.msk [vmem:[%s5883_s4 + $0x4e8] sm:$0xff] %vm3832_vm1, %v2413_v21 }
 0x228   : > { %4246 = vst.msk [vmem:[%s5883_s4 + $0xce8] sm:$0xff] %vm3832_vm1, %v3437_v22 }
 0x229   : > { %v5103_v44 = vpop.f32.mrb[160].mxu0 }
 0x22a   : > { %v5359_v23 = vpop.f32.mrb[160].mxu1  ;;  %v2434_v24 = vadd.f32 %v7278_v20, %v5103_v44  ;;  %v2425_v26 = vpop.f32.mrb[161].mxu0 }
 0x22b   : > { %v3458_v25 = vadd.f32 %v7278_v20, %v5359_v23  ;;  %v3449_v27 = vpop.f32.mrb[161].mxu1  ;;  %v2426_v28 = vadd.f32 %v7278_v20, %v2425_v26  ;;  %v5104_v30 = vpop.f32.mrb[162].mxu0 }
 0x22c   : > { %v3450_v29 = vadd.f32 %v7278_v20, %v3449_v27  ;;  %v5360_v31 = vpop.f32.mrb[162].mxu1  ;;  %3995 = vst.msk [vmem:[%s5883_s4 + $0x510] sm:$0xff] %vm3832_vm1, %v2434_v24  ;;  %v2437_v32 = vadd.f32 %v7278_v20, %v5104_v30  ;;  %v2428_v34 = vpop.f32.mrb[163].mxu0 }
 0x22d   : > { %4251 = vst.msk [vmem:[%s5883_s4 + $0xd10] sm:$0xff] %vm3832_vm1, %v3458_v25  ;;  %v3461_v33 = vadd.f32 %v7278_v20, %v5360_v31  ;;  %v3452_v35 = vpop.f32.mrb[163].mxu1  ;;  %3993 = vst.msk [vmem:[%s5883_s4 + $0x500] sm:$0xff] %vm3832_vm1, %v2426_v28  ;;  %v2429_v36 = vadd.f32 %v7278_v20, %v2428_v34 }
 0x22e   : > { %4249 = vst.msk [vmem:[%s5883_s4 + $0xd00] sm:$0xff] %vm3832_vm1, %v3450_v29  ;;  %v3453_v37 = vadd.f32 %v7278_v20, %v3452_v35  ;;  %3996 = vst.msk [vmem:[%s5883_s4 + $0x518] sm:$0xff] %vm3832_vm1, %v2437_v32 }
 0x22f   : > { %4252 = vst.msk [vmem:[%s5883_s4 + $0xd18] sm:$0xff] %vm3832_vm1, %v3461_v33  ;;  %3994 = vst.msk [vmem:[%s5883_s4 + $0x508] sm:$0xff] %vm3832_vm1, %v2429_v36 }
 0x230   : > { %4250 = vst.msk [vmem:[%s5883_s4 + $0xd08] sm:$0xff] %vm3832_vm1, %v3453_v37 }
 0x231   : > { %v5107_v38 = vpop.f32.mrb[164].mxu0 }
 0x232   : > { %v5363_v39 = vpop.f32.mrb[164].mxu1  ;;  %v2450_v40 = vadd.f32 %v7278_v20, %v5107_v38  ;;  %v2441_v42 = vpop.f32.mrb[165].mxu0 }
 0x233   : > { %v3474_v41 = vadd.f32 %v7278_v20, %v5363_v39  ;;  %v3465_v43 = vpop.f32.mrb[165].mxu1  ;;  %v2442_v62 = vadd.f32 %v7278_v20, %v2441_v42  ;;  %v5108_v46 = vpop.f32.mrb[166].mxu0 }
 0x234   : > { %v3466_v45 = vadd.f32 %v7278_v20, %v3465_v43  ;;  %v5364_v47 = vpop.f32.mrb[166].mxu1  ;;  %3999 = vst.msk [vmem:[%s5883_s4 + $0x530] sm:$0xff] %vm3832_vm1, %v2450_v40  ;;  %v2453_v48 = vadd.f32 %v7278_v20, %v5108_v46  ;;  %v2444_v50 = vpop.f32.mrb[167].mxu0 }
 0x235   : > { %4255 = vst.msk [vmem:[%s5883_s4 + $0xd30] sm:$0xff] %vm3832_vm1, %v3474_v41  ;;  %v3477_v49 = vadd.f32 %v7278_v20, %v5364_v47  ;;  %v3468_v51 = vpop.f32.mrb[167].mxu1  ;;  %3997 = vst.msk [vmem:[%s5883_s4 + $0x520] sm:$0xff] %vm3832_vm1, %v2442_v62  ;;  %v2445_v52 = vadd.f32 %v7278_v20, %v2444_v50 }
 0x236   : > { %4253 = vst.msk [vmem:[%s5883_s4 + $0xd20] sm:$0xff] %vm3832_vm1, %v3466_v45  ;;  %v3469_v53 = vadd.f32 %v7278_v20, %v3468_v51  ;;  %4000 = vst.msk [vmem:[%s5883_s4 + $0x538] sm:$0xff] %vm3832_vm1, %v2453_v48 }
 0x237   : > { %4256 = vst.msk [vmem:[%s5883_s4 + $0xd38] sm:$0xff] %vm3832_vm1, %v3477_v49  ;;  %3998 = vst.msk [vmem:[%s5883_s4 + $0x528] sm:$0xff] %vm3832_vm1, %v2445_v52 }
 0x238   : > { %4254 = vst.msk [vmem:[%s5883_s4 + $0xd28] sm:$0xff] %vm3832_vm1, %v3469_v53 }
 0x239   : > { %v5111_v54 = vpop.f32.mrb[168].mxu0 }
 0x23a   : > { %v5367_v55 = vpop.f32.mrb[168].mxu1  ;;  %v2466_v56 = vadd.f32 %v7278_v20, %v5111_v54  ;;  %v2457_v58 = vpop.f32.mrb[169].mxu0 }
 0x23b   : > { %v3490_v57 = vadd.f32 %v7278_v20, %v5367_v55  ;;  %v3481_v59 = vpop.f32.mrb[169].mxu1  ;;  %v2458_v60 = vadd.f32 %v7278_v20, %v2457_v58  ;;  %v5112_v63 = vpop.f32.mrb[170].mxu0 }
 0x23c   : > { %v3482_v61 = vadd.f32 %v7278_v20, %v3481_v59  ;;  %v5368_v14 = vpop.f32.mrb[170].mxu1  ;;  %4003 = vst.msk [vmem:[%s5883_s4 + $0x550] sm:$0xff] %vm3832_vm1, %v2466_v56  ;;  %v2469_v0 = vadd.f32 %v7278_v20, %v5112_v63  ;;  %v2460_v2 = vpop.f32.mrb[171].mxu0 }
 0x23d   : > { %4259 = vst.msk [vmem:[%s5883_s4 + $0xd50] sm:$0xff] %vm3832_vm1, %v3490_v57  ;;  %v3493_v1 = vadd.f32 %v7278_v20, %v5368_v14  ;;  %v3484_v3 = vpop.f32.mrb[171].mxu1  ;;  %4001 = vst.msk [vmem:[%s5883_s4 + $0x540] sm:$0xff] %vm3832_vm1, %v2458_v60  ;;  %v2461_v4 = vadd.f32 %v7278_v20, %v2460_v2 }
 0x23e   : > { %4257 = vst.msk [vmem:[%s5883_s4 + $0xd40] sm:$0xff] %vm3832_vm1, %v3482_v61  ;;  %v3485_v5 = vadd.f32 %v7278_v20, %v3484_v3  ;;  %4004 = vst.msk [vmem:[%s5883_s4 + $0x558] sm:$0xff] %vm3832_vm1, %v2469_v0 }
 0x23f   : > { %4260 = vst.msk [vmem:[%s5883_s4 + $0xd58] sm:$0xff] %vm3832_vm1, %v3493_v1  ;;  %4002 = vst.msk [vmem:[%s5883_s4 + $0x548] sm:$0xff] %vm3832_vm1, %v2461_v4 }
 0x240   : > { %4258 = vst.msk [vmem:[%s5883_s4 + $0xd48] sm:$0xff] %vm3832_vm1, %v3485_v5 }
 0x241   : > { %v5115_v6 = vpop.f32.mrb[172].mxu0 }
 0x242   : > { %v5371_v7 = vpop.f32.mrb[172].mxu1  ;;  %v2482_v8 = vadd.f32 %v7278_v20, %v5115_v6  ;;  %v2473_v10 = vpop.f32.mrb[173].mxu0 }
 0x243   : > { %v3506_v9 = vadd.f32 %v7278_v20, %v5371_v7  ;;  %v3497_v11 = vpop.f32.mrb[173].mxu1  ;;  %v2474_v12 = vadd.f32 %v7278_v20, %v2473_v10  ;;  %v5116_v15 = vpop.f32.mrb[174].mxu0 }
 0x244   : > { %v3498_v13 = vadd.f32 %v7278_v20, %v3497_v11  ;;  %v5372_v16 = vpop.f32.mrb[174].mxu1  ;;  %4007 = vst.msk [vmem:[%s5883_s4 + $0x570] sm:$0xff] %vm3832_vm1, %v2482_v8  ;;  %v2485_v17 = vadd.f32 %v7278_v20, %v5116_v15  ;;  %v2476_v19 = vpop.f32.mrb[175].mxu0 }
 0x245   : > { %4263 = vst.msk [vmem:[%s5883_s4 + $0xd70] sm:$0xff] %vm3832_vm1, %v3506_v9  ;;  %v3509_v18 = vadd.f32 %v7278_v20, %v5372_v16  ;;  %v3500_v21 = vpop.f32.mrb[175].mxu1  ;;  %4005 = vst.msk [vmem:[%s5883_s4 + $0x560] sm:$0xff] %vm3832_vm1, %v2474_v12  ;;  %v2477_v22 = vadd.f32 %v7278_v20, %v2476_v19 }
 0x246   : > { %4261 = vst.msk [vmem:[%s5883_s4 + $0xd60] sm:$0xff] %vm3832_vm1, %v3498_v13  ;;  %v3501_v44 = vadd.f32 %v7278_v20, %v3500_v21  ;;  %4008 = vst.msk [vmem:[%s5883_s4 + $0x578] sm:$0xff] %vm3832_vm1, %v2485_v17 }
 0x247   : > { %4264 = vst.msk [vmem:[%s5883_s4 + $0xd78] sm:$0xff] %vm3832_vm1, %v3509_v18  ;;  %4006 = vst.msk [vmem:[%s5883_s4 + $0x568] sm:$0xff] %vm3832_vm1, %v2477_v22 }
 0x248   : > { %4262 = vst.msk [vmem:[%s5883_s4 + $0xd68] sm:$0xff] %vm3832_vm1, %v3501_v44 }
 0x249   : > { %v5119_v23 = vpop.f32.mrb[176].mxu0 }
 0x24a   : > { %v5375_v24 = vpop.f32.mrb[176].mxu1  ;;  %v2498_v25 = vadd.f32 %v7278_v20, %v5119_v23  ;;  %v2489_v27 = vpop.f32.mrb[177].mxu0 }
 0x24b   : > { %v3522_v26 = vadd.f32 %v7278_v20, %v5375_v24  ;;  %v3513_v28 = vpop.f32.mrb[177].mxu1  ;;  %v2490_v29 = vadd.f32 %v7278_v20, %v2489_v27  ;;  %v5120_v31 = vpop.f32.mrb[178].mxu0 }
 0x24c   : > { %v3514_v30 = vadd.f32 %v7278_v20, %v3513_v28  ;;  %v5376_v32 = vpop.f32.mrb[178].mxu1  ;;  %4011 = vst.msk [vmem:[%s5883_s4 + $0x590] sm:$0xff] %vm3832_vm1, %v2498_v25  ;;  %v2501_v33 = vadd.f32 %v7278_v20, %v5120_v31  ;;  %v2492_v35 = vpop.f32.mrb[179].mxu0 }
 0x24d   : > { %4267 = vst.msk [vmem:[%s5883_s4 + $0xd90] sm:$0xff] %vm3832_vm1, %v3522_v26  ;;  %v3525_v34 = vadd.f32 %v7278_v20, %v5376_v32  ;;  %v3516_v36 = vpop.f32.mrb[179].mxu1  ;;  %4009 = vst.msk [vmem:[%s5883_s4 + $0x580] sm:$0xff] %vm3832_vm1, %v2490_v29  ;;  %v2493_v37 = vadd.f32 %v7278_v20, %v2492_v35 }
 0x24e   : > { %4265 = vst.msk [vmem:[%s5883_s4 + $0xd80] sm:$0xff] %vm3832_vm1, %v3514_v30  ;;  %v3517_v38 = vadd.f32 %v7278_v20, %v3516_v36  ;;  %4012 = vst.msk [vmem:[%s5883_s4 + $0x598] sm:$0xff] %vm3832_vm1, %v2501_v33 }
 0x24f   : > { %4268 = vst.msk [vmem:[%s5883_s4 + $0xd98] sm:$0xff] %vm3832_vm1, %v3525_v34  ;;  %4010 = vst.msk [vmem:[%s5883_s4 + $0x588] sm:$0xff] %vm3832_vm1, %v2493_v37 }
 0x250   : > { %4266 = vst.msk [vmem:[%s5883_s4 + $0xd88] sm:$0xff] %vm3832_vm1, %v3517_v38 }
 0x251   : > { %v5123_v39 = vpop.f32.mrb[180].mxu0 }
 0x252   : > { %v5379_v40 = vpop.f32.mrb[180].mxu1  ;;  %v2514_v41 = vadd.f32 %v7278_v20, %v5123_v39  ;;  %v2505_v43 = vpop.f32.mrb[181].mxu0 }
 0x253   : > { %v3538_v42 = vadd.f32 %v7278_v20, %v5379_v40  ;;  %v3529_v62 = vpop.f32.mrb[181].mxu1  ;;  %v2506_v45 = vadd.f32 %v7278_v20, %v2505_v43  ;;  %v5124_v47 = vpop.f32.mrb[182].mxu0 }
 0x254   : > { %v3530_v46 = vadd.f32 %v7278_v20, %v3529_v62  ;;  %v5380_v48 = vpop.f32.mrb[182].mxu1  ;;  %4015 = vst.msk [vmem:[%s5883_s4 + $0x5b0] sm:$0xff] %vm3832_vm1, %v2514_v41  ;;  %v2517_v49 = vadd.f32 %v7278_v20, %v5124_v47  ;;  %v2508_v51 = vpop.f32.mrb[183].mxu0 }
 0x255   : > { %4271 = vst.msk [vmem:[%s5883_s4 + $0xdb0] sm:$0xff] %vm3832_vm1, %v3538_v42  ;;  %v3541_v50 = vadd.f32 %v7278_v20, %v5380_v48  ;;  %v3532_v52 = vpop.f32.mrb[183].mxu1  ;;  %4013 = vst.msk [vmem:[%s5883_s4 + $0x5a0] sm:$0xff] %vm3832_vm1, %v2506_v45  ;;  %v2509_v53 = vadd.f32 %v7278_v20, %v2508_v51 }
 0x256   : > { %4269 = vst.msk [vmem:[%s5883_s4 + $0xda0] sm:$0xff] %vm3832_vm1, %v3530_v46  ;;  %v3533_v54 = vadd.f32 %v7278_v20, %v3532_v52  ;;  %4016 = vst.msk [vmem:[%s5883_s4 + $0x5b8] sm:$0xff] %vm3832_vm1, %v2517_v49 }
 0x257   : > { %4272 = vst.msk [vmem:[%s5883_s4 + $0xdb8] sm:$0xff] %vm3832_vm1, %v3541_v50  ;;  %4014 = vst.msk [vmem:[%s5883_s4 + $0x5a8] sm:$0xff] %vm3832_vm1, %v2509_v53 }
 0x258   : > { %4270 = vst.msk [vmem:[%s5883_s4 + $0xda8] sm:$0xff] %vm3832_vm1, %v3533_v54 }
 0x259   : > { %v5127_v55 = vpop.f32.mrb[184].mxu0 }
 0x25a   : > { %v5383_v56 = vpop.f32.mrb[184].mxu1  ;;  %v2530_v57 = vadd.f32 %v7278_v20, %v5127_v55  ;;  %v2521_v59 = vpop.f32.mrb[185].mxu0 }
 0x25b   : > { %v3554_v58 = vadd.f32 %v7278_v20, %v5383_v56  ;;  %v3545_v60 = vpop.f32.mrb[185].mxu1  ;;  %v2522_v61 = vadd.f32 %v7278_v20, %v2521_v59  ;;  %v5128_v14 = vpop.f32.mrb[186].mxu0 }
 0x25c   : > { %v3546_v63 = vadd.f32 %v7278_v20, %v3545_v60  ;;  %v5384_v0 = vpop.f32.mrb[186].mxu1  ;;  %4019 = vst.msk [vmem:[%s5883_s4 + $0x5d0] sm:$0xff] %vm3832_vm1, %v2530_v57  ;;  %v2533_v1 = vadd.f32 %v7278_v20, %v5128_v14  ;;  %v2524_v3 = vpop.f32.mrb[187].mxu0 }
 0x25d   : > { %4275 = vst.msk [vmem:[%s5883_s4 + $0xdd0] sm:$0xff] %vm3832_vm1, %v3554_v58  ;;  %v3557_v2 = vadd.f32 %v7278_v20, %v5384_v0  ;;  %v3548_v4 = vpop.f32.mrb[187].mxu1  ;;  %4017 = vst.msk [vmem:[%s5883_s4 + $0x5c0] sm:$0xff] %vm3832_vm1, %v2522_v61  ;;  %v2525_v5 = vadd.f32 %v7278_v20, %v2524_v3 }
 0x25e   : > { %4273 = vst.msk [vmem:[%s5883_s4 + $0xdc0] sm:$0xff] %vm3832_vm1, %v3546_v63  ;;  %v3549_v6 = vadd.f32 %v7278_v20, %v3548_v4  ;;  %4020 = vst.msk [vmem:[%s5883_s4 + $0x5d8] sm:$0xff] %vm3832_vm1, %v2533_v1 }
 0x25f   : > { %4276 = vst.msk [vmem:[%s5883_s4 + $0xdd8] sm:$0xff] %vm3832_vm1, %v3557_v2  ;;  %4018 = vst.msk [vmem:[%s5883_s4 + $0x5c8] sm:$0xff] %vm3832_vm1, %v2525_v5 }
 0x260   : > { %4274 = vst.msk [vmem:[%s5883_s4 + $0xdc8] sm:$0xff] %vm3832_vm1, %v3549_v6 }
 0x261   : > { %v5131_v7 = vpop.f32.mrb[188].mxu0 }
 0x262   : > { %v5387_v8 = vpop.f32.mrb[188].mxu1  ;;  %v2546_v9 = vadd.f32 %v7278_v20, %v5131_v7  ;;  %v2537_v11 = vpop.f32.mrb[189].mxu0 }
 0x263   : > { %v3570_v10 = vadd.f32 %v7278_v20, %v5387_v8  ;;  %v3561_v12 = vpop.f32.mrb[189].mxu1  ;;  %v2538_v13 = vadd.f32 %v7278_v20, %v2537_v11  ;;  %v5132_v16 = vpop.f32.mrb[190].mxu0 }
 0x264   : > { %v3562_v15 = vadd.f32 %v7278_v20, %v3561_v12  ;;  %v5388_v17 = vpop.f32.mrb[190].mxu1  ;;  %4023 = vst.msk [vmem:[%s5883_s4 + $0x5f0] sm:$0xff] %vm3832_vm1, %v2546_v9  ;;  %v2549_v18 = vadd.f32 %v7278_v20, %v5132_v16  ;;  %v2540_v21 = vpop.f32.mrb[191].mxu0 }
 0x265   : > { %4279 = vst.msk [vmem:[%s5883_s4 + $0xdf0] sm:$0xff] %vm3832_vm1, %v3570_v10  ;;  %v3573_v19 = vadd.f32 %v7278_v20, %v5388_v17  ;;  %v3564_v22 = vpop.f32.mrb[191].mxu1  ;;  %4021 = vst.msk [vmem:[%s5883_s4 + $0x5e0] sm:$0xff] %vm3832_vm1, %v2538_v13  ;;  %v2541_v44 = vadd.f32 %v7278_v20, %v2540_v21 }
 0x266   : > { %4277 = vst.msk [vmem:[%s5883_s4 + $0xde0] sm:$0xff] %vm3832_vm1, %v3562_v15  ;;  %v3565_v23 = vadd.f32 %v7278_v20, %v3564_v22  ;;  %4024 = vst.msk [vmem:[%s5883_s4 + $0x5f8] sm:$0xff] %vm3832_vm1, %v2549_v18 }
 0x267   : > { %4280 = vst.msk [vmem:[%s5883_s4 + $0xdf8] sm:$0xff] %vm3832_vm1, %v3573_v19  ;;  %4022 = vst.msk [vmem:[%s5883_s4 + $0x5e8] sm:$0xff] %vm3832_vm1, %v2541_v44 }
 0x268   : > { %4278 = vst.msk [vmem:[%s5883_s4 + $0xde8] sm:$0xff] %vm3832_vm1, %v3565_v23 }
 0x269   : > { %v5135_v24 = vpop.f32.mrb[192].mxu0 }
 0x26a   : > { %v5391_v25 = vpop.f32.mrb[192].mxu1  ;;  %v2562_v26 = vadd.f32 %v7278_v20, %v5135_v24  ;;  %v2553_v28 = vpop.f32.mrb[193].mxu0 }
 0x26b   : > { %v3586_v27 = vadd.f32 %v7278_v20, %v5391_v25  ;;  %v3577_v29 = vpop.f32.mrb[193].mxu1  ;;  %v2554_v30 = vadd.f32 %v7278_v20, %v2553_v28  ;;  %v5136_v32 = vpop.f32.mrb[194].mxu0 }
 0x26c   : > { %v3578_v31 = vadd.f32 %v7278_v20, %v3577_v29  ;;  %v5392_v33 = vpop.f32.mrb[194].mxu1  ;;  %4027 = vst.msk [vmem:[%s5883_s4 + $0x610] sm:$0xff] %vm3832_vm1, %v2562_v26  ;;  %v2565_v34 = vadd.f32 %v7278_v20, %v5136_v32  ;;  %v2556_v36 = vpop.f32.mrb[195].mxu0 }
 0x26d   : > { %4283 = vst.msk [vmem:[%s5883_s4 + $0xe10] sm:$0xff] %vm3832_vm1, %v3586_v27  ;;  %v3589_v35 = vadd.f32 %v7278_v20, %v5392_v33  ;;  %v3580_v37 = vpop.f32.mrb[195].mxu1  ;;  %4025 = vst.msk [vmem:[%s5883_s4 + $0x600] sm:$0xff] %vm3832_vm1, %v2554_v30  ;;  %v2557_v38 = vadd.f32 %v7278_v20, %v2556_v36 }
 0x26e   : > { %4281 = vst.msk [vmem:[%s5883_s4 + $0xe00] sm:$0xff] %vm3832_vm1, %v3578_v31  ;;  %v3581_v39 = vadd.f32 %v7278_v20, %v3580_v37  ;;  %4028 = vst.msk [vmem:[%s5883_s4 + $0x618] sm:$0xff] %vm3832_vm1, %v2565_v34 }
 0x26f   : > { %4284 = vst.msk [vmem:[%s5883_s4 + $0xe18] sm:$0xff] %vm3832_vm1, %v3589_v35  ;;  %4026 = vst.msk [vmem:[%s5883_s4 + $0x608] sm:$0xff] %vm3832_vm1, %v2557_v38 }
 0x270   : > { %4282 = vst.msk [vmem:[%s5883_s4 + $0xe08] sm:$0xff] %vm3832_vm1, %v3581_v39 }
 0x271   : > { %v5139_v40 = vpop.f32.mrb[196].mxu0 }
 0x272   : > { %v5395_v41 = vpop.f32.mrb[196].mxu1  ;;  %v2578_v42 = vadd.f32 %v7278_v20, %v5139_v40  ;;  %v2569_v62 = vpop.f32.mrb[197].mxu0 }
 0x273   : > { %v3602_v43 = vadd.f32 %v7278_v20, %v5395_v41  ;;  %v3593_v45 = vpop.f32.mrb[197].mxu1  ;;  %v2570_v46 = vadd.f32 %v7278_v20, %v2569_v62  ;;  %v5140_v48 = vpop.f32.mrb[198].mxu0 }
 0x274   : > { %v3594_v47 = vadd.f32 %v7278_v20, %v3593_v45  ;;  %v5396_v49 = vpop.f32.mrb[198].mxu1  ;;  %4031 = vst.msk [vmem:[%s5883_s4 + $0x630] sm:$0xff] %vm3832_vm1, %v2578_v42  ;;  %v2581_v50 = vadd.f32 %v7278_v20, %v5140_v48  ;;  %v2572_v52 = vpop.f32.mrb[199].mxu0 }
 0x275   : > { %4287 = vst.msk [vmem:[%s5883_s4 + $0xe30] sm:$0xff] %vm3832_vm1, %v3602_v43  ;;  %v3605_v51 = vadd.f32 %v7278_v20, %v5396_v49  ;;  %v3596_v53 = vpop.f32.mrb[199].mxu1  ;;  %4029 = vst.msk [vmem:[%s5883_s4 + $0x620] sm:$0xff] %vm3832_vm1, %v2570_v46  ;;  %v2573_v54 = vadd.f32 %v7278_v20, %v2572_v52 }
 0x276   : > { %4285 = vst.msk [vmem:[%s5883_s4 + $0xe20] sm:$0xff] %vm3832_vm1, %v3594_v47  ;;  %v3597_v55 = vadd.f32 %v7278_v20, %v3596_v53  ;;  %4032 = vst.msk [vmem:[%s5883_s4 + $0x638] sm:$0xff] %vm3832_vm1, %v2581_v50 }
 0x277   : > { %4288 = vst.msk [vmem:[%s5883_s4 + $0xe38] sm:$0xff] %vm3832_vm1, %v3605_v51  ;;  %4030 = vst.msk [vmem:[%s5883_s4 + $0x628] sm:$0xff] %vm3832_vm1, %v2573_v54 }
 0x278   : > { %4286 = vst.msk [vmem:[%s5883_s4 + $0xe28] sm:$0xff] %vm3832_vm1, %v3597_v55 }
 0x279   : > { %v5143_v56 = vpop.f32.mrb[200].mxu0 }
 0x27a   : > { %v5399_v57 = vpop.f32.mrb[200].mxu1  ;;  %v2594_v58 = vadd.f32 %v7278_v20, %v5143_v56  ;;  %v2585_v60 = vpop.f32.mrb[201].mxu0 }
 0x27b   : > { %v3618_v59 = vadd.f32 %v7278_v20, %v5399_v57  ;;  %v3609_v61 = vpop.f32.mrb[201].mxu1  ;;  %v2586_v63 = vadd.f32 %v7278_v20, %v2585_v60  ;;  %v5144_v0 = vpop.f32.mrb[202].mxu0 }
 0x27c   : > { %v3610_v14 = vadd.f32 %v7278_v20, %v3609_v61  ;;  %v5400_v1 = vpop.f32.mrb[202].mxu1  ;;  %4035 = vst.msk [vmem:[%s5883_s4 + $0x650] sm:$0xff] %vm3832_vm1, %v2594_v58  ;;  %v2597_v2 = vadd.f32 %v7278_v20, %v5144_v0  ;;  %v2588_v4 = vpop.f32.mrb[203].mxu0 }
 0x27d   : > { %4291 = vst.msk [vmem:[%s5883_s4 + $0xe50] sm:$0xff] %vm3832_vm1, %v3618_v59  ;;  %v3621_v3 = vadd.f32 %v7278_v20, %v5400_v1  ;;  %v3612_v5 = vpop.f32.mrb[203].mxu1  ;;  %4033 = vst.msk [vmem:[%s5883_s4 + $0x640] sm:$0xff] %vm3832_vm1, %v2586_v63  ;;  %v2589_v6 = vadd.f32 %v7278_v20, %v2588_v4 }
 0x27e   : > { %4289 = vst.msk [vmem:[%s5883_s4 + $0xe40] sm:$0xff] %vm3832_vm1, %v3610_v14  ;;  %v3613_v7 = vadd.f32 %v7278_v20, %v3612_v5  ;;  %4036 = vst.msk [vmem:[%s5883_s4 + $0x658] sm:$0xff] %vm3832_vm1, %v2597_v2 }
 0x27f   : > { %4292 = vst.msk [vmem:[%s5883_s4 + $0xe58] sm:$0xff] %vm3832_vm1, %v3621_v3  ;;  %4034 = vst.msk [vmem:[%s5883_s4 + $0x648] sm:$0xff] %vm3832_vm1, %v2589_v6 }
 0x280   : > { %4290 = vst.msk [vmem:[%s5883_s4 + $0xe48] sm:$0xff] %vm3832_vm1, %v3613_v7 }
 0x281   : > { %v5147_v8 = vpop.f32.mrb[204].mxu0 }
 0x282   : > { %v5403_v9 = vpop.f32.mrb[204].mxu1  ;;  %v2610_v10 = vadd.f32 %v7278_v20, %v5147_v8  ;;  %v2601_v12 = vpop.f32.mrb[205].mxu0 }
 0x283   : > { %v3634_v11 = vadd.f32 %v7278_v20, %v5403_v9  ;;  %v3625_v13 = vpop.f32.mrb[205].mxu1  ;;  %v2602_v15 = vadd.f32 %v7278_v20, %v2601_v12  ;;  %v5148_v17 = vpop.f32.mrb[206].mxu0 }
 0x284   : > { %v3626_v16 = vadd.f32 %v7278_v20, %v3625_v13  ;;  %v5404_v18 = vpop.f32.mrb[206].mxu1  ;;  %4039 = vst.msk [vmem:[%s5883_s4 + $0x670] sm:$0xff] %vm3832_vm1, %v2610_v10  ;;  %v2613_v19 = vadd.f32 %v7278_v20, %v5148_v17  ;;  %v2604_v22 = vpop.f32.mrb[207].mxu0 }
 0x285   : > { %4295 = vst.msk [vmem:[%s5883_s4 + $0xe70] sm:$0xff] %vm3832_vm1, %v3634_v11  ;;  %v3637_v21 = vadd.f32 %v7278_v20, %v5404_v18  ;;  %v3628_v44 = vpop.f32.mrb[207].mxu1  ;;  %4037 = vst.msk [vmem:[%s5883_s4 + $0x660] sm:$0xff] %vm3832_vm1, %v2602_v15  ;;  %v2605_v23 = vadd.f32 %v7278_v20, %v2604_v22 }
 0x286   : > { %4293 = vst.msk [vmem:[%s5883_s4 + $0xe60] sm:$0xff] %vm3832_vm1, %v3626_v16  ;;  %v3629_v24 = vadd.f32 %v7278_v20, %v3628_v44  ;;  %4040 = vst.msk [vmem:[%s5883_s4 + $0x678] sm:$0xff] %vm3832_vm1, %v2613_v19 }
 0x287   : > { %4296 = vst.msk [vmem:[%s5883_s4 + $0xe78] sm:$0xff] %vm3832_vm1, %v3637_v21  ;;  %4038 = vst.msk [vmem:[%s5883_s4 + $0x668] sm:$0xff] %vm3832_vm1, %v2605_v23 }
 0x288   : > { %4294 = vst.msk [vmem:[%s5883_s4 + $0xe68] sm:$0xff] %vm3832_vm1, %v3629_v24 }
 0x289   : > { %v5151_v25 = vpop.f32.mrb[208].mxu0 }
 0x28a   : > { %v5407_v26 = vpop.f32.mrb[208].mxu1  ;;  %v2626_v27 = vadd.f32 %v7278_v20, %v5151_v25  ;;  %v2617_v29 = vpop.f32.mrb[209].mxu0 }
 0x28b   : > { %v3650_v28 = vadd.f32 %v7278_v20, %v5407_v26  ;;  %v3641_v30 = vpop.f32.mrb[209].mxu1  ;;  %v2618_v31 = vadd.f32 %v7278_v20, %v2617_v29  ;;  %v5152_v33 = vpop.f32.mrb[210].mxu0 }
 0x28c   : > { %v3642_v32 = vadd.f32 %v7278_v20, %v3641_v30  ;;  %v5408_v34 = vpop.f32.mrb[210].mxu1  ;;  %4043 = vst.msk [vmem:[%s5883_s4 + $0x690] sm:$0xff] %vm3832_vm1, %v2626_v27  ;;  %v2629_v35 = vadd.f32 %v7278_v20, %v5152_v33  ;;  %v2620_v37 = vpop.f32.mrb[211].mxu0 }
 0x28d   : > { %4299 = vst.msk [vmem:[%s5883_s4 + $0xe90] sm:$0xff] %vm3832_vm1, %v3650_v28  ;;  %v3653_v36 = vadd.f32 %v7278_v20, %v5408_v34  ;;  %v3644_v38 = vpop.f32.mrb[211].mxu1  ;;  %4041 = vst.msk [vmem:[%s5883_s4 + $0x680] sm:$0xff] %vm3832_vm1, %v2618_v31  ;;  %v2621_v39 = vadd.f32 %v7278_v20, %v2620_v37 }
 0x28e   : > { %4297 = vst.msk [vmem:[%s5883_s4 + $0xe80] sm:$0xff] %vm3832_vm1, %v3642_v32  ;;  %v3645_v40 = vadd.f32 %v7278_v20, %v3644_v38  ;;  %4044 = vst.msk [vmem:[%s5883_s4 + $0x698] sm:$0xff] %vm3832_vm1, %v2629_v35 }
 0x28f   : > { %4300 = vst.msk [vmem:[%s5883_s4 + $0xe98] sm:$0xff] %vm3832_vm1, %v3653_v36  ;;  %4042 = vst.msk [vmem:[%s5883_s4 + $0x688] sm:$0xff] %vm3832_vm1, %v2621_v39 }
 0x290   : > { %4298 = vst.msk [vmem:[%s5883_s4 + $0xe88] sm:$0xff] %vm3832_vm1, %v3645_v40 }
 0x291   : > { %v5155_v41 = vpop.f32.mrb[212].mxu0 }
 0x292   : > { %v5411_v42 = vpop.f32.mrb[212].mxu1  ;;  %v2642_v43 = vadd.f32 %v7278_v20, %v5155_v41  ;;  %v2633_v45 = vpop.f32.mrb[213].mxu0 }
 0x293   : > { %v3666_v62 = vadd.f32 %v7278_v20, %v5411_v42  ;;  %v3657_v46 = vpop.f32.mrb[213].mxu1  ;;  %v2634_v47 = vadd.f32 %v7278_v20, %v2633_v45  ;;  %v5156_v49 = vpop.f32.mrb[214].mxu0 }
 0x294   : > { %v3658_v48 = vadd.f32 %v7278_v20, %v3657_v46  ;;  %v5412_v50 = vpop.f32.mrb[214].mxu1  ;;  %4047 = vst.msk [vmem:[%s5883_s4 + $0x6b0] sm:$0xff] %vm3832_vm1, %v2642_v43  ;;  %v2645_v51 = vadd.f32 %v7278_v20, %v5156_v49  ;;  %v2636_v53 = vpop.f32.mrb[215].mxu0 }
 0x295   : > { %4303 = vst.msk [vmem:[%s5883_s4 + $0xeb0] sm:$0xff] %vm3832_vm1, %v3666_v62  ;;  %v3669_v52 = vadd.f32 %v7278_v20, %v5412_v50  ;;  %v3660_v54 = vpop.f32.mrb[215].mxu1  ;;  %4045 = vst.msk [vmem:[%s5883_s4 + $0x6a0] sm:$0xff] %vm3832_vm1, %v2634_v47  ;;  %v2637_v55 = vadd.f32 %v7278_v20, %v2636_v53 }
 0x296   : > { %4301 = vst.msk [vmem:[%s5883_s4 + $0xea0] sm:$0xff] %vm3832_vm1, %v3658_v48  ;;  %v3661_v56 = vadd.f32 %v7278_v20, %v3660_v54  ;;  %4048 = vst.msk [vmem:[%s5883_s4 + $0x6b8] sm:$0xff] %vm3832_vm1, %v2645_v51 }
 0x297   : > { %4304 = vst.msk [vmem:[%s5883_s4 + $0xeb8] sm:$0xff] %vm3832_vm1, %v3669_v52  ;;  %4046 = vst.msk [vmem:[%s5883_s4 + $0x6a8] sm:$0xff] %vm3832_vm1, %v2637_v55 }
 0x298   : > { %4302 = vst.msk [vmem:[%s5883_s4 + $0xea8] sm:$0xff] %vm3832_vm1, %v3661_v56 }
 0x299   : > { %v5159_v57 = vpop.f32.mrb[216].mxu0 }
 0x29a   : > { %v5415_v58 = vpop.f32.mrb[216].mxu1  ;;  %v2658_v59 = vadd.f32 %v7278_v20, %v5159_v57  ;;  %v2649_v61 = vpop.f32.mrb[217].mxu0 }
 0x29b   : > { %v3682_v60 = vadd.f32 %v7278_v20, %v5415_v58  ;;  %v3673_v63 = vpop.f32.mrb[217].mxu1  ;;  %v2650_v14 = vadd.f32 %v7278_v20, %v2649_v61  ;;  %v5160_v1 = vpop.f32.mrb[218].mxu0 }
 0x29c   : > { %v3674_v0 = vadd.f32 %v7278_v20, %v3673_v63  ;;  %v5416_v2 = vpop.f32.mrb[218].mxu1  ;;  %4051 = vst.msk [vmem:[%s5883_s4 + $0x6d0] sm:$0xff] %vm3832_vm1, %v2658_v59  ;;  %v2661_v3 = vadd.f32 %v7278_v20, %v5160_v1  ;;  %v2652_v5 = vpop.f32.mrb[219].mxu0 }
 0x29d   : > { %4307 = vst.msk [vmem:[%s5883_s4 + $0xed0] sm:$0xff] %vm3832_vm1, %v3682_v60  ;;  %v3685_v4 = vadd.f32 %v7278_v20, %v5416_v2  ;;  %v3676_v6 = vpop.f32.mrb[219].mxu1  ;;  %4049 = vst.msk [vmem:[%s5883_s4 + $0x6c0] sm:$0xff] %vm3832_vm1, %v2650_v14  ;;  %v2653_v7 = vadd.f32 %v7278_v20, %v2652_v5 }
 0x29e   : > { %4305 = vst.msk [vmem:[%s5883_s4 + $0xec0] sm:$0xff] %vm3832_vm1, %v3674_v0  ;;  %v3677_v8 = vadd.f32 %v7278_v20, %v3676_v6  ;;  %4052 = vst.msk [vmem:[%s5883_s4 + $0x6d8] sm:$0xff] %vm3832_vm1, %v2661_v3 }
 0x29f   : > { %4308 = vst.msk [vmem:[%s5883_s4 + $0xed8] sm:$0xff] %vm3832_vm1, %v3685_v4  ;;  %4050 = vst.msk [vmem:[%s5883_s4 + $0x6c8] sm:$0xff] %vm3832_vm1, %v2653_v7 }
 0x2a0   : > { %4306 = vst.msk [vmem:[%s5883_s4 + $0xec8] sm:$0xff] %vm3832_vm1, %v3677_v8 }
 0x2a1   : > { %v5163_v9 = vpop.f32.mrb[220].mxu0 }
 0x2a2   : > { %v5419_v10 = vpop.f32.mrb[220].mxu1  ;;  %v2674_v11 = vadd.f32 %v7278_v20, %v5163_v9  ;;  %v2665_v13 = vpop.f32.mrb[221].mxu0 }
 0x2a3   : > { %v3698_v12 = vadd.f32 %v7278_v20, %v5419_v10  ;;  %v3689_v15 = vpop.f32.mrb[221].mxu1  ;;  %v2666_v16 = vadd.f32 %v7278_v20, %v2665_v13  ;;  %v5164_v18 = vpop.f32.mrb[222].mxu0 }
 0x2a4   : > { %v3690_v17 = vadd.f32 %v7278_v20, %v3689_v15  ;;  %v5420_v19 = vpop.f32.mrb[222].mxu1  ;;  %4055 = vst.msk [vmem:[%s5883_s4 + $0x6f0] sm:$0xff] %vm3832_vm1, %v2674_v11  ;;  %v2677_v21 = vadd.f32 %v7278_v20, %v5164_v18  ;;  %v2668_v44 = vpop.f32.mrb[223].mxu0 }
 0x2a5   : > { %4311 = vst.msk [vmem:[%s5883_s4 + $0xef0] sm:$0xff] %vm3832_vm1, %v3698_v12  ;;  %v3701_v22 = vadd.f32 %v7278_v20, %v5420_v19  ;;  %v3692_v23 = vpop.f32.mrb[223].mxu1  ;;  %4053 = vst.msk [vmem:[%s5883_s4 + $0x6e0] sm:$0xff] %vm3832_vm1, %v2666_v16  ;;  %v2669_v24 = vadd.f32 %v7278_v20, %v2668_v44 }
 0x2a6   : > { %4309 = vst.msk [vmem:[%s5883_s4 + $0xee0] sm:$0xff] %vm3832_vm1, %v3690_v17  ;;  %v3693_v25 = vadd.f32 %v7278_v20, %v3692_v23  ;;  %4056 = vst.msk [vmem:[%s5883_s4 + $0x6f8] sm:$0xff] %vm3832_vm1, %v2677_v21 }
 0x2a7   : > { %4312 = vst.msk [vmem:[%s5883_s4 + $0xef8] sm:$0xff] %vm3832_vm1, %v3701_v22  ;;  %4054 = vst.msk [vmem:[%s5883_s4 + $0x6e8] sm:$0xff] %vm3832_vm1, %v2669_v24 }
 0x2a8   : > { %4310 = vst.msk [vmem:[%s5883_s4 + $0xee8] sm:$0xff] %vm3832_vm1, %v3693_v25 }
 0x2a9   : > { %v5167_v26 = vpop.f32.mrb[224].mxu0 }
 0x2aa   : > { %v5423_v27 = vpop.f32.mrb[224].mxu1  ;;  %v2690_v28 = vadd.f32 %v7278_v20, %v5167_v26  ;;  %v2681_v30 = vpop.f32.mrb[225].mxu0 }
 0x2ab   : > { %v3714_v29 = vadd.f32 %v7278_v20, %v5423_v27  ;;  %v3705_v31 = vpop.f32.mrb[225].mxu1  ;;  %v2682_v32 = vadd.f32 %v7278_v20, %v2681_v30  ;;  %v5168_v34 = vpop.f32.mrb[226].mxu0 }
 0x2ac   : > { %v3706_v33 = vadd.f32 %v7278_v20, %v3705_v31  ;;  %v5424_v35 = vpop.f32.mrb[226].mxu1  ;;  %4059 = vst.msk [vmem:[%s5883_s4 + $0x710] sm:$0xff] %vm3832_vm1, %v2690_v28  ;;  %v2693_v36 = vadd.f32 %v7278_v20, %v5168_v34  ;;  %v2684_v38 = vpop.f32.mrb[227].mxu0 }
 0x2ad   : > { %4315 = vst.msk [vmem:[%s5883_s4 + $0xf10] sm:$0xff] %vm3832_vm1, %v3714_v29  ;;  %v3717_v37 = vadd.f32 %v7278_v20, %v5424_v35  ;;  %v3708_v39 = vpop.f32.mrb[227].mxu1  ;;  %4057 = vst.msk [vmem:[%s5883_s4 + $0x700] sm:$0xff] %vm3832_vm1, %v2682_v32  ;;  %v2685_v40 = vadd.f32 %v7278_v20, %v2684_v38 }
 0x2ae   : > { %4313 = vst.msk [vmem:[%s5883_s4 + $0xf00] sm:$0xff] %vm3832_vm1, %v3706_v33  ;;  %v3709_v41 = vadd.f32 %v7278_v20, %v3708_v39  ;;  %4060 = vst.msk [vmem:[%s5883_s4 + $0x718] sm:$0xff] %vm3832_vm1, %v2693_v36 }
 0x2af   : > { %4316 = vst.msk [vmem:[%s5883_s4 + $0xf18] sm:$0xff] %vm3832_vm1, %v3717_v37  ;;  %4058 = vst.msk [vmem:[%s5883_s4 + $0x708] sm:$0xff] %vm3832_vm1, %v2685_v40 }
 0x2b0   : > { %4314 = vst.msk [vmem:[%s5883_s4 + $0xf08] sm:$0xff] %vm3832_vm1, %v3709_v41 }
 0x2b1   : > { %v5171_v42 = vpop.f32.mrb[228].mxu0 }
 0x2b2   : > { %v5427_v43 = vpop.f32.mrb[228].mxu1  ;;  %v2706_v62 = vadd.f32 %v7278_v20, %v5171_v42  ;;  %v2697_v46 = vpop.f32.mrb[229].mxu0 }
 0x2b3   : > { %v3730_v45 = vadd.f32 %v7278_v20, %v5427_v43  ;;  %v3721_v47 = vpop.f32.mrb[229].mxu1  ;;  %v2698_v48 = vadd.f32 %v7278_v20, %v2697_v46  ;;  %v5172_v50 = vpop.f32.mrb[230].mxu0 }
 0x2b4   : > { %v3722_v49 = vadd.f32 %v7278_v20, %v3721_v47  ;;  %v5428_v51 = vpop.f32.mrb[230].mxu1  ;;  %4063 = vst.msk [vmem:[%s5883_s4 + $0x730] sm:$0xff] %vm3832_vm1, %v2706_v62  ;;  %v2709_v52 = vadd.f32 %v7278_v20, %v5172_v50  ;;  %v2700_v54 = vpop.f32.mrb[231].mxu0 }
 0x2b5   : > { %4319 = vst.msk [vmem:[%s5883_s4 + $0xf30] sm:$0xff] %vm3832_vm1, %v3730_v45  ;;  %v3733_v53 = vadd.f32 %v7278_v20, %v5428_v51  ;;  %v3724_v55 = vpop.f32.mrb[231].mxu1  ;;  %4061 = vst.msk [vmem:[%s5883_s4 + $0x720] sm:$0xff] %vm3832_vm1, %v2698_v48  ;;  %v2701_v56 = vadd.f32 %v7278_v20, %v2700_v54  ;;  %v7797_v45 = vld [vmem:[%s7876_s2] ss:$0 sm:$0xff] }
 0x2b6   : > { %4317 = vst.msk [vmem:[%s5883_s4 + $0xf20] sm:$0xff] %vm3832_vm1, %v3722_v49  ;;  %v3725_v57 = vadd.f32 %v7278_v20, %v3724_v55  ;;  %4064 = vst.msk [vmem:[%s5883_s4 + $0x738] sm:$0xff] %vm3832_vm1, %v2709_v52 }
 0x2b7   : > { %4320 = vst.msk [vmem:[%s5883_s4 + $0xf38] sm:$0xff] %vm3832_vm1, %v3733_v53  ;;  %4062 = vst.msk [vmem:[%s5883_s4 + $0x728] sm:$0xff] %vm3832_vm1, %v2701_v56 }
 0x2b8   : > { %4318 = vst.msk [vmem:[%s5883_s4 + $0xf28] sm:$0xff] %vm3832_vm1, %v3725_v57 }
 0x2b9   : > { %v5175_v58 = vpop.f32.mrb[232].mxu0 }
 0x2ba   : > { %v5431_v59 = vpop.f32.mrb[232].mxu1  ;;  %v2722_v60 = vadd.f32 %v7278_v20, %v5175_v58  ;;  %v2713_v63 = vpop.f32.mrb[233].mxu0 }
 0x2bb   : > { %v3746_v61 = vadd.f32 %v7278_v20, %v5431_v59  ;;  %v3737_v14 = vpop.f32.mrb[233].mxu1  ;;  %v2714_v0 = vadd.f32 %v7278_v20, %v2713_v63  ;;  %v5176_v2 = vpop.f32.mrb[234].mxu0 }
 0x2bc   : > { %v3738_v1 = vadd.f32 %v7278_v20, %v3737_v14  ;;  %v5432_v3 = vpop.f32.mrb[234].mxu1  ;;  %4067 = vst.msk [vmem:[%s5883_s4 + $0x750] sm:$0xff] %vm3832_vm1, %v2722_v60  ;;  %v2725_v4 = vadd.f32 %v7278_v20, %v5176_v2  ;;  %v2716_v6 = vpop.f32.mrb[235].mxu0 }
 0x2bd   : > { %4323 = vst.msk [vmem:[%s5883_s4 + $0xf50] sm:$0xff] %vm3832_vm1, %v3746_v61  ;;  %v3749_v5 = vadd.f32 %v7278_v20, %v5432_v3  ;;  %v3740_v7 = vpop.f32.mrb[235].mxu1  ;;  %4065 = vst.msk [vmem:[%s5883_s4 + $0x740] sm:$0xff] %vm3832_vm1, %v2714_v0  ;;  %v2717_v8 = vadd.f32 %v7278_v20, %v2716_v6 }
 0x2be   : > { %4321 = vst.msk [vmem:[%s5883_s4 + $0xf40] sm:$0xff] %vm3832_vm1, %v3738_v1  ;;  %v3741_v9 = vadd.f32 %v7278_v20, %v3740_v7  ;;  %4068 = vst.msk [vmem:[%s5883_s4 + $0x758] sm:$0xff] %vm3832_vm1, %v2725_v4 }
 0x2bf   : > { %4324 = vst.msk [vmem:[%s5883_s4 + $0xf58] sm:$0xff] %vm3832_vm1, %v3749_v5  ;;  %4066 = vst.msk [vmem:[%s5883_s4 + $0x748] sm:$0xff] %vm3832_vm1, %v2717_v8 }
 0x2c0   : > { %4322 = vst.msk [vmem:[%s5883_s4 + $0xf48] sm:$0xff] %vm3832_vm1, %v3741_v9 }
 0x2c1   : > { %v5179_v10 = vpop.f32.mrb[236].mxu0 }
 0x2c2   : > { %v5435_v11 = vpop.f32.mrb[236].mxu1  ;;  %v2738_v12 = vadd.f32 %v7278_v20, %v5179_v10  ;;  %v2729_v15 = vpop.f32.mrb[237].mxu0 }
 0x2c3   : > { %v3762_v13 = vadd.f32 %v7278_v20, %v5435_v11  ;;  %v3753_v16 = vpop.f32.mrb[237].mxu1  ;;  %v2730_v17 = vadd.f32 %v7278_v20, %v2729_v15  ;;  %v5180_v19 = vpop.f32.mrb[238].mxu0 }
 0x2c4   : > { %v3754_v18 = vadd.f32 %v7278_v20, %v3753_v16  ;;  %v5436_v21 = vpop.f32.mrb[238].mxu1  ;;  %4071 = vst.msk [vmem:[%s5883_s4 + $0x770] sm:$0xff] %vm3832_vm1, %v2738_v12  ;;  %v2741_v22 = vadd.f32 %v7278_v20, %v5180_v19  ;;  %v2732_v23 = vpop.f32.mrb[239].mxu0 }
 0x2c5   : > { %4327 = vst.msk [vmem:[%s5883_s4 + $0xf70] sm:$0xff] %vm3832_vm1, %v3762_v13  ;;  %v3765_v44 = vadd.f32 %v7278_v20, %v5436_v21  ;;  %v3756_v24 = vpop.f32.mrb[239].mxu1  ;;  %4069 = vst.msk [vmem:[%s5883_s4 + $0x760] sm:$0xff] %vm3832_vm1, %v2730_v17  ;;  %v2733_v25 = vadd.f32 %v7278_v20, %v2732_v23 }
 0x2c6   : > { %4325 = vst.msk [vmem:[%s5883_s4 + $0xf60] sm:$0xff] %vm3832_vm1, %v3754_v18  ;;  %v3757_v26 = vadd.f32 %v7278_v20, %v3756_v24  ;;  %4072 = vst.msk [vmem:[%s5883_s4 + $0x778] sm:$0xff] %vm3832_vm1, %v2741_v22 }
 0x2c7   : > { %4328 = vst.msk [vmem:[%s5883_s4 + $0xf78] sm:$0xff] %vm3832_vm1, %v3765_v44  ;;  %4070 = vst.msk [vmem:[%s5883_s4 + $0x768] sm:$0xff] %vm3832_vm1, %v2733_v25 }
 0x2c8   : > { %4326 = vst.msk [vmem:[%s5883_s4 + $0xf68] sm:$0xff] %vm3832_vm1, %v3757_v26 }
 0x2c9   : > { %v5183_v27 = vpop.f32.mrb[240].mxu0 }
 0x2ca   : > { %v5439_v28 = vpop.f32.mrb[240].mxu1  ;;  %v2754_v29 = vadd.f32 %v7278_v20, %v5183_v27  ;;  %v2745_v31 = vpop.f32.mrb[241].mxu0 }
 0x2cb   : > { %v3778_v30 = vadd.f32 %v7278_v20, %v5439_v28  ;;  %v3769_v32 = vpop.f32.mrb[241].mxu1  ;;  %v2746_v33 = vadd.f32 %v7278_v20, %v2745_v31  ;;  %v5184_v35 = vpop.f32.mrb[242].mxu0 }
 0x2cc   : > { %v3770_v34 = vadd.f32 %v7278_v20, %v3769_v32  ;;  %v5440_v36 = vpop.f32.mrb[242].mxu1  ;;  %4075 = vst.msk [vmem:[%s5883_s4 + $0x790] sm:$0xff] %vm3832_vm1, %v2754_v29  ;;  %v2757_v37 = vadd.f32 %v7278_v20, %v5184_v35  ;;  %v2748_v39 = vpop.f32.mrb[243].mxu0 }
 0x2cd   : > { %4331 = vst.msk [vmem:[%s5883_s4 + $0xf90] sm:$0xff] %vm3832_vm1, %v3778_v30  ;;  %v3781_v38 = vadd.f32 %v7278_v20, %v5440_v36  ;;  %v3772_v40 = vpop.f32.mrb[243].mxu1  ;;  %4073 = vst.msk [vmem:[%s5883_s4 + $0x780] sm:$0xff] %vm3832_vm1, %v2746_v33  ;;  %v2749_v41 = vadd.f32 %v7278_v20, %v2748_v39 }
 0x2ce   : > { %4329 = vst.msk [vmem:[%s5883_s4 + $0xf80] sm:$0xff] %vm3832_vm1, %v3770_v34  ;;  %v3773_v42 = vadd.f32 %v7278_v20, %v3772_v40  ;;  %4076 = vst.msk [vmem:[%s5883_s4 + $0x798] sm:$0xff] %vm3832_vm1, %v2757_v37 }
 0x2cf   : > { %4332 = vst.msk [vmem:[%s5883_s4 + $0xf98] sm:$0xff] %vm3832_vm1, %v3781_v38  ;;  %4074 = vst.msk [vmem:[%s5883_s4 + $0x788] sm:$0xff] %vm3832_vm1, %v2749_v41 }
 0x2d0   : > { %4330 = vst.msk [vmem:[%s5883_s4 + $0xf88] sm:$0xff] %vm3832_vm1, %v3773_v42 }
 0x2d1   : > { %v5187_v43 = vpop.f32.mrb[244].mxu0 }
 0x2d2   : > { %v5443_v62 = vpop.f32.mrb[244].mxu1  ;;  %v2770_v20 = vadd.f32 %v7797_v45, %v5187_v43  ;;  %v2761_v47 = vpop.f32.mrb[245].mxu0 }
 0x2d3   : > { %v3794_v46 = vadd.f32 %v7797_v45, %v5443_v62  ;;  %v3785_v48 = vpop.f32.mrb[245].mxu1  ;;  %v2762_v49 = vadd.f32 %v7797_v45, %v2761_v47  ;;  %v5188_v51 = vpop.f32.mrb[246].mxu0 }
 0x2d4   : > { %v3786_v50 = vadd.f32 %v7797_v45, %v3785_v48  ;;  %v5444_v52 = vpop.f32.mrb[246].mxu1  ;;  %4079 = vst.msk [vmem:[%s5883_s4 + $0x7b0] sm:$0xff] %vm3832_vm1, %v2770_v20  ;;  %v2773_v53 = vadd.f32 %v7797_v45, %v5188_v51  ;;  %v2764_v55 = vpop.f32.mrb[247].mxu0 }
 0x2d5   : > { %4335 = vst.msk [vmem:[%s5883_s4 + $0xfb0] sm:$0xff] %vm3832_vm1, %v3794_v46  ;;  %v3797_v54 = vadd.f32 %v7797_v45, %v5444_v52  ;;  %v3788_v56 = vpop.f32.mrb[247].mxu1  ;;  %4077 = vst.msk [vmem:[%s5883_s4 + $0x7a0] sm:$0xff] %vm3832_vm1, %v2762_v49  ;;  %v2765_v57 = vadd.f32 %v7797_v45, %v2764_v55 }
 0x2d6   : > { %4333 = vst.msk [vmem:[%s5883_s4 + $0xfa0] sm:$0xff] %vm3832_vm1, %v3786_v50  ;;  %v3789_v58 = vadd.f32 %v7797_v45, %v3788_v56  ;;  %4080 = vst.msk [vmem:[%s5883_s4 + $0x7b8] sm:$0xff] %vm3832_vm1, %v2773_v53 }
 0x2d7   : > { %4336 = vst.msk [vmem:[%s5883_s4 + $0xfb8] sm:$0xff] %vm3832_vm1, %v3797_v54  ;;  %4078 = vst.msk [vmem:[%s5883_s4 + $0x7a8] sm:$0xff] %vm3832_vm1, %v2765_v57 }
 0x2d8   : > { %4334 = vst.msk [vmem:[%s5883_s4 + $0xfa8] sm:$0xff] %vm3832_vm1, %v3789_v58 }
 0x2d9   : > { %v5191_v59 = vpop.f32.mrb[248].mxu0 }
 0x2da   : > { %v5447_v60 = vpop.f32.mrb[248].mxu1  ;;  %v2786_v61 = vadd.f32 %v7797_v45, %v5191_v59  ;;  %v2777_v14 = vpop.f32.mrb[249].mxu0 }
 0x2db   : > { %v3810_v63 = vadd.f32 %v7797_v45, %v5447_v60  ;;  %v3801_v0 = vpop.f32.mrb[249].mxu1  ;;  %v2778_v1 = vadd.f32 %v7797_v45, %v2777_v14  ;;  %v5192_v3 = vpop.f32.mrb[250].mxu0 }
 0x2dc   : > { %v3802_v2 = vadd.f32 %v7797_v45, %v3801_v0  ;;  %v5448_v4 = vpop.f32.mrb[250].mxu1  ;;  %4083 = vst.msk [vmem:[%s5883_s4 + $0x7d0] sm:$0xff] %vm3832_vm1, %v2786_v61  ;;  %v2789_v5 = vadd.f32 %v7797_v45, %v5192_v3  ;;  %v2780_v7 = vpop.f32.mrb[251].mxu0 }
 0x2dd   : > { %4339 = vst.msk [vmem:[%s5883_s4 + $0xfd0] sm:$0xff] %vm3832_vm1, %v3810_v63  ;;  %v3813_v6 = vadd.f32 %v7797_v45, %v5448_v4  ;;  %v3804_v8 = vpop.f32.mrb[251].mxu1  ;;  %4081 = vst.msk [vmem:[%s5883_s4 + $0x7c0] sm:$0xff] %vm3832_vm1, %v2778_v1  ;;  %v2781_v9 = vadd.f32 %v7797_v45, %v2780_v7 }
 0x2de   : > { %4337 = vst.msk [vmem:[%s5883_s4 + $0xfc0] sm:$0xff] %vm3832_vm1, %v3802_v2  ;;  %v3805_v10 = vadd.f32 %v7797_v45, %v3804_v8  ;;  %4084 = vst.msk [vmem:[%s5883_s4 + $0x7d8] sm:$0xff] %vm3832_vm1, %v2789_v5 }
 0x2df   : > { %4340 = vst.msk [vmem:[%s5883_s4 + $0xfd8] sm:$0xff] %vm3832_vm1, %v3813_v6  ;;  %4082 = vst.msk [vmem:[%s5883_s4 + $0x7c8] sm:$0xff] %vm3832_vm1, %v2781_v9 }
 0x2e0   : > { %4338 = vst.msk [vmem:[%s5883_s4 + $0xfc8] sm:$0xff] %vm3832_vm1, %v3805_v10 }
 0x2e1   : > { %v5195_v11 = vpop.f32.mrb[252].mxu0 }
 0x2e2   : > { %v5451_v12 = vpop.f32.mrb[252].mxu1  ;;  %v2802_v13 = vadd.f32 %v7797_v45, %v5195_v11  ;;  %v2793_v16 = vpop.f32.mrb[253].mxu0 }
 0x2e3   : > { %v3826_v15 = vadd.f32 %v7797_v45, %v5451_v12  ;;  %v3817_v17 = vpop.f32.mrb[253].mxu1  ;;  %v2794_v18 = vadd.f32 %v7797_v45, %v2793_v16  ;;  %v5196_v21 = vpop.f32.mrb[254].mxu0 }
 0x2e4   : > { %v3818_v19 = vadd.f32 %v7797_v45, %v3817_v17  ;;  %v5452_v22 = vpop.f32.mrb[254].mxu1  ;;  %4087 = vst.msk [vmem:[%s5883_s4 + $0x7f0] sm:$0xff] %vm3832_vm1, %v2802_v13  ;;  %v2805_v44 = vadd.f32 %v7797_v45, %v5196_v21  ;;  %v2796_v24 = vpop.f32.mrb[255].mxu0 }
 0x2e5   : > { %4343 = vst.msk [vmem:[%s5883_s4 + $0xff0] sm:$0xff] %vm3832_vm1, %v3826_v15  ;;  %v3829_v23 = vadd.f32 %v7797_v45, %v5452_v22  ;;  %v3820_v25 = vpop.f32.mrb[255].mxu1  ;;  %4085 = vst.msk [vmem:[%s5883_s4 + $0x7e0] sm:$0xff] %vm3832_vm1, %v2794_v18  ;;  %v2797_v26 = vadd.f32 %v7797_v45, %v2796_v24 }
 0x2e6   : > { %4341 = vst.msk [vmem:[%s5883_s4 + $0xfe0] sm:$0xff] %vm3832_vm1, %v3818_v19  ;;  %v3821_v27 = vadd.f32 %v7797_v45, %v3820_v25  ;;  %4088 = vst.msk [vmem:[%s5883_s4 + $0x7f8] sm:$0xff] %vm3832_vm1, %v2805_v44 }
 0x2e7   : > { %4344 = vst.msk [vmem:[%s5883_s4 + $0xff8] sm:$0xff] %vm3832_vm1, %v3829_v23  ;;  %4086 = vst.msk [vmem:[%s5883_s4 + $0x7e8] sm:$0xff] %vm3832_vm1, %v2797_v26 }
 0x2e8   : > { %4342 = vst.msk [vmem:[%s5883_s4 + $0xfe8] sm:$0xff] %vm3832_vm1, %v3821_v27 }
 0x2e9 PF: > { %s13_s12 = sadd.s32 1, %s5483_s12  }
 0x2ea   : > { %p10_p4 = scmp.ge.s32.totalorder %s13_s12, 4  }
 0x2ec   :  { %12 = sbr.rel (!%p10_p4) target bundleno = 1 (0x1), region = 62 }

</bundles_post_ra>
